<compile_context>
chip_gen: v5e
topology: v5e:2x2
jax: 0.10.0
libtpu: 0.0.40
codegen_flags: <defaults>
</compile_context>

<pallas_src>
import functools
import math

import jax
import jax.numpy as jnp
from jax.experimental import pallas as pl
from jax.experimental.pallas import tpu as pltpu

# ----------------------------------------------------------------------------
# Reduced stand-in dimensions (original BioGPT sizes in parentheses).
# ----------------------------------------------------------------------------
B       = 2
SEQ     = 128        # (max 512 tokens)
D_MODEL = 128        # (1024)
N_HEADS = 4          # (16)
D_HEAD  = D_MODEL // N_HEADS
D_FFN   = 256        # (4096)
N_LAYER = 2          # (24)
VOCAB   = 128        # (42384)
LN_EPS  = 1e-5
NEG_INF = -1e9


# ----------------------------------------------------------------------------
# Fused kernel body.  Grid = (batch, layer); runs one decoder layer for one
# example per grid step.  Activations live in a [S, D] f32 VMEM scratch.
# ----------------------------------------------------------------------------
def _encoder_kernel(ids_ref, bias_ref, embed_ref, pos_ref,
                    ln1_s_ref, ln1_b_ref, wqkv_ref, bqkv_ref, wo_ref, bo_ref,
                    ln2_s_ref, ln2_b_ref, wfc1_ref, bfc1_ref, wfc2_ref, bfc2_ref,
                    lnf_s_ref, lnf_b_ref, gate_w_ref, gate_b_ref,
                    out_ref, x_ref, *, num_heads):
    f32, bf16 = jnp.float32, jnp.bfloat16
    l = pl.program_id(1)
    n_layers = pl.num_programs(1)
    S, D = x_ref.shape
    V = embed_ref.shape[0]
    H = num_heads
    dh = D // H

    def layer_norm(x, s_ref, b_ref):
        mu = jnp.mean(x, axis=-1, keepdims=True)
        xc = x - mu
        var = jnp.mean(xc * xc, axis=-1, keepdims=True)
        return xc * jax.lax.rsqrt(var + LN_EPS) * s_ref[...] + b_ref[...]

    def split_heads(m):                 # [S, D] f32 -> [H, S, dh]
        # minor transpose + sublane-aligned split (dh % 8 == 0) + minor transpose
        return jnp.swapaxes(m.T.reshape(H, dh, S), 1, 2)

    def merge_heads(m):                 # [H, S, dh] f32 -> [S, D]
        return jnp.swapaxes(m, 1, 2).reshape(D, S).T

    # ---- embeddings (layer 0 only): one-hot MXU matmul + learned positions ----
    # TODO(synk): at real VOCAB (42384) replace the one-hot matmul with a
    # scalar-prefetched / DMA row gather from an HBM-resident embedding table.
    @pl.when(l == 0)
    def _():
        ids = ids_ref[...]                                          # [S, 1] int32
        viota = jax.lax.broadcasted_iota(jnp.int32, (S, V), 1)
        onehot = jnp.where(viota == ids, 1.0, 0.0).astype(bf16)     # [S, V]
        tok = jnp.dot(onehot, embed_ref[...], preferred_element_type=f32)
        x_ref[...] = tok * math.sqrt(D) + pos_ref[...]              # scale_embedding

    x = x_ref[...]                                                  # [S, D] f32

    # ---- self-attention (pre-LN); 1/sqrt(dh) already folded into Q weights ----
    h = layer_norm(x, ln1_s_ref, ln1_b_ref).astype(bf16)
    qkv = jnp.dot(h, wqkv_ref[...], preferred_element_type=f32) + bqkv_ref[...]
    q = split_heads(qkv[:, 0:D])                                    # [H, S, dh]
    k = split_heads(qkv[:, D:2 * D])
    v = split_heads(qkv[:, 2 * D:3 * D])
    scores = jnp.einsum('hqd,hkd->hqk', q.astype(bf16), k.astype(bf16),
                        preferred_element_type=f32)                 # [H, S, S]
    scores = scores + bias_ref[...]                                 # causal + padding
    m = jnp.max(scores, axis=-1, keepdims=True)
    e = jnp.exp(scores - m)
    p = e * pl.reciprocal(jnp.sum(e, axis=-1, keepdims=True), approx=True)
    ctx = jnp.einsum('hqk,hkd->hqd', p.astype(bf16), v.astype(bf16),
                     preferred_element_type=f32)                    # [H, S, dh]
    attn = jnp.dot(merge_heads(ctx).astype(bf16), wo_ref[...],
                   preferred_element_type=f32) + bo_ref[...]
    x = x + attn

    # ---- feed-forward (pre-LN, GELU) ----
    h = layer_norm(x, ln2_s_ref, ln2_b_ref).astype(bf16)
    f = jnp.dot(h, wfc1_ref[...], preferred_element_type=f32) + bfc1_ref[...]
    f = jax.nn.gelu(f)
    f = jnp.dot(f.astype(bf16), wfc2_ref[...], preferred_element_type=f32) + bfc2_ref[...]
    x = x + f
    x_ref[...] = x

    # ---- final LN -> unmasked mean pool -> sigmoid gate  (last layer only) ----
    @pl.when(l == n_layers - 1)
    def _():
        xf = layer_norm(x, lnf_s_ref, lnf_b_ref)                    # [S, D]
        pooled = jnp.mean(xf, axis=0, keepdims=True)                # [1, D]
        logit = (jnp.sum(pooled * gate_w_ref[...], axis=-1, keepdims=True)
                 + gate_b_ref[...])                                 # [1, 1]
        out_ref[...] = (jax.nn.sigmoid(logit) * pooled).astype(out_ref.dtype)


# ----------------------------------------------------------------------------
# Synthetic "checkpoint" (f32, torch-like layout) and load-time preparation
# (fold attention scale into Q, cast matmul weights to bf16, reshape biases).
# ----------------------------------------------------------------------------
def init_params(key):
    def nrm(k, shape, scale=0.02):
        return scale * jax.random.normal(k, shape, jnp.float32)

    ks = iter(jax.random.split(key, 8))
    p = {}
    p["embed"] = nrm(next(ks), (VOCAB, D_MODEL), 1.0)
    # TODO(synk): BioGPT's learned positions use a padding-idx offset (+2); plain
    # position indices are used for the synthetic stand-in.
    p["pos"]   = nrm(next(ks), (SEQ, D_MODEL))
    p["ln1_s"] = jnp.ones((N_LAYER, D_MODEL), jnp.float32)
    p["ln1_b"] = jnp.zeros((N_LAYER, D_MODEL), jnp.float32)
    p["w_qkv"] = nrm(next(ks), (N_LAYER, D_MODEL, 3 * D_MODEL))
    p["b_qkv"] = jnp.zeros((N_LAYER, 3 * D_MODEL), jnp.float32)
    p["w_o"]   = nrm(next(ks), (N_LAYER, D_MODEL, D_MODEL))
    p["b_o"]   = jnp.zeros((N_LAYER, D_MODEL), jnp.float32)
    p["ln2_s"] = jnp.ones((N_LAYER, D_MODEL), jnp.float32)
    p["ln2_b"] = jnp.zeros((N_LAYER, D_MODEL), jnp.float32)
    p["w_fc1"] = nrm(next(ks), (N_LAYER, D_MODEL, D_FFN))
    p["b_fc1"] = jnp.zeros((N_LAYER, D_FFN), jnp.float32)
    p["w_fc2"] = nrm(next(ks), (N_LAYER, D_FFN, D_MODEL))
    p["b_fc2"] = jnp.zeros((N_LAYER, D_MODEL), jnp.float32)
    p["lnf_s"] = jnp.ones((1, D_MODEL), jnp.float32)
    p["lnf_b"] = jnp.zeros((1, D_MODEL), jnp.float32)
    p["gate_w"] = nrm(next(ks), (1, D_MODEL))        # nn.Linear(1024, 1) weight
    p["gate_b"] = jnp.zeros((1, 1), jnp.float32)
    return p


def prepare_params(p):
    """Load-time transform: fold 1/sqrt(d_head) into the Q projection, store MXU
    weights in bf16, and reshape per-layer vectors to [L, 1, dim] for squeezed
    BlockSpecs."""
    bf = jnp.bfloat16
    scale = 1.0 / math.sqrt(D_HEAD)
    w_qkv = p["w_qkv"].at[:, :, :D_MODEL].multiply(scale)
    b_qkv = p["b_qkv"].at[:, :D_MODEL].multiply(scale)
    return {
        "embed": p["embed"].astype(bf),
        "pos":   p["pos"],
        "ln1_s": p["ln1_s"][:, None, :], "ln1_b": p["ln1_b"][:, None, :],
        "w_qkv": w_qkv.astype(bf),       "b_qkv": b_qkv[:, None, :],
        "w_o":   p["w_o"].astype(bf),    "b_o":   p["b_o"][:, None, :],
        "ln2_s": p["ln2_s"][:, None, :], "ln2_b": p["ln2_b"][:, None, :],
        "w_fc1": p["w_fc1"].astype(bf),  "b_fc1": p["b_fc1"][:, None, :],
        "w_fc2": p["w_fc2"].astype(bf),  "b_fc2": p["b_fc2"][:, None, :],
        "lnf_s": p["lnf_s"],             "lnf_b": p["lnf_b"],
        "gate_w": p["gate_w"],           "gate_b": p["gate_b"],
    }


# ----------------------------------------------------------------------------
# Public forward: one pallas_call, grid = (batch [parallel], layer [arbitrary]).
# ----------------------------------------------------------------------------
def clinical_text_encoder_forward(params, input_ids, attention_mask=None,
                                  *, num_heads=N_HEADS):
    Bq, S = input_ids.shape
    V, D = params["embed"].shape
    F = params["w_fc1"].shape[2]
    L = params["w_qkv"].shape[0]

    ids = input_ids.reshape(Bq, S, 1).astype(jnp.int32)
    if attention_mask is None:
        amask = jnp.ones((Bq, S), jnp.float32)
    else:
        amask = attention_mask.astype(jnp.float32)

    # Additive causal + key-padding bias, built once outside the kernel: [B,1,S,S].
    qpos = jnp.arange(S, dtype=jnp.int32)[:, None]
    kpos = jnp.arange(S, dtype=jnp.int32)[None, :]
    causal = kpos <= qpos                                          # [S, S]
    key_valid = amask[:, None, :] > 0.5                            # [B, 1, S]
    allowed = jnp.logical_and(causal[None, :, :], key_valid)       # [B, S, S]
    bias = jnp.where(allowed, 0.0, NEG_INF).astype(jnp.float32).reshape(Bq, 1, S, S)

    layer3 = lambda b, l: (l, 0, 0)
    const2 = lambda b, l: (0, 0)

    in_specs = [
        pl.BlockSpec((None, S, 1), lambda b, l: (b, 0, 0)),        # ids
        pl.BlockSpec((None, 1, S, S), lambda b, l: (b, 0, 0, 0)),  # attention bias
        pl.BlockSpec((V, D), const2),                              # embed (bf16)
        pl.BlockSpec((S, D), const2),                              # positions
        pl.BlockSpec((None, 1, D), layer3),                        # ln1 scale
        pl.BlockSpec((None, 1, D), layer3),                        # ln1 bias
        pl.BlockSpec((None, D, 3 * D), layer3),                    # w_qkv (bf16)
        pl.BlockSpec((None, 1, 3 * D), layer3),                    # b_qkv
        pl.BlockSpec((None, D, D), layer3),                        # w_o (bf16)
        pl.BlockSpec((None, 1, D), layer3),                        # b_o
        pl.BlockSpec((None, 1, D), layer3),                        # ln2 scale
        pl.BlockSpec((None, 1, D), layer3),                        # ln2 bias
        pl.BlockSpec((None, D, F), layer3),                        # w_fc1 (bf16)
        pl.BlockSpec((None, 1, F), layer3),                        # b_fc1
        pl.BlockSpec((None, F, D), layer3),                        # w_fc2 (bf16)
        pl.BlockSpec((None, 1, D), layer3),                        # b_fc2
        pl.BlockSpec((1, D), const2),                              # final LN scale
        pl.BlockSpec((1, D), const2),                              # final LN bias
        pl.BlockSpec((1, D), const2),                              # gate weight
        pl.BlockSpec((1, 1), const2),                              # gate bias
    ]
    out_spec = pl.BlockSpec((None, 1, D), lambda b, l: (b, 0, 0))

    kernel = functools.partial(_encoder_kernel, num_heads=num_heads)
    out = pl.pallas_call(
        kernel,
        grid_spec=pltpu.PrefetchScalarGridSpec(
            num_scalar_prefetch=0,
            grid=(Bq, L),
            in_specs=in_specs,
            out_specs=out_spec,
            scratch_shapes=[pltpu.VMEM((S, D), jnp.float32)],      # layer-carried acts
        ),
        out_shape=jax.ShapeDtypeStruct((Bq, 1, D), jnp.float32),
        compiler_params=pltpu.CompilerParams(
            dimension_semantics=("parallel", "arbitrary"),
            vmem_limit_bytes=32 * 1024 * 1024),
    )(ids, bias,
      params["embed"], params["pos"],
      params["ln1_s"], params["ln1_b"], params["w_qkv"], params["b_qkv"],
      params["w_o"], params["b_o"],
      params["ln2_s"], params["ln2_b"], params["w_fc1"], params["b_fc1"],
      params["w_fc2"], params["b_fc2"],
      params["lnf_s"], params["lnf_b"], params["gate_w"], params["gate_b"])
    return out.reshape(Bq, D)


# ----------------------------------------------------------------------------
if __name__ == "__main__":
    key = jax.random.PRNGKey(0)
    pkey, tkey = jax.random.split(key)

    params = prepare_params(init_params(pkey))
    input_ids = jax.random.randint(tkey, (B, SEQ), 0, VOCAB, dtype=jnp.int32)
    attention_mask = jnp.ones((B, SEQ), jnp.int32)

    fwd = jax.jit(clinical_text_encoder_forward)
    out = fwd(params, input_ids, attention_mask)
    jax.block_until_ready(out)

    assert out.shape == (B, D_MODEL), out.shape
    assert bool(jnp.isfinite(out).all())
    print("KERNEL_OK")
</pallas_src>

<mosaic_0001>
module attributes {stable_mosaic.version = 11 : i64} {
  func.func @_encoder_kernel(%arg0: i32, %arg1: i32, %arg2: memref<1x128x1xi32, #tpu.memory_space<vmem>>, %arg3: memref<1x1x128x128xf32, #tpu.memory_space<vmem>>, %arg4: memref<128x128xbf16, #tpu.memory_space<vmem>>, %arg5: memref<128x128xf32, #tpu.memory_space<vmem>>, %arg6: memref<1x1x128xf32, #tpu.memory_space<vmem>>, %arg7: memref<1x1x128xf32, #tpu.memory_space<vmem>>, %arg8: memref<1x128x384xbf16, #tpu.memory_space<vmem>>, %arg9: memref<1x1x384xf32, #tpu.memory_space<vmem>>, %arg10: memref<1x128x128xbf16, #tpu.memory_space<vmem>>, %arg11: memref<1x1x128xf32, #tpu.memory_space<vmem>>, %arg12: memref<1x1x128xf32, #tpu.memory_space<vmem>>, %arg13: memref<1x1x128xf32, #tpu.memory_space<vmem>>, %arg14: memref<1x128x256xbf16, #tpu.memory_space<vmem>>, %arg15: memref<1x1x256xf32, #tpu.memory_space<vmem>>, %arg16: memref<1x256x128xbf16, #tpu.memory_space<vmem>>, %arg17: memref<1x1x128xf32, #tpu.memory_space<vmem>>, %arg18: memref<1x128xf32, #tpu.memory_space<vmem>>, %arg19: memref<1x128xf32, #tpu.memory_space<vmem>>, %arg20: memref<1x128xf32, #tpu.memory_space<vmem>>, %arg21: memref<1x1xf32, #tpu.memory_space<vmem>>, %arg22: memref<1x1x128xf32, #tpu.memory_space<vmem>>, %arg23: memref<128x128xf32, #tpu.memory_space<vmem>>) attributes {dimension_semantics = [#tpu.dimension_semantics<parallel>, #tpu.dimension_semantics<arbitrary>], iteration_bounds = array<i64: 2, 2>, scalar_prefetch = 0 : i64, scratch_operands = 1 : i64, tpu.core_type = #tpu.core_type<tc>, window_params = [{transform_indices = @transform_0, window_bounds = array<i64: 1, 128, 1>}, {transform_indices = @transform_1, window_bounds = array<i64: 1, 1, 128, 128>}, {pipeline_mode = #tpu.pipeline_mode<synchronous>, transform_indices = @transform_2, window_bounds = array<i64: 128, 128>}, {pipeline_mode = #tpu.pipeline_mode<synchronous>, transform_indices = @transform_3, window_bounds = array<i64: 128, 128>}, {transform_indices = @transform_4, window_bounds = array<i64: 1, 1, 128>}, {transform_indices = @transform_5, window_bounds = array<i64: 1, 1, 128>}, {transform_indices = @transform_6, window_bounds = array<i64: 1, 128, 384>}, {transform_indices = @transform_7, window_bounds = array<i64: 1, 1, 384>}, {transform_indices = @transform_8, window_bounds = array<i64: 1, 128, 128>}, {transform_indices = @transform_9, window_bounds = array<i64: 1, 1, 128>}, {transform_indices = @transform_10, window_bounds = array<i64: 1, 1, 128>}, {transform_indices = @transform_11, window_bounds = array<i64: 1, 1, 128>}, {transform_indices = @transform_12, window_bounds = array<i64: 1, 128, 256>}, {transform_indices = @transform_13, window_bounds = array<i64: 1, 1, 256>}, {transform_indices = @transform_14, window_bounds = array<i64: 1, 256, 128>}, {transform_indices = @transform_15, window_bounds = array<i64: 1, 1, 128>}, {pipeline_mode = #tpu.pipeline_mode<synchronous>, transform_indices = @transform_16, window_bounds = array<i64: 1, 128>}, {pipeline_mode = #tpu.pipeline_mode<synchronous>, transform_indices = @transform_17, window_bounds = array<i64: 1, 128>}, {pipeline_mode = #tpu.pipeline_mode<synchronous>, transform_indices = @transform_18, window_bounds = array<i64: 1, 128>}, {pipeline_mode = #tpu.pipeline_mode<synchronous>, transform_indices = @transform_19, window_bounds = array<i64: 1, 1>}, {transform_indices = @transform_20, window_bounds = array<i64: 1, 1, 128>}]} {
    %c0_i32 = arith.constant 0 : i32
    %0 = arith.cmpi eq, %arg1, %c0_i32 : i32
    %1 = arith.extui %0 : i1 to i32
    %c0_i32_0 = arith.constant 0 : i32
    %2 = arith.cmpi ne, %1, %c0_i32_0 : i32
    scf.if %2 {
      %c0_66 = arith.constant 0 : index
      %c0_67 = arith.constant 0 : index
      %c0_68 = arith.constant 0 : index
      %138 = vector.load %arg2[%c0_66, %c0_67, %c0_68] : memref<1x128x1xi32, #tpu.memory_space<vmem>>, vector<1x128x1xi32>
      %139 = vector.shape_cast %138 : vector<1x128x1xi32> to vector<128x1xi32>
      %140 = tpu.iota {dimensions = array<i32: 1>} : vector<128x128xi32>
      %141 = vector.broadcast %139 : vector<128x1xi32> to vector<128x128xi32>
      %142 = arith.cmpi eq, %140, %141 : vector<128x128xi32>
      %cst_69 = arith.constant 1.000000e+00 : f32
      %cst_70 = arith.constant 0.000000e+00 : f32
      %143 = vector.broadcast %cst_69 : f32 to vector<128x128xf32>
      %144 = vector.broadcast %cst_70 : f32 to vector<128x128xf32>
      %145 = arith.select %142, %143, %144 : vector<128x128xi1>, vector<128x128xf32>
      %146 = arith.truncf %145 : vector<128x128xf32> to vector<128x128xbf16>
      %c0_71 = arith.constant 0 : index
      %c0_72 = arith.constant 0 : index
      %147 = vector.load %arg4[%c0_71, %c0_72] : memref<128x128xbf16, #tpu.memory_space<vmem>>, vector<128x128xbf16>
      %cst_73 = arith.constant dense<0.000000e+00> : vector<128x128xf32>
      %148 = tpu.matmul %146, %147, %cst_73 {dimension_numbers = #tpu.dot_dimension_numbers<[1], [0], [0], [1], [0, 0, 1, 1], [], []>} : vector<128x128xbf16>, vector<128x128xbf16>, vector<128x128xf32> -> vector<128x128xf32>
      %cst_74 = arith.constant 11.3137083 : f32
      %149 = vector.broadcast %cst_74 : f32 to vector<128x128xf32>
      %150 = arith.mulf %148, %149 : vector<128x128xf32>
      %c0_75 = arith.constant 0 : index
      %c0_76 = arith.constant 0 : index
      %151 = vector.load %arg5[%c0_75, %c0_76] : memref<128x128xf32, #tpu.memory_space<vmem>>, vector<128x128xf32>
      %152 = arith.addf %150, %151 : vector<128x128xf32>
      %c0_77 = arith.constant 0 : index
      %c0_78 = arith.constant 0 : index
      %153 = vector.load %arg23[%c0_77, %c0_78] : memref<128x128xf32, #tpu.memory_space<vmem>>, vector<128x128xf32>
      tpu.vector_store %arg23[%c0_77, %c0_78], %152 {strides = array<i32>} : memref<128x128xf32, #tpu.memory_space<vmem>>, vector<128x128xf32>,
    } else {
    }
    %c0 = arith.constant 0 : index
    %c0_1 = arith.constant 0 : index
    %3 = vector.load %arg23[%c0, %c0_1] : memref<128x128xf32, #tpu.memory_space<vmem>>, vector<128x128xf32>
    %cst = arith.constant dense<0.000000e+00> : vector<128xf32>
    %4 = vector.multi_reduction <add>, %3, %cst [1] : vector<128x128xf32> to vector<128xf32>
    %5 = vector.shape_cast %4 : vector<128xf32> to vector<128x1xf32>
    %cst_2 = arith.constant 1.280000e+02 : f32
    %6 = vector.broadcast %cst_2 : f32 to vector<128x1xf32>
    %7 = arith.divf %5, %6 : vector<128x1xf32>
    %8 = vector.broadcast %7 : vector<128x1xf32> to vector<128x128xf32>
    %9 = arith.subf %3, %8 : vector<128x128xf32>
    %10 = arith.mulf %9, %9 : vector<128x128xf32>
    %cst_3 = arith.constant dense<0.000000e+00> : vector<128xf32>
    %11 = vector.multi_reduction <add>, %10, %cst_3 [1] : vector<128x128xf32> to vector<128xf32>
    %12 = vector.shape_cast %11 : vector<128xf32> to vector<128x1xf32>
    %cst_4 = arith.constant 1.280000e+02 : f32
    %13 = vector.broadcast %cst_4 : f32 to vector<128x1xf32>
    %14 = arith.divf %12, %13 : vector<128x1xf32>
    %cst_5 = arith.constant 9.99999974E-6 : f32
    %15 = vector.broadcast %cst_5 : f32 to vector<128x1xf32>
    %16 = arith.addf %14, %15 : vector<128x1xf32>
    %17 = math.rsqrt %16 : vector<128x1xf32>
    %18 = vector.broadcast %17 : vector<128x1xf32> to vector<128x128xf32>
    %19 = arith.mulf %9, %18 : vector<128x128xf32>
    %c0_6 = arith.constant 0 : index
    %c0_7 = arith.constant 0 : index
    %c0_8 = arith.constant 0 : index
    %20 = vector.load %arg6[%c0_6, %c0_7, %c0_8] : memref<1x1x128xf32, #tpu.memory_space<vmem>>, vector<1x1x128xf32>
    %21 = vector.shape_cast %20 : vector<1x1x128xf32> to vector<1x128xf32>
    %22 = vector.broadcast %21 : vector<1x128xf32> to vector<128x128xf32>
    %23 = arith.mulf %19, %22 : vector<128x128xf32>
    %c0_9 = arith.constant 0 : index
    %c0_10 = arith.constant 0 : index
    %c0_11 = arith.constant 0 : index
    %24 = vector.load %arg7[%c0_9, %c0_10, %c0_11] : memref<1x1x128xf32, #tpu.memory_space<vmem>>, vector<1x1x128xf32>
    %25 = vector.shape_cast %24 : vector<1x1x128xf32> to vector<1x128xf32>
    %26 = vector.broadcast %25 : vector<1x128xf32> to vector<128x128xf32>
    %27 = arith.addf %23, %26 : vector<128x128xf32>
    %28 = arith.truncf %27 : vector<128x128xf32> to vector<128x128xbf16>
    %c0_12 = arith.constant 0 : index
    %c0_13 = arith.constant 0 : index
    %c0_14 = arith.constant 0 : index
    %29 = vector.load %arg8[%c0_12, %c0_13, %c0_14] : memref<1x128x384xbf16, #tpu.memory_space<vmem>>, vector<1x128x384xbf16>
    %30 = vector.shape_cast %29 : vector<1x128x384xbf16> to vector<128x384xbf16>
    %cst_15 = arith.constant dense<0.000000e+00> : vector<128x384xf32>
    %31 = tpu.matmul %28, %30, %cst_15 {dimension_numbers = #tpu.dot_dimension_numbers<[1], [0], [0], [1], [0, 0, 1, 1], [], []>} : vector<128x128xbf16>, vector<128x384xbf16>, vector<128x384xf32> -> vector<128x384xf32>
    %c0_16 = arith.constant 0 : index
    %c0_17 = arith.constant 0 : index
    %c0_18 = arith.constant 0 : index
    %32 = vector.load %arg9[%c0_16, %c0_17, %c0_18] : memref<1x1x384xf32, #tpu.memory_space<vmem>>, vector<1x1x384xf32>
    %33 = vector.shape_cast %32 : vector<1x1x384xf32> to vector<1x384xf32>
    %34 = vector.broadcast %33 : vector<1x384xf32> to vector<128x384xf32>
    %35 = arith.addf %31, %34 : vector<128x384xf32>
    %36 = vector.extract_strided_slice %35 {offsets = [0, 0], sizes = [128, 128], strides = [1, 1]} : vector<128x384xf32> to vector<128x128xf32>
    %37 = tpu.transpose %36, [1, 0] : vector<128x128xf32> -> vector<128x128xf32>
    %38 = vector.shape_cast %37 : vector<128x128xf32> to vector<4x32x128xf32>
    %39 = tpu.transpose %38, [0, 2, 1] : vector<4x32x128xf32> -> vector<4x128x32xf32>
    %40 = vector.extract_strided_slice %35 {offsets = [0, 128], sizes = [128, 128], strides = [1, 1]} : vector<128x384xf32> to vector<128x128xf32>
    %41 = tpu.transpose %40, [1, 0] : vector<128x128xf32> -> vector<128x128xf32>
    %42 = vector.shape_cast %41 : vector<128x128xf32> to vector<4x32x128xf32>
    %43 = tpu.transpose %42, [0, 2, 1] : vector<4x32x128xf32> -> vector<4x128x32xf32>
    %44 = vector.extract_strided_slice %35 {offsets = [0, 256], sizes = [128, 128], strides = [1, 1]} : vector<128x384xf32> to vector<128x128xf32>
    %45 = tpu.transpose %44, [1, 0] : vector<128x128xf32> -> vector<128x128xf32>
    %46 = vector.shape_cast %45 : vector<128x128xf32> to vector<4x32x128xf32>
    %47 = tpu.transpose %46, [0, 2, 1] : vector<4x32x128xf32> -> vector<4x128x32xf32>
    %48 = arith.truncf %39 : vector<4x128x32xf32> to vector<4x128x32xbf16>
    %49 = arith.truncf %43 : vector<4x128x32xf32> to vector<4x128x32xbf16>
    "tpu.trace_start"() <{level = 10 : i32, message = "hqd,hkd->hqk"}> : () -> ()
    %cst_19 = arith.constant dense<0.000000e+00> : vector<4x128x128xf32>
    %50 = tpu.matmul %48, %49, %cst_19 {dimension_numbers = #tpu.dot_dimension_numbers<[2], [2], [1], [1], [0, 0, 0, 1, 1, 1], [0], [0]>} : vector<4x128x32xbf16>, vector<4x128x32xbf16>, vector<4x128x128xf32> -> vector<4x128x128xf32>
    "tpu.trace_stop"() : () -> ()
    %c0_20 = arith.constant 0 : index
    %c0_21 = arith.constant 0 : index
    %c0_22 = arith.constant 0 : index
    %c0_23 = arith.constant 0 : index
    %51 = vector.load %arg3[%c0_20, %c0_21, %c0_22, %c0_23] : memref<1x1x128x128xf32, #tpu.memory_space<vmem>>, vector<1x1x128x128xf32>
    %52 = vector.shape_cast %51 : vector<1x1x128x128xf32> to vector<1x128x128xf32>
    %53 = vector.broadcast %52 : vector<1x128x128xf32> to vector<4x128x128xf32>
    %54 = arith.addf %50, %53 : vector<4x128x128xf32>
    %cst_24 = arith.constant dense<0xFF800000> : vector<4x128xf32>
    %55 = vector.multi_reduction <maximumf>, %54, %cst_24 [2] : vector<4x128x128xf32> to vector<4x128xf32>
    %56 = vector.shape_cast %55 : vector<4x128xf32> to vector<4x128x1xf32>
    %57 = vector.broadcast %56 : vector<4x128x1xf32> to vector<4x128x128xf32>
    %58 = arith.subf %54, %57 : vector<4x128x128xf32>
    %59 = math.exp %58 : vector<4x128x128xf32>
    %cst_25 = arith.constant dense<0.000000e+00> : vector<4x128xf32>
    %60 = vector.multi_reduction <add>, %59, %cst_25 [2] : vector<4x128x128xf32> to vector<4x128xf32>
    %61 = vector.shape_cast %60 : vector<4x128xf32> to vector<4x128x1xf32>
    %62 = tpu.reciprocal %61 {approx = true} : vector<4x128x1xf32> -> vector<4x128x1xf32>
    %63 = vector.broadcast %62 : vector<4x128x1xf32> to vector<4x128x128xf32>
    %64 = arith.mulf %59, %63 : vector<4x128x128xf32>
    %65 = arith.truncf %64 : vector<4x128x128xf32> to vector<4x128x128xbf16>
    %66 = arith.truncf %47 : vector<4x128x32xf32> to vector<4x128x32xbf16>
    "tpu.trace_start"() <{level = 10 : i32, message = "hqk,hkd->hqd"}> : () -> ()
    %cst_26 = arith.constant dense<0.000000e+00> : vector<4x128x32xf32>
    %67 = tpu.matmul %65, %66, %cst_26 {dimension_numbers = #tpu.dot_dimension_numbers<[2], [1], [1], [2], [0, 0, 0, 1, 1, 2], [0], [0]>} : vector<4x128x128xbf16>, vector<4x128x32xbf16>, vector<4x128x32xf32> -> vector<4x128x32xf32>
    "tpu.trace_stop"() : () -> ()
    %68 = tpu.transpose %67, [0, 2, 1] : vector<4x128x32xf32> -> vector<4x32x128xf32>
    %69 = vector.shape_cast %68 : vector<4x32x128xf32> to vector<128x128xf32>
    %70 = tpu.transpose %69, [1, 0] : vector<128x128xf32> -> vector<128x128xf32>
    %71 = arith.truncf %70 : vector<128x128xf32> to vector<128x128xbf16>
    %c0_27 = arith.constant 0 : index
    %c0_28 = arith.constant 0 : index
    %c0_29 = arith.constant 0 : index
    %72 = vector.load %arg10[%c0_27, %c0_28, %c0_29] : memref<1x128x128xbf16, #tpu.memory_space<vmem>>, vector<1x128x128xbf16>
    %73 = vector.shape_cast %72 : vector<1x128x128xbf16> to vector<128x128xbf16>
    %cst_30 = arith.constant dense<0.000000e+00> : vector<128x128xf32>
    %74 = tpu.matmul %71, %73, %cst_30 {dimension_numbers = #tpu.dot_dimension_numbers<[1], [0], [0], [1], [0, 0, 1, 1], [], []>} : vector<128x128xbf16>, vector<128x128xbf16>, vector<128x128xf32> -> vector<128x128xf32>
    %c0_31 = arith.constant 0 : index
    %c0_32 = arith.constant 0 : index
    %c0_33 = arith.constant 0 : index
    %75 = vector.load %arg11[%c0_31, %c0_32, %c0_33] : memref<1x1x128xf32, #tpu.memory_space<vmem>>, vector<1x1x128xf32>
    %76 = vector.shape_cast %75 : vector<1x1x128xf32> to vector<1x128xf32>
    %77 = vector.broadcast %76 : vector<1x128xf32> to vector<128x128xf32>
    %78 = arith.addf %74, %77 : vector<128x128xf32>
    %79 = arith.addf %3, %78 : vector<128x128xf32>
    %cst_34 = arith.constant dense<0.000000e+00> : vector<128xf32>
    %80 = vector.multi_reduction <add>, %79, %cst_34 [1] : vector<128x128xf32> to vector<128xf32>
    %81 = vector.shape_cast %80 : vector<128xf32> to vector<128x1xf32>
    %cst_35 = arith.constant 1.280000e+02 : f32
    %82 = vector.broadcast %cst_35 : f32 to vector<128x1xf32>
    %83 = arith.divf %81, %82 : vector<128x1xf32>
    %84 = vector.broadcast %83 : vector<128x1xf32> to vector<128x128xf32>
    %85 = arith.subf %79, %84 : vector<128x128xf32>
    %86 = arith.mulf %85, %85 : vector<128x128xf32>
    %cst_36 = arith.constant dense<0.000000e+00> : vector<128xf32>
    %87 = vector.multi_reduction <add>, %86, %cst_36 [1] : vector<128x128xf32> to vector<128xf32>
    %88 = vector.shape_cast %87 : vector<128xf32> to vector<128x1xf32>
    %cst_37 = arith.constant 1.280000e+02 : f32
    %89 = vector.broadcast %cst_37 : f32 to vector<128x1xf32>
    %90 = arith.divf %88, %89 : vector<128x1xf32>
    %cst_38 = arith.constant 9.99999974E-6 : f32
    %91 = vector.broadcast %cst_38 : f32 to vector<128x1xf32>
    %92 = arith.addf %90, %91 : vector<128x1xf32>
    %93 = math.rsqrt %92 : vector<128x1xf32>
    %94 = vector.broadcast %93 : vector<128x1xf32> to vector<128x128xf32>
    %95 = arith.mulf %85, %94 : vector<128x128xf32>
    %c0_39 = arith.constant 0 : index
    %c0_40 = arith.constant 0 : index
    %c0_41 = arith.constant 0 : index
    %96 = vector.load %arg12[%c0_39, %c0_40, %c0_41] : memref<1x1x128xf32, #tpu.memory_space<vmem>>, vector<1x1x128xf32>
    %97 = vector.shape_cast %96 : vector<1x1x128xf32> to vector<1x128xf32>
    %98 = vector.broadcast %97 : vector<1x128xf32> to vector<128x128xf32>
    %99 = arith.mulf %95, %98 : vector<128x128xf32>
    %c0_42 = arith.constant 0 : index
    %c0_43 = arith.constant 0 : index
    %c0_44 = arith.constant 0 : index
    %100 = vector.load %arg13[%c0_42, %c0_43, %c0_44] : memref<1x1x128xf32, #tpu.memory_space<vmem>>, vector<1x1x128xf32>
    %101 = vector.shape_cast %100 : vector<1x1x128xf32> to vector<1x128xf32>
    %102 = vector.broadcast %101 : vector<1x128xf32> to vector<128x128xf32>
    %103 = arith.addf %99, %102 : vector<128x128xf32>
    %104 = arith.truncf %103 : vector<128x128xf32> to vector<128x128xbf16>
    %c0_45 = arith.constant 0 : index
    %c0_46 = arith.constant 0 : index
    %c0_47 = arith.constant 0 : index
    %105 = vector.load %arg14[%c0_45, %c0_46, %c0_47] : memref<1x128x256xbf16, #tpu.memory_space<vmem>>, vector<1x128x256xbf16>
    %106 = vector.shape_cast %105 : vector<1x128x256xbf16> to vector<128x256xbf16>
    %cst_48 = arith.constant dense<0.000000e+00> : vector<128x256xf32>
    %107 = tpu.matmul %104, %106, %cst_48 {dimension_numbers = #tpu.dot_dimension_numbers<[1], [0], [0], [1], [0, 0, 1, 1], [], []>} : vector<128x128xbf16>, vector<128x256xbf16>, vector<128x256xf32> -> vector<128x256xf32>
    %c0_49 = arith.constant 0 : index
    %c0_50 = arith.constant 0 : index
    %c0_51 = arith.constant 0 : index
    %108 = vector.load %arg15[%c0_49, %c0_50, %c0_51] : memref<1x1x256xf32, #tpu.memory_space<vmem>>, vector<1x1x256xf32>
    %109 = vector.shape_cast %108 : vector<1x1x256xf32> to vector<1x256xf32>
    %110 = vector.broadcast %109 : vector<1x256xf32> to vector<128x256xf32>
    %111 = arith.addf %107, %110 : vector<128x256xf32>
    %112 = arith.mulf %111, %111 : vector<128x256xf32>
    %113 = arith.mulf %111, %112 : vector<128x256xf32>
    %cst_52 = arith.constant 4.471500e-02 : f32
    %114 = vector.broadcast %cst_52 : f32 to vector<128x256xf32>
    %115 = arith.mulf %114, %113 : vector<128x256xf32>
    %116 = arith.addf %111, %115 : vector<128x256xf32>
    %cst_53 = arith.constant 0.797884583 : f32
    %117 = vector.broadcast %cst_53 : f32 to vector<128x256xf32>
    %118 = arith.mulf %117, %116 : vector<128x256xf32>
    %119 = math.tanh %118 : vector<128x256xf32>
    %cst_54 = arith.constant 1.000000e+00 : f32
    %120 = vector.broadcast %cst_54 : f32 to vector<128x256xf32>
    %121 = arith.addf %120, %119 : vector<128x256xf32>
    %cst_55 = arith.constant 5.000000e-01 : f32
    %122 = vector.broadcast %cst_55 : f32 to vector<128x256xf32>
    %123 = arith.mulf %122, %121 : vector<128x256xf32>
    %124 = arith.mulf %111, %123 : vector<128x256xf32>
    %125 = arith.truncf %124 : vector<128x256xf32> to vector<128x256xbf16>
    %c0_56 = arith.constant 0 : index
    %c0_57 = arith.constant 0 : index
    %c0_58 = arith.constant 0 : index
    %126 = vector.load %arg16[%c0_56, %c0_57, %c0_58] : memref<1x256x128xbf16, #tpu.memory_space<vmem>>, vector<1x256x128xbf16>
    %127 = vector.shape_cast %126 : vector<1x256x128xbf16> to vector<256x128xbf16>
    %cst_59 = arith.constant dense<0.000000e+00> : vector<128x128xf32>
    %128 = tpu.matmul %125, %127, %cst_59 {dimension_numbers = #tpu.dot_dimension_numbers<[1], [0], [0], [1], [0, 0, 1, 1], [], []>} : vector<128x256xbf16>, vector<256x128xbf16>, vector<128x128xf32> -> vector<128x128xf32>
    %c0_60 = arith.constant 0 : index
    %c0_61 = arith.constant 0 : index
    %c0_62 = arith.constant 0 : index
    %129 = vector.load %arg17[%c0_60, %c0_61, %c0_62] : memref<1x1x128xf32, #tpu.memory_space<vmem>>, vector<1x1x128xf32>
    %130 = vector.shape_cast %129 : vector<1x1x128xf32> to vector<1x128xf32>
    %131 = vector.broadcast %130 : vector<1x128xf32> to vector<128x128xf32>
    %132 = arith.addf %128, %131 : vector<128x128xf32>
    %133 = arith.addf %79, %132 : vector<128x128xf32>
    %c0_63 = arith.constant 0 : index
    %c0_64 = arith.constant 0 : index
    %134 = vector.load %arg23[%c0_63, %c0_64] : memref<128x128xf32, #tpu.memory_space<vmem>>, vector<128x128xf32>
    tpu.vector_store %arg23[%c0_63, %c0_64], %133 {strides = array<i32>} : memref<128x128xf32, #tpu.memory_space<vmem>>, vector<128x128xf32>,
    %c1_i32 = arith.constant 1 : i32
    %135 = arith.cmpi eq, %arg1, %c1_i32 : i32
    %136 = arith.extui %135 : i1 to i32
    %c0_i32_65 = arith.constant 0 : i32
    %137 = arith.cmpi ne, %136, %c0_i32_65 : i32
    scf.if %137 {
      %cst_66 = arith.constant dense<0.000000e+00> : vector<128xf32>
      %138 = vector.multi_reduction <add>, %133, %cst_66 [1] : vector<128x128xf32> to vector<128xf32>
      %139 = vector.shape_cast %138 : vector<128xf32> to vector<128x1xf32>
      %cst_67 = arith.constant 1.280000e+02 : f32
      %140 = vector.broadcast %cst_67 : f32 to vector<128x1xf32>
      %141 = arith.divf %139, %140 : vector<128x1xf32>
      %142 = vector.broadcast %141 : vector<128x1xf32> to vector<128x128xf32>
      %143 = arith.subf %133, %142 : vector<128x128xf32>
      %144 = arith.mulf %143, %143 : vector<128x128xf32>
      %cst_68 = arith.constant dense<0.000000e+00> : vector<128xf32>
      %145 = vector.multi_reduction <add>, %144, %cst_68 [1] : vector<128x128xf32> to vector<128xf32>
      %146 = vector.shape_cast %145 : vector<128xf32> to vector<128x1xf32>
      %cst_69 = arith.constant 1.280000e+02 : f32
      %147 = vector.broadcast %cst_69 : f32 to vector<128x1xf32>
      %148 = arith.divf %146, %147 : vector<128x1xf32>
      %cst_70 = arith.constant 9.99999974E-6 : f32
      %149 = vector.broadcast %cst_70 : f32 to vector<128x1xf32>
      %150 = arith.addf %148, %149 : vector<128x1xf32>
      %151 = math.rsqrt %150 : vector<128x1xf32>
      %152 = vector.broadcast %151 : vector<128x1xf32> to vector<128x128xf32>
      %153 = arith.mulf %143, %152 : vector<128x128xf32>
      %c0_71 = arith.constant 0 : index
      %c0_72 = arith.constant 0 : index
      %154 = vector.load %arg18[%c0_71, %c0_72] : memref<1x128xf32, #tpu.memory_space<vmem>>, vector<1x128xf32>
      %155 = vector.broadcast %154 : vector<1x128xf32> to vector<128x128xf32>
      %156 = arith.mulf %153, %155 : vector<128x128xf32>
      %c0_73 = arith.constant 0 : index
      %c0_74 = arith.constant 0 : index
      %157 = vector.load %arg19[%c0_73, %c0_74] : memref<1x128xf32, #tpu.memory_space<vmem>>, vector<1x128xf32>
      %158 = vector.broadcast %157 : vector<1x128xf32> to vector<128x128xf32>
      %159 = arith.addf %156, %158 : vector<128x128xf32>
      %cst_75 = arith.constant dense<0.000000e+00> : vector<128xf32>
      %160 = vector.multi_reduction <add>, %159, %cst_75 [0] : vector<128x128xf32> to vector<128xf32>
      %161 = vector.shape_cast %160 : vector<128xf32> to vector<1x128xf32>
      %cst_76 = arith.constant 1.280000e+02 : f32
      %162 = vector.broadcast %cst_76 : f32 to vector<1x128xf32>
      %163 = arith.divf %161, %162 : vector<1x128xf32>
      %c0_77 = arith.constant 0 : index
      %c0_78 = arith.constant 0 : index
      %164 = vector.load %arg20[%c0_77, %c0_78] : memref<1x128xf32, #tpu.memory_space<vmem>>, vector<1x128xf32>
      %165 = arith.mulf %163, %164 : vector<1x128xf32>
      %cst_79 = arith.constant dense<0.000000e+00> : vector<1xf32>
      %166 = vector.multi_reduction <add>, %165, %cst_79 [1] : vector<1x128xf32> to vector<1xf32>
      %167 = vector.shape_cast %166 : vector<1xf32> to vector<1x1xf32>
      %c0_80 = arith.constant 0 : index
      %c0_81 = arith.constant 0 : index
      %168 = vector.load %arg21[%c0_80, %c0_81] : memref<1x1xf32, #tpu.memory_space<vmem>>, vector<1x1xf32>
      %169 = arith.addf %167, %168 : vector<1x1xf32>
      %170 = arith.negf %169 : vector<1x1xf32>
      %171 = math.exp %170 : vector<1x1xf32>
      %cst_82 = arith.constant 1.000000e+00 : f32
      %172 = vector.broadcast %cst_82 : f32 to vector<1x1xf32>
      %173 = arith.addf %172, %171 : vector<1x1xf32>
      %174 = arith.divf %172, %173 : vector<1x1xf32>
      %175 = vector.broadcast %174 : vector<1x1xf32> to vector<1x128xf32>
      %176 = arith.mulf %175, %163 : vector<1x128xf32>
      %c0_83 = arith.constant 0 : index
      %c0_84 = arith.constant 0 : index
      %c0_85 = arith.constant 0 : index
      %177 = vector.load %arg22[%c0_83, %c0_84, %c0_85] : memref<1x1x128xf32, #tpu.memory_space<vmem>>, vector<1x1x128xf32>
      %178 = vector.shape_cast %177 : vector<1x1x128xf32> to vector<1x128xf32>
      %179 = vector.shape_cast %176 : vector<1x128xf32> to vector<1x1x128xf32>
      tpu.vector_store %arg22[%c0_83, %c0_84, %c0_85], %179 {strides = array<i32>} : memref<1x1x128xf32, #tpu.memory_space<vmem>>, vector<1x1x128xf32>,
    } else {
    }
    return
  }
  func.func @transform_0(%arg0: i32, %arg1: i32) -> (i32, i32, i32) {
    %c0_i32 = arith.constant 0 : i32
    %c0_i32_0 = arith.constant 0 : i32
    %c0_i32_1 = arith.constant 0 : i32
    return %arg0, %c0_i32, %c0_i32_0 : i32, i32, i32
  }
  func.func @transform_1(%arg0: i32, %arg1: i32) -> (i32, i32, i32, i32) {
    %c0_i32 = arith.constant 0 : i32
    %c0_i32_0 = arith.constant 0 : i32
    %c0_i32_1 = arith.constant 0 : i32
    %c0_i32_2 = arith.constant 0 : i32
    return %arg0, %c0_i32, %c0_i32_0, %c0_i32_1 : i32, i32, i32, i32
  }
  func.func @transform_2(%arg0: i32, %arg1: i32) -> (i32, i32) {
    %c0_i32 = arith.constant 0 : i32
    %c0_i32_0 = arith.constant 0 : i32
    %c0_i32_1 = arith.constant 0 : i32
    return %c0_i32, %c0_i32_0 : i32, i32
  }
  func.func @transform_3(%arg0: i32, %arg1: i32) -> (i32, i32) {
    %c0_i32 = arith.constant 0 : i32
    %c0_i32_0 = arith.constant 0 : i32
    %c0_i32_1 = arith.constant 0 : i32
    return %c0_i32, %c0_i32_0 : i32, i32
  }
  func.func @transform_4(%arg0: i32, %arg1: i32) -> (i32, i32, i32) {
    %c0_i32 = arith.constant 0 : i32
    %c0_i32_0 = arith.constant 0 : i32
    %c0_i32_1 = arith.constant 0 : i32
    return %arg1, %c0_i32, %c0_i32_0 : i32, i32, i32
  }
  func.func @transform_5(%arg0: i32, %arg1: i32) -> (i32, i32, i32) {
    %c0_i32 = arith.constant 0 : i32
    %c0_i32_0 = arith.constant 0 : i32
    %c0_i32_1 = arith.constant 0 : i32
    return %arg1, %c0_i32, %c0_i32_0 : i32, i32, i32
  }
  func.func @transform_6(%arg0: i32, %arg1: i32) -> (i32, i32, i32) {
    %c0_i32 = arith.constant 0 : i32
    %c0_i32_0 = arith.constant 0 : i32
    %c0_i32_1 = arith.constant 0 : i32
    return %arg1, %c0_i32, %c0_i32_0 : i32, i32, i32
  }
  func.func @transform_7(%arg0: i32, %arg1: i32) -> (i32, i32, i32) {
    %c0_i32 = arith.constant 0 : i32
    %c0_i32_0 = arith.constant 0 : i32
    %c0_i32_1 = arith.constant 0 : i32
    return %arg1, %c0_i32, %c0_i32_0 : i32, i32, i32
  }
  func.func @transform_8(%arg0: i32, %arg1: i32) -> (i32, i32, i32) {
    %c0_i32 = arith.constant 0 : i32
    %c0_i32_0 = arith.constant 0 : i32
    %c0_i32_1 = arith.constant 0 : i32
    return %arg1, %c0_i32, %c0_i32_0 : i32, i32, i32
  }
  func.func @transform_9(%arg0: i32, %arg1: i32) -> (i32, i32, i32) {
    %c0_i32 = arith.constant 0 : i32
    %c0_i32_0 = arith.constant 0 : i32
    %c0_i32_1 = arith.constant 0 : i32
    return %arg1, %c0_i32, %c0_i32_0 : i32, i32, i32
  }
  func.func @transform_10(%arg0: i32, %arg1: i32) -> (i32, i32, i32) {
    %c0_i32 = arith.constant 0 : i32
    %c0_i32_0 = arith.constant 0 : i32
    %c0_i32_1 = arith.constant 0 : i32
    return %arg1, %c0_i32, %c0_i32_0 : i32, i32, i32
  }
  func.func @transform_11(%arg0: i32, %arg1: i32) -> (i32, i32, i32) {
    %c0_i32 = arith.constant 0 : i32
    %c0_i32_0 = arith.constant 0 : i32
    %c0_i32_1 = arith.constant 0 : i32
    return %arg1, %c0_i32, %c0_i32_0 : i32, i32, i32
  }
  func.func @transform_12(%arg0: i32, %arg1: i32) -> (i32, i32, i32) {
    %c0_i32 = arith.constant 0 : i32
    %c0_i32_0 = arith.constant 0 : i32
    %c0_i32_1 = arith.constant 0 : i32
    return %arg1, %c0_i32, %c0_i32_0 : i32, i32, i32
  }
  func.func @transform_13(%arg0: i32, %arg1: i32) -> (i32, i32, i32) {
    %c0_i32 = arith.constant 0 : i32
    %c0_i32_0 = arith.constant 0 : i32
    %c0_i32_1 = arith.constant 0 : i32
    return %arg1, %c0_i32, %c0_i32_0 : i32, i32, i32
  }
  func.func @transform_14(%arg0: i32, %arg1: i32) -> (i32, i32, i32) {
    %c0_i32 = arith.constant 0 : i32
    %c0_i32_0 = arith.constant 0 : i32
    %c0_i32_1 = arith.constant 0 : i32
    return %arg1, %c0_i32, %c0_i32_0 : i32, i32, i32
  }
  func.func @transform_15(%arg0: i32, %arg1: i32) -> (i32, i32, i32) {
    %c0_i32 = arith.constant 0 : i32
    %c0_i32_0 = arith.constant 0 : i32
    %c0_i32_1 = arith.constant 0 : i32
    return %arg1, %c0_i32, %c0_i32_0 : i32, i32, i32
  }
  func.func @transform_16(%arg0: i32, %arg1: i32) -> (i32, i32) {
    %c0_i32 = arith.constant 0 : i32
    %c0_i32_0 = arith.constant 0 : i32
    %c0_i32_1 = arith.constant 0 : i32
    return %c0_i32, %c0_i32_0 : i32, i32
  }
  func.func @transform_17(%arg0: i32, %arg1: i32) -> (i32, i32) {
    %c0_i32 = arith.constant 0 : i32
    %c0_i32_0 = arith.constant 0 : i32
    %c0_i32_1 = arith.constant 0 : i32
    return %c0_i32, %c0_i32_0 : i32, i32
  }
  func.func @transform_18(%arg0: i32, %arg1: i32) -> (i32, i32) {
    %c0_i32 = arith.constant 0 : i32
    %c0_i32_0 = arith.constant 0 : i32
    %c0_i32_1 = arith.constant 0 : i32
    return %c0_i32, %c0_i32_0 : i32, i32
  }
  func.func @transform_19(%arg0: i32, %arg1: i32) -> (i32, i32) {
    %c0_i32 = arith.constant 0 : i32
    %c0_i32_0 = arith.constant 0 : i32
    %c0_i32_1 = arith.constant 0 : i32
    return %c0_i32, %c0_i32_0 : i32, i32
  }
  func.func @transform_20(%arg0: i32, %arg1: i32) -> (i32, i32, i32) {
    %c0_i32 = arith.constant 0 : i32
    %c0_i32_0 = arith.constant 0 : i32
    %c0_i32_1 = arith.constant 0 : i32
    return %arg0, %c0_i32, %c0_i32_0 : i32, i32, i32
  }
}

</mosaic_0001>

<bundles_post_ra>
// kernel: clinical_text_encoder_forward.1
= control target key start
LH: loop header
LB: loop body
LE: loop exit
PB: predicated region body
PF: predicated region fallthrough
CT: control target
= control target key end

     0   :  { %s12470_s0 = inlined_call_operand.vmem [shape: s32[2,128,1], index: 0, kind: input, shape index: {}]   ;;  %s12471_s1 = inlined_call_operand.vmem [shape: f32[2,1,128,128], index: 1, kind: input, shape index: {}]   ;;  %s12472_s2 = inlined_call_operand.vmem [shape: bf16[128,128], index: 2, kind: input, shape index: {}]   ;;  %s12473_s3 = inlined_call_operand.vmem [shape: f32[128,128], index: 3, kind: input, shape index: {}]   ;;  %s12474_s4 = inlined_call_operand.vmem [shape: f32[2,1,128], index: 4, kind: input, shape index: {}]   ;;  %s12475_s5 = inlined_call_operand.hbm [shape: f32[2,1,128], index: 5, kind: input, shape index: {}]   ;;  %s12476_s6 = inlined_call_operand.vmem [shape: bf16[2,128,384], index: 6, kind: input, shape index: {}]   ;;  %s12477_s7 = inlined_call_operand.hbm [shape: f32[2,1,384], index: 7, kind: input, shape index: {}]   ;;  %s12478_s8 = inlined_call_operand.hbm [shape: bf16[2,128,128], index: 8, kind: input, shape index: {}]   ;;  %s12479_s9 = inlined_call_operand.hbm [shape: f32[2,1,128], index: 9, kind: input, shape index: {}]   ;;  %s12480_s10 = inlined_call_operand.vmem [shape: f32[2,1,128], index: 10, kind: input, shape index: {}]   ;;  %s12481_s11 = inlined_call_operand.vmem [shape: f32[2,1,128], index: 11, kind: input, shape index: {}]   ;;  %s12482_s12 = inlined_call_operand.hbm [shape: bf16[2,128,256], index: 12, kind: input, shape index: {}]   ;;  %s12483_s13 = inlined_call_operand.vmem [shape: f32[2,1,256], index: 13, kind: input, shape index: {}]   ;;  %s12484_s14 = inlined_call_operand.hbm [shape: bf16[2,256,128], index: 14, kind: input, shape index: {}]   ;;  %s12485_s15 = inlined_call_operand.hbm [shape: f32[2,1,128], index: 15, kind: input, shape index: {}]   ;;  %s12486_s16 = inlined_call_operand.vmem [shape: f32[1,128], index: 16, kind: input, shape index: {}]   ;;  %s12487_s17 = inlined_call_operand.hbm [shape: f32[1,128], index: 17, kind: input, shape index: {}]   ;;  %s12488_s18 = inlined_call_operand.hbm [shape: f32[1,128], index: 18, kind: input, shape index: {}]   ;;  %s12489_s19 = inlined_call_operand.<no memory space> [shape: f32[1,1], index: 19, kind: input, shape index: {}]   ;;  %s12490_s20 = inlined_call_operand.hbm [shape: f32[2,1,128], index: 20, kind: output, shape index: {}]  }
   0x1   :  { %12576 = sst [smem:[#allocation73_spill]] %s12470_s0  ;;  %v25_v0 = vstv %s12489_s19 }
   0x2   :  { %12577 = sst [smem:[#allocation74_spill]] %s12471_s1  ;;  %26 = vst [vmem:[#allocation3] sm:$0x1] %v25_v0 }
   0x3   :  { %12578 = sst [smem:[#allocation75_spill]] %s12472_s2 }
   0x4   :  { %12579 = sst [smem:[#allocation76_spill]] %s12473_s3 }
   0x5   :  { %12580 = sst [smem:[#allocation77_spill]] %s12474_s4 }
   0x6   :  { %12581 = sst [smem:[#allocation78_spill]] %s12475_s5 }
   0x7   :  { %12582 = sst [smem:[#allocation79_spill]] %s12476_s6 }
   0x8   :  { %12583 = sst [smem:[#allocation80_spill]] %s12477_s7 }
   0x9   :  { %12584 = sst [smem:[#allocation81_spill]] %s12478_s8 }
   0xa   :  { %12585 = sst [smem:[#allocation82_spill]] %s12479_s9 }
   0xb   :  { %12586 = sst [smem:[#allocation83_spill]] %s12480_s10 }
   0xc   :  { %12587 = sst [smem:[#allocation84_spill]] %s12481_s11 }
   0xd   :  { %12588 = sst [smem:[#allocation85_spill]] %s12482_s12 }
   0xe   :  { %12589 = sst [smem:[#allocation86_spill]] %s12483_s13 }
   0xf   :  { %12590 = sst [smem:[#allocation87_spill]] %s12484_s14 }
  0x10   :  { %12591 = sst [smem:[#allocation88_spill]] %s12485_s15 }
  0x11   :  { %12592 = sst [smem:[#allocation89_spill]] %s12486_s16 }
  0x12   :  { %12593 = sst [smem:[#allocation90_spill]] %s12487_s17 }
  0x13   :  { %12594 = sst [smem:[#allocation91_spill]] %s12488_s18 }
  0x14   :  { %12595 = sst [smem:[#allocation92_spill]] %s12490_s20 }
  0x15   :  { %27 = vsyncpa [#allocation5], 0 }
  0x16   :  { %29 = vsyncpa [#allocation5 + $0x1], 0 }
  0x17   :  { %30 = vsyncpa [#allocation8], 0 }
  0x18   :  { %32 = vsyncpa [#allocation8 + $0x1], 0 }
  0x19   :  { %33 = vsyncpa [#allocation11], 0 }
  0x1a   :  { %35 = vsyncpa [#allocation11 + $0x1], 0 }
  0x1b   :  { %36 = vsyncpa [#allocation14], 0 }
  0x1c   :  { %38 = vsyncpa [#allocation14 + $0x1], 0 }
  0x1d   :  { %39 = vsyncpa [#allocation17], 0 }
  0x1e   :  { %40 = vsyncpa [#allocation6], 0 }
  0x1f   :  { %42 = vsyncpa [#allocation6 + $0x1], 0  ;;  %s9166_s23 = smov 0   ;;  %s9168_s24 = smov 0  }
  0x20   :  { %s9170_s2 = smov 0   ;;  %s9172_s25 = smov 0  }
  0x21   :  { %s9174_s19 = smov 0   ;;  %s9176_s3 = smov 0  }
  0x22   :  { %s9178_s26 = smov 0   ;;  %s9180_s27 = smov 0  }
  0x23   :  { %s9182_s28 = smov 0   ;;  %s9184_s4 = smov 0  }
  0x24   :  { %s9186_s29 = smov 0  }
  0x25 LB: > { %12596 = sst [smem:[#allocation26_spill]] %s9006_s23  ;;  %s9220_s30 = sadd.s32 4294967295, %s9046_s29   ;;  %s9046_s29 = sphi %s9186_s29, %s48_s29   ;;  %s9042_s4 = sphi %s9184_s4, %s12824_s4   ;;  %s9038_s28 = sphi %s9182_s28, %s12823_s28   ;;  %s9034_s27 = sphi %s9180_s27, %s12822_s27   ;;  %s9030_s26 = sphi %s9178_s26, %s12821_s26   ;;  %s9026_s3 = sphi %s9176_s3, %s12820_s3   ;;  %s9022_s19 = sphi %s9174_s19, %s12819_s19   ;;  %s9018_s25 = sphi %s9172_s25, %s12818_s25   ;;  %s9014_s2 = sphi %s9170_s2, %s12817_s2   ;;  %s9010_s24 = sphi %s9168_s24, %s12826_s24   ;;  %s9006_s23 = sphi %s9166_s23, %s12825_s23  }
  0x26   : > { %12597 = sst [smem:[#allocation27_spill]] %s9014_s2  ;;  %s6797_s0 = sadd.s32 4294967294, %s9046_s29  }
  0x27   : > { %12598 = sst [smem:[#allocation28_spill]] %s9022_s19  ;;  %s57_s21 = sadd.s32 1, %s9038_s28 }
  0x28   : > { %12599 = sst [smem:[#allocation29_spill]] %s9026_s3  ;;  %s60_s1 = sadd.s32 1, %s9042_s4 }
  0x29   : > { %12600 = sst [smem:[#allocation30_spill]] %s9030_s26  ;;  %p58_p0 = scmp.ge.s32.totalorder %s57_s21, 2 }
  0x2a   : > { %12601 = sst [smem:[#allocation31_spill]] %s9034_s27  ;;  %s187_s22 = sadd.s32 1, %s9026_s3 }
  0x2b   : > { %12602 = sst [smem:[#allocation32_spill]] %s9038_s28  ;;  %p194_p1 = scmp.ne.s32.totalorder %s9026_s3, %s9022_s19 }
  0x2c   : > { %12603 = sst [smem:[#allocation33_spill]] %s9042_s4  ;;  %p195_p2 = scmp.eq.s32.totalorder %s9046_s29, 0 }
  0x2d   : > { %12604 = sst [smem:[#allocation34_spill]] %s9046_s29  ;;  %s12828_s21 = smov (%p58_p0, %s57_s21), 0 }
  0x2e   : > { %12605 = sst [smem:[#allocation35_spill]] %s12828_s21  ;;  %s12830_s1 = smov (!%p58_p0, %s60_s1), %s9042_s4 }
  0x2f   : > { %s184_s20 = ssub.s32 %s9038_s28, %s12828_s21  ;;  %p9234_p3 = por %p195_p2, %p194_p1 }
  0x30   : > { %p62_p4 = scmp.ge.s32.totalorder %s12830_s1, 2  ;;  %p185_p5 = scmp.eq.s32.totalorder %s184_s20, 0 }
  0x31   : > { %p200_p6 = scmp.ne.s32.totalorder %s9022_s19, %s9018_s25  ;;  %p201_p7 = scmp.eq.s32.totalorder %s9220_s30, 0 }
  0x32   : > { %s12832_s1 = smov (%p62_p4, %s12830_s1), 0  ;;  %s557_s11 = sadd.s32 1, %s9014_s2 }
  0x33   : > { %12607 = sst [smem:[#allocation36_spill]] %s12832_s1  ;;  %p9247_p8 = por %p201_p7, %p200_p6 }
  0x34   : > { %s9243_s13 = scalar_select %p185_p5, %s9026_s3, %s187_s22  }
  0x35   : > { %s554_s6 = ssub.s32 %s9042_s4, %s12832_s1  ;;  %p567_p10 = scmp.ne.s32.totalorder %s9014_s2, %s9010_s24 }
  0x36   : > { %12608 = sst [smem:[#allocation37_spill]] %s9243_s13  ;;  %p555_p9 = scmp.eq.s32.totalorder %s554_s6, 0 }
  0x37   : > { %p568_p11 = scmp.eq.s32.totalorder %s9220_s30, 3  ;;  %p573_p13 = scmp.ne.s32.totalorder %s9010_s24, %s9006_s23 }
  0x38   : > { %s9258_s20 = scalar_select %p555_p9, %s9014_s2, %s557_s11  }
  0x39   : > { %p9260_p12 = por %p568_p11, %p567_p10  ;;  %p574_p0 = scmp.eq.s32.totalorder %s6797_s0, 3 }
  0x3a   : > { %12610 = sst [smem:[#allocation38_spill]] %s9258_s20  ;;  %p6798_p1 = scmp.ge.s32.totalorder %s9046_s29, 1 }
  0x3b   : > { %s12611_s25 = scalar_select %p9260_p12, 1, 0 }
  0x3c   : > { %p581_p2 = scmp.lt.s32.totalorder %s9046_s29, 5  ;;  %p9268_p4 = por %p574_p0, %p573_p13 }
  0x3d   : > { %12612 = sst [smem:[#allocation39_spill]] %s12611_s25  ;;  %s9048_s0 = smov [#allocation16]  }
  0x3e   : > { %s12613_s6 = scalar_select %p9268_p4, 1, 0 }
  0x3f   : > { %s12615_s17 = sld [smem:[#allocation90_spill]]  ;;  %p9275_p5 = pnand %p6798_p1, %p581_p2 }
  0x40   : > { %12614 = sst [smem:[#allocation40_spill]] %s12613_s6  ;;  %s604_s13 = sshll.u32 %s9048_s0, 4  ;;  %s605_s13 = int_to_ptr.vmem [resolvable:$true] %s604_s13 }
  0x41   : > { %p7301_p6 = pneg %p9275_p5  ;;  %p7336_p9 = scmp.lt.s32.totalorder %s9046_s29, 4 }
  0x42   : > { %s9289_s1 = sand.u32 1, %s9026_s3   ;;  %s9298_s0 = sand.u32 1, %s9046_s29  }
  0x43   : > { %p9284_p10 = pnand %p7301_p6, %p201_p7  ;;  %p9293_p11 = pnand %p7336_p9, %p9234_p3 }
  0x44   : > { %s7274_s2 = smul.u32 3, %s9038_s28  ;;  %s12619_s7 = sld [smem:[#allocation80_spill]] }
  0x45   : > { %s602_s11 = sshll.u32 %s12615_s17, 4  ;;  %s7273_s17 = smul.u32 3, %s9289_s1  ;;  %s603_s11 = int_to_ptr.hbm [resolvable:$true] %s602_s11 }
  0x46   : > { %7304 = dma.hbm_to_vmem [thread:$0]  (!%p9284_p10), %s603_s11, 16, %s605_s13, [#allocation17]  }
  0x47   : > { %s681_s23 = scalar_lea.vmem [#allocation7], %s7273_s17  ;;  %s12508_s29 = scalar_lea.sflag [#allocation8], %s9298_s0 }
  0x48   : > { %s689_s25 = sshll.u32 %s681_s23, 4  ;;  %s12620_s9 = sld [smem:[#allocation82_spill]]  ;;  %s690_s25 = int_to_ptr.vmem [resolvable:$true] %s689_s25 }
  0x49   : > { %s721_s27 = scalar_lea.vmem [#allocation10], %s9289_s1  ;;  %s6805_s17 = sshll.u32 %s9289_s1, 7 }
  0x4a   : > { %s685_s16 = scalar_lea.hbm %s12619_s7, %s7274_s2  ;;  %s728_s3 = sshll.u32 %s721_s27, 4  ;;  %s729_s3 = int_to_ptr.vmem [resolvable:$true] %s728_s3 }
  0x4b   : > { %s687_s10 = sshll.u32 %s685_s16, 4  ;;  %s12507_s2 = scalar_lea.sflag [#allocation11], %s9298_s0  ;;  %s688_s10 = int_to_ptr.hbm [resolvable:$true] %s687_s10 }
  0x4c   : > { %7314 = dma.hbm_to_vmem [thread:$0]  (!%p9293_p11), %s688_s10, 48, %s690_s25, %s12508_s29  }
  0x4d   : > { %s7165_s23 = sshll.u32 %s9038_s28, 7  ;;  %s12621_s12 = sld [smem:[#allocation85_spill]] }
  0x4e   : > { %s724_s26 = scalar_lea.hbm %s12620_s9, %s9038_s28  ;;  %s751_s25 = scalar_lea.vmem [#allocation12], %s6805_s17 }
  0x4f   : > { %s726_s6 = sshll.u32 %s724_s26, 4  ;;  %s759_s13 = sshll.u32 %s751_s25, 4  ;;  %s727_s6 = int_to_ptr.hbm [resolvable:$true] %s726_s6  ;;  %s9327_s13 = int_to_ptr.vmem [resolvable:$true] %s759_s13 }
  0x50   : > { %7320 = dma.hbm_to_vmem [thread:$0]  (!%p9293_p11), %s727_s6, 16, %s729_s3, %s12507_s2  }
  0x51   : > { %s12622_s14 = sld [smem:[#allocation87_spill]]  ;;  %s780_s6 = scalar_lea.vmem [#allocation13], %s6805_s17 }
  0x52   : > { %s788_s2 = sshll.u32 %s780_s6, 4  ;;  %s12623_s18 = sld [smem:[#allocation91_spill]]  ;;  %s789_s2 = int_to_ptr.vmem [resolvable:$true] %s788_s2 }
  0x53   : > { %s756_s10 = scalar_lea.hbm %s12621_s12, %s7165_s23  ;;  %s12509_s25 = scalar_lea.sflag [#allocation14], %s9298_s0 }
  0x54   : > { %s757_s11 = sshll.u32 %s756_s10, 4  ;;  %s9049_s9 = smov 64   ;;  %s9329_s11 = int_to_ptr.hbm [resolvable:$true] %s757_s11 }
  0x55   : > { %s9050_s12 = smov 4   ;;  %s9051_s17 = smov [#allocation18]  }
  0x56   : > { %s12624_s5 = sld [smem:[#allocation78_spill]]  ;;  %s653_s20 = scalar_lea.sflag [#allocation5], %s9289_s1 }
  0x57   : > { %s785_s3 = scalar_lea.hbm %s12622_s14, %s7165_s23  ;;  %s616_s23 = sshll.u32 %s9051_s17, 4  ;;  %s617_s23 = int_to_ptr.vmem [resolvable:$true] %s616_s23 }
  0x58   : > { %s786_s7 = sshll.u32 %s785_s3, 4  ;;  %s614_s10 = sshll.u32 %s12623_s18, 4  ;;  %s787_s7 = int_to_ptr.hbm [resolvable:$true] %s786_s7  ;;  %s615_s10 = int_to_ptr.hbm [resolvable:$true] %s614_s10 }
  0x59   : > { %7326 = dma.hbm_to_vmem [thread:$0]  (!%p9293_p11), %s787_s7, 2048, %s789_s2, %s12509_s25, %s9049_s9, %s9049_s9, %s9050_s12  }
  0x5a   : > { %7307 = dma.hbm_to_vmem [thread:$0]  (!%p9284_p10), %s615_s10, 16, %s617_s23, [#allocation17]  }
  0x5b   : > { %s655_s3 = scalar_lea.vmem [#allocation4], %s9289_s1  ;;  %s6802_s2 = sshll.u32 %s9289_s1, 6 }
  0x5c   : > { %s658_s29 = scalar_lea.hbm %s12624_s5, %s9038_s28  ;;  %s662_s6 = sshll.u32 %s655_s3, 4  ;;  %s663_s6 = int_to_ptr.vmem [resolvable:$true] %s662_s6 }
  0x5d   : > { %s660_s16 = sshll.u32 %s658_s29, 4  ;;  %s7164_s7 = sshll.u32 %s9038_s28, 6  ;;  %s661_s16 = int_to_ptr.hbm [resolvable:$true] %s660_s16 }
  0x5e   : > { %7311 = dma.hbm_to_vmem [thread:$0]  (!%p9293_p11), %s661_s16, 16, %s663_s6, %s653_s20  }
  0x5f   : > { %s12625_s8 = sld [smem:[#allocation81_spill]]  ;;  %s700_s26 = scalar_lea.vmem [#allocation9], %s6802_s2 }
  0x60   : > { %s708_s27 = sshll.u32 %s700_s26, 4  ;;  %s12626_s3 = scalar_lea.sflag [#allocation8], %s9298_s0  ;;  %s709_s27 = int_to_ptr.vmem [resolvable:$true] %s708_s27 }
  0x61   : > { %s9052_s25 = smov 128   ;;  %s9053_s5 = smov 8  }
  0x62   : > { %s12627_s14 = scalar_lea.sflag [#allocation11], %s9298_s0  ;;  %s12628_s15 = sld [smem:[#allocation88_spill]] }
  0x63   : > { %7323 = dma.hbm_to_vmem [thread:$0]  (!%p9293_p11), %s9329_s11, 2048, %s9327_s13, %s12627_s14, %s9052_s25, %s9052_s25, %s9053_s5  }
  0x64   : > { %s12629_s2 = scalar_lea.sflag [#allocation14], %s9298_s0 }
  0x65   : > { %s705_s23 = scalar_lea.hbm %s12625_s8, %s7164_s7  ;;  %s801_s7 = scalar_lea.vmem [#allocation15], %s9289_s1 }
  0x66   : > { %s706_s29 = sshll.u32 %s705_s23, 4  ;;  %s808_s10 = sshll.u32 %s801_s7, 4  ;;  %s707_s29 = int_to_ptr.hbm [resolvable:$true] %s706_s29  ;;  %s809_s10 = int_to_ptr.vmem [resolvable:$true] %s808_s10 }
  0x67   : > { %7317 = dma.hbm_to_vmem [thread:$0]  (!%p9293_p11), %s707_s29, 1024, %s709_s27, %s12626_s3, %s9049_s9, %s9049_s9, %s9050_s12  }
  0x68   : > { %s804_s20 = scalar_lea.hbm %s12628_s15, %s9038_s28  ;;  %817 = sbr.rel (%p9275_p5) target bundleno = 4241 (0x1091), region = 100 }
  0x69   : > { %s806_s17 = sshll.u32 %s804_s20, 4  ;;  %s807_s17 = int_to_ptr.hbm [resolvable:$true] %s806_s17 }
  0x6a   : > { %7329 = dma.hbm_to_vmem [thread:$0]  (!%p9293_p11), %s807_s17, 16, %s809_s10, %s12629_s2  }
  0x6d   : > { %s9379_s9 = sand.u32 1, %s9022_s19  }
  0x6e   : > { %s820_s5 = scalar_lea.sflag [#allocation5], %s9379_s9 }
  0x6f   : > { %8981 = dma.done.wait (%p9247_p8), %s820_s5, 16  }
  0x70   : > { %8983 = vsyncadd (%p9247_p8), %s820_s5, 4294967280  ;;  %s828_s14 = sand.u32 1, %s9220_s30   ;;  %s7275_s1 = smul.u32 3, %s9379_s9 }
  0x71   : > { %s829_s4 = scalar_lea.sflag [#allocation8], %s828_s14 }
  0x72   : > { %s9389_s22 = scalar_lea.vmem [#allocation7], %s7275_s1 }
  0x73   : > { %8985 = dma.done.wait (%p9247_p8), %s829_s4, 1072  }
  0x74   : > { %8987 = vsyncadd (%p9247_p8), %s829_s4, 4294966224  ;;  %s6812_s0 = sshll.u32 %s9379_s9, 6  ;;  %s849_s11 = scalar_lea.sflag [#allocation11], %s828_s14 }
  0x75   : > { %s9396_s13 = scalar_lea.vmem [#allocation9], %s6812_s0 }
  0x76   : > { %8989 = dma.done.wait (%p9247_p8), %s849_s11, 2064  }
  0x77   : > { %8991 = vsyncadd (%p9247_p8), %s849_s11, 4294965232  ;;  %s6813_s23 = sshll.u32 %s9379_s9, 7  ;;  %s868_s27 = scalar_lea.sflag [#allocation14], %s828_s14 }
  0x78   : > { %s9404_s26 = scalar_lea.vmem [#allocation12], %s6813_s23  ;;  %s9406_s29 = scalar_lea.vmem [#allocation13], %s6813_s23 }
  0x79   : > { %8993 = dma.done.wait (%p9247_p8), %s868_s27, 2064  }
  0x7a   : > { %8995 = vsyncadd (%p9247_p8), %s868_s27, 4294965232 }
  0x7b   : > { %8997 = dma.done.wait (%p201_p7), [#allocation17], 32  }
  0x7c   : > { %8999 = vsyncadd (%p201_p7), [#allocation17], 4294967264  ;;  %s12630_s6 = sld [smem:[#allocation31_spill]]  ;;  %s12639_s11 = sand.u32 1, %s9010_s24  }
  0x7d   : > { %s12631_s16 = sld [smem:[#allocation30_spill]] }
  0x7e   : > { %s12632_s17 = sld [smem:[#allocation73_spill]] }
  0x7f   : > { %s12633_s1 = sld [smem:[#allocation74_spill]] }
  0x80   : > { %s12634_s23 = sld [smem:[#allocation77_spill]] }
  0x81   : > { %s12635_s20 = sld [smem:[#allocation83_spill]] }
  0x82   : > { %p1002_p3 = scmp.lt.s32.totalorder %s12630_s6, 1  ;;  %s12636_s18 = sld [smem:[#allocation84_spill]] }
  0x83   : > { %p1012_p13 = scmp.lt.s32.totalorder %s12631_s16, 1  ;;  %s12637_s28 = sld [smem:[#allocation79_spill]] }
  0x84   : > { %s12834_s6 = smov (!%p1002_p3, %s12630_s6), 1  ;;  %p6823_p7 = scmp.ne.s32.totalorder %s12631_s16, 0 }
  0x85   : > { %s9422_s21 = scalar_select %p1012_p13, %s12631_s16, 1 }
  0x86   : > { %s7167_s7 = sshll.u32 %s12834_s6, 7  ;;  %s12642_s25 = sld [smem:[#allocation76_spill]] (!%p6823_p7) }
  0x87   : > { %s9427_s2 = scalar_lea.vmem %s12632_s17, %s7167_s7  ;;  %s9432_s4 = scalar_lea.vmem %s12633_s1, %s7167_s7 }
  0x88   : > { %s1014_s27 = scalar_lea.vmem %s12634_s23, %s9422_s21  ;;  %s7276_s3 = smul.u32 192, %s9422_s21 }
  0x89   : > { %s1022_s8 = scalar_lea.vmem %s12635_s20, %s9422_s21  ;;  %s1025_s30 = scalar_lea.vmem %s12636_s18, %s9422_s21 }
  0x8a   : > { %s9450_s19 = scalar_lea.vmem %s12637_s28, %s7276_s3  ;;  %s6822_s7 = sshll.u32 %s9422_s21, 1 }
  0x8b   : > { %s12638_s1 = sld [smem:[#allocation86_spill]]  ;;  %s9460_s23 = scalar_lea.vmem [#allocation19], %s12639_s11 }
  0x8c   : > { %s12640_s28 = sld [smem:[#allocation75_spill]] (!%p6823_p7)  ;;  %s12643_s16 = smov (!%p6823_p7), %s12642_s25 }
  0x8d   : > { %1033 = sbr.rel (%p6823_p7) target bundleno = 445 (0x1bd), region = 140 }
  0x91   : > { %s9456_s0 = scalar_lea.vmem %s12638_s1, %s6822_s7 }
  0x92   : > { %v1046_v1 = vld [vmem:[%s9427_s2 + $0x60] sm:$0xff]  ;;  %v9054_v4 = vmov 0   ;;  %v1047_v5 = vld [vmem:[%s9427_s2 + $0x68] sm:$0xff]  ;;  %s12641_s12 = smov %s12640_s28  ;;  %v7176_v8 = vld [vmem:[%s12640_s28 + $0x38] sm:$0xff]  ;;  %v1050_v26 = vlaneseq  ;;  %v9055_v30 = vmov 1.0|1.0  }
  0x93   : > { %v1042_v2 = vld [vmem:[%s9427_s2 + $0x40] sm:$0xff]  ;;  %7441 = vset.pattern.permute.xlu2 %v9054_v4  ;;  %7440 = vset.pattern.permute.xlu1 %v9054_v4  ;;  %v1043_v6 = vld [vmem:[%s9427_s2 + $0x48] sm:$0xff]  ;;  %v7175_v9 = vld [vmem:[%s12641_s12 + $0x30] sm:$0xff] }
  0x94   : > { %v1034_v3 = vld [vmem:[%s9427_s2] sm:$0xff]  ;;  %7439 = vset.pattern.permute.xlu0 %v9054_v4  ;;  %1089 = vperm.xlu1 %7440, %v1046_v1   ;;  %v1035_v7 = vld [vmem:[%s9427_s2 + $0x8] sm:$0xff]  ;;  %v1044_v12 = vld [vmem:[%s9427_s2 + $0x50] sm:$0xff]  ;;  %v1051_v28 = vand.u32 127, %v1050_v26 }
  0x95   : > { %1077 = vperm.xlu0 %7439, %v1042_v2   ;;  %1053 = vperm.xlu2 %7441, %v1034_v3   ;;  %v1039_v10 = vld [vmem:[%s9427_s2 + $0x28] sm:$0xff]  ;;  %v1038_v11 = vld [vmem:[%s9427_s2 + $0x20] sm:$0xff]  ;;  %v1048_v13 = vld [vmem:[%s9427_s2 + $0x70] sm:$0xff] }
  0x96   : > { %1204 = vmatpush.bf16.msra.mxu0 %v7176_v8  ;;  %7242 = vmatpush.bf16.msra.mxu2 %v7176_v8  ;;  %v1045_v14 = vld [vmem:[%s9427_s2 + $0x58] sm:$0xff]  ;;  %v1036_v17 = vld [vmem:[%s9427_s2 + $0x10] sm:$0xff]  ;;  %v7174_v20 = vld [vmem:[%s12641_s12 + $0x28] sm:$0xff] }
  0x97   : > { %7243 = vmatpush.bf16.msra.mxu3 %v7176_v8  ;;  %7241 = vmatpush.bf16.msra.mxu1 %v7176_v8  ;;  %v1049_v15 = vld [vmem:[%s9427_s2 + $0x78] sm:$0xff]  ;;  %v1040_v18 = vld [vmem:[%s9427_s2 + $0x30] sm:$0xff]  ;;  %v7173_v21 = vld [vmem:[%s12641_s12 + $0x20] sm:$0xff] }
  0x98   : > { %v1037_v16 = vld [vmem:[%s9427_s2 + $0x18] sm:$0xff]  ;;  %v7171_v23 = vld [vmem:[%s12641_s12 + $0x10] sm:$0xff]  ;;  %v7170_v24 = vld [vmem:[%s12641_s12 + $0x8] sm:$0xff] }
  0x99   : > { %v1041_v19 = vld [vmem:[%s9427_s2 + $0x38] sm:$0xff]  ;;  %v7169_v25 = vld [vmem:[%s12641_s12] sm:$0xff]  ;;  %v1270_v50 = vld [vmem:[%s12643_s16 + $0x8] sm:$0xff] }
  0x9a   : > { %1205 = vmatpush.bf16.msra.mxu0 %v7175_v9  ;;  %7245 = vmatpush.bf16.msra.mxu2 %v7175_v9  ;;  %v7172_v22 = vld [vmem:[%s12641_s12 + $0x18] sm:$0xff]  ;;  %v1269_v46 = vld [vmem:[%s12642_s25] sm:$0xff]  ;;  %v1282_v2 = vld [vmem:[%s12643_s16 + $0x68] sm:$0xff] }
  0x9b   : > { %7246 = vmatpush.bf16.msra.mxu3 %v7175_v9  ;;  %7244 = vmatpush.bf16.msra.mxu1 %v7175_v9  ;;  %v1281_v54 = vld [vmem:[%s12643_s16 + $0x60] sm:$0xff]  ;;  %v1278_v4 = vld [vmem:[%s12643_s16 + $0x48] sm:$0xff]  ;;  %v1284_v26 = vld [vmem:[%s12643_s16 + $0x78] sm:$0xff] }
  0x9c   : > { %1092 = vperm.xlu1 %7440, %v1047_v5   ;;  %v1277_v56 = vld [vmem:[%s12643_s16 + $0x40] sm:$0xff]  ;;  %v1274_v9 = vld [vmem:[%s12643_s16 + $0x28] sm:$0xff] }
  0x9d   : > { %1080 = vperm.xlu0 %7439, %v1043_v6   ;;  %1056 = vperm.xlu2 %7441, %v1035_v7   ;;  %v1273_v61 = vld [vmem:[%s12643_s16 + $0x20] sm:$0xff] }
  0x9e   : > { %1206 = vmatpush.bf16.msra.mxu0 %v7174_v20  ;;  %7248 = vmatpush.bf16.msra.mxu2 %v7174_v20 }
  0x9f   : > { %7249 = vmatpush.bf16.msra.mxu3 %v7174_v20  ;;  %7247 = vmatpush.bf16.msra.mxu1 %v7174_v20 }
  0xa2   : > { %1207 = vmatpush.bf16.msra.mxu0 %v7173_v21  ;;  %7251 = vmatpush.bf16.msra.mxu2 %v7173_v21 }
  0xa3   : > { %7252 = vmatpush.bf16.msra.mxu3 %v7173_v21  ;;  %7250 = vmatpush.bf16.msra.mxu1 %v7173_v21  ;;  %v1271_v21 = vld [vmem:[%s12643_s16 + $0x10] sm:$0xff] }
  0xa4   : > { %1068 = vperm.xlu1 %7440, %v1039_v10  }
  0xa5   : > { %1065 = vperm.xlu0 %7439, %v1038_v11   ;;  %1083 = vperm.xlu2 %7441, %v1044_v12  }
  0xa6   : > { %1208 = vmatpush.bf16.msra.mxu0 %v7172_v22  ;;  %7254 = vmatpush.bf16.msra.mxu2 %v7172_v22 }
  0xa7   : > { %7255 = vmatpush.bf16.msra.mxu3 %v7172_v22  ;;  %7253 = vmatpush.bf16.msra.mxu1 %v7172_v22 }
  0xaa   : > { %1209 = vmatpush.bf16.msra.mxu0 %v7171_v23  ;;  %7257 = vmatpush.bf16.msra.mxu2 %v7171_v23 }
  0xab   : > { %7258 = vmatpush.bf16.msra.mxu3 %v7171_v23  ;;  %7256 = vmatpush.bf16.msra.mxu1 %v7171_v23 }
  0xac   : > { %1095 = vperm.xlu1 %7440, %v1048_v13  }
  0xad   : > { %1086 = vperm.xlu0 %7439, %v1045_v14   ;;  %1098 = vperm.xlu2 %7441, %v1049_v15   ;;  %v1283_v14 = vld [vmem:[%s12643_s16 + $0x70] sm:$0xff] }
  0xae   : > { %1210 = vmatpush.bf16.msra.mxu0 %v7170_v24  ;;  %7260 = vmatpush.bf16.msra.mxu2 %v7170_v24 }
  0xaf   : > { %7261 = vmatpush.bf16.msra.mxu3 %v7170_v24  ;;  %7259 = vmatpush.bf16.msra.mxu1 %v7170_v24 }
  0xb2   : > { %1211 = vmatpush.bf16.msra.mxu0 %v7169_v25  ;;  %7263 = vmatpush.bf16.msra.mxu2 %v7169_v25 }
  0xb3   : > { %7264 = vmatpush.bf16.msra.mxu3 %v7169_v25  ;;  %7262 = vmatpush.bf16.msra.mxu1 %v7169_v25 }
  0xb4   : > { %1062 = vperm.xlu1 %7440, %v1037_v16   ;;  %v1279_v16 = vld [vmem:[%s12643_s16 + $0x50] sm:$0xff] }
  0xb5   : > { %1059 = vperm.xlu0 %7439, %v1036_v17   ;;  %1071 = vperm.xlu2 %7441, %v1040_v18  }
  0xbd   : > { %1074 = vperm.xlu0 %7439, %v1041_v19  }
  0xef   : > { %v1054_v27 = vpop.permute.xlu2 %1053 }
  0xf0   : > { %vm1100_vm0 = vcmp.eq.s32.totalorder %v1051_v28, %v1054_v27 }
  0xf7   : > { %v1057_v29 = vpop.permute.xlu2 %1056 }
  0xf8   : > { %vm1101_vm1 = vcmp.eq.s32.totalorder %v1051_v28, %v1057_v29 }
  0xf9   : > { %vm6856_vm2 = vmpackc.low %vm1101_vm1, %vm1100_vm0 }
  0xfa   : > { %6857 = vmatmul.msk.bf16.vlgmr.msra.gmra.mxu0 %vm6856_vm2, %v9055_v30 }
  0xff   : > { %v1084_v35 = vpop.permute.xlu2 %1083 }
 0x100   : > { %vm1110_vm14 = vcmp.eq.s32.totalorder %v1051_v28, %v1084_v35  ;;  %v1275_v35 = vld [vmem:[%s12643_s16 + $0x30] sm:$0xff] }
 0x106   : > { %v1090_v31 = vpop.permute.xlu1 %1089 }
 0x107   : > { %v1078_v32 = vpop.permute.xlu0 %1077  ;;  %vm1112_vm3 = vcmp.eq.s32.totalorder %v1051_v28, %v1090_v31  ;;  %v1099_v38 = vpop.permute.xlu2 %1098 }
 0x108   : > { %vm1108_vm5 = vcmp.eq.s32.totalorder %v1051_v28, %v1078_v32  ;;  %vm1115_vm12 = vcmp.eq.s32.totalorder %v1051_v28, %v1099_v38 }
 0x10e   : > { %v1093_v33 = vpop.permute.xlu1 %1092 }
 0x10f   : > { %vm1113_vm4 = vcmp.eq.s32.totalorder %v1051_v28, %v1093_v33  ;;  %v1081_v34 = vpop.permute.xlu0 %1080  ;;  %v1072_v43 = vpop.permute.xlu2 %1071  ;;  %v1272_v33 = vld [vmem:[%s12643_s16 + $0x18] sm:$0xff] }
 0x110   : > { %vm6868_vm6 = vmpackc.low %vm1113_vm4, %vm1112_vm3  ;;  %vm1109_vm7 = vcmp.eq.s32.totalorder %v1051_v28, %v1081_v34 }
 0x111   : > { %vm6864_vm8 = vmpackc.low %vm1109_vm7, %vm1108_vm5  ;;  %6869 = vmatmul.msk.bf16.vlgmr.msra.gmra.mxu3 %vm6868_vm6, %v9055_v30  ;;  %vm1106_vm5 = vcmp.eq.s32.totalorder %v1051_v28, %v1072_v43 }
 0x112   : > { %6865 = vmatmul.msk.bf16.vlgmr.msra.gmra.mxu2 %vm6864_vm8, %v9055_v30 }
 0x116   : > { %v1069_v36 = vpop.permute.xlu1 %1068 }
 0x117   : > { %vm1105_vm9 = vcmp.eq.s32.totalorder %v1051_v28, %v1069_v36  ;;  %v1066_v37 = vpop.permute.xlu0 %1065 }
 0x118   : > { %vm1104_vm10 = vcmp.eq.s32.totalorder %v1051_v28, %v1066_v37 }
 0x119   : > { %vm6860_vm11 = vmpackc.low %vm1105_vm9, %vm1104_vm10 }
 0x11a   : > { %6861 = vmatmul.msk.bf16.vlgmr.msra.gmra.mxu1 %vm6860_vm11, %v9055_v30 }
 0x11e   : > { %v1096_v39 = vpop.permute.xlu1 %1095 }
 0x11f   : > { %vm1114_vm13 = vcmp.eq.s32.totalorder %v1051_v28, %v1096_v39  ;;  %v1087_v40 = vpop.permute.xlu0 %1086 }
 0x120   : > { %vm6870_vm15 = vmpackc.low %vm1115_vm12, %vm1114_vm13  ;;  %vm1111_vm0 = vcmp.eq.s32.totalorder %v1051_v28, %v1087_v40 }
 0x121   : > { %vm6866_vm1 = vmpackc.low %vm1111_vm0, %vm1110_vm14  ;;  %6871 = vmatmul.msk.bf16.gmra.mxu3 %vm6870_vm15, %v9055_v30 }
 0x122   : > { %6867 = vmatmul.msk.bf16.gmra.mxu2 %vm6866_vm1, %v9055_v30 }
 0x126   : > { %v1063_v41 = vpop.permute.xlu1 %1062 }
 0x127   : > { %vm1103_vm2 = vcmp.eq.s32.totalorder %v1051_v28, %v1063_v41  ;;  %v1060_v42 = vpop.permute.xlu0 %1059 }
 0x128   : > { %vm1102_vm3 = vcmp.eq.s32.totalorder %v1051_v28, %v1060_v42  ;;  %v1276_v42 = vld [vmem:[%s12643_s16 + $0x38] sm:$0xff] }
 0x129   : > { %vm6858_vm4 = vmpackc.low %vm1103_vm2, %vm1102_vm3 }
 0x12a   : > { %6859 = vmatmul.msk.bf16.gmra.mxu0 %vm6858_vm4, %v9055_v30 }
 0x12f   : > { %v1075_v44 = vpop.permute.xlu0 %1074 }
 0x130   : > { %vm1107_vm6 = vcmp.eq.s32.totalorder %v1051_v28, %v1075_v44  ;;  %v1280_v28 = vld [vmem:[%s12643_s16 + $0x58] sm:$0xff] }
 0x131   : > { %vm6862_vm7 = vmpackc.low %vm1107_vm6, %vm1106_vm5 }
 0x132   : > { %6863 = vmatmul.msk.bf16.gmra.mxu1 %vm6862_vm7, %v9055_v30 }
 0x177   : > { %v1213_v45 = vpop.f32.mrf.mxu0 }
 0x178   : > { %v1253_v47 = vmul.f32 11.313708, %v1213_v45 }
 0x17a   : > { %v1285_v48 = vadd.f32 %v1269_v46, %v1253_v47 }
 0x17c   : > { %1301 = vst [vmem:[#allocation2 + $0x30] sm:$0xff] %v1285_v48 }
 0x17f   : > { %v1215_v49 = vpop.f32.mrf.mxu0 }
 0x180   : > { %v1254_v51 = vmul.f32 11.313708, %v1215_v49 }
 0x182   : > { %v1286_v52 = vadd.f32 %v1270_v50, %v1254_v51 }
 0x184   : > { %1302 = vst [vmem:[#allocation2] sm:$0xff] %v1286_v52 }
 0x194   : > { %v1243_v53 = vpop.f32.mrf.mxu3 }
 0x195   : > { %v1233_v55 = vpop.f32.mrf.mxu2  ;;  %v1265_v57 = vmul.f32 11.313708, %v1243_v53 }
 0x196   : > { %v1261_v58 = vmul.f32 11.313708, %v1233_v55 }
 0x197   : > { %v1297_v59 = vadd.f32 %v1281_v54, %v1265_v57  ;;  %v1223_v60 = vpop.f32.mrf.mxu1 }
 0x198   : > { %v1293_v62 = vadd.f32 %v1277_v56, %v1261_v58  ;;  %v1257_v63 = vmul.f32 11.313708, %v1223_v60 }
 0x199   : > { %1313 = vst [vmem:[#allocation2 + $0x60] sm:$0xff] %v1297_v59 }
 0x19a   : > { %1309 = vst [vmem:[#allocation2 + $0x40] sm:$0xff] %v1293_v62  ;;  %v1289_v0 = vadd.f32 %v1273_v61, %v1257_v63 }
 0x19c   : > { %1305 = vst [vmem:[#allocation2 + $0x50] sm:$0xff] %v1289_v0  ;;  %v1245_v1 = vpop.f32.mrf.mxu3 }
 0x19d   : > { %v1235_v3 = vpop.f32.mrf.mxu2  ;;  %v1266_v5 = vmul.f32 11.313708, %v1245_v1 }
 0x19e   : > { %v1262_v6 = vmul.f32 11.313708, %v1235_v3 }
 0x19f   : > { %v1298_v7 = vadd.f32 %v1282_v2, %v1266_v5  ;;  %v1225_v8 = vpop.f32.mrf.mxu1 }
 0x1a0   : > { %v1294_v10 = vadd.f32 %v1278_v4, %v1262_v6  ;;  %v1258_v11 = vmul.f32 11.313708, %v1225_v8 }
 0x1a1   : > { %1314 = vst [vmem:[#allocation2 + $0x70] sm:$0xff] %v1298_v7 }
 0x1a2   : > { %1310 = vst [vmem:[#allocation2 + $0x20] sm:$0xff] %v1294_v10  ;;  %v1290_v12 = vadd.f32 %v1274_v9, %v1258_v11 }
 0x1a4   : > { %1306 = vst [vmem:[#allocation2 + $0x68] sm:$0xff] %v1290_v12  ;;  %v1248_v13 = vpop.f32.mrf.mxu3 }
 0x1a5   : > { %v1238_v15 = vpop.f32.mrf.mxu2  ;;  %v1267_v17 = vmul.f32 11.313708, %v1248_v13 }
 0x1a6   : > { %v1263_v18 = vmul.f32 11.313708, %v1238_v15 }
 0x1a7   : > { %v1299_v19 = vadd.f32 %v1283_v14, %v1267_v17  ;;  %v1218_v20 = vpop.f32.mrf.mxu0 }
 0x1a8   : > { %v1295_v22 = vadd.f32 %v1279_v16, %v1263_v18  ;;  %v1255_v23 = vmul.f32 11.313708, %v1218_v20 }
 0x1a9   : > { %1315 = vst [vmem:[#allocation2 + $0x78] sm:$0xff] %v1299_v19 }
 0x1aa   : > { %1311 = vst [vmem:[#allocation2 + $0x10] sm:$0xff] %v1295_v22  ;;  %v1287_v24 = vadd.f32 %v1271_v21, %v1255_v23 }
 0x1ac   : > { %1303 = vst [vmem:[#allocation2 + $0x58] sm:$0xff] %v1287_v24  ;;  %v1250_v25 = vpop.f32.mrf.mxu3 }
 0x1ad   : > { %v1240_v27 = vpop.f32.mrf.mxu2  ;;  %v1268_v29 = vmul.f32 11.313708, %v1250_v25 }
 0x1ae   : > { %v1264_v30 = vmul.f32 11.313708, %v1240_v27 }
 0x1af   : > { %v1300_v31 = vadd.f32 %v1284_v26, %v1268_v29  ;;  %v1220_v32 = vpop.f32.mrf.mxu0  ;;  %v1228_v34 = vpop.f32.mrf.mxu1 }
 0x1b0   : > { %v1296_v36 = vadd.f32 %v1280_v28, %v1264_v30  ;;  %v1256_v37 = vmul.f32 11.313708, %v1220_v32  ;;  %v1259_v38 = vmul.f32 11.313708, %v1228_v34 }
 0x1b1   : > { %1316 = vst [vmem:[#allocation2 + $0x28] sm:$0xff] %v1300_v31 }
 0x1b2   : > { %1312 = vst [vmem:[#allocation2 + $0x38] sm:$0xff] %v1296_v36  ;;  %v1288_v39 = vadd.f32 %v1272_v33, %v1256_v37  ;;  %v1291_v40 = vadd.f32 %v1275_v35, %v1259_v38 }
 0x1b4   : > { %1304 = vst [vmem:[#allocation2 + $0x18] sm:$0xff] %v1288_v39 }
 0x1b5   : > { %1307 = vst [vmem:[#allocation2 + $0x8] sm:$0xff] %v1291_v40 }
 0x1b7   : > { %v1230_v41 = vpop.f32.mrf.mxu1 }
 0x1b8   : > { %v1260_v43 = vmul.f32 11.313708, %v1230_v41 }
 0x1ba   : > { %v1292_v44 = vadd.f32 %v1276_v42, %v1260_v43 }
 0x1bc   : > { %1308 = vst [vmem:[#allocation2 + $0x48] sm:$0xff] %v1292_v44 }
 0x1bd PF: > { %v1317_v45 = vld [vmem:[#allocation2 + $0x30] sm:$0xff]  ;;  %v1319_v46 = vld [vmem:[#allocation2 + $0x58] sm:$0xff]  ;;  %v1318_v48 = vld [vmem:[#allocation2] sm:$0xff]  ;;  %v9056_v53 = vmov 128.0  }
 0x1be   : > { %1333 = vadd.xlane.f32.xlu0 %v1317_v45  ;;  %1337 = vadd.xlane.f32.xlu1 %v1319_v46  ;;  %v1321_v47 = vld [vmem:[#allocation2 + $0x50] sm:$0xff]  ;;  %v1320_v49 = vld [vmem:[#allocation2 + $0x18] sm:$0xff]  ;;  %v1322_v50 = vld [vmem:[#allocation2 + $0x68] sm:$0xff]  ;;  %8192 = vrcp.f32 %v9056_v53 }
 0x1bf   : > { %1341 = vadd.xlane.f32.xlu2 %v1321_v47  ;;  %v1323_v51 = vld [vmem:[#allocation2 + $0x8] sm:$0xff]  ;;  %v1328_v52 = vld [vmem:[#allocation2 + $0x38] sm:$0xff]  ;;  %v9551_v54 = vld [vmem:[#allocation2 + $0x60] sm:$0xff] }
 0x1c0   : > { %v9582_v17 = vld [vmem:[#allocation2 + $0x40] sm:$0xff]  ;;  %v9587_v19 = vld [vmem:[#allocation2 + $0x70] sm:$0xff]  ;;  %v9594_v23 = vld [vmem:[#allocation2 + $0x78] sm:$0xff] }
 0x1c1   : > { %v9589_v20 = vld [vmem:[#allocation2 + $0x20] sm:$0xff]  ;;  %v9596_v24 = vld [vmem:[#allocation2 + $0x10] sm:$0xff]  ;;  %v6958_v35 = vld [vmem:[%s9450_s19 + $0xa8] sm:$0xf] }
 0x1c2   : > { %v7199_v36 = vld [vmem:[%s9450_s19 + $0xb0] sm:$0xf0]  ;;  %v7198_v37 = vld [vmem:[%s9450_s19 + $0xac] sm:$0xf]  ;;  %v6960_v39 = vld [vmem:[%s9450_s19 + $0xb4] sm:$0xf0] }
 0x1c3   : > { %v9568_v10 = vld [vmem:[#allocation2 + $0x48] sm:$0xff]  ;;  %v6959_v38 = vor.u32 %v7199_v36, %v6958_v35  ;;  %v6966_v40 = vld [vmem:[%s9450_s19 + $0xb0] sm:$0xf]  ;;  %v7200_v41 = vld [vmem:[%s9450_s19 + $0xb8] sm:$0xf0]  ;;  %v6963_v42 = vor.u32 %v7198_v37, %v6960_v39 }
 0x1c4   : > { %v8193_v55 = vpop.eup %8192  ;;  %v6967_v43 = vor.u32 %v7200_v41, %v6966_v40  ;;  %v6946_v44 = vld [vmem:[%s9450_s19 + $0x90] sm:$0xf]  ;;  %v6934_v53 = vld [vmem:[%s9450_s19 + $0x78] sm:$0xf]  ;;  %v6900_v36 = vld [vmem:[%s9450_s19 + $0x3c] sm:$0xf0] }
 0x1c5   : > { %v1366_v56 = vmul.f32 128.0, %v8193_v55  ;;  %vm1370_vm8 = vweird.f32 %v8193_v55  ;;  %1876 = vmatpush.bf16.msra.mxu0 %v6959_v38  ;;  %1925 = vmatpush.bf16.msra.mxu1 %v6963_v42  ;;  %v6906_v37 = vld [vmem:[%s9450_s19 + $0x38] sm:$0xf]  ;;  %v7185_v38 = vld [vmem:[%s9450_s19 + $0x40] sm:$0xf0] }
 0x1c6   : > { %1335 = vadd.xlane.f32.xlu0 %v1318_v48  ;;  %1339 = vadd.xlane.f32.xlu1 %v1320_v49  ;;  %v6907_v40 = vor.u32 %v7185_v38, %v6906_v37  ;;  %v6886_v41 = vld [vmem:[%s9450_s19 + $0x18] sm:$0xf]  ;;  %v7181_v42 = vld [vmem:[%s9450_s19 + $0x20] sm:$0xf0] }
 0x1c7   : > { %1343 = vadd.xlane.f32.xlu2 %v1322_v50  ;;  %v1367_v57 = vsub.f32 1.0, %v1366_v56  ;;  %1974 = vmatpush.bf16.msra.mxu2 %v6967_v43  ;;  %v7192_v56 = vld [vmem:[%s9450_s19 + $0x7c] sm:$0xf] }
 0x1c8   : > { %v7180_v43 = vld [vmem:[%s9450_s19 + $0x1c] sm:$0xf] }
 0x1c9   : > { %v1368_v58 = vmul.f32 %v8193_v55, %v1367_v57 }
 0x1cb   : > { %v1369_v59 = vadd.f32 %v8193_v55, %v1368_v58  ;;  %v6936_v58 = vld [vmem:[%s9450_s19 + $0x84] sm:$0xf0] }
 0x1cd   : > { %v9554_v60 = vsel %vm1370_vm8, %v8193_v55, %v1369_v59  ;;  %v7193_v55 = vld [vmem:[%s9450_s19 + $0x80] sm:$0xf0]  ;;  %v6942_v59 = vld [vmem:[%s9450_s19 + $0x80] sm:$0xf] }
 0x1ce   : > { %12644 = vst [vmem:[#allocation41_spill] sm:$0xff] %v9554_v60  ;;  %v6935_v57 = vor.u32 %v7193_v55, %v6934_v53  ;;  %v6874_v53 = vld [vmem:[%s9450_s19] sm:$0xf]  ;;  %v7178_v55 = vld [vmem:[%s9450_s19 + $0x8] sm:$0xf0] }
 0x1cf   : > { %1345 = vadd.xlane.f32.xlu2 %v1323_v51 }
 0x1d7   : > { %1355 = vadd.xlane.f32.xlu2 %v1328_v52 }
 0x1df   : > { %1357 = vadd.xlane.f32.xlu2 %v9551_v54 }
 0x231   : > { %v1334_v61 = vpop.xlane.xlu0 %1333  ;;  %v1338_v62 = vpop.xlane.xlu1 %1337 }
 0x232   : > { %v1372_v63 = vmul.f32 %v9554_v60, %v1334_v61  ;;  %v1342_v6 = vpop.xlane.xlu2 %1341  ;;  %v1374_v7 = vmul.f32 %v9554_v60, %v1338_v62  ;;  %v7194_v61 = vld [vmem:[%s9450_s19 + $0x88] sm:$0xf0]  ;;  %v6939_v62 = vor.u32 %v7192_v56, %v6936_v58  ;;  %v7177_v56 = vld [vmem:[%s9450_s19 + $0x4] sm:$0xf]  ;;  %v6876_v58 = vld [vmem:[%s9450_s19 + $0xc] sm:$0xf0] }
 0x233   : > { %v1376_v11 = vmul.f32 %v9554_v60, %v1342_v6  ;;  %v6930_v6 = vld [vmem:[%s9450_s19 + $0x68] sm:$0xf] }
 0x234   : > { %v9557_v0 = vsub.f32 %v1317_v45, %v1372_v63  ;;  %v9575_v14 = vsub.f32 %v1319_v46, %v1374_v7  ;;  %v7196_v45 = vld [vmem:[%s9450_s19 + $0x98] sm:$0xf0]  ;;  %v7195_v46 = vld [vmem:[%s9450_s19 + $0x94] sm:$0xf]  ;;  %v6943_v63 = vor.u32 %v7194_v61, %v6942_v59  ;;  %v6882_v59 = vld [vmem:[%s9450_s19 + $0x8] sm:$0xf] }
 0x235   : > { %v9578_v15 = vsub.f32 %v1321_v47, %v1376_v11  ;;  %v6947_v47 = vor.u32 %v7196_v45, %v6946_v44  ;;  %v7191_v7 = vld [vmem:[%s9450_s19 + $0x70] sm:$0xf0]  ;;  %v6887_v44 = vor.u32 %v7181_v42, %v6886_v41  ;;  %v6888_v45 = vld [vmem:[%s9450_s19 + $0x24] sm:$0xf0] }
 0x236   : > { %v1404_v1 = vmul.f32 %v9557_v0, %v9557_v0  ;;  %v1406_v16 = vmul.f32 %v9575_v14, %v9575_v14  ;;  %v7179_v61 = vld [vmem:[%s9450_s19 + $0x10] sm:$0xf0] }
 0x237   : > { %v1408_v18 = vmul.f32 %v9578_v15, %v9578_v15  ;;  %1877 = vmatpush.bf16.msra.mxu0 %v6947_v47  ;;  %v7182_v47 = vld [vmem:[%s9450_s19 + $0x28] sm:$0xf0] }
 0x238   : > { %1420 = vadd.xlane.f32.xlu0 %v1404_v1  ;;  %v6922_v1 = vld [vmem:[%s9450_s19 + $0x60] sm:$0xf] }
 0x239   : > { %v1336_v2 = vpop.xlane.xlu0 %1335  ;;  %v1340_v3 = vpop.xlane.xlu1 %1339 }
 0x23a   : > { %v1373_v4 = vmul.f32 %v9554_v60, %v1336_v2  ;;  %v1375_v5 = vmul.f32 %v9554_v60, %v1340_v3  ;;  %v1344_v21 = vpop.xlane.xlu2 %1343  ;;  %v7190_v2 = vld [vmem:[%s9450_s19 + $0x68] sm:$0xf0]  ;;  %v7189_v3 = vld [vmem:[%s9450_s19 + $0x64] sm:$0xf] }
 0x23b   : > { %v1377_v22 = vmul.f32 %v9554_v60, %v1344_v21  ;;  %1878 = vmatpush.bf16.msra.mxu0 %v6935_v57  ;;  %v6875_v57 = vor.u32 %v7178_v55, %v6874_v53 }
 0x23c   : > { %v9564_v8 = vsub.f32 %v1318_v48, %v1373_v4  ;;  %v9566_v9 = vsub.f32 %v1320_v49, %v1375_v5  ;;  %v6948_v48 = vld [vmem:[%s9450_s19 + $0x9c] sm:$0xf0]  ;;  %v6954_v49 = vld [vmem:[%s9450_s19 + $0x98] sm:$0xf]  ;;  %v6923_v4 = vor.u32 %v7190_v2, %v6922_v1  ;;  %v6924_v5 = vld [vmem:[%s9450_s19 + $0x6c] sm:$0xf0]  ;;  %v6883_v1 = vor.u32 %v7179_v61, %v6882_v59 }
 0x23d   : > { %v9600_v25 = vsub.f32 %v1322_v50, %v1377_v22  ;;  %v7197_v50 = vld [vmem:[%s9450_s19 + $0xa0] sm:$0xf0]  ;;  %v6927_v11 = vor.u32 %v7189_v3, %v6924_v5  ;;  %v6912_v22 = vld [vmem:[%s9450_s19 + $0x54] sm:$0xf0]  ;;  %v9711_v59 = vld [vmem:[%s1014_s27] ss:$0 sm:$0xff] }
 0x23e   : > { %v1405_v12 = vmul.f32 %v9564_v8, %v9564_v8  ;;  %v1407_v13 = vmul.f32 %v9566_v9, %v9566_v9  ;;  %s12648_s27 = scalar_lea.vmem [#allocation4], %s9379_s9 }
 0x23f   : > { %v1409_v27 = vmul.f32 %v9600_v25, %v9600_v25  ;;  %1879 = vmatpush.bf16.msra.mxu0 %v6923_v4 }
 0x240   : > { %1347 = vadd.xlane.f32.xlu0 %v9568_v10  ;;  %1422 = vadd.xlane.f32.xlu1 %v1405_v12  ;;  %v6931_v12 = vor.u32 %v7191_v7, %v6930_v6 }
 0x241   : > { %1426 = vadd.xlane.f32.xlu2 %v1407_v13  ;;  %v6910_v13 = vld [vmem:[%s9450_s19 + $0x48] sm:$0xf] }
 0x242   : > { %v1346_v26 = vpop.xlane.xlu2 %1345 }
 0x243   : > { %v1378_v28 = vmul.f32 %v9554_v60, %v1346_v26  ;;  %v6918_v26 = vld [vmem:[%s9450_s19 + $0x50] sm:$0xf] }
 0x245   : > { %v9605_v29 = vsub.f32 %v1323_v51, %v1378_v28  ;;  %v6951_v51 = vor.u32 %v7195_v46, %v6948_v48  ;;  %v7188_v28 = vld [vmem:[%s9450_s19 + $0x58] sm:$0xf0]  ;;  %v6894_v46 = vld [vmem:[%s9450_s19 + $0x20] sm:$0xf] }
 0x247   : > { %v1410_v31 = vmul.f32 %v9605_v29, %v9605_v29  ;;  %1926 = vmatpush.bf16.msra.mxu1 %v6951_v51 }
 0x248   : > { %1349 = vadd.xlane.f32.xlu0 %v9582_v17  ;;  %1424 = vadd.xlane.f32.xlu1 %v1406_v16  ;;  %v7187_v16 = vld [vmem:[%s9450_s19 + $0x50] sm:$0xf0] }
 0x249   : > { %1428 = vadd.xlane.f32.xlu2 %v1408_v18  ;;  %v7186_v18 = vld [vmem:[%s9450_s19 + $0x4c] sm:$0xf]  ;;  %v6911_v21 = vor.u32 %v7187_v16, %v6910_v13 }
 0x24a   : > { %v1356_v30 = vpop.xlane.xlu2 %1355 }
 0x24b   : > { %v1383_v32 = vmul.f32 %v9554_v60, %v1356_v30  ;;  %1927 = vmatpush.bf16.msra.mxu1 %v6939_v62  ;;  %1880 = vmatpush.bf16.msra.mxu0 %v6911_v21  ;;  %v6919_v30 = vor.u32 %v7188_v28, %v6918_v26 }
 0x24d   : > { %v9610_v33 = vsub.f32 %v1328_v52, %v1383_v32  ;;  %v6955_v52 = vor.u32 %v7197_v50, %v6954_v49  ;;  %v7184_v32 = vld [vmem:[%s9450_s19 + $0x38] sm:$0xf0]  ;;  %v6891_v49 = vor.u32 %v7180_v43, %v6888_v45  ;;  %v6895_v50 = vor.u32 %v7182_v47, %v6894_v46 }
 0x24f   : > { %v1415_v34 = vmul.f32 %v9610_v33, %v9610_v33  ;;  %1975 = vmatpush.bf16.msra.mxu2 %v6955_v52  ;;  %1928 = vmatpush.bf16.msra.mxu1 %v6927_v11 }
 0x250   : > { %1359 = vadd.xlane.f32.xlu0 %v9587_v19  ;;  %1351 = vadd.xlane.f32.xlu1 %v9589_v20 }
 0x252   : > { %v9656_v48 = vpop.xlane.xlu2 %1357 }
 0x253   : > { %1976 = vmatpush.bf16.msra.mxu2 %v6943_v63  ;;  %v6879_v63 = vor.u32 %v7177_v56, %v6876_v58 }
 0x257   : > { %1977 = vmatpush.bf16.msra.mxu2 %v6931_v12 }
 0x258   : > { %1361 = vadd.xlane.f32.xlu0 %v9594_v23  ;;  %1353 = vadd.xlane.f32.xlu1 %v9596_v24 }
 0x25b   : > { %1978 = vmatpush.bf16.msra.mxu2 %v6919_v30 }
 0x25f   : > { %1979 = vmatpush.bf16.msra.mxu2 %v6907_v40  ;;  %v9681_v40 = vld [vmem:[#allocation2 + $0x28] sm:$0xff] }
 0x260   : > { %1430 = vadd.xlane.f32.xlu0 %v1409_v27  ;;  %v6915_v27 = vor.u32 %v7186_v18, %v6912_v22 }
 0x262   : > { %1929 = vmatpush.bf16.msra.mxu1 %v6915_v27 }
 0x263   : > { %1980 = vmatpush.bf16.msra.mxu2 %v6895_v50 }
 0x267   : > { %1981 = vmatpush.bf16.msra.mxu2 %v6883_v1 }
 0x268   : > { %1432 = vadd.xlane.f32.xlu0 %v1410_v31  ;;  %v6898_v31 = vld [vmem:[%s9450_s19 + $0x30] sm:$0xf] }
 0x269   : > { %v6899_v35 = vor.u32 %v7184_v32, %v6898_v31 }
 0x26b   : > { %1881 = vmatpush.bf16.msra.mxu0 %v6899_v35 }
 0x26f   : > { %1882 = vmatpush.bf16.msra.mxu0 %v6887_v44 }
 0x270   : > { %1442 = vadd.xlane.f32.xlu0 %v1415_v34  ;;  %v7183_v34 = vld [vmem:[%s9450_s19 + $0x34] sm:$0xf] }
 0x271   : > { %v6903_v39 = vor.u32 %v7183_v34, %v6900_v36 }
 0x273   : > { %1930 = vmatpush.bf16.msra.mxu1 %v6903_v39  ;;  %1883 = vmatpush.bf16.msra.mxu0 %v6875_v57 }
 0x277   : > { %1931 = vmatpush.bf16.msra.mxu1 %v6891_v49 }
 0x27b   : > { %1932 = vmatpush.bf16.msra.mxu1 %v6879_v63 }
 0x2ab   : > { %v1421_v51 = vpop.xlane.xlu0 %1420 }
 0x2ac   : > { %v1452_v52 = vmul.f32 %v1421_v51, %v9554_v60 }
 0x2ae   : > { %v1468_v62 = vadd.f32 1e-05, %v1452_v52 }
 0x2b0   : > { %8194 = vrsqrt.f32 %v1468_v62  ;;  %vm1490_vm10 = vweird.f32 %v1468_v62 }
 0x2b3   : > { %v1423_v2 = vpop.xlane.xlu1 %1422  ;;  %v1348_v3 = vpop.xlane.xlu0 %1347 }
 0x2b4   : > { %v1453_v4 = vmul.f32 %v1423_v2, %v9554_v60  ;;  %v1379_v5 = vmul.f32 %v9554_v60, %v1348_v3  ;;  %v1427_v6 = vpop.xlane.xlu2 %1426 }
 0x2b5   : > { %v1455_v7 = vmul.f32 %v1427_v6, %v9554_v60 }
 0x2b6   : > { %v8195_v11 = vpop.eup %8194  ;;  %v1469_v12 = vadd.f32 1e-05, %v1453_v4  ;;  %v9669_v13 = vsub.f32 %v9568_v10, %v1379_v5  ;;  %v9723_v5 = vld [vmem:[%s12648_s27] ss:$0 sm:$0xff] }
 0x2b7   : > { %v1485_v16 = vmul.f32 %v8195_v11, %v1468_v62  ;;  %v9671_v18 = vadd.f32 1e-05, %v1455_v7  ;;  %vm1491_vm9 = vweird.f32 %v8195_v11 }
 0x2b8   : > { %8196 = vrsqrt.f32 %v1469_v12  ;;  %v1411_v21 = vmul.f32 %v9669_v13, %v9669_v13  ;;  %vm9685_vm11 = vmor %vm1490_vm10, %vm1491_vm9  ;;  %vm1500_vm12 = vweird.f32 %v1469_v12 }
 0x2b9   : > { %v1486_v22 = vmul.f32 %v8195_v11, %v1485_v16  ;;  %8198 = vrsqrt.f32 %v9671_v18  ;;  %vm1520_vm15 = vweird.f32 %v9671_v18 }
 0x2ba   : > { %1434 = vadd.xlane.f32.xlu1 %v1411_v21 }
 0x2bb   : > { %v1487_v26 = vmul.f32 0.5, %v1486_v22  ;;  %v1425_v27 = vpop.xlane.xlu1 %1424  ;;  %v1350_v28 = vpop.xlane.xlu0 %1349 }
 0x2bc   : > { %v1454_v30 = vmul.f32 %v1425_v27, %v9554_v60  ;;  %v1429_v31 = vpop.xlane.xlu2 %1428  ;;  %v1380_v35 = vmul.f32 %v9554_v60, %v1350_v28 }
 0x2bd   : > { %v1488_v32 = vsub.f32 1.5, %v1487_v26  ;;  %v1456_v36 = vmul.f32 %v1429_v31, %v9554_v60 }
 0x2be   : > { %v8197_v10 = vpop.eup %8196  ;;  %v1470_v34 = vadd.f32 1e-05, %v1454_v30  ;;  %v9692_v45 = vsub.f32 %v9582_v17, %v1380_v35 }
 0x2bf   : > { %v9679_v37 = vpop.eup %8198  ;;  %v1489_v38 = vmul.f32 %v8195_v11, %v1488_v32  ;;  %v1495_v39 = vmul.f32 %v8197_v10, %v1469_v12  ;;  %v9694_v46 = vadd.f32 1e-05, %v1456_v36  ;;  %vm1501_vm13 = vweird.f32 %v8197_v10 }
 0x2c0   : > { %v1515_v41 = vmul.f32 %v9679_v37, %v9671_v18  ;;  %8200 = vrsqrt.f32 %v1470_v34  ;;  %vm1502_vm14 = vmor %vm1500_vm12, %vm1501_vm13  ;;  %v1412_v57 = vmul.f32 %v9692_v45, %v9692_v45  ;;  %vm1521_vm0 = vweird.f32 %v9679_v37 }
 0x2c1   : > { %v1496_v42 = vmul.f32 %v8197_v10, %v1495_v39  ;;  %v1493_v47 = vsel %vm9685_vm11, %v8195_v11, %v1489_v38  ;;  %8202 = vrsqrt.f32 %v9694_v46  ;;  %vm1510_vm1 = vweird.f32 %v1470_v34  ;;  %vm9736_vm3 = vmor %vm1520_vm15, %vm1521_vm0 }
 0x2c2   : > { %v1516_v44 = vmul.f32 %v9679_v37, %v1515_v41  ;;  %1363 = vadd.xlane.f32.xlu1 %v9681_v40  ;;  %v1644_v58 = vmul.f32 %v1493_v47, %v9557_v0  ;;  %vm1530_vm5 = vweird.f32 %v9694_v46 }
 0x2c3   : > { %v1497_v49 = vmul.f32 0.5, %v1496_v42  ;;  %v1352_v50 = vpop.xlane.xlu1 %1351  ;;  %v1360_v51 = vpop.xlane.xlu0 %1359 }
 0x2c4   : > { %v1381_v52 = vmul.f32 %v9554_v60, %v1352_v50  ;;  %v1517_v55 = vmul.f32 0.5, %v1516_v44  ;;  %v1664_v0 = vmul.f32 %v9711_v59, %v1644_v58 }
 0x2c5   : > { %v1498_v53 = vsub.f32 1.5, %v1497_v49 }
 0x2c6   : > { %v8201_v56 = vpop.eup %8200  ;;  %v9700_v17 = vsub.f32 %v9589_v20, %v1381_v52  ;;  %v1384_v20 = vmul.f32 %v9554_v60, %v9656_v48  ;;  %v1518_v2 = vsub.f32 1.5, %v1517_v55  ;;  %v1684_v31 = vadd.f32 %v9723_v5, %v1664_v0 }
 0x2c7   : > { %v1499_v61 = vmul.f32 %v8197_v10, %v1498_v53  ;;  %v1505_v62 = vmul.f32 %v8201_v56, %v1470_v34  ;;  %vm1511_vm2 = vweird.f32 %v8201_v56  ;;  %v8203_v11 = vpop.eup %8202 }
 0x2c8   : > { %v1413_v63 = vmul.f32 %v9700_v17, %v9700_v17  ;;  %v9726_v12 = vsub.f32 %v9551_v54, %v1384_v20  ;;  %v1519_v22 = vmul.f32 %v9679_v37, %v1518_v2  ;;  %v1385_v54 = vmul.f32 %v9554_v60, %v1360_v51  ;;  %vm9741_vm4 = vmor %vm1510_vm1, %vm1511_vm2 }
 0x2c9   : > { %v1503_v1 = vsel %vm1502_vm14, %v8197_v10, %v1499_v61  ;;  %v1506_v3 = vmul.f32 %v8201_v56, %v1505_v62  ;;  %v1525_v34 = vmul.f32 %v8203_v11, %v9694_v46  ;;  %vm1531_vm6 = vweird.f32 %v8203_v11 }
 0x2ca   : > { %v1645_v4 = vmul.f32 %v1503_v1, %v9564_v8  ;;  %1438 = vadd.xlane.f32.xlu2 %v1413_v63  ;;  %1436 = vadd.xlane.f32.xlu1 %v1412_v57  ;;  %v1416_v38 = vmul.f32 %v9726_v12, %v9726_v12  ;;  %v1523_v39 = vsel %vm9736_vm3, %v9679_v37, %v1519_v22  ;;  %vm1532_vm7 = vmor %vm1530_vm5, %vm1531_vm6 }
 0x2cb   : > { %v1507_v48 = vmul.f32 0.5, %v1506_v3  ;;  %v1354_v6 = vpop.xlane.xlu1 %1353  ;;  %v1362_v7 = vpop.xlane.xlu0 %1361  ;;  %v9766_v41 = vsub.f32 %v9587_v19, %v1385_v54  ;;  %v1526_v42 = vmul.f32 %v8203_v11, %v1525_v34  ;;  %v1647_v44 = vmul.f32 %v1523_v39, %v9566_v9 }
 0x2cc   : > { %v1382_v8 = vmul.f32 %v9554_v60, %v1354_v6  ;;  %v1386_v16 = vmul.f32 %v9554_v60, %v1362_v7  ;;  %v1665_v21 = vmul.f32 %v9711_v59, %v1645_v4 }
 0x2cd   : > { %v1508_v27 = vsub.f32 1.5, %v1507_v48  ;;  %v1417_v50 = vmul.f32 %v9766_v41, %v9766_v41  ;;  %v1527_v51 = vmul.f32 0.5, %v1526_v42  ;;  %v1667_v52 = vmul.f32 %v9711_v59, %v1647_v44 }
 0x2ce   : > { %v9746_v30 = vsub.f32 %v9596_v24, %v1382_v8  ;;  %v1685_v32 = vadd.f32 %v9723_v5, %v1665_v21  ;;  %v9751_v18 = vsub.f32 %v9594_v23, %v1386_v16 }
 0x2cf   : > { %v1509_v10 = vmul.f32 %v8201_v56, %v1508_v27  ;;  %v1528_v53 = vsub.f32 1.5, %v1527_v51 }
 0x2d0   : > { %v1414_v35 = vmul.f32 %v9746_v30, %v9746_v30  ;;  %v1700_v36 = vpack.c.bf16 %v1685_v32, %v1684_v31  ;;  %v1418_v24 = vmul.f32 %v9751_v18, %v9751_v18 }
 0x2d1   : > { %v1513_v23 = vsel %vm9741_vm4, %v8201_v56, %v1509_v10  ;;  %v1529_v56 = vmul.f32 %v8203_v11, %v1528_v53 }
 0x2d2   : > { %1440 = vadd.xlane.f32.xlu2 %v1414_v35  ;;  %1884 = vmatmul.bf16.vlgmr.msra.gmra.mxu0 %v1700_v36  ;;  %v1646_v47 = vmul.f32 %v1513_v23, %v9575_v14  ;;  %v1687_v14 = vadd.f32 %v9723_v5, %v1667_v52 }
 0x2d3   : > { %1933 = vmatmul.bf16.vlgmr.msra.gmra.mxu1 %v1700_v36  ;;  %1982 = vmatmul.bf16.vlgmr.msra.gmra.mxu2 %v1700_v36  ;;  %v1431_v43 = vpop.xlane.xlu0 %1430  ;;  %v1533_v62 = vsel %vm1532_vm7, %v8203_v11, %v1529_v56 }
 0x2d4   : > { %1444 = vadd.xlane.f32.xlu1 %v1416_v38  ;;  %1448 = vadd.xlane.f32.xlu0 %v1418_v24  ;;  %v1457_v37 = vmul.f32 %v1431_v43, %v9554_v60  ;;  %v1666_v19 = vmul.f32 %v9711_v59, %v1646_v47  ;;  %v1648_v1 = vmul.f32 %v1533_v62, %v9578_v15 }
 0x2d6   : > { %v1473_v49 = vadd.f32 1e-05, %v1457_v37  ;;  %v1686_v9 = vadd.f32 %v9723_v5, %v1666_v19  ;;  %v1668_v4 = vmul.f32 %v9711_v59, %v1648_v1 }
 0x2d8   : > { %8204 = vrsqrt.f32 %v1473_v49  ;;  %v1701_v58 = vpack.c.bf16 %v1687_v14, %v1686_v9  ;;  %vm1540_vm8 = vweird.f32 %v1473_v49  ;;  %v1688_v48 = vadd.f32 %v9723_v5, %v1668_v4 }
 0x2da   : > { %1446 = vadd.xlane.f32.xlu2 %v1417_v50 }
 0x2db   : > { %v1433_v11 = vpop.xlane.xlu0 %1432 }
 0x2dc   : > { %v1458_v15 = vmul.f32 %v1433_v11, %v9554_v60 }
 0x2de   : > { %v8205_v55 = vpop.eup %8204  ;;  %v1474_v8 = vadd.f32 1e-05, %v1458_v15 }
 0x2df   : > { %v1535_v57 = vmul.f32 %v8205_v55, %v1473_v49  ;;  %vm1541_vm9 = vweird.f32 %v8205_v55 }
 0x2e0   : > { %vm1542_vm10 = vmor %vm1540_vm8, %vm1541_vm9  ;;  %8206 = vrsqrt.f32 %v1474_v8  ;;  %vm1550_vm11 = vweird.f32 %v1474_v8 }
 0x2e1   : > { %v1536_v61 = vmul.f32 %v8205_v55, %v1535_v57 }
 0x2e2   : > { %1889 = vmatmul.bf16.gmra.mxu0 %v1701_v58 }
 0x2e3   : > { %v1537_v20 = vmul.f32 0.5, %v1536_v61  ;;  %1938 = vmatmul.bf16.gmra.mxu1 %v1701_v58  ;;  %1987 = vmatmul.bf16.gmra.mxu2 %v1701_v58  ;;  %v1443_v28 = vpop.xlane.xlu0 %1442 }
 0x2e4   : > { %v1463_v34 = vmul.f32 %v1443_v28, %v9554_v60 }
 0x2e5   : > { %v1538_v63 = vsub.f32 1.5, %v1537_v20 }
 0x2e6   : > { %v8207_v16 = vpop.eup %8206  ;;  %v9797_v42 = vadd.f32 1e-05, %v1463_v34 }
 0x2e7   : > { %v1539_v2 = vmul.f32 %v8205_v55, %v1538_v63  ;;  %v1545_v21 = vmul.f32 %v8207_v16, %v1474_v8  ;;  %vm1551_vm12 = vweird.f32 %v8207_v16 }
 0x2e8   : > { %vm9793_vm13 = vmor %vm1550_vm11, %vm1551_vm12  ;;  %vm1600_vm9 = vweird.f32 %v9797_v42 }
 0x2e9   : > { %v1543_v46 = vsel %vm1542_vm10, %v8205_v55, %v1539_v2  ;;  %v1546_v22 = vmul.f32 %v8207_v16, %v1545_v21 }
 0x2ea   : > { %v1649_v3 = vmul.f32 %v1543_v46, %v9600_v25 }
 0x2eb   : > { %v1547_v54 = vmul.f32 0.5, %v1546_v22 }
 0x2ec   : > { %v1669_v0 = vmul.f32 %v9711_v59, %v1649_v3 }
 0x2ed   : > { %v1548_v32 = vsub.f32 1.5, %v1547_v54 }
 0x2ee   : > { %v1689_v6 = vadd.f32 %v9723_v5, %v1669_v0  ;;  %v9819_v0 = vld [vmem:[%s9389_s22] sm:$0x7]  ;;  %s12779_s22 = scalar_lea.vmem [#allocation10], %s9379_s9 }
 0x2ef   : > { %v1549_v24 = vmul.f32 %v8207_v16, %v1548_v32  ;;  %v9824_v8 = vperm.slane %v9819_v0, 0 }
 0x2f0   : > { %v1702_v7 = vpack.c.bf16 %v1689_v6, %v1688_v48 }
 0x2f2   : > { %1894 = vmatmul.bf16.gmra.mxu0 %v1702_v7 }
 0x2f3   : > { %1943 = vmatmul.bf16.gmra.mxu1 %v1702_v7  ;;  %1992 = vmatmul.bf16.gmra.mxu2 %v1702_v7 }
 0x32d   : > { %v1435_v25 = vpop.xlane.xlu1 %1434 }
 0x32e   : > { %v1459_v26 = vmul.f32 %v1435_v25, %v9554_v60 }
 0x330   : > { %v1475_v27 = vadd.f32 1e-05, %v1459_v26 }
 0x332   : > { %8208 = vrsqrt.f32 %v1475_v27  ;;  %vm1560_vm15 = vweird.f32 %v1475_v27 }
 0x333   : > { %8210 = vrsqrt.f32 %v9797_v42 }
 0x335   : > { %v1364_v31 = vpop.xlane.xlu1 %1363 }
 0x336   : > { %v1387_v10 = vmul.f32 %v9554_v60, %v1364_v31 }
 0x338   : > { %v8209_v35 = vpop.eup %8208  ;;  %v9789_v36 = vsub.f32 %v9681_v40, %v1387_v10  ;;  %v1553_v40 = vsel %vm9793_vm13, %v8207_v16, %v1549_v24  ;;  %v9827_v16 = vperm.slane %v9819_v0, 1 }
 0x339   : > { %v1555_v38 = vmul.f32 %v8209_v35, %v1475_v27  ;;  %vm1561_vm14 = vweird.f32 %v8209_v35  ;;  %v1650_v9 = vmul.f32 %v1553_v40, %v9605_v29  ;;  %v9806_v56 = vpop.eup %8210 }
 0x33a   : > { %v1419_v39 = vmul.f32 %v9789_v36, %v9789_v36  ;;  %vm1562_vm0 = vmor %vm1560_vm15, %vm1561_vm14  ;;  %v1595_v29 = vmul.f32 %v9806_v56, %v9797_v42  ;;  %vm1601_vm10 = vweird.f32 %v9806_v56 }
 0x33b   : > { %v1556_v43 = vmul.f32 %v8209_v35, %v1555_v38  ;;  %v1670_v58 = vmul.f32 %v9711_v59, %v1650_v9  ;;  %vm9869_vm12 = vmor %vm1600_vm9, %vm1601_vm10  ;;  %vm2727_vm9 = vcmask 261120  }
 0x33c   : > { %1450 = vadd.xlane.f32.xlu1 %v1419_v39  ;;  %v1596_v11 = vmul.f32 %v9806_v56, %v1595_v29 }
 0x33d   : > { %v1557_v44 = vmul.f32 0.5, %v1556_v43  ;;  %v1439_v47 = vpop.xlane.xlu2 %1438  ;;  %v1437_v37 = vpop.xlane.xlu1 %1436  ;;  %v1690_v4 = vadd.f32 %v9723_v5, %v1670_v58 }
 0x33e   : > { %v1461_v49 = vmul.f32 %v1439_v47, %v9554_v60  ;;  %v1460_v50 = vmul.f32 %v1437_v37, %v9554_v60  ;;  %v1597_v43 = vmul.f32 0.5, %v1596_v11 }
 0x33f   : > { %v1558_v51 = vsub.f32 1.5, %v1557_v44 }
 0x340   : > { %v1477_v19 = vadd.f32 1e-05, %v1461_v49  ;;  %v1476_v52 = vadd.f32 1e-05, %v1460_v50 }
 0x341   : > { %v1559_v53 = vmul.f32 %v8209_v35, %v1558_v51 }
 0x342   : > { %8212 = vrsqrt.f32 %v1477_v19  ;;  %vm1580_vm1 = vweird.f32 %v1477_v19  ;;  %vm1570_vm3 = vweird.f32 %v1476_v52 }
 0x343   : > { %v1563_v14 = vsel %vm1562_vm0, %v8209_v35, %v1559_v53  ;;  %8214 = vrsqrt.f32 %v1476_v52 }
 0x344   : > { %v1651_v55 = vmul.f32 %v1563_v14, %v9669_v13 }
 0x345   : > { %v1441_v57 = vpop.xlane.xlu2 %1440 }
 0x346   : > { %v1462_v61 = vmul.f32 %v1441_v57, %v9554_v60  ;;  %v1671_v62 = vmul.f32 %v9711_v59, %v1651_v55 }
 0x347   : > { %v1445_v20 = vpop.xlane.xlu1 %1444 }
 0x348   : > { %v8213_v63 = vpop.eup %8212  ;;  %v9813_v1 = vadd.f32 1e-05, %v1462_v61  ;;  %v1691_v2 = vadd.f32 %v9723_v5, %v1671_v62  ;;  %v1464_v3 = vmul.f32 %v1445_v20, %v9554_v60 }
 0x349   : > { %v8215_v46 = vpop.eup %8214  ;;  %v1575_v13 = vmul.f32 %v8213_v63, %v1477_v19  ;;  %vm1581_vm2 = vweird.f32 %v8213_v63 }
 0x34a   : > { %v1565_v48 = vmul.f32 %v8215_v46, %v1476_v52  ;;  %8216 = vrsqrt.f32 %v9813_v1  ;;  %v1703_v7 = vpack.c.bf16 %v1691_v2, %v1690_v4  ;;  %v9829_v25 = vadd.f32 1e-05, %v1464_v3  ;;  %vm9832_vm5 = vmor %vm1580_vm1, %vm1581_vm2 }
 0x34b   : > { %v1576_v6 = vmul.f32 %v8213_v63, %v1575_v13  ;;  %vm1571_vm4 = vweird.f32 %v8215_v46  ;;  %v1598_v52 = vsub.f32 1.5, %v1597_v43  ;;  %vm1590_vm7 = vweird.f32 %v9813_v1 }
 0x34c   : > { %v1566_v15 = vmul.f32 %v8215_v46, %v1565_v48  ;;  %1899 = vmatmul.bf16.gmra.mxu0 %v1703_v7  ;;  %1948 = vmatmul.bf16.gmra.mxu1 %v1703_v7  ;;  %vm1572_vm6 = vmor %vm1570_vm3, %vm1571_vm4  ;;  %8218 = vrsqrt.f32 %v9829_v25  ;;  %vm1610_vm15 = vweird.f32 %v9829_v25 }
 0x34d   : > { %v1577_v21 = vmul.f32 0.5, %v1576_v6  ;;  %v1447_v22 = vpop.xlane.xlu2 %1446  ;;  %1997 = vmatmul.bf16.gmra.mxu2 %v1703_v7  ;;  %v1599_v2 = vmul.f32 %v9806_v56, %v1598_v52 }
 0x34e   : > { %v1567_v26 = vmul.f32 0.5, %v1566_v15  ;;  %v1465_v27 = vmul.f32 %v1447_v22, %v9554_v60 }
 0x34f   : > { %v1578_v54 = vsub.f32 1.5, %v1577_v21  ;;  %v1885_v28 = vpop.f32.mrf.mxu0  ;;  %v1603_v6 = vsel %vm9869_vm12, %v9806_v56, %v1599_v2 }
 0x350   : > { %v8217_v31 = vpop.eup %8216  ;;  %v1568_v10 = vsub.f32 1.5, %v1567_v26  ;;  %v9836_v34 = vadd.f32 1e-05, %v1465_v27  ;;  %v1886_v35 = vadd.f32 %v1885_v28, %v9824_v8  ;;  %v1934_v38 = vpop.f32.mrf.mxu1 }
 0x351   : > { %v1579_v24 = vmul.f32 %v8213_v63, %v1578_v54  ;;  %v1585_v39 = vmul.f32 %v8217_v31, %v9813_v1  ;;  %v1935_v23 = vadd.f32 %v1934_v38, %v9827_v16  ;;  %vm1591_vm8 = vweird.f32 %v8217_v31 }
 0x352   : > { %v1569_v44 = vmul.f32 %v8215_v46, %v1568_v10  ;;  %8220 = vrsqrt.f32 %v9836_v34  ;;  %v9848_v9 = vpop.eup %8218  ;;  %vm9860_vm11 = vmor %vm1590_vm7, %vm1591_vm8  ;;  %v1655_v54 = vmul.f32 %v1603_v6, %v9610_v33  ;;  %vm1620_vm13 = vweird.f32 %v9836_v34 }
 0x353   : > { %v1583_v47 = vsel %vm9832_vm5, %v8213_v63, %v1579_v24  ;;  %v1586_v37 = vmul.f32 %v8217_v31, %v1585_v39  ;;  %v7442_v40 = vpack.i.bf16 %v1935_v23, %v1886_v35  ;;  %vm1611_vm0 = vweird.f32 %v9848_v9 }
 0x354   : > { %v1653_v49 = vmul.f32 %v1583_v47, %v9700_v17  ;;  %v1573_v50 = vsel %vm1572_vm6, %v8215_v46, %v1569_v44  ;;  %v1605_v46 = vmul.f32 %v9848_v9, %v9829_v25  ;;  %v1675_v10 = vmul.f32 %v9711_v59, %v1655_v54  ;;  %vm1612_vm2 = vmor %vm1610_vm15, %vm1611_vm0 }
 0x355   : > { %v1652_v51 = vmul.f32 %v1573_v50, %v9692_v45  ;;  %v1587_v19 = vmul.f32 0.5, %v1586_v37  ;;  %7443 = vxpose.xlu2.b32.start [1/16] %v7442_v40, 128 }
 0x356   : > { %v1673_v53 = vmul.f32 %v9711_v59, %v1653_v49  ;;  %v1606_v7 = vmul.f32 %v9848_v9, %v1605_v46  ;;  %v1695_v43 = vadd.f32 %v9723_v5, %v1675_v10 }
 0x357   : > { %v1588_v14 = vsub.f32 1.5, %v1587_v19  ;;  %v1887_v55 = vpop.f32.mrf.mxu0  ;;  %v1672_v57 = vmul.f32 %v9711_v59, %v1652_v51 }
 0x358   : > { %v9852_v58 = vpop.eup %8220  ;;  %v1888_v17 = vadd.f32 %v1887_v55, %v9824_v8  ;;  %v1936_v61 = vpop.f32.mrf.mxu1  ;;  %v1693_v45 = vadd.f32 %v9723_v5, %v1673_v53  ;;  %v1607_v28 = vmul.f32 0.5, %v1606_v7 }
 0x359   : > { %v1589_v62 = vmul.f32 %v8217_v31, %v1588_v14  ;;  %v1615_v20 = vmul.f32 %v9852_v58, %v9836_v34  ;;  %v1937_v29 = vadd.f32 %v1936_v61, %v9827_v16  ;;  %v1692_v1 = vadd.f32 %v9723_v5, %v1672_v57 }
 0x35a   : > { %v1608_v35 = vsub.f32 1.5, %v1607_v28  ;;  %vm1621_vm14 = vweird.f32 %v9852_v58 }
 0x35b   : > { %v7444_v13 = vpack.i.bf16 %v1937_v29, %v1888_v17  ;;  %v1704_v3 = vpack.c.bf16 %v1693_v45, %v1692_v1  ;;  %v1593_v4 = vsel %vm9860_vm11, %v8217_v31, %v1589_v62  ;;  %v1616_v48 = vmul.f32 %v9852_v58, %v1615_v20  ;;  %vm1622_vm1 = vmor %vm1620_vm13, %vm1621_vm14 }
 0x35c   : > { %v1654_v22 = vmul.f32 %v1593_v4, %v9746_v30  ;;  %v1609_v34 = vmul.f32 %v9848_v9, %v1608_v35 }
 0x35d   : > { %7445 = vxpose.xlu2.b32.cont [2/16] %v7444_v13, 128  ;;  %1904 = vmatmul.bf16.gmra.mxu0 %v1704_v3  ;;  %v1617_v26 = vmul.f32 0.5, %v1616_v48 }
 0x35e   : > { %1953 = vmatmul.bf16.gmra.mxu1 %v1704_v3  ;;  %2002 = vmatmul.bf16.gmra.mxu2 %v1704_v3  ;;  %v1674_v32 = vmul.f32 %v9711_v59, %v1654_v22  ;;  %v1613_v25 = vsel %vm1612_vm2, %v9848_v9, %v1609_v34 }
 0x35f   : > { %v1890_v11 = vpop.f32.mrf.mxu0  ;;  %v1618_v56 = vsub.f32 1.5, %v1617_v26  ;;  %v1656_v52 = vmul.f32 %v1613_v25, %v9726_v12  ;;  %v1449_v12 = vpop.xlane.xlu0 %1448 }
 0x360   : > { %v1891_v15 = vadd.f32 %v1890_v11, %v9824_v8  ;;  %v1939_v21 = vpop.f32.mrf.mxu1  ;;  %v1694_v39 = vadd.f32 %v9723_v5, %v1674_v32  ;;  %v1466_v20 = vmul.f32 %v1449_v12, %v9554_v60 }
 0x361   : > { %v1940_v27 = vadd.f32 %v1939_v21, %v9827_v16  ;;  %v1619_v33 = vmul.f32 %v9852_v58, %v1618_v56  ;;  %v1676_v55 = vmul.f32 %v9711_v59, %v1656_v52 }
 0x362   : > { %v1705_v47 = vpack.c.bf16 %v1695_v43, %v1694_v39  ;;  %v1482_v63 = vadd.f32 1e-05, %v1466_v20 }
 0x363   : > { %v7446_v31 = vpack.i.bf16 %v1940_v27, %v1891_v15  ;;  %v1623_v37 = vsel %vm1622_vm1, %v9852_v58, %v1619_v33 }
 0x364   : > { %v1657_v51 = vmul.f32 %v1623_v37, %v9766_v41  ;;  %v1696_v41 = vadd.f32 %v9723_v5, %v1676_v55  ;;  %8222 = vrsqrt.f32 %v1482_v63  ;;  %vm1630_vm3 = vweird.f32 %v1482_v63 }
 0x365   : > { %7447 = vxpose.xlu2.b32.cont [3/16] %v7446_v31, 128 }
 0x366   : > { %v1677_v14 = vmul.f32 %v9711_v59, %v1657_v51 }
 0x367   : > { %v1892_v38 = vpop.f32.mrf.mxu0 }
 0x368   : > { %v1893_v30 = vadd.f32 %v1892_v38, %v9824_v8  ;;  %v1941_v24 = vpop.f32.mrf.mxu1  ;;  %v1697_v17 = vadd.f32 %v9723_v5, %v1677_v14 }
 0x369   : > { %v1942_v23 = vadd.f32 %v1941_v24, %v9827_v16 }
 0x36a   : > { %v1706_v62 = vpack.c.bf16 %v1697_v17, %v1696_v41  ;;  %v8223_v29 = vpop.eup %8222 }
 0x36b   : > { %v7448_v44 = vpack.i.bf16 %v1942_v23, %v1893_v30  ;;  %v1625_v1 = vmul.f32 %v8223_v29, %v1482_v63  ;;  %vm1631_vm4 = vweird.f32 %v8223_v29 }
 0x36c   : > { %vm1632_vm5 = vmor %vm1630_vm3, %vm1631_vm4 }
 0x36d   : > { %7449 = vxpose.xlu2.b32.cont [4/16] %v7448_v44, 128  ;;  %1909 = vmatmul.bf16.gmra.mxu0 %v1705_v47  ;;  %v1626_v2 = vmul.f32 %v8223_v29, %v1625_v1 }
 0x36e   : > { %1958 = vmatmul.bf16.gmra.mxu1 %v1705_v47  ;;  %2007 = vmatmul.bf16.gmra.mxu2 %v1705_v47 }
 0x36f   : > { %v1895_v40 = vpop.f32.mrf.mxu0  ;;  %v1627_v3 = vmul.f32 0.5, %v1626_v2 }
 0x370   : > { %v1896_v49 = vadd.f32 %v1895_v40, %v9824_v8  ;;  %v1944_v50 = vpop.f32.mrf.mxu1 }
 0x371   : > { %v1945_v19 = vadd.f32 %v1944_v50, %v9827_v16  ;;  %v1628_v4 = vsub.f32 1.5, %v1627_v3 }
 0x373   : > { %v7450_v53 = vpack.i.bf16 %v1945_v19, %v1896_v49  ;;  %v1629_v6 = vmul.f32 %v8223_v29, %v1628_v4 }
 0x375   : > { %7451 = vxpose.xlu2.b32.cont [5/16] %v7450_v53, 128  ;;  %v1633_v15 = vsel %vm1632_vm5, %v8223_v29, %v1629_v6 }
 0x376   : > { %v1658_v26 = vmul.f32 %v1633_v15, %v9751_v18 }
 0x377   : > { %v1897_v57 = vpop.f32.mrf.mxu0 }
 0x378   : > { %v1898_v9 = vadd.f32 %v1897_v57, %v9824_v8  ;;  %v1946_v58 = vpop.f32.mrf.mxu1  ;;  %v1678_v31 = vmul.f32 %v9711_v59, %v1658_v26 }
 0x379   : > { %v1947_v61 = vadd.f32 %v1946_v58, %v9827_v16 }
 0x37a   : > { %v1698_v35 = vadd.f32 %v9723_v5, %v1678_v31 }
 0x37b   : > { %v7452_v45 = vpack.i.bf16 %v1947_v61, %v1898_v9 }
 0x37d   : > { %7453 = vxpose.xlu2.b32.cont [6/16] %v7452_v45, 128  ;;  %1914 = vmatmul.bf16.gmra.mxu0 %v1706_v62 }
 0x37e   : > { %1963 = vmatmul.bf16.gmra.mxu1 %v1706_v62  ;;  %2012 = vmatmul.bf16.gmra.mxu2 %v1706_v62 }
 0x3af   : > { %v1451_v46 = vpop.xlane.xlu1 %1450 }
 0x3b0   : > { %v1467_v42 = vmul.f32 %v1451_v46, %v9554_v60 }
 0x3b2   : > { %v1483_v13 = vadd.f32 1e-05, %v1467_v42  ;;  %v1983_v42 = vpop.f32.mrf.mxu2 }
 0x3b4   : > { %8224 = vrsqrt.f32 %v1483_v13  ;;  %vm1640_vm7 = vweird.f32 %v1483_v13 }
 0x3ba   : > { %v8225_v48 = vpop.eup %8224 }
 0x3bb   : > { %v1635_v7 = vmul.f32 %v8225_v48, %v1483_v13  ;;  %vm1641_vm6 = vweird.f32 %v8225_v48  ;;  %v1985_v13 = vpop.f32.mrf.mxu2 }
 0x3bc   : > { %vm1642_vm8 = vmor %vm1640_vm7, %vm1641_vm6 }
 0x3bd   : > { %v1636_v11 = vmul.f32 %v8225_v48, %v1635_v7 }
 0x3bf   : > { %v1637_v21 = vmul.f32 0.5, %v1636_v11 }
 0x3c1   : > { %v1638_v22 = vsub.f32 1.5, %v1637_v21 }
 0x3c3   : > { %v1639_v27 = vmul.f32 %v8225_v48, %v1638_v22  ;;  %v1988_v26 = vpop.f32.mrf.mxu2 }
 0x3c5   : > { %v1643_v54 = vsel %vm1642_vm8, %v8225_v48, %v1639_v27 }
 0x3c6   : > { %v1659_v28 = vmul.f32 %v1643_v54, %v9789_v36  ;;  %v9937_v54 = vperm.slane %v9819_v0, 2 }
 0x3c8   : > { %v1679_v32 = vmul.f32 %v9711_v59, %v1659_v28  ;;  %v1984_v28 = vadd.f32 %v1983_v42, %v9937_v54 }
 0x3c9   : > { %v1900_v56 = vpop.f32.mrf.mxu0  ;;  %v1949_v10 = vpop.f32.mrf.mxu1 }
 0x3ca   : > { %v1699_v38 = vadd.f32 %v9723_v5, %v1679_v32  ;;  %v1901_v30 = vadd.f32 %v1900_v56, %v9824_v8  ;;  %v1950_v18 = vadd.f32 %v1949_v10, %v9827_v16  ;;  %v1986_v32 = vadd.f32 %v1985_v13, %v9937_v54 }
 0x3cb   : > { %v1990_v31 = vpop.f32.mrf.mxu2  ;;  %v1989_v10 = vadd.f32 %v1988_v26, %v9937_v54 }
 0x3cc   : > { %v1707_v24 = vpack.c.bf16 %v1699_v38, %v1698_v35  ;;  %v7454_v39 = vpack.i.bf16 %v1950_v18, %v1901_v30 }
 0x3ce   : > { %1919 = vmatmul.bf16.gmra.mxu0 %v1707_v24  ;;  %1968 = vmatmul.bf16.gmra.mxu1 %v1707_v24 }
 0x3cf   : > { %7455 = vxpose.xlu2.b32.cont [7/16] %v7454_v39, 128  ;;  %2017 = vmatmul.bf16.gmra.mxu2 %v1707_v24 }
 0x3d1   : > { %v1902_v36 = vpop.f32.mrf.mxu0  ;;  %v1951_v33 = vpop.f32.mrf.mxu1 }
 0x3d2   : > { %v1903_v59 = vadd.f32 %v1902_v36, %v9824_v8  ;;  %v1952_v23 = vadd.f32 %v1951_v33, %v9827_v16 }
 0x3d3   : > { %v1993_v56 = vpop.f32.mrf.mxu2 }
 0x3d4   : > { %v7456_v43 = vpack.i.bf16 %v1952_v23, %v1903_v59  ;;  %v1994_v0 = vadd.f32 %v1993_v56, %v9937_v54 }
 0x3d7   : > { %7457 = vxpose.xlu2.b32.cont [8/16] %v7456_v43, 128 }
 0x3da   : > { %v1905_v34 = vpop.f32.mrf.mxu0 }
 0x3db   : > { %v1906_v5 = vadd.f32 %v1905_v34, %v9824_v8  ;;  %v1954_v44 = vpop.f32.mrf.mxu1 }
 0x3dc   : > { %v1955_v47 = vadd.f32 %v1954_v44, %v9827_v16 }
 0x3de   : > { %v7458_v37 = vpack.i.bf16 %v1955_v47, %v1906_v5 }
 0x3e0   : > { %7459 = vxpose.xlu2.b32.cont [9/16] %v7458_v37, 128 }
 0x3e2   : > { %v1907_v25 = vpop.f32.mrf.mxu0 }
 0x3e3   : > { %v1908_v40 = vadd.f32 %v1907_v25, %v9824_v8  ;;  %v1956_v49 = vpop.f32.mrf.mxu1 }
 0x3e4   : > { %v1957_v50 = vadd.f32 %v1956_v49, %v9827_v16 }
 0x3e6   : > { %v7460_v51 = vpack.i.bf16 %v1957_v50, %v1908_v40 }
 0x3e8   : > { %7461 = vxpose.xlu2.b32.cont [10/16] %v7460_v51, 128 }
 0x3ea   : > { %v1910_v19 = vpop.f32.mrf.mxu0 }
 0x3eb   : > { %v1911_v52 = vadd.f32 %v1910_v19, %v9824_v8  ;;  %v1959_v53 = vpop.f32.mrf.mxu1 }
 0x3ec   : > { %v1960_v14 = vadd.f32 %v1959_v53, %v9827_v16 }
 0x3ee   : > { %v7462_v55 = vpack.i.bf16 %v1960_v14, %v1911_v52 }
 0x3f0   : > { %7463 = vxpose.xlu2.b32.cont [11/16] %v7462_v55, 128 }
 0x3f2   : > { %v1912_v57 = vpop.f32.mrf.mxu0 }
 0x3f3   : > { %v1913_v9 = vadd.f32 %v1912_v57, %v9824_v8  ;;  %v1961_v58 = vpop.f32.mrf.mxu1 }
 0x3f4   : > { %v1962_v17 = vadd.f32 %v1961_v58, %v9827_v16 }
 0x3f6   : > { %v7464_v61 = vpack.i.bf16 %v1962_v17, %v1913_v9 }
 0x3f8   : > { %7465 = vxpose.xlu2.b32.cont [12/16] %v7464_v61, 128 }
 0x3fa   : > { %v1915_v41 = vpop.f32.mrf.mxu0 }
 0x3fb   : > { %v1916_v45 = vadd.f32 %v1915_v41, %v9824_v8  ;;  %v1964_v62 = vpop.f32.mrf.mxu1 }
 0x3fc   : > { %v1965_v12 = vadd.f32 %v1964_v62, %v9827_v16 }
 0x3fe   : > { %v7466_v20 = vpack.i.bf16 %v1965_v12, %v1916_v45 }
 0x400   : > { %7467 = vxpose.xlu2.b32.cont [13/16] %v7466_v20, 128 }
 0x402   : > { %v1917_v63 = vpop.f32.mrf.mxu0 }
 0x403   : > { %v1918_v29 = vadd.f32 %v1917_v63, %v9824_v8  ;;  %v1966_v1 = vpop.f32.mrf.mxu1 }
 0x404   : > { %v1967_v2 = vadd.f32 %v1966_v1, %v9827_v16 }
 0x406   : > { %v7468_v46 = vpack.i.bf16 %v1967_v2, %v1918_v29 }
 0x408   : > { %7469 = vxpose.xlu2.b32.cont [14/16] %v7468_v46, 128 }
 0x44b   : > { %v1920_v3 = vpop.f32.mrf.mxu0  ;;  %v1969_v4 = vpop.f32.mrf.mxu1 }
 0x44c   : > { %v1921_v48 = vadd.f32 %v1920_v3, %v9824_v8  ;;  %v1970_v6 = vadd.f32 %v1969_v4, %v9827_v16 }
 0x44e   : > { %v7470_v7 = vpack.i.bf16 %v1970_v6, %v1921_v48 }
 0x450   : > { %7471 = vxpose.xlu2.b32.cont [15/16] %v7470_v7, 128 }
 0x453   : > { %v1922_v11 = vpop.f32.mrf.mxu0  ;;  %v1971_v15 = vpop.f32.mrf.mxu1 }
 0x454   : > { %v1923_v21 = vadd.f32 %v1922_v11, %v9824_v8  ;;  %v1972_v22 = vadd.f32 %v1971_v15, %v9827_v16  ;;  %v1995_v8 = vpop.f32.mrf.mxu2  ;;  %v1991_v16 = vadd.f32 %v1990_v31, %v9937_v54 }
 0x455   : > { %v1996_v24 = vadd.f32 %v1995_v8, %v9937_v54 }
 0x456   : > { %v7472_v27 = vpack.i.bf16 %v1972_v22, %v1923_v21 }
 0x458   : > { %7473 = vxpose.xlu2.b32.end [16/16] %v7472_v27, 128 }
 0x45c   : > { %v1998_v38 = vpop.f32.mrf.mxu2 }
 0x45d   : > { %v1999_v36 = vadd.f32 %v1998_v38, %v9937_v54 }
 0x460   : > { %2343 = vxpose.xlu2.b32.start [1/16] %v1984_v28, 128 }
 0x464   : > { %v2000_v18 = vpop.f32.mrf.mxu2 }
 0x465   : > { %v2001_v23 = vadd.f32 %v2000_v18, %v9937_v54 }
 0x468   : > { %2344 = vxpose.xlu2.b32.cont [2/16] %v1986_v32, 128 }
 0x46c   : > { %v2003_v33 = vpop.f32.mrf.mxu2 }
 0x46d   : > { %v2004_v5 = vadd.f32 %v2003_v33, %v9937_v54 }
 0x470   : > { %2345 = vxpose.xlu2.b32.cont [3/16] %v1989_v10, 128 }
 0x474   : > { %v2005_v43 = vpop.f32.mrf.mxu2 }
 0x475   : > { %v2006_v37 = vadd.f32 %v2005_v43, %v9937_v54 }
 0x478   : > { %2346 = vxpose.xlu2.b32.cont [4/16] %v1991_v16, 128 }
 0x479   : > { %v7474_v35 = vpop.trf.xlu2 }
 0x47a   : > { %7555 = vxpose.xlu0.b32.start [1/4] (short) %v7474_v35, 128 }
 0x47c   : > { %v2008_v47 = vpop.f32.mrf.mxu2 }
 0x47d   : > { %v2009_v49 = vadd.f32 %v2008_v47, %v9937_v54 }
 0x480   : > { %2347 = vxpose.xlu2.b32.cont [5/16] %v1994_v0, 128 }
 0x481   : > { %v7479_v30 = vpop.trf.xlu2 }
 0x482   : > { %7557 = vxpose.xlu0.b32.cont [2/4] (short) %v7479_v30, 128 }
 0x484   : > { %v2010_v40 = vpop.f32.mrf.mxu2 }
 0x485   : > { %v2011_v51 = vadd.f32 %v2010_v40, %v9937_v54 }
 0x488   : > { %2348 = vxpose.xlu2.b32.cont [6/16] %v1996_v24, 128 }
 0x489   : > { %v7484_v39 = vpop.trf.xlu2 }
 0x48a   : > { %7559 = vxpose.xlu0.b32.cont [3/4] (short) %v7484_v39, 128 }
 0x48c   : > { %v2013_v19 = vpop.f32.mrf.mxu2 }
 0x48d   : > { %v2014_v57 = vadd.f32 %v2013_v19, %v9937_v54 }
 0x490   : > { %2349 = vxpose.xlu2.b32.cont [7/16] %v1999_v36, 128 }
 0x491   : > { %v7489_v59 = vpop.trf.xlu2 }
 0x492   : > { %7561 = vxpose.xlu0.b32.end [4/4] (short) %v7489_v59, 128 }
 0x494   : > { %v2015_v9 = vpop.f32.mrf.mxu2 }
 0x495   : > { %v2016_v45 = vadd.f32 %v2015_v9, %v9937_v54 }
 0x498   : > { %2350 = vxpose.xlu2.b32.cont [8/16] %v2001_v23, 128 }
 0x499   : > { %v7494_v34 = vpop.trf.xlu2 }
 0x49a   : > { %v7498_v14 = vunpack.i.h.bf16 %v7494_v34  ;;  %v7495_v21 = vunpack.i.l.bf16 %v7494_v34 }
 0x49c   : > { %v2018_v62 = vpop.f32.mrf.mxu2 }
 0x49d   : > { %v2019_v1 = vadd.f32 %v2018_v62, %v9937_v54 }
 0x4a0   : > { %2351 = vxpose.xlu2.b32.cont [9/16] %v2004_v5, 128 }
 0x4a1   : > { %v7499_v44 = vpop.trf.xlu2 }
 0x4a2   : > { %v7503_v61 = vunpack.i.h.bf16 %v7499_v44  ;;  %v7500_v27 = vunpack.i.l.bf16 %v7499_v44 }
 0x4a4   : > { %v2020_v13 = vpop.f32.mrf.mxu2 }
 0x4a5   : > { %v2021_v4 = vadd.f32 %v2020_v13, %v9937_v54 }
 0x4a8   : > { %2352 = vxpose.xlu2.b32.cont [10/16] %v2006_v37, 128 }
 0x4a9   : > { %v7504_v25 = vpop.trf.xlu2 }
 0x4aa   : > { %v7508_v63 = vunpack.i.h.bf16 %v7504_v25  ;;  %v7505_v32 = vunpack.i.l.bf16 %v7504_v25 }
 0x4b0   : > { %2353 = vxpose.xlu2.b32.cont [11/16] %v2009_v49, 128 }
 0x4b1   : > { %v7509_v50 = vpop.trf.xlu2 }
 0x4b2   : > { %v7513_v42 = vunpack.i.h.bf16 %v7509_v50  ;;  %v7510_v54 = vunpack.i.l.bf16 %v7509_v50 }
 0x4b8   : > { %2354 = vxpose.xlu2.b32.cont [12/16] %v2011_v51, 128 }
 0x4b9   : > { %v7514_v52 = vpop.trf.xlu2 }
 0x4ba   : > { %v7518_v53 = vunpack.i.h.bf16 %v7514_v52  ;;  %v7515_v18 = vunpack.i.l.bf16 %v7514_v52 }
 0x4bc   : > { %v7730_v55 = vpack.i.bf16 %v7518_v53, %v7498_v14 }
 0x4be   : > { %7731 = vxpose.xlu1.b32.start [1/4] (short) %v7730_v55, 128 }
 0x4c0   : > { %2355 = vxpose.xlu2.b32.cont [13/16] %v2014_v57, 128 }
 0x4c1   : > { %v7519_v58 = vpop.trf.xlu2 }
 0x4c2   : > { %v7523_v17 = vunpack.i.h.bf16 %v7519_v58  ;;  %v7520_v59 = vunpack.i.l.bf16 %v7519_v58 }
 0x4c4   : > { %v7732_v41 = vpack.i.bf16 %v7523_v17, %v7503_v61 }
 0x4c6   : > { %7733 = vxpose.xlu1.b32.cont [2/4] (short) %v7732_v41, 128 }
 0x4c8   : > { %2356 = vxpose.xlu2.b32.cont [14/16] %v2016_v45, 128 }
 0x4c9   : > { %v7524_v12 = vpop.trf.xlu2 }
 0x4ca   : > { %v7528_v20 = vunpack.i.h.bf16 %v7524_v12  ;;  %v7525_v44 = vunpack.i.l.bf16 %v7524_v12 }
 0x4cc   : > { %v7734_v29 = vpack.i.bf16 %v7528_v20, %v7508_v63 }
 0x4ce   : > { %7735 = vxpose.xlu1.b32.cont [3/4] (short) %v7734_v29, 128 }
 0x4d0   : > { %2357 = vxpose.xlu2.b32.cont [15/16] %v2019_v1, 128 }
 0x4d1   : > { %v7529_v2 = vpop.trf.xlu2 }
 0x4d2   : > { %v7533_v46 = vunpack.i.h.bf16 %v7529_v2  ;;  %v7530_v49 = vunpack.i.l.bf16 %v7529_v2 }
 0x4d4   : > { %v7736_v3 = vpack.i.bf16 %v7533_v46, %v7513_v42 }
 0x4d6   : > { %7737 = vxpose.xlu1.b32.end [4/4] (short) %v7736_v3, 128 }
 0x4d8   : > { %2358 = vxpose.xlu2.b32.end [16/16] %v2021_v4, 128 }
 0x4d9   : > { %v7534_v48 = vpop.trf.xlu2 }
 0x4da   : > { %v7538_v15 = vunpack.i.h.bf16 %v7534_v48  ;;  %v7535_v0 = vunpack.i.l.bf16 %v7534_v48 }
 0x4dc   : > { %v7818_v22 = vpack.i.bf16 %v7495_v21, %v7538_v15  ;;  %v7906_v39 = vpack.i.bf16 %v7535_v0, %v7515_v18 }
 0x4e1   : > { %v7539_v6 = vpop.trf.xlu2 }
 0x4e2   : > { %v7543_v26 = vunpack.i.h.bf16 %v7539_v6  ;;  %v7540_v36 = vunpack.i.l.bf16 %v7539_v6 }
 0x4e4   : > { %v7820_v28 = vpack.i.bf16 %v7500_v27, %v7543_v26  ;;  %v7908_v43 = vpack.i.bf16 %v7540_v36, %v7520_v59 }
 0x4e9   : > { %v7544_v7 = vpop.trf.xlu2 }
 0x4ea   : > { %v7548_v31 = vunpack.i.h.bf16 %v7544_v7  ;;  %v7545_v34 = vunpack.i.l.bf16 %v7544_v7 }
 0x4ec   : > { %v7822_v56 = vpack.i.bf16 %v7505_v32, %v7548_v31  ;;  %v7910_v37 = vpack.i.bf16 %v7545_v34, %v7525_v44 }
 0x4f1   : > { %v7549_v11 = vpop.trf.xlu2 }
 0x4f2   : > { %v7553_v10 = vunpack.i.h.bf16 %v7549_v11  ;;  %v7550_v25 = vunpack.i.l.bf16 %v7549_v11 }
 0x4f4   : > { %v7824_v8 = vpack.i.bf16 %v7510_v54, %v7553_v10  ;;  %v7912_v51 = vpack.i.bf16 %v7550_v25, %v7530_v49 }
 0x4f9   : > { %v2359_v24 = vpop.trf.xlu2 }
 0x4fa   : > { %7819 = vxpose.xlu0.b32.start [1/4] (short) %v7818_v22, 128 }
 0x501   : > { %v2360_v23 = vpop.trf.xlu2 }
 0x502   : > { %7821 = vxpose.xlu0.b32.cont [2/4] (short) %v7820_v28, 128 }
 0x509   : > { %v2361_v47 = vpop.trf.xlu2 }
 0x50a   : > { %7823 = vxpose.xlu0.b32.cont [3/4] (short) %v7822_v56, 128 }
 0x511   : > { %v2362_v50 = vpop.trf.xlu2 }
 0x512   : > { %7825 = vxpose.xlu0.b32.end [4/4] (short) %v7824_v8, 128 }
 0x519   : > { %v2363_v52 = vpop.trf.xlu2 }
 0x51a   : > { %v7642_v53 = vpack.i.bf16 %v2363_v52, %v2359_v24 }
 0x51c   : > { %7643 = vxpose.xlu2.b32.start [1/4] (short) %v7642_v53, 128 }
 0x51e   : > { %v9955_v16 = vpop.trf.xlu0 }
 0x521   : > { %v2364_v57 = vpop.trf.xlu2 }
 0x522   : > { %v7644_v9 = vpack.i.bf16 %v2364_v57, %v2360_v23 }
 0x524   : > { %7645 = vxpose.xlu2.b32.cont [2/4] (short) %v7644_v9, 128 }
 0x526   : > { %v9957_v35 = vpop.trf.xlu0 }
 0x529   : > { %v2365_v61 = vpop.trf.xlu2 }
 0x52a   : > { %v7646_v41 = vpack.i.bf16 %v2365_v61, %v2361_v47 }
 0x52c   : > { %7647 = vxpose.xlu2.b32.cont [3/4] (short) %v7646_v41, 128 }
 0x52e   : > { %v9959_v38 = vpop.trf.xlu0 }
 0x531   : > { %v2366_v12 = vpop.trf.xlu2 }
 0x532   : > { %v7648_v20 = vpack.i.bf16 %v2366_v12, %v2362_v50 }
 0x534   : > { %7649 = vxpose.xlu2.b32.end [4/4] (short) %v7648_v20, 128 }
 0x536   : > { %v9961_v30 = vpop.trf.xlu0 }
 0x539   : > { %v9991_v46 = vpop.trf.xlu2 }
 0x53e   : > { %7907 = vxpose.xlu1.b32.start [1/4] (short) %v7906_v39, 128  ;;  %v9963_v33 = vpop.trf.xlu0 }
 0x541   : > { %v10001_v48 = vpop.trf.xlu2 }
 0x546   : > { %7909 = vxpose.xlu1.b32.cont [2/4] (short) %v7908_v43, 128  ;;  %v9965_v5 = vpop.trf.xlu0 }
 0x549   : > { %v10011_v27 = vpop.trf.xlu2 }
 0x54e   : > { %7911 = vxpose.xlu1.b32.cont [3/4] (short) %v7910_v37, 128  ;;  %v9967_v40 = vpop.trf.xlu0 }
 0x54f   : > { %v7596_v20 = vunpack.i.h.bf16 %v9967_v40 }
 0x551   : > { %v10020_v43 = vpop.trf.xlu2 }
 0x556   : > { %7913 = vxpose.xlu1.b32.end [4/4] (short) %v7912_v51, 128  ;;  %v9969_v19 = vpop.trf.xlu0 }
 0x559   : > { %v2371_v61 = vpop.trf.xlu2 }
 0x55e   : > { %v9973_v55 = vpop.trf.xlu0 }
 0x55f   : > { %v7606_v49 = vunpack.i.h.bf16 %v9973_v55 }
 0x561   : > { %v2575_v9 = vpack.c.bf16 %v7606_v49, %v7606_v49 }
 0x562   : > { %v9971_v14 = vpop.trf.xlu1 }
 0x566   : > { %v9977_v17 = vpop.trf.xlu0 }
 0x567   : > { %v7611_v52 = vunpack.i.h.bf16 %v9977_v17 }
 0x569   : > { %v2576_v57 = vpack.c.bf16 %v7611_v52, %v7611_v52 }
 0x56a   : > { %v9975_v58 = vpop.trf.xlu1 }
 0x56e   : > { %v9981_v62 = vpop.trf.xlu0 }
 0x56f   : > { %v7616_v59 = vunpack.i.h.bf16 %v9981_v62 }
 0x571   : > { %v2577_v44 = vpack.c.bf16 %v7616_v59, %v7616_v59  ;;  %v7591_v59 = vunpack.i.h.bf16 %v9965_v5 }
 0x572   : > { %v9979_v45 = vpop.trf.xlu1 }
 0x573   : > { %v2713_v51 = vunpack.c.l.b16 %v2577_v44 }
 0x576   : > { %v9985_v29 = vpop.trf.xlu0 }
 0x577   : > { %v7621_v36 = vunpack.i.h.bf16 %v9985_v29 }
 0x579   : > { %v2578_v34 = vpack.c.bf16 %v7621_v36, %v7621_v36 }
 0x57a   : > { %v9983_v63 = vpop.trf.xlu1 }
 0x57b   : > { %v2714_v50 = vunpack.c.l.b16 %v2578_v34  ;;  %v2572_v34 = vpack.c.bf16 %v7591_v59, %v7591_v59 }
 0x57d   : > { %v2724_v53 = vpack.c.b16 %v2714_v50, %v2713_v51  ;;  %v7576_v50 = vunpack.i.h.bf16 %v9959_v38  ;;  %v2708_v52 = vunpack.c.l.b16 %v2572_v34 }
 0x57e   : > { %v9989_v2 = vpop.trf.xlu0 }
 0x57f   : > { %v7626_v22 = vunpack.i.h.bf16 %v9989_v2 }
 0x581   : > { %v2579_v56 = vpack.c.bf16 %v7626_v22, %v7626_v22  ;;  %v7601_v22 = vunpack.i.h.bf16 %v9969_v19 }
 0x582   : > { %v9987_v1 = vpop.trf.xlu1 }
 0x583   : > { %v2715_v24 = vunpack.c.l.b16 %v2579_v56 }
 0x586   : > { %v9995_v13 = vpop.trf.xlu0 }
 0x587   : > { %v7631_v21 = vunpack.i.h.bf16 %v9995_v13 }
 0x589   : > { %v2580_v32 = vpack.c.bf16 %v7631_v21, %v7631_v21  ;;  %v2711_v21 = vunpack.c.l.b16 %v2575_v9 }
 0x58a   : > { %v9993_v42 = vpop.trf.xlu1 }
 0x58b   : > { %v2716_v18 = vunpack.c.l.b16 %v2580_v32 }
 0x58d   : > { %v2725_v23 = vpack.c.b16 %v2716_v18, %v2715_v24  ;;  %v2372_v18 = vpop.trf.xlu2 }
 0x58e   : > { %v9999_v4 = vpop.trf.xlu0 }
 0x58f   : > { %v7636_v6 = vunpack.i.h.bf16 %v9999_v4  ;;  %v2771_v25 = vsel %vm2727_vm9, %v2725_v23, 0 }
 0x591   : > { %v2581_v15 = vpack.c.bf16 %v7636_v6, %v7636_v6  ;;  %v2768_v6 = vsel %vm2727_vm9, %v2724_v53, 0 }
 0x592   : > { %v9997_v3 = vpop.trf.xlu1 }
 0x593   : > { %v2717_v31 = vunpack.c.l.b16 %v2581_v15  ;;  %v2712_v15 = vunpack.c.l.b16 %v2576_v57  ;;  %v7581_v57 = vunpack.i.h.bf16 %v9961_v30 }
 0x595   : > { %v2373_v9 = vpop.trf.xlu2 }
 0x596   : > { %v10006_v11 = vpop.trf.xlu0 }
 0x597   : > { %v7641_v26 = vunpack.i.h.bf16 %v10006_v11 }
 0x599   : > { %v2582_v28 = vpack.c.bf16 %v7641_v26, %v7641_v26  ;;  %v2723_v26 = vpack.c.b16 %v2712_v15, %v2711_v21 }
 0x59a   : > { %v10004_v7 = vpop.trf.xlu1 }
 0x59b   : > { %v2718_v10 = vunpack.c.l.b16 %v2582_v28  ;;  %v2574_v28 = vpack.c.bf16 %v7601_v22, %v7601_v22  ;;  %v2765_v24 = vsel %vm2727_vm9, %v2723_v26, 0  ;;  %v7998_v22 = vpack.i.bf16 %v2373_v9, %v10011_v27 }
 0x59c   : > { %v7566_v26 = vunpack.i.h.bf16 %v9955_v16 }
 0x59d   : > { %v2726_v0 = vpack.c.b16 %v2718_v10, %v2717_v31  ;;  %v2573_v31 = vpack.c.bf16 %v7596_v20, %v7596_v20  ;;  %v7994_v10 = vpack.i.bf16 %v2371_v61, %v9991_v46  ;;  %v7996_v46 = vpack.i.bf16 %v2372_v18, %v10001_v48 }
 0x59e   : > { %v10015_v8 = vpop.trf.xlu0  ;;  %v2570_v20 = vpack.c.bf16 %v7581_v57, %v7581_v57  ;;  %v7571_v48 = vunpack.i.h.bf16 %v9957_v35  ;;  %v2567_v18 = vpack.c.bf16 %v7566_v26, %v7566_v26 }
 0x59f   : > { %v2774_v39 = vsel %vm2727_vm9, %v2726_v0, 0  ;;  %v7586_v0 = vunpack.i.h.bf16 %v9963_v33  ;;  %v2709_v36 = vunpack.c.l.b16 %v2573_v31 }
 0x5a0   : > { %2776 = vmatpush.bf16.xpose.msra.mxu3 %v2774_v39  ;;  %v2710_v39 = vunpack.c.l.b16 %v2574_v28  ;;  %v2706_v31 = vunpack.c.l.b16 %v2570_v20  ;;  %v2703_v34 = vunpack.c.l.b16 %v2567_v18 }
 0x5a1   : > { %v2571_v44 = vpack.c.bf16 %v7586_v0, %v7586_v0  ;;  %v2568_v0 = vpack.c.bf16 %v7571_v48, %v7571_v48 }
 0x5a2   : > { %v10013_v54 = vpop.trf.xlu1  ;;  %v2722_v23 = vpack.c.b16 %v2710_v39, %v2709_v36 }
 0x5a3   : > { %v2707_v53 = vunpack.c.l.b16 %v2571_v44  ;;  %v2704_v27 = vunpack.c.l.b16 %v2568_v0 }
 0x5a4   : > { %v2762_v51 = vsel %vm2727_vm9, %v2722_v23, 0 }
 0x5a5   : > { %v2721_v61 = vpack.c.b16 %v2708_v52, %v2707_v53 }
 0x5a6   : > { %v10024_v37 = vpop.trf.xlu0 }
 0x5a7   : > { %v2759_v28 = vsel %vm2727_vm9, %v2721_v61, 0 }
 0x5a8   : > { %2777 = vmatpush.bf16.xpose.msra.mxu3 %v2771_v25 }
 0x5aa   : > { %v10022_v47 = vpop.trf.xlu1 }
 0x5ae   : > { %v10031_v12 = vpop.trf.xlu0 }
 0x5b0   : > { %2778 = vmatpush.bf16.xpose.msra.mxu3 %v2768_v6  ;;  %v2569_v6 = vpack.c.bf16 %v7576_v50, %v7576_v50  ;;  %v7563_v50 = vunpack.i.l.bf16 %v9955_v16 }
 0x5b2   : > { %v10029_v41 = vpop.trf.xlu1  ;;  %v2503_v9 = vpack.c.bf16 %v7563_v50, %v7563_v50 }
 0x5b4   : > { %v2663_v16 = vunpack.c.l.b16 %v2503_v9 }
 0x5b6   : > { %v10038_v56 = vpop.trf.xlu0 }
 0x5b8   : > { %2779 = vmatpush.bf16.xpose.msra.mxu3 %v2765_v24  ;;  %v2374_v24 = vpop.trf.xlu2 }
 0x5b9   : > { %v8000_v23 = vpack.i.bf16 %v2374_v24, %v10020_v43 }
 0x5ba   : > { %v10036_v32 = vpop.trf.xlu1 }
 0x5bb   : > { %v7797_v50 = vunpack.i.h.bf16 %v10036_v32 }
 0x5be   : > { %7995 = vxpose.xlu1.b32.start [1/4] (short) %v7994_v10, 128  ;;  %v10046_v49 = vpop.trf.xlu0  ;;  %v2705_v10 = vunpack.c.l.b16 %v2569_v6 }
 0x5c0   : > { %2780 = vmatpush.bf16.xpose.msra.mxu3 %v2762_v51  ;;  %v2720_v39 = vpack.c.b16 %v2706_v31, %v2705_v10  ;;  %v2719_v51 = vpack.c.b16 %v2704_v27, %v2703_v34 }
 0x5c2   : > { %v10044_v25 = vpop.trf.xlu1  ;;  %v2756_v44 = vsel %vm2727_vm9, %v2720_v39, 0  ;;  %v2753_v43 = vsel %vm2727_vm9, %v2719_v51, 0 }
 0x5c3   : > { %v7799_v18 = vunpack.i.l.bf16 %v10044_v25  ;;  %v7802_v24 = vunpack.i.h.bf16 %v10044_v25 }
 0x5c5   : > { %v2611_v9 = vpack.c.bf16 %v7802_v24, %v7802_v24 }
 0x5c6   : > { %7997 = vxpose.xlu1.b32.cont [2/4] (short) %v7996_v46, 128  ;;  %v10052_v21 = vpop.trf.xlu0  ;;  %v7568_v46 = vunpack.i.l.bf16 %v9957_v35 }
 0x5c8   : > { %2781 = vmatpush.bf16.xpose.msra.mxu3 %v2759_v28  ;;  %v2504_v57 = vpack.c.bf16 %v7568_v46, %v7568_v46  ;;  %v7794_v46 = vunpack.i.l.bf16 %v10036_v32  ;;  %v7578_v32 = vunpack.i.l.bf16 %v9961_v30  ;;  %v7784_v30 = vunpack.i.l.bf16 %v10022_v47 }
 0x5ca   : > { %v7803_v15 = vpop.trf.xlu1  ;;  %v2664_v35 = vunpack.c.l.b16 %v2504_v57  ;;  %v2595_v57 = vpack.c.bf16 %v7799_v18, %v7799_v18  ;;  %v2610_v18 = vpack.c.bf16 %v7797_v50, %v7797_v50  ;;  %v2506_v24 = vpack.c.bf16 %v7578_v32, %v7578_v32 }
 0x5cb   : > { %v7804_v6 = vunpack.i.l.bf16 %v7803_v15 }
 0x5cc   : > { %v2666_v50 = vunpack.c.l.b16 %v2506_v24  ;;  %v7588_v24 = vunpack.i.l.bf16 %v9965_v5  ;;  %v7764_v5 = vunpack.i.l.bf16 %v9993_v42 }
 0x5cd   : > { %v2596_v39 = vpack.c.bf16 %v7804_v6, %v7804_v6 }
 0x5ce   : > { %7999 = vxpose.xlu1.b32.cont [3/4] (short) %v7998_v22, 128  ;;  %v10058_v59 = vpop.trf.xlu0  ;;  %v7807_v22 = vunpack.i.h.bf16 %v7803_v15  ;;  %v2679_v15 = vpack.c.b16 %v2664_v35, %v2663_v16  ;;  %v7792_v35 = vunpack.i.h.bf16 %v10029_v41  ;;  %v2594_v16 = vpack.c.bf16 %v7794_v46, %v7794_v46 }
 0x5cf   : > { %v2894_v25 = vunpack.c.l.b16 %v2596_v39  ;;  %v3069_v46 = vunpack.c.l.b16 %v2610_v18 }
 0x5d0   : > { %2782 = vmatpush.bf16.xpose.msra.mxu3 %v2756_v44 }
 0x5d2   : > { %v7808_v36 = vpop.trf.xlu1 }
 0x5d3   : > { %v7809_v52 = vunpack.i.l.bf16 %v7808_v36  ;;  %v7812_v53 = vunpack.i.h.bf16 %v7808_v36  ;;  %v2612_v36 = vpack.c.bf16 %v7807_v22, %v7807_v22 }
 0x5d5   : > { %v2597_v26 = vpack.c.bf16 %v7809_v52, %v7809_v52  ;;  %v2613_v31 = vpack.c.bf16 %v7812_v53, %v7812_v53  ;;  %v3071_v22 = vunpack.c.l.b16 %v2612_v36 }
 0x5d6   : > { %8001 = vxpose.xlu1.b32.end [4/4] (short) %v8000_v23, 128  ;;  %v10064_v20 = vpop.trf.xlu0 }
 0x5d7   : > { %v2895_v27 = vunpack.c.l.b16 %v2597_v26  ;;  %v3072_v44 = vunpack.c.l.b16 %v2613_v31  ;;  %v2893_v26 = vunpack.c.l.b16 %v2595_v57  ;;  %v7789_v31 = vunpack.i.l.bf16 %v10029_v41 }
 0x5d8   : > { %2783 = vmatpush.bf16.xpose.msra.mxu3 %v2753_v43 }
 0x5d9   : > { %v2593_v36 = vpack.c.bf16 %v7789_v31, %v7789_v31  ;;  %v7774_v31 = vunpack.i.l.bf16 %v10004_v7 }
 0x5da   : > { %v7813_v61 = vpop.trf.xlu1 }
 0x5db   : > { %v7814_v48 = vunpack.i.l.bf16 %v7813_v61  ;;  %v7817_v28 = vunpack.i.h.bf16 %v7813_v61 }
 0x5dd   : > { %v2598_v10 = vpack.c.bf16 %v7814_v48, %v7814_v48  ;;  %v2614_v0 = vpack.c.bf16 %v7817_v28, %v7817_v28  ;;  %v7573_v48 = vunpack.i.l.bf16 %v9959_v38  ;;  %v3070_v28 = vunpack.c.l.b16 %v2611_v9 }
 0x5de   : > { %v10071_v51 = vpop.trf.xlu0  ;;  %v7787_v38 = vunpack.i.h.bf16 %v10022_v47  ;;  %v7779_v9 = vunpack.i.l.bf16 %v10013_v54 }
 0x5df   : > { %v2896_v23 = vunpack.c.l.b16 %v2598_v10  ;;  %v3073_v34 = vunpack.c.l.b16 %v2614_v0  ;;  %6968 = vmatmul.msk.bf16.vlgmr.msra.gmra.mxu3 %vm2727_vm9, %v2679_v15  ;;  %v2903_v10 = vpack.c.b16 %v2894_v25, %v2893_v26  ;;  %v3080_v0 = vpack.c.b16 %v3071_v22, %v3070_v28 }
 0x5e0   : > { %v2505_v39 = vpack.c.bf16 %v7573_v48, %v7573_v48  ;;  %v7782_v25 = vunpack.i.h.bf16 %v10013_v54  ;;  %v2608_v22 = vpack.c.bf16 %v7787_v38, %v7787_v38  ;;  %v2591_v26 = vpack.c.bf16 %v7779_v9, %v7779_v9 }
 0x5e1   : > { %v2904_v52 = vpack.c.b16 %v2896_v23, %v2895_v27  ;;  %v3081_v53 = vpack.c.b16 %v3073_v34, %v3072_v44  ;;  %v2609_v27 = vpack.c.bf16 %v7792_v35, %v7792_v35  ;;  %v2892_v44 = vunpack.c.l.b16 %v2594_v16 }
 0x5e2   : > { %v10073_v61 = vpop.trf.xlu1  ;;  %v2948_v15 = vsel %vm2727_vm9, %v2903_v10, 0  ;;  %v3125_v41 = vsel %vm2727_vm9, %v3080_v0, 0  ;;  %v2607_v28 = vpack.c.bf16 %v7782_v25, %v7782_v25  ;;  %v7777_v35 = vunpack.i.h.bf16 %v10004_v7 }
 0x5e3   : > { %v2951_v43 = vsel %vm2727_vm9, %v2904_v52, 0  ;;  %v3128_v6 = vsel %vm2727_vm9, %v3081_v53, 0  ;;  %v2665_v52 = vunpack.c.l.b16 %v2505_v39  ;;  %v2891_v53 = vunpack.c.l.b16 %v2593_v36 }
 0x5e4   : > { %2953 = vmatpush.bf16.xpose.msrb.mxu0 %v2951_v43  ;;  %3130 = vmatpush.bf16.xpose.msrb.mxu1 %v3128_v6  ;;  %v3068_v57 = vunpack.c.l.b16 %v2609_v27  ;;  %v2592_v43 = vpack.c.bf16 %v7784_v30, %v7784_v30  ;;  %v3067_v18 = vunpack.c.l.b16 %v2608_v22  ;;  %v7583_v39 = vunpack.i.l.bf16 %v9963_v33 }
 0x5e5   : > { %v2902_v47 = vpack.c.b16 %v2892_v44, %v2891_v53  ;;  %v2680_v32 = vpack.c.b16 %v2666_v50, %v2665_v52  ;;  %v2889_v36 = vunpack.c.l.b16 %v2591_v26  ;;  %v3066_v27 = vunpack.c.l.b16 %v2607_v28 }
 0x5e6   : > { %v10082_v23 = vpop.trf.xlu0  ;;  %v3079_v6 = vpack.c.b16 %v3069_v46, %v3068_v57  ;;  %v2890_v10 = vunpack.c.l.b16 %v2592_v43  ;;  %v7769_v7 = vunpack.i.l.bf16 %v9997_v3  ;;  %v7772_v30 = vunpack.i.h.bf16 %v9997_v3 }
 0x5e7   : > { %v2945_v54 = vsel %vm2727_vm9, %v2902_v47, 0  ;;  %v2590_v38 = vpack.c.bf16 %v7774_v31, %v7774_v31  ;;  %v2508_v46 = vpack.c.bf16 %v7588_v24, %v7588_v24  ;;  %v2507_v50 = vpack.c.bf16 %v7583_v39, %v7583_v39 }
 0x5e8   : > { %v3122_v0 = vsel %vm2727_vm9, %v3079_v6, 0  ;;  %v2901_v44 = vpack.c.b16 %v2890_v10, %v2889_v36  ;;  %v2589_v53 = vpack.c.bf16 %v7769_v7, %v7769_v7  ;;  %v2605_v57 = vpack.c.bf16 %v7772_v30, %v7772_v30 }
 0x5e9   : > { %v7767_v33 = vunpack.i.h.bf16 %v9993_v42  ;;  %v2888_v25 = vunpack.c.l.b16 %v2590_v38  ;;  %v2668_v6 = vunpack.c.l.b16 %v2508_v46  ;;  %v2667_v22 = vunpack.c.l.b16 %v2507_v50 }
 0x5ea   : > { %v10086_v34 = vpop.trf.xlu1  ;;  %v2942_v43 = vsel %vm2727_vm9, %v2901_v44, 0  ;;  %v3064_v26 = vunpack.c.l.b16 %v2605_v57  ;;  %v7759_v28 = vunpack.i.l.bf16 %v9987_v1  ;;  %v7762_v31 = vunpack.i.h.bf16 %v9987_v1 }
 0x5eb   : > { %v7754_v36 = vunpack.i.l.bf16 %v9983_v63 }
 0x5ec   : > { %2954 = vmatpush.bf16.xpose.msrb.mxu0 %v2948_v15  ;;  %3131 = vmatpush.bf16.xpose.msrb.mxu1 %v3125_v41  ;;  %v3078_v15 = vpack.c.b16 %v3067_v18, %v3066_v27  ;;  %v2606_v41 = vpack.c.bf16 %v7777_v35, %v7777_v35  ;;  %v2588_v35 = vpack.c.bf16 %v7764_v5, %v7764_v5  ;;  %v7757_v27 = vunpack.i.h.bf16 %v9983_v63 }
 0x5ed   : > { %v2587_v24 = vpack.c.bf16 %v7759_v28, %v7759_v28  ;;  %v2603_v39 = vpack.c.bf16 %v7762_v31, %v7762_v31  ;;  %v7749_v63 = vunpack.i.l.bf16 %v9979_v45  ;;  %v2586_v57 = vpack.c.bf16 %v7754_v36, %v7754_v36 }
 0x5ee   : > { %v10092_v48 = vpop.trf.xlu0  ;;  %v3119_v3 = vsel %vm2727_vm9, %v3078_v15, 0  ;;  %v3065_v47 = vunpack.c.l.b16 %v2606_v41  ;;  %v2886_v30 = vunpack.c.l.b16 %v2588_v35  ;;  %v7598_v15 = vunpack.i.l.bf16 %v9969_v19 }
 0x5ef   : > { %6969 = vmatmul.msk.bf16.gmra.mxu3 %vm2727_vm9, %v2680_v32  ;;  %v2887_v32 = vunpack.c.l.b16 %v2589_v53  ;;  %v7593_v41 = vunpack.i.l.bf16 %v9967_v40  ;;  %v2885_v46 = vunpack.c.l.b16 %v2587_v24  ;;  %v3062_v50 = vunpack.c.l.b16 %v2603_v39 }
 0x5f0   : > { %v3077_v10 = vpack.c.b16 %v3065_v47, %v3064_v26  ;;  %v7752_v53 = vunpack.i.h.bf16 %v9979_v45  ;;  %v2602_v5 = vpack.c.bf16 %v7757_v27, %v7757_v27  ;;  %v7744_v19 = vunpack.i.l.bf16 %v9975_v58 }
 0x5f1   : > { %v2900_v42 = vpack.c.b16 %v2888_v25, %v2887_v32  ;;  %v7747_v40 = vunpack.i.h.bf16 %v9975_v58  ;;  %v2884_v26 = vunpack.c.l.b16 %v2586_v57  ;;  %v7742_v24 = vunpack.i.h.bf16 %v9971_v14 }
 0x5f2   : > { %v10096_v16 = vpop.trf.xlu1  ;;  %v3116_v38 = vsel %vm2727_vm9, %v3077_v10, 0  ;;  %v3061_v28 = vunpack.c.l.b16 %v2602_v5  ;;  %v2584_v39 = vpack.c.bf16 %v7744_v19, %v7744_v19  ;;  %v7915_v57 = vunpack.i.l.bf16 %v10073_v61 }
 0x5f3   : > { %v2939_v1 = vsel %vm2727_vm9, %v2900_v42, 0  ;;  %v2600_v58 = vpack.c.bf16 %v7747_v40, %v7747_v40 }
 0x5f4   : > { %2955 = vmatpush.bf16.xpose.msrb.mxu0 %v2945_v54  ;;  %3132 = vmatpush.bf16.xpose.msrb.mxu1 %v3122_v0  ;;  %v2604_v54 = vpack.c.bf16 %v7767_v33, %v7767_v33  ;;  %v2681_v0 = vpack.c.b16 %v2668_v6, %v2667_v22  ;;  %v2899_v33 = vpack.c.b16 %v2886_v30, %v2885_v46  ;;  %v7603_v30 = vunpack.i.l.bf16 %v9973_v55 }
 0x5f5   : > { %v2585_v6 = vpack.c.bf16 %v7749_v63, %v7749_v63  ;;  %v2601_v22 = vpack.c.bf16 %v7752_v53, %v7752_v53  ;;  %v3059_v63 = vunpack.c.l.b16 %v2600_v58  ;;  %v7920_v55 = vunpack.i.l.bf16 %v10086_v34 }
 0x5f6   : > { %v10105_v52 = vpop.trf.xlu0  ;;  %v3063_v44 = vunpack.c.l.b16 %v2604_v54  ;;  %v2936_v45 = vsel %vm2727_vm9, %v2899_v33, 0  ;;  %v2511_v5 = vpack.c.bf16 %v7603_v30, %v7603_v30  ;;  %v2535_v40 = vpack.c.bf16 %v7915_v57, %v7915_v57 }
 0x5f7   : > { %v2883_v10 = vunpack.c.l.b16 %v2585_v6  ;;  %v3060_v54 = vunpack.c.l.b16 %v2601_v22 }
 0x5f8   : > { %v3076_v25 = vpack.c.b16 %v3063_v44, %v3062_v50  ;;  %v2882_v50 = vunpack.c.l.b16 %v2584_v39 }
 0x5f9   : > { %v2898_v36 = vpack.c.b16 %v2884_v26, %v2883_v10  ;;  %v3075_v27 = vpack.c.b16 %v3061_v28, %v3060_v54  ;;  %v2536_v26 = vpack.c.bf16 %v7920_v55, %v7920_v55  ;;  %v2671_v28 = vunpack.c.l.b16 %v2511_v5 }
 0x5fa   : > { %v10109_v9 = vpop.trf.xlu1  ;;  %v3113_v31 = vsel %vm2727_vm9, %v3076_v25, 0  ;;  %v7835_v25 = vunpack.i.h.bf16 %v10024_v37 }
 0x5fb   : > { %v3110_v53 = vsel %vm2727_vm9, %v3075_v27, 0 }
 0x5fc   : > { %2956 = vmatpush.bf16.xpose.msrb.mxu0 %v2942_v43  ;;  %3133 = vmatpush.bf16.xpose.msrb.mxu1 %v3119_v3  ;;  %v2510_v43 = vpack.c.bf16 %v7598_v15, %v7598_v15  ;;  %v2509_v3 = vpack.c.bf16 %v7593_v41, %v7593_v41  ;;  %v2599_v15 = vpack.c.bf16 %v7742_v24, %v7742_v24  ;;  %v7608_v41 = vunpack.i.l.bf16 %v9977_v17 }
 0x5fd   : > { %v7830_v17 = vunpack.i.h.bf16 %v10015_v8 }
 0x5fe   : > { %v10115_v18 = vpop.trf.xlu0  ;;  %v2670_v35 = vunpack.c.l.b16 %v2510_v43  ;;  %v2669_v42 = vunpack.c.l.b16 %v2509_v3  ;;  %v3058_v3 = vunpack.c.l.b16 %v2599_v15  ;;  %v2512_v6 = vpack.c.bf16 %v7608_v41, %v7608_v41 }
 0x5ff   : > { %6970 = vmatmul.msk.bf16.gmra.mxu3 %vm2727_vm9, %v2681_v0  ;;  %v7739_v0 = vunpack.i.l.bf16 %v9971_v14  ;;  %v2933_v14 = vsel %vm2727_vm9, %v2898_v36, 0  ;;  %v7887_v54 = vunpack.i.l.bf16 %v10115_v18 }
 0x600   : > { %v3074_v19 = vpack.c.b16 %v3059_v63, %v3058_v3  ;;  %v2672_v24 = vunpack.c.l.b16 %v2512_v6  ;;  %v7882_v3 = vunpack.i.l.bf16 %v10105_v52  ;;  %v7877_v6 = vunpack.i.l.bf16 %v10092_v48 }
 0x601   : > { %v2583_v44 = vpack.c.bf16 %v7739_v0, %v7739_v0  ;;  %v2627_v63 = vpack.c.bf16 %v7887_v54, %v7887_v54 }
 0x602   : > { %v10119_v7 = vpop.trf.xlu1  ;;  %v3107_v36 = vsel %vm2727_vm9, %v3074_v19, 0  ;;  %v2683_v55 = vpack.c.b16 %v2672_v24, %v2671_v28  ;;  %v7840_v28 = vunpack.i.h.bf16 %v10031_v12 }
 0x603   : > { %v2881_v43 = vunpack.c.l.b16 %v2583_v44  ;;  %v3019_v44 = vunpack.c.l.b16 %v2536_v26  ;;  %v7845_v26 = vunpack.i.h.bf16 %v10038_v56 }
 0x604   : > { %2957 = vmatpush.bf16.xpose.msrb.mxu0 %v2939_v1  ;;  %3134 = vmatpush.bf16.xpose.msrb.mxu1 %v3116_v38  ;;  %v2682_v38 = vpack.c.b16 %v2670_v35, %v2669_v42  ;;  %v2520_v35 = vpack.c.bf16 %v7835_v25, %v7835_v25 }
 0x605   : > { %v2897_v22 = vpack.c.b16 %v2882_v50, %v2881_v43  ;;  %v2522_v24 = vpack.c.bf16 %v7845_v26, %v7845_v26  ;;  %v7850_v26 = vunpack.i.h.bf16 %v10046_v49 }
 0x606   : > { %v10128_v47 = vpop.trf.xlu0  ;;  %v2842_v41 = vunpack.c.l.b16 %v2520_v35 }
 0x607   : > { %v7892_v10 = vunpack.i.l.bf16 %v10128_v47  ;;  %v2930_v58 = vsel %vm2727_vm9, %v2897_v22, 0  ;;  %v7613_v22 = vunpack.i.l.bf16 %v9981_v62 }
 0x609   : > { %v2628_v50 = vpack.c.bf16 %v7892_v10, %v7892_v10  ;;  %v2513_v35 = vpack.c.bf16 %v7613_v22, %v7613_v22  ;;  %v7628_v22 = vunpack.i.l.bf16 %v9995_v13  ;;  %v7852_v13 = vunpack.i.l.bf16 %v10052_v21 }
 0x60a   : > { %v10132_v32 = vpop.trf.xlu1 }
 0x60c   : > { %2958 = vmatpush.bf16.xpose.msrb.mxu0 %v2936_v45  ;;  %3135 = vmatpush.bf16.xpose.msrb.mxu1 %v3113_v31  ;;  %v2519_v31 = vpack.c.bf16 %v7830_v17, %v7830_v17  ;;  %v3247_v17 = vunpack.c.l.b16 %v2627_v63 }
 0x60e   : > { %v10139_v1 = vpop.trf.xlu0  ;;  %v2841_v15 = vunpack.c.l.b16 %v2519_v31  ;;  %v2625_v31 = vpack.c.bf16 %v7877_v6, %v7877_v6  ;;  %v7925_v6 = vunpack.i.l.bf16 %v10096_v16 }
 0x60f   : > { %6971 = vmatmul.msk.bf16.gmra.mxu3 %vm2727_vm9, %v2682_v38  ;;  %v7897_v33 = vunpack.i.l.bf16 %v10139_v1  ;;  %v3018_v38 = vunpack.c.l.b16 %v2535_v40  ;;  %v7618_v40 = vunpack.i.l.bf16 %v9985_v29  ;;  %v7867_v29 = vunpack.i.l.bf16 %v10071_v51 }
 0x610   : > { %v2857_v5 = vpack.c.b16 %v2842_v41, %v2841_v15 }
 0x611   : > { %v2629_v45 = vpack.c.bf16 %v7897_v33, %v7897_v33  ;;  %v3034_v57 = vpack.c.b16 %v3019_v44, %v3018_v38  ;;  %v3248_v33 = vunpack.c.l.b16 %v2628_v50  ;;  %v2514_v54 = vpack.c.bf16 %v7618_v40, %v7618_v40 }
 0x612   : > { %v10142_v46 = vpop.trf.xlu1  ;;  %v2673_v38 = vunpack.c.l.b16 %v2513_v35  ;;  %v2844_v44 = vunpack.c.l.b16 %v2522_v24  ;;  %v2623_v63 = vpack.c.bf16 %v7867_v29, %v7867_v29  ;;  %v7855_v40 = vunpack.i.h.bf16 %v10052_v21 }
 0x613   : > { %v3249_v30 = vunpack.c.l.b16 %v2629_v45  ;;  %v3257_v19 = vpack.c.b16 %v3248_v33, %v3247_v17  ;;  %v2626_v45 = vpack.c.bf16 %v7882_v3, %v7882_v3  ;;  %v7930_v3 = vunpack.i.l.bf16 %v10109_v9 }
 0x614   : > { %2959 = vmatpush.bf16.xpose.msrb.mxu0 %v2933_v14  ;;  %3136 = vmatpush.bf16.xpose.msrb.mxu1 %v3110_v53  ;;  %v3243_v17 = vunpack.c.l.b16 %v2623_v63 }
 0x615   : > { %v3302_v10 = vsel %vm2727_vm9, %v3257_v19, 0  ;;  %v3246_v62 = vunpack.c.l.b16 %v2626_v45  ;;  %v7623_v19 = vunpack.i.l.bf16 %v9989_v2  ;;  %v2537_v45 = vpack.c.bf16 %v7925_v6, %v7925_v6 }
 0x616   : > { %v10152_v42 = vpop.trf.xlu0 }
 0x617   : > { %v7902_v39 = vunpack.i.l.bf16 %v10152_v42  ;;  %v3020_v24 = vunpack.c.l.b16 %v2537_v45  ;;  %v7860_v45 = vunpack.i.h.bf16 %v10058_v59 }
 0x619   : > { %v2630_v27 = vpack.c.bf16 %v7902_v39, %v7902_v39  ;;  %v2521_v39 = vpack.c.bf16 %v7840_v28, %v7840_v28  ;;  %v2538_v28 = vpack.c.bf16 %v7930_v3, %v7930_v3 }
 0x61a   : > { %v10156_v0 = vpop.trf.xlu1 }
 0x61b   : > { %v3250_v14 = vunpack.c.l.b16 %v2630_v27  ;;  %v7872_v27 = vunpack.i.l.bf16 %v10082_v23  ;;  %v2843_v15 = vunpack.c.l.b16 %v2521_v39  ;;  %v2516_v39 = vpack.c.bf16 %v7628_v22, %v7628_v22 }
 0x61c   : > { %2960 = vmatpush.bf16.xpose.msrb.mxu0 %v2930_v58  ;;  %3137 = vmatpush.bf16.xpose.msrb.mxu1 %v3107_v36  ;;  %v3245_v36 = vunpack.c.l.b16 %v2625_v31  ;;  %v7837_v22 = vunpack.i.l.bf16 %v10031_v12 }
 0x61d   : > { %v3258_v53 = vpack.c.b16 %v3250_v14, %v3249_v30  ;;  %v2674_v30 = vunpack.c.l.b16 %v2514_v54  ;;  %v2624_v50 = vpack.c.bf16 %v7872_v27, %v7872_v27  ;;  %v3021_v54 = vunpack.c.l.b16 %v2538_v28 }
 0x61e   : > { %v3256_v41 = vpack.c.b16 %v3246_v62, %v3245_v36  ;;  %v2515_v62 = vpack.c.bf16 %v7623_v19, %v7623_v19  ;;  %v2524_v36 = vpack.c.bf16 %v7855_v40, %v7855_v40  ;;  %v2523_v27 = vpack.c.bf16 %v7850_v26, %v7850_v26 }
 0x61f   : > { %v3305_v43 = vsel %vm2727_vm9, %v3258_v53, 0  ;;  %6972 = vmatmul.msk.bf16.gmra.mxu3 %vm2727_vm9, %v2683_v55  ;;  %v2684_v14 = vpack.c.b16 %v2674_v30, %v2673_v38  ;;  %v2858_v53 = vpack.c.b16 %v2844_v44, %v2843_v15  ;;  %v7862_v55 = vunpack.i.l.bf16 %v10064_v20 }
 0x620   : > { %3307 = vmatpush.bf16.xpose.msrb.mxu2 %v3305_v43  ;;  %v3244_v33 = vunpack.c.l.b16 %v2624_v50  ;;  %v7857_v43 = vunpack.i.l.bf16 %v10058_v59  ;;  %v3035_v2 = vpack.c.b16 %v3021_v54, %v3020_v24  ;;  %v7847_v15 = vunpack.i.l.bf16 %v10046_v49  ;;  %v10210_v54 = vpop.trf.xlu2 }
 0x621   : > { %v2622_v35 = vpack.c.bf16 %v7862_v55, %v7862_v55  ;;  %v2675_v50 = vunpack.c.l.b16 %v2515_v62  ;;  %v2846_v63 = vunpack.c.l.b16 %v2524_v36  ;;  %v2620_v55 = vpack.c.bf16 %v7852_v13, %v7852_v13  ;;  %12661 = vst [vmem:[#allocation42_spill] sm:$0xff] %v10210_v54 }
 0x622   : > { %v10161_v25 = vpop.trf.xlu1  ;;  %v3255_v31 = vpack.c.b16 %v3244_v33, %v3243_v17  ;;  %v7940_v19 = vunpack.i.l.bf16 %v10132_v32  ;;  %v7935_v40 = vunpack.i.l.bf16 %v10119_v7  ;;  %v7638_v26 = vunpack.i.l.bf16 %v10006_v11 }
 0x623   : > { %6976 = vmatmul.msk.bf16.vlgmr.msrb.gmra.mxu0 %vm2727_vm9, %v2857_v5  ;;  %6984 = vmatmul.msk.bf16.vlgmr.msrb.gmra.mxu1 %vm2727_vm9, %v3034_v57  ;;  %v3299_v5 = vsel %vm2727_vm9, %v3256_v41, 0  ;;  %v3242_v38 = vunpack.c.l.b16 %v2622_v35  ;;  %v2676_v41 = vunpack.c.l.b16 %v2516_v39  ;;  %v3240_v3 = vunpack.c.l.b16 %v2620_v55 }
 0x624   : > { %v3296_v30 = vsel %vm2727_vm9, %v3255_v31, 0  ;;  %v7633_v28 = vunpack.i.l.bf16 %v9999_v4  ;;  %v2540_v35 = vpack.c.bf16 %v7940_v19, %v7940_v19  ;;  %v2617_v12 = vpack.c.bf16 %v7837_v22, %v7837_v22 }
 0x625   : > { %v2685_v33 = vpack.c.b16 %v2676_v41, %v2675_v50  ;;  %v2518_v36 = vpack.c.bf16 %v7638_v26, %v7638_v26  ;;  %v7832_v4 = vunpack.i.l.bf16 %v10024_v37  ;;  %v7918_v22 = vunpack.i.h.bf16 %v10073_v61 }
 0x626   : > { %v3023_v39 = vunpack.c.l.b16 %v2540_v35  ;;  %v7923_v19 = vunpack.i.h.bf16 %v10086_v34  ;;  %v7945_v26 = vunpack.i.l.bf16 %v10142_v46 }
 0x628   : > { %3308 = vmatpush.bf16.xpose.msrb.mxu2 %v3302_v10  ;;  %v2621_v10 = vpack.c.bf16 %v7857_v43, %v7857_v43  ;;  %v7842_v43 = vunpack.i.l.bf16 %v10038_v56  ;;  %v7865_v56 = vunpack.i.h.bf16 %v10064_v20 }
 0x62a   : > { %v10174_v58 = vpop.trf.xlu1  ;;  %v3241_v44 = vunpack.c.l.b16 %v2621_v10  ;;  %v2618_v31 = vpack.c.bf16 %v7842_v43, %v7842_v43  ;;  %v2539_v10 = vpack.c.bf16 %v7935_v40, %v7935_v40  ;;  %v2526_v13 = vpack.c.bf16 %v7865_v56, %v7865_v56 }
 0x62b   : > { %v7950_v40 = vunpack.i.l.bf16 %v10156_v0 }
 0x62c   : > { %v3022_v62 = vunpack.c.l.b16 %v2539_v10  ;;  %v2848_v50 = vunpack.c.l.b16 %v2526_v13 }
 0x62e   : > { %v3036_v20 = vpack.c.b16 %v3023_v39, %v3022_v62 }
 0x62f   : > { %6973 = vmatmul.msk.bf16.gmra.mxu3 %vm2727_vm9, %v2684_v14  ;;  %v2845_v14 = vunpack.c.l.b16 %v2523_v27  ;;  %v2517_v27 = vpack.c.bf16 %v7633_v28, %v7633_v28 }
 0x630   : > { %3309 = vmatpush.bf16.xpose.msrb.mxu2 %v3299_v5  ;;  %v2619_v5 = vpack.c.bf16 %v7847_v15, %v7847_v15  ;;  %v2678_v15 = vunpack.c.l.b16 %v2518_v36 }
 0x631   : > { %v2859_v17 = vpack.c.b16 %v2846_v63, %v2845_v14  ;;  %v2677_v41 = vunpack.c.l.b16 %v2517_v27  ;;  %v2616_v14 = vpack.c.bf16 %v7832_v4, %v7832_v4 }
 0x632   : > { %v10178_v57 = vpop.trf.xlu1  ;;  %v3239_v6 = vunpack.c.l.b16 %v2619_v5 }
 0x633   : > { %6977 = vmatmul.msk.bf16.gmra.mxu0 %vm2727_vm9, %v2858_v53  ;;  %6985 = vmatmul.msk.bf16.gmra.mxu1 %vm2727_vm9, %v3035_v2  ;;  %v3254_v53 = vpack.c.b16 %v3242_v38, %v3241_v44  ;;  %v2525_v2 = vpack.c.bf16 %v7860_v45, %v7860_v45  ;;  %v3237_v38 = vunpack.c.l.b16 %v2617_v12  ;;  %v7827_v44 = vunpack.i.l.bf16 %v10015_v8 }
 0x634   : > { %v3253_v24 = vpack.c.b16 %v3240_v3, %v3239_v6  ;;  %v2686_v37 = vpack.c.b16 %v2678_v15, %v2677_v41  ;;  %v3236_v43 = vunpack.c.l.b16 %v2616_v14  ;;  %v7870_v3 = vunpack.i.h.bf16 %v10071_v51 }
 0x635   : > { %v3293_v49 = vsel %vm2727_vm9, %v3254_v53, 0  ;;  %v2847_v63 = vunpack.c.l.b16 %v2525_v2  ;;  %v10218_v53 = vpop.trf.xlu2  ;;  %v2615_v5 = vpack.c.bf16 %v7827_v44, %v7827_v44  ;;  %v7875_v6 = vunpack.i.h.bf16 %v10082_v23 }
 0x636   : > { %v3290_v59 = vsel %vm2727_vm9, %v3253_v24, 0  ;;  %12662 = vst [vmem:[#allocation43_spill] sm:$0xff] %v10218_v53  ;;  %v2542_v45 = vpack.c.bf16 %v7950_v40, %v7950_v40  ;;  %v2527_v35 = vpack.c.bf16 %v7870_v3, %v7870_v3  ;;  %v2551_v24 = vpack.c.bf16 %v7918_v22, %v7918_v22 }
 0x637   : > { %v2528_v10 = vpack.c.bf16 %v7875_v6, %v7875_v6  ;;  %v2552_v12 = vpack.c.bf16 %v7923_v19, %v7923_v19  ;;  %v7885_v44 = vunpack.i.h.bf16 %v10105_v52  ;;  %v7933_v15 = vunpack.i.h.bf16 %v10109_v9 }
 0x638   : > { %3310 = vmatpush.bf16.xpose.msrb.mxu2 %v3296_v30  ;;  %v3238_v30 = vunpack.c.l.b16 %v2618_v31  ;;  %v2541_v31 = vpack.c.bf16 %v7945_v26, %v7945_v26  ;;  %v3025_v23 = vunpack.c.l.b16 %v2542_v45  ;;  %v2849_v62 = vunpack.c.l.b16 %v2527_v35 }
 0x639   : > { %v2850_v36 = vunpack.c.l.b16 %v2528_v10  ;;  %v3195_v27 = vunpack.c.l.b16 %v2551_v24  ;;  %v3196_v13 = vunpack.c.l.b16 %v2552_v12  ;;  %v7928_v41 = vunpack.i.h.bf16 %v10096_v16  ;;  %v10271_v12 = vld [vmem:[%s9432_s4 + $0x10] sm:$0xff] }
 0x63a   : > { %v10191_v29 = vpop.trf.xlu1  ;;  %v3252_v55 = vpack.c.b16 %v3238_v30, %v3237_v38  ;;  %v3024_v61 = vunpack.c.l.b16 %v2541_v31  ;;  %v10244_v30 = vld [vmem:[%s9432_s4] sm:$0xff]  ;;  %v7880_v38 = vunpack.i.h.bf16 %v10092_v48  ;;  %v2554_v48 = vpack.c.bf16 %v7933_v15, %v7933_v15 }
 0x63b   : > { %v2861_v4 = vpack.c.b16 %v2850_v36, %v2849_v62  ;;  %v2553_v52 = vpack.c.bf16 %v7928_v41, %v7928_v41  ;;  %v7943_v35 = vunpack.i.h.bf16 %v10132_v32  ;;  %v7938_v10 = vunpack.i.h.bf16 %v10119_v7 }
 0x63c   : > { %v3287_v8 = vsel %vm2727_vm9, %v3252_v55, 0  ;;  %v3037_v39 = vpack.c.b16 %v3025_v23, %v3024_v61  ;;  %v7960_v55 = vunpack.i.l.bf16 %v10174_v58  ;;  %v3198_v3 = vunpack.c.l.b16 %v2554_v48 }
 0x63d   : > { %v10231_v28 = vpop.trf.xlu2  ;;  %v3197_v6 = vunpack.c.l.b16 %v2553_v52  ;;  %v7890_v23 = vunpack.i.h.bf16 %v10115_v18  ;;  %v7895_v61 = vunpack.i.h.bf16 %v10128_v47  ;;  %v2556_v62 = vpack.c.bf16 %v7943_v35, %v7943_v35 }
 0x63e   : > { %12663 = vst [vmem:[#allocation44_spill] sm:$0xff] %v10231_v28  ;;  %v2544_v16 = vpack.c.bf16 %v7960_v55, %v7960_v55  ;;  %v7970_v52 = vunpack.i.l.bf16 %v10191_v29 }
 0x63f   : > { %6974 = vmatmul.msk.bf16.gmra.mxu3 %vm2727_vm9, %v2685_v33  ;;  %v2860_v33 = vpack.c.b16 %v2848_v50, %v2847_v63  ;;  %v7955_v50 = vunpack.i.l.bf16 %v10161_v25  ;;  %v3212_v45 = vpack.c.b16 %v3198_v3, %v3197_v6  ;;  %v7953_v3 = vunpack.i.h.bf16 %v10156_v0 }
 0x640   : > { %3311 = vmatpush.bf16.xpose.msrb.mxu2 %v3293_v49  ;;  %v3235_v49 = vunpack.c.l.b16 %v2615_v5  ;;  %v3027_v26 = vunpack.c.l.b16 %v2544_v16  ;;  %v7948_v6 = vunpack.i.h.bf16 %v10142_v46 }
 0x641   : > { %v2543_v9 = vpack.c.bf16 %v7955_v50, %v7955_v50 }
 0x642   : > { %v10197_v21 = vpop.trf.xlu1  ;;  %v3251_v56 = vpack.c.b16 %v3236_v43, %v3235_v49 }
 0x643   : > { %6978 = vmatmul.msk.bf16.gmra.mxu0 %vm2727_vm9, %v2859_v17  ;;  %6986 = vmatmul.msk.bf16.gmra.mxu1 %vm2727_vm9, %v3036_v20  ;;  %v3211_v20 = vpack.c.b16 %v3196_v13, %v3195_v27  ;;  %v3026_v40 = vunpack.c.l.b16 %v2543_v9  ;;  %v2555_v27 = vpack.c.bf16 %v7938_v10, %v7938_v10  ;;  %v2531_v13 = vpack.c.bf16 %v7890_v23, %v7890_v23 }
 0x644   : > { %v3284_v34 = vsel %vm2727_vm9, %v3251_v56, 0  ;;  %v2557_v23 = vpack.c.bf16 %v7948_v6, %v7948_v6 }
 0x645   : > { %v10237_v2 = vpop.trf.xlu2  ;;  %v3038_v24 = vpack.c.b16 %v3027_v26, %v3026_v40  ;;  %v2853_v41 = vunpack.c.l.b16 %v2531_v13  ;;  %v2546_v40 = vpack.c.bf16 %v7970_v52, %v7970_v52  ;;  %v7900_v26 = vunpack.i.h.bf16 %v10139_v1 }
 0x646   : > { %12664 = vst [vmem:[#allocation45_spill] sm:$0xff] %v10237_v2  ;;  %v3201_v46 = vunpack.c.l.b16 %v2557_v23 }
 0x648   : > { %3312 = vmatpush.bf16.xpose.msrb.mxu2 %v3290_v59 }
 0x64a   : > { %v10212_v11 = vpop.trf.xlu1 }
 0x64d   : > { %v10251_v14 = vpop.trf.xlu2 }
 0x64f   : > { %6975 = vmatmul.msk.bf16.gmra.mxu3 %vm2727_vm9, %v2686_v37  ;;  %v2529_v37 = vpack.c.bf16 %v7880_v38, %v7880_v38  ;;  %v10287_v38 = vld [vmem:[%s9432_s4 + $0x18] sm:$0xff] }
 0x650   : > { %3313 = vmatpush.bf16.xpose.msrb.mxu2 %v3287_v8  ;;  %12667 = vst [vmem:[#allocation48_spill] sm:$0xff] %v10287_v38 }
 0x651   : > { %v2851_v43 = vunpack.c.l.b16 %v2529_v37 }
 0x652   : > { %v10220_v17 = vpop.trf.xlu1 }
 0x653   : > { %6979 = vmatmul.msk.bf16.gmra.mxu0 %vm2727_vm9, %v2860_v33  ;;  %6987 = vmatmul.msk.bf16.gmra.mxu1 %vm2727_vm9, %v3037_v39  ;;  %v2530_v33 = vpack.c.bf16 %v7885_v44, %v7885_v44  ;;  %v7963_v39 = vunpack.i.h.bf16 %v10174_v58  ;;  %v3199_v58 = vunpack.c.l.b16 %v2555_v27 }
 0x655   : > { %v2852_v49 = vunpack.c.l.b16 %v2530_v33  ;;  %v10262_v19 = vpop.trf.xlu2 }
 0x657   : > { %v2862_v56 = vpack.c.b16 %v2852_v49, %v2851_v43 }
 0x658   : > { %3314 = vmatpush.bf16.xpose.msrb.mxu2 %v3284_v34  ;;  %v7958_v34 = vunpack.i.h.bf16 %v10161_v25  ;;  %v3200_v25 = vunpack.c.l.b16 %v2556_v62 }
 0x65a   : > { %v10233_v51 = vpop.trf.xlu1  ;;  %v2559_v18 = vpack.c.bf16 %v7958_v34, %v7958_v34  ;;  %v3213_v48 = vpack.c.b16 %v3200_v25, %v3199_v58  ;;  %v2533_v34 = vpack.c.bf16 %v7900_v26, %v7900_v26 }
 0x65c   : > { %v3203_v44 = vunpack.c.l.b16 %v2559_v18  ;;  %v2855_v1 = vunpack.c.l.b16 %v2533_v34  ;;  %v10313_v18 = vld [vmem:[%s9432_s4 + $0x8] sm:$0xff] }
 0x65d   : > { %v10278_v36 = vpop.trf.xlu2 }
 0x65f   : > { %6992 = vmatmul.msk.bf16.vlgmr.msrb.gmra.mxu2 %vm2727_vm9, %v3211_v20  ;;  %v2560_v20 = vpack.c.bf16 %v7963_v39, %v7963_v39 }
 0x661   : > { %v3204_v15 = vunpack.c.l.b16 %v2560_v20 }
 0x662   : > { %v10239_v59 = vpop.trf.xlu1  ;;  %v2785_v63 = vpop.f32.mrf.mxu3 }
 0x663   : > { %6980 = vmatmul.msk.bf16.gmra.mxu0 %vm2727_vm9, %v2861_v4  ;;  %v10255_v5 = vadd.f32 %v2785_v63, %v10244_v30  ;;  %6988 = vmatmul.msk.bf16.gmra.mxu1 %vm2727_vm9, %v3038_v24  ;;  %v2532_v4 = vpack.c.bf16 %v7895_v61, %v7895_v61  ;;  %v7965_v63 = vunpack.i.l.bf16 %v10178_v57  ;;  %v3215_v16 = vpack.c.b16 %v3204_v15, %v3203_v44 }
 0x664   : > { %v2558_v24 = vpack.c.bf16 %v7953_v3, %v7953_v3  ;;  %v3029_v61 = vunpack.c.l.b16 %v2546_v40  ;;  %v7973_v3 = vunpack.i.h.bf16 %v10191_v29 }
 0x665   : > { %12665 = vst [vmem:[#allocation46_spill] sm:$0xff] %v10255_v5  ;;  %3356 = vmax.xlane.f32.xlu0 %v10255_v5  ;;  %v2854_v50 = vunpack.c.l.b16 %v2532_v4  ;;  %v10290_v37 = vpop.trf.xlu2  ;;  %v2545_v49 = vpack.c.bf16 %v7965_v63, %v7965_v63 }
 0x666   : > { %v3202_v62 = vunpack.c.l.b16 %v2558_v24  ;;  %v2562_v23 = vpack.c.bf16 %v7973_v3, %v7973_v3  ;;  %v7990_v3 = vunpack.i.l.bf16 %v10233_v51 }
 0x667   : > { %v2863_v9 = vpack.c.b16 %v2854_v50, %v2853_v41 }
 0x668   : > { %v3214_v4 = vpack.c.b16 %v3202_v62, %v3201_v46 }
 0x66a   : > { %v10258_v8 = vpop.trf.xlu1  ;;  %v10260_v22 = vpop.f32.mrf.mxu3 }
 0x66b   : > { %v10319_v58 = vadd.f32 %v10260_v22, %v10313_v18  ;;  %v7975_v22 = vunpack.i.l.bf16 %v10197_v21 }
 0x66d   : > { %v10305_v10 = vpop.trf.xlu2  ;;  %12669 = vst [vmem:[#allocation50_spill] sm:$0xff] %v10319_v58  ;;  %v2547_v6 = vpack.c.bf16 %v7975_v22, %v7975_v22 }
 0x66f   : > { %6993 = vmatmul.msk.bf16.gmra.mxu2 %vm2727_vm9, %v3212_v45  ;;  %v3028_v45 = vunpack.c.l.b16 %v2545_v49  ;;  %v7968_v49 = vunpack.i.h.bf16 %v10178_v57  ;;  %v3030_v34 = vunpack.c.l.b16 %v2547_v6 }
 0x671   : > { %v3039_v0 = vpack.c.b16 %v3029_v61, %v3028_v45  ;;  %v2561_v26 = vpack.c.bf16 %v7968_v49, %v7968_v49 }
 0x672   : > { %v10264_v31 = vpop.trf.xlu1  ;;  %v2790_v32 = vpop.f32.mrf.mxu3 }
 0x673   : > { %6981 = vmatmul.msk.bf16.gmra.mxu0 %vm2727_vm9, %v2862_v56  ;;  %v10281_v7 = vadd.f32 %v2790_v32, %v10271_v12  ;;  %v7905_v56 = vunpack.i.h.bf16 %v10152_v42  ;;  %6989 = vmatmul.msk.bf16.gmra.mxu1 %vm2727_vm9, %v3039_v0  ;;  %v3205_v46 = vunpack.c.l.b16 %v2561_v26 }
 0x675   : > { %12666 = vst [vmem:[#allocation47_spill] sm:$0xff] %v10281_v7  ;;  %3360 = vmax.xlane.f32.xlu2 %v10281_v7  ;;  %v2534_v39 = vpack.c.bf16 %v7905_v56, %v7905_v56  ;;  %v10310_v13 = vpop.trf.xlu2  ;;  %v10346_v56 = vld [vmem:[%s9432_s4 + $0x20] sm:$0xff] }
 0x676   : > { %v10428_v7 = vld [vmem:[%s9432_s4 + $0x40] sm:$0xff] }
 0x677   : > { %v2856_v27 = vunpack.c.l.b16 %v2534_v39  ;;  %12680 = vst [vmem:[#allocation61_spill] sm:$0xff] %v10428_v7 }
 0x679   : > { %v2864_v20 = vpack.c.b16 %v2856_v27, %v2855_v1  ;;  %v3206_v1 = vunpack.c.l.b16 %v2562_v23  ;;  %v10363_v27 = vld [vmem:[%s9432_s4 + $0x48] sm:$0xff] }
 0x67a   : > { %v10284_v47 = vpop.trf.xlu1  ;;  %v2792_v55 = vpop.f32.mrf.mxu3  ;;  %12673 = vst [vmem:[#allocation54_spill] sm:$0xff] %v10363_v27 }
 0x67b   : > { %v10293_v33 = vadd.f32 %v2792_v55, %v10287_v38  ;;  %v7980_v55 = vunpack.i.l.bf16 %v10212_v11 }
 0x67d   : > { %12668 = vst [vmem:[#allocation49_spill] sm:$0xff] %v10293_v33  ;;  %3362 = vmax.xlane.f32.xlu0 %v10293_v33  ;;  %v10326_v15 = vpop.trf.xlu2  ;;  %v2548_v40 = vpack.c.bf16 %v7980_v55, %v7980_v55  ;;  %v3216_v55 = vpack.c.b16 %v3206_v1, %v3205_v46  ;;  %v10393_v1 = vld [vmem:[%s9432_s4 + $0x30] sm:$0xff] }
 0x67e   : > { %12677 = vst [vmem:[#allocation58_spill] sm:$0xff] %v10393_v1 }
 0x67f   : > { %6994 = vmatmul.msk.bf16.gmra.mxu2 %vm2727_vm9, %v3213_v48  ;;  %v3031_v57 = vunpack.c.l.b16 %v2548_v40  ;;  %v7978_v40 = vunpack.i.h.bf16 %v10197_v21 }
 0x681   : > { %v3040_v0 = vpack.c.b16 %v3031_v57, %v3030_v34  ;;  %v7983_v34 = vunpack.i.h.bf16 %v10212_v11  ;;  %v2563_v21 = vpack.c.bf16 %v7978_v40, %v7978_v40 }
 0x682   : > { %v10297_v43 = vpop.trf.xlu1  ;;  %v2795_v35 = vpop.f32.mrf.mxu3 }
 0x683   : > { %6982 = vmatmul.msk.bf16.gmra.mxu0 %vm2727_vm9, %v2863_v9  ;;  %v10353_v29 = vadd.f32 %v2795_v35, %v10346_v56  ;;  %6990 = vmatmul.msk.bf16.gmra.mxu1 %vm2727_vm9, %v3040_v0  ;;  %v2550_v0 = vpack.c.bf16 %v7990_v3, %v7990_v3  ;;  %v2564_v46 = vpack.c.bf16 %v7983_v34, %v7983_v34 }
 0x685   : > { %v10332_v63 = vpop.trf.xlu2  ;;  %12671 = vst [vmem:[#allocation52_spill] sm:$0xff] %v10353_v29  ;;  %v3033_v60 = vunpack.c.l.b16 %v2550_v0 }
 0x68a   : > { %v10307_v32 = vpop.trf.xlu1  ;;  %v2797_v42 = vpop.f32.mrf.mxu3 }
 0x68d   : > { %v10350_v24 = vpop.trf.xlu2 }
 0x68f   : > { %6995 = vmatmul.msk.bf16.gmra.mxu2 %vm2727_vm9, %v3214_v4  ;;  %v7985_v4 = vunpack.i.l.bf16 %v10220_v17 }
 0x692   : > { %v10315_v25 = vpop.trf.xlu1  ;;  %v10324_v44 = vpop.f32.mrf.mxu3 }
 0x693   : > { %6983 = vmatmul.msk.bf16.gmra.mxu0 %vm2727_vm9, %v2864_v20  ;;  %v10402_v3 = vadd.f32 %v10324_v44, %v10393_v1 }
 0x695   : > { %v10367_v20 = vpop.trf.xlu2  ;;  %12679 = vst [vmem:[#allocation60_spill] sm:$0xff] %v10402_v3 }
 0x696   : > { %3358 = vmax.xlane.f32.xlu1 %v10319_v58 }
 0x69a   : > { %v10328_v41 = vpop.trf.xlu1  ;;  %v10330_v50 = vpop.f32.mrf.mxu3 }
 0x69f   : > { %6996 = vmatmul.msk.bf16.gmra.mxu2 %vm2727_vm9, %v3215_v16 }
 0x6a0   : > { %v2962_v48 = vpop.f32.mrf.mxu0  ;;  %v3139_v61 = vpop.f32.mrf.mxu1 }
 0x6a1   : > { %v10337_v52 = vadd.f32 %v2962_v48, %v10244_v30  ;;  %v10373_v48 = vld [vmem:[%s9432_s4 + $0x28] sm:$0xff] }
 0x6a2   : > { %v10339_v9 = vpop.trf.xlu1  ;;  %v10348_v45 = vpop.f32.mrf.mxu3  ;;  %v10387_v57 = vadd.f32 %v2797_v42, %v10373_v48  ;;  %v7988_v42 = vunpack.i.h.bf16 %v10220_v17 }
 0x6a3   : > { %12670 = vst [vmem:[#allocation51_spill] sm:$0xff] %v10337_v52  ;;  %3388 = vmax.xlane.f32.xlu1 %v10337_v52  ;;  %v10444_v33 = vadd.f32 %v10348_v45, %v10428_v7  ;;  %v7716_v45 = vunpack.i.l.bf16 %v10367_v20 }
 0x6a4   : > { %12676 = vst [vmem:[#allocation57_spill] sm:$0xff] %v10387_v57  ;;  %v10412_v17 = vpack.c.bf16 %v7988_v42, %v7988_v42  ;;  %v8043_v42 = vunpack.i.l.bf16 %v10339_v9 }
 0x6a8   : > { %v2964_v39 = vpop.f32.mrf.mxu0  ;;  %v10375_v49 = vpop.f32.mrf.mxu1 }
 0x6a9   : > { %v10356_v16 = vadd.f32 %v2964_v39, %v10313_v18  ;;  %v2549_v39 = vpack.c.bf16 %v7985_v4, %v7985_v4 }
 0x6aa   : > { %v10358_v62 = vpop.trf.xlu1  ;;  %v2807_v35 = vpop.f32.mrf.mxu3 }
 0x6ab   : > { %12672 = vst [vmem:[#allocation53_spill] sm:$0xff] %v10356_v16  ;;  %3364 = vmax.xlane.f32.xlu1 %v10353_v29  ;;  %3390 = vmax.xlane.f32.xlu0 %v10356_v16  ;;  %v10370_v22 = vadd.f32 %v2807_v35, %v10363_v27  ;;  %v7720_v35 = vpop.trf.xlu2  ;;  %v3032_v11 = vunpack.c.l.b16 %v2549_v39  ;;  %v10409_v29 = vld [vmem:[%s9432_s4 + $0x38] sm:$0xff]  ;;  %v8051_v7 = vunpack.i.h.bf16 %v10358_v62 }
 0x6ac   : > { %v7724_v44 = vunpack.i.h.bf16 %v7720_v35  ;;  %v10421_v0 = vadd.f32 %v10330_v50, %v10409_v29 }
 0x6ad   : > { %12674 = vst [vmem:[#allocation55_spill] sm:$0xff] %v10370_v22  ;;  %3374 = vmax.xlane.f32.xlu2 %v10370_v22  ;;  %v3041_v52 = vpack.c.b16 %v3033_v60, %v3032_v11  ;;  %v8038_v60 = vunpack.i.l.bf16 %v10328_v41  ;;  %v8046_v11 = vunpack.i.h.bf16 %v10339_v9 }
 0x6af   : > { %6997 = vmatmul.msk.bf16.gmra.mxu2 %vm2727_vm9, %v3216_v55  ;;  %v7993_v55 = vunpack.i.h.bf16 %v10233_v51  ;;  %v8041_v51 = vunpack.i.h.bf16 %v10328_v41  ;;  %6991 = vmatmul.msk.bf16.gmra.mxu1 %vm2727_vm9, %v3041_v52  ;;  %v7714_v52 = vunpack.i.h.bf16 %v10350_v24  ;;  %v7719_v41 = vunpack.i.h.bf16 %v10367_v20 }
 0x6b0   : > { %v2967_v6 = vpop.f32.mrf.mxu0  ;;  %v10404_v40 = vpop.f32.mrf.mxu1 }
 0x6b1   : > { %v10380_v26 = vadd.f32 %v2967_v6, %v10271_v12  ;;  %v10396_v6 = vadd.f32 %v3139_v61, %v10244_v30  ;;  %v3208_v61 = vunpack.c.l.b16 %v2564_v46  ;;  %v10417_v39 = vpack.c.bf16 %v7993_v55, %v7993_v55 }
 0x6b2   : > { %v10383_v23 = vpop.trf.xlu1  ;;  %v10433_v50 = vpack.c.bf16 %v8041_v51, %v8041_v51  ;;  %v10446_v1 = vpop.f32.mrf.mxu3 }
 0x6b3   : > { %12675 = vst [vmem:[#allocation56_spill] sm:$0xff] %v10380_v26  ;;  %3392 = vmax.xlane.f32.xlu1 %v10380_v26  ;;  %3366 = vmax.xlane.f32.xlu0 %v10387_v57  ;;  %v3207_v26 = vunpack.c.l.b16 %v2563_v21  ;;  %v7709_v21 = vunpack.i.h.bf16 %v10332_v63  ;;  %v7721_v57 = vunpack.i.l.bf16 %v7720_v35  ;;  %v10452_v35 = vpack.c.bf16 %v8046_v11, %v8046_v11 }
 0x6b4   : > { %12678 = vst [vmem:[#allocation59_spill] sm:$0xff] %v10396_v6  ;;  %v3209_v11 = vunpack.c.l.b16 %v10412_v17 }
 0x6b5   : > { %v3217_v46 = vpack.c.b16 %v3208_v61, %v3207_v26  ;;  %v10436_v26 = vpack.c.bf16 %v8038_v60, %v8038_v60  ;;  %v10438_v61 = vpack.c.bf16 %v7709_v21, %v7709_v21  ;;  %12682 = vst [vmem:[#allocation63_spill] sm:$0xff] %v10446_v1  ;;  %v4025_v21 = vpack.c.bf16 %v7719_v41, %v7719_v41 }
 0x6b8   : > { %v2969_v4 = vpop.f32.mrf.mxu0 }
 0x6b9   : > { %v10449_v51 = vadd.f32 %v2969_v4, %v10287_v38  ;;  %v8048_v4 = vunpack.i.l.bf16 %v10358_v62  ;;  %v4282_v62 = vunpack.c.l.b16 %v4025_v21 }
 0x6ba   : > { %v10406_v34 = vpop.trf.xlu1 }
 0x6bb   : > { %3420 = vmax.xlane.f32.xlu1 %v10396_v6  ;;  %3368 = vmax.xlane.f32.xlu0 %v10402_v3  ;;  %v4026_v6 = vpack.c.bf16 %v7724_v44, %v7724_v44  ;;  %v7725_v3 = vpop.trf.xlu2  ;;  %v10440_v44 = vpop.f32.mrf.mxu1  ;;  %12683 = vst [vmem:[#allocation64_spill] sm:$0xff] %v10449_v51  ;;  %v8058_v17 = vunpack.i.l.bf16 %v10406_v34  ;;  %v4037_v27 = vpack.c.bf16 %v8048_v4, %v8048_v4 }
 0x6bc   : > { %v7729_v55 = vunpack.i.h.bf16 %v7725_v3  ;;  %v7726_v5 = vunpack.i.l.bf16 %v7725_v3  ;;  %12681 = vst [vmem:[#allocation62_spill] sm:$0xff] %v10440_v44  ;;  %v10454_v3 = vpack.c.bf16 %v8043_v42, %v8043_v42  ;;  %v4010_v44 = vpack.c.bf16 %v7721_v57, %v7721_v57 }
 0x6bd   : > { %v4283_v9 = vunpack.c.l.b16 %v4026_v6  ;;  %v4024_v6 = vpack.c.bf16 %v7714_v52, %v7714_v52  ;;  %v4009_v52 = vpack.c.bf16 %v7716_v45, %v7716_v45 }
 0x6be   : > { %v4027_v22 = vpack.c.bf16 %v7729_v55, %v7729_v55  ;;  %v4011_v55 = vpack.c.bf16 %v7726_v5, %v7726_v5  ;;  %v4138_v1 = vunpack.c.l.b16 %v4010_v44 }
 0x6bf   : > { %6998 = vmatmul.msk.bf16.gmra.mxu2 %vm2727_vm9, %v3217_v46  ;;  %v7711_v46 = vunpack.i.l.bf16 %v10350_v24  ;;  %v4137_v54 = vunpack.c.l.b16 %v4009_v52  ;;  %v4281_v53 = vunpack.c.l.b16 %v4024_v6  ;;  %v8061_v24 = vunpack.i.h.bf16 %v10406_v34 }
 0x6c0   : > { %v10431_v58 = vpop.f32.mrf.mxu0  ;;  %v4284_v60 = vunpack.c.l.b16 %v4027_v22  ;;  %v4139_v42 = vunpack.c.l.b16 %v4011_v55  ;;  %v8053_v22 = vunpack.i.l.bf16 %v10383_v23 }
 0x6c1   : > { %v4008_v5 = vpack.c.bf16 %v7711_v46, %v7711_v46  ;;  %v10472_v46 = vld [vmem:[%s9432_s4 + $0x58] sm:$0xff]  ;;  %v4055_v2 = vpack.c.bf16 %v8061_v24, %v8061_v24 }
 0x6c2   : > { %v8062_v16 = vpop.trf.xlu1  ;;  %v4292_v38 = vpack.c.b16 %v4284_v60, %v4283_v9  ;;  %v4147_v20 = vpack.c.b16 %v4139_v42, %v4138_v1  ;;  %v8056_v9 = vunpack.i.h.bf16 %v10383_v23  ;;  %v4053_v1 = vpack.c.bf16 %v8051_v7, %v8051_v7  ;;  %v2812_v23 = vpop.f32.mrf.mxu3 }
 0x6c3   : > { %3394 = vmax.xlane.f32.xlu0 %v10449_v51  ;;  %v8066_v51 = vunpack.i.h.bf16 %v8062_v16  ;;  %v8063_v41 = vunpack.i.l.bf16 %v8062_v16  ;;  %v4136_v60 = vunpack.c.l.b16 %v4008_v5  ;;  %v3149_v55 = vpop.f32.mrf.mxu1  ;;  %v3210_v16 = vunpack.c.l.b16 %v10417_v39 }
 0x6c4   : > { %4301 = vmatpush.bf16.msra.mxu0 %v4292_v38  ;;  %4156 = vmatpush.bf16.msrb.mxu3 %v4147_v20  ;;  %v10469_v38 = vadd.f32 %v10375_v49, %v10313_v18  ;;  %v4038_v6 = vpack.c.bf16 %v8053_v22, %v8053_v22  ;;  %v4291_v5 = vpack.c.b16 %v4282_v62, %v4281_v53  ;;  %v7706_v53 = vunpack.i.l.bf16 %v10332_v63 }
 0x6c5   : > { %v4056_v34 = vpack.c.bf16 %v8066_v51, %v8066_v51  ;;  %v4040_v42 = vpack.c.bf16 %v8063_v41, %v8063_v41  ;;  %v4146_v52 = vpack.c.b16 %v4137_v54, %v4136_v60  ;;  %v4054_v28 = vpack.c.bf16 %v8056_v9, %v8056_v9 }
 0x6c6   : > { %v4039_v39 = vpack.c.bf16 %v8058_v17, %v8058_v17  ;;  %v10477_v49 = vadd.f32 %v10404_v40, %v10271_v12  ;;  %v3218_v7 = vpack.c.b16 %v3210_v16, %v3209_v11  ;;  %v10480_v22 = vadd.f32 %v2812_v23, %v10472_v46 }
 0x6c7   : > { %v10484_v51 = vadd.f32 %v10431_v58, %v10346_v56  ;;  %v4426_v4 = vunpack.c.l.b16 %v4040_v42  ;;  %v4571_v62 = vunpack.c.l.b16 %v4056_v34  ;;  %v4424_v9 = vunpack.c.l.b16 %v4038_v6 }
 0x6c8   : > { %v2974_v57 = vpop.f32.mrf.mxu0  ;;  %4157 = vmatpush.bf16.msrb.mxu3 %v4146_v52  ;;  %4302 = vmatpush.bf16.msra.mxu0 %v4291_v5  ;;  %v7701_v12 = vunpack.i.l.bf16 %v10326_v15  ;;  %v4425_v24 = vunpack.c.l.b16 %v4039_v39  ;;  %v4569_v17 = vunpack.c.l.b16 %v4054_v28  ;;  %v4422_v60 = vunpack.c.l.b16 %v10454_v3 }
 0x6c9   : > { %v4567_v63 = vunpack.c.l.b16 %v10452_v35  ;;  %v4568_v16 = vunpack.c.l.b16 %v4053_v1  ;;  %v10494_v23 = vadd.f32 %v2974_v57, %v10373_v48  ;;  %v8033_v28 = vunpack.i.l.bf16 %v10315_v25 }
 0x6ca   : > { %v8067_v44 = vpop.trf.xlu1  ;;  %v4006_v3 = vpack.c.bf16 %v7701_v12, %v7701_v12  ;;  %v7704_v35 = vunpack.i.h.bf16 %v10326_v15  ;;  %v10505_v52 = vpack.c.b16 %v4425_v24, %v4424_v9  ;;  %v4421_v15 = vunpack.c.l.b16 %v10436_v26 }
 0x6cb   : > { %v8071_v45 = vunpack.i.h.bf16 %v8067_v44  ;;  %v8068_v21 = vunpack.i.l.bf16 %v8067_v44  ;;  %3370 = vmax.xlane.f32.xlu0 %v10421_v0  ;;  %v4570_v44 = vunpack.c.l.b16 %v4055_v2  ;;  %v3151_v6 = vpop.f32.mrf.mxu1  ;;  %v10499_v2 = vadd.f32 %v3149_v55, %v10346_v56 }
 0x6cc   : > { %v10512_v39 = vadd.f32 %v3151_v6, %v10373_v48  ;;  %v10516_v56 = vpack.c.b16 %v4568_v16, %v4567_v63  ;;  %v4022_v26 = vpack.c.bf16 %v7704_v35, %v7704_v35  ;;  %v8031_v6 = vunpack.i.h.bf16 %v10307_v32 }
 0x6cd   : > { %v4057_v20 = vpack.c.bf16 %v8071_v45, %v8071_v45  ;;  %v4041_v54 = vpack.c.bf16 %v8068_v21, %v8068_v21  ;;  %v4423_v45 = vunpack.c.l.b16 %v4037_v27  ;;  %v4007_v21 = vpack.c.bf16 %v7706_v53, %v7706_v53 }
 0x6ce   : > { %v8036_v27 = vunpack.i.h.bf16 %v10315_v25  ;;  %v10507_v57 = vpack.c.b16 %v4570_v44, %v4569_v17  ;;  %v4034_v53 = vpack.c.bf16 %v8033_v28, %v8033_v28  ;;  %v8023_v17 = vunpack.i.l.bf16 %v10297_v43 }
 0x6cf   : > { %v4572_v11 = vunpack.c.l.b16 %v4057_v20  ;;  %6999 = vmatmul.msk.bf16.gmra.mxu2 %vm2727_vm9, %v3218_v7  ;;  %v4427_v58 = vunpack.c.l.b16 %v4041_v54  ;;  %v10509_v5 = vpack.c.b16 %v4423_v45, %v4422_v60  ;;  %v4135_v55 = vunpack.c.l.b16 %v4007_v21 }
 0x6d0   : > { %v10487_v41 = vpop.f32.mrf.mxu0  ;;  %v10522_v12 = vpack.c.bf16 %v8036_v27, %v8036_v27  ;;  %v4280_v60 = vunpack.c.l.b16 %v10438_v61  ;;  %v4420_v21 = vunpack.c.l.b16 %v4034_v53  ;;  %v4032_v61 = vpack.c.bf16 %v8023_v17, %v8023_v17 }
 0x6d1   : > { %v10503_v1 = vpack.c.b16 %v4572_v11, %v4571_v62  ;;  %v10514_v20 = vpack.c.b16 %v4427_v58, %v4426_v4  ;;  %v4134_v11 = vunpack.c.l.b16 %v4006_v3  ;;  %v4566_v3 = vunpack.c.l.b16 %v10433_v50 }
 0x6d2   : > { %v8072_v40 = vpop.trf.xlu1  ;;  %v8016_v50 = vunpack.i.h.bf16 %v10264_v31  ;;  %v7696_v17 = vunpack.i.l.bf16 %v10310_v13 }
 0x6d3   : > { %3396 = vmax.xlane.f32.xlu0 %v10484_v51  ;;  %v8076_v34 = vunpack.i.h.bf16 %v8072_v40  ;;  %v8073_v42 = vunpack.i.l.bf16 %v8072_v40  ;;  %v8028_v40 = vunpack.i.l.bf16 %v10307_v32  ;;  %v4145_v44 = vpack.c.b16 %v4135_v55, %v4134_v11 }
 0x6d4   : > { %v4565_v32 = vunpack.c.l.b16 %v10522_v12  ;;  %v10538_v11 = vpack.c.b16 %v4421_v15, %v4420_v21  ;;  %v4418_v12 = vunpack.c.l.b16 %v4032_v61 }
 0x6d5   : > { %v4058_v7 = vpack.c.bf16 %v8076_v34, %v8076_v34  ;;  %v4042_v54 = vpack.c.bf16 %v8073_v42, %v8073_v42  ;;  %v8026_v34 = vunpack.i.h.bf16 %v10297_v43  ;;  %4158 = vmatpush.bf16.msrb.mxu3 %v4145_v44  ;;  %v4279_v42 = vunpack.c.l.b16 %v4022_v26 }
 0x6d6   : > { %v4033_v55 = vpack.c.bf16 %v8028_v40, %v8028_v40  ;;  %v8021_v43 = vunpack.i.h.bf16 %v10284_v47  ;;  %v7691_v44 = vunpack.i.l.bf16 %v10305_v10  ;;  %v7694_v26 = vunpack.i.h.bf16 %v10305_v10 }
 0x6d7   : > { %v4573_v45 = vunpack.c.l.b16 %v4058_v7  ;;  %v4428_v58 = vunpack.c.l.b16 %v4042_v54  ;;  %v4290_v35 = vpack.c.b16 %v4280_v60, %v4279_v42  ;;  %v8013_v7 = vunpack.i.l.bf16 %v10264_v31 }
 0x6d8   : > { %v2979_v25 = vpop.f32.mrf.mxu0  ;;  %v4419_v40 = vunpack.c.l.b16 %v4033_v55  ;;  %v7699_v60 = vunpack.i.h.bf16 %v10310_v13  ;;  %v4005_v31 = vpack.c.bf16 %v7696_v17, %v7696_v17  ;;  %v8008_v10 = vunpack.i.l.bf16 %v10258_v8 }
 0x6d9   : > { %v10520_v62 = vadd.f32 %v2979_v25, %v10409_v29  ;;  %v8018_v25 = vunpack.i.l.bf16 %v10284_v47  ;;  %4303 = vmatpush.bf16.msra.mxu0 %v4290_v35  ;;  %v4030_v15 = vpack.c.bf16 %v8013_v7, %v8013_v7  ;;  %v4578_v61 = vpack.c.b16 %v4566_v3, %v4565_v32 }
 0x6da   : > { %v8077_v9 = vpop.trf.xlu1  ;;  %v4133_v13 = vunpack.c.l.b16 %v4005_v31  ;;  %v10553_v35 = vpack.c.b16 %v4419_v40, %v4418_v12  ;;  %v10562_v3 = vpack.c.bf16 %v8008_v10, %v8008_v10  ;;  %v8003_v32 = vunpack.i.l.bf16 %v10239_v59 }
 0x6db   : > { %v8081_v4 = vunpack.i.h.bf16 %v8077_v9  ;;  %v8078_v24 = vunpack.i.l.bf16 %v8077_v9  ;;  %3402 = vmax.xlane.f32.xlu2 %v10520_v62  ;;  %3372 = vmax.xlane.f32.xlu0 %v10444_v33  ;;  %v4031_v47 = vpack.c.bf16 %v8018_v25, %v8018_v25  ;;  %v7689_v40 = vunpack.i.h.bf16 %v10290_v37 }
 0x6dc   : > { %v7676_v12 = vunpack.i.l.bf16 %v10262_v19 }
 0x6dd   : > { %v4059_v63 = vpack.c.bf16 %v8081_v4, %v8081_v4  ;;  %v4043_v16 = vpack.c.bf16 %v8078_v24, %v8078_v24  ;;  %v4049_v4 = vpack.c.bf16 %v8031_v6, %v8031_v6  ;;  %v4048_v24 = vpack.c.bf16 %v8026_v34, %v8026_v34 }
 0x6de   : > { %v4046_v6 = vpack.c.bf16 %v8016_v50, %v8016_v50  ;;  %v4020_v34 = vpack.c.bf16 %v7694_v26, %v7694_v26  ;;  %v7681_v50 = vunpack.i.l.bf16 %v10278_v36 }
 0x6df   : > { %v4574_v28 = vunpack.c.l.b16 %v4059_v63  ;;  %v4429_v27 = vunpack.c.l.b16 %v4043_v16  ;;  %v4021_v63 = vpack.c.bf16 %v7699_v60, %v7699_v60  ;;  %v4564_v16 = vunpack.c.l.b16 %v4049_v4 }
 0x6e0   : > { %v10534_v54 = vpop.f32.mrf.mxu0  ;;  %v4563_v21 = vunpack.c.l.b16 %v4048_v24  ;;  %v4277_v25 = vunpack.c.l.b16 %v4020_v34  ;;  %v7686_v24 = vunpack.i.l.bf16 %v10290_v37  ;;  %v7684_v60 = vunpack.i.h.bf16 %v10278_v36 }
 0x6e1   : > { %v4437_v53 = vpack.c.b16 %v4429_v27, %v4428_v58  ;;  %v4582_v9 = vpack.c.b16 %v4574_v28, %v4573_v45  ;;  %v4047_v45 = vpack.c.bf16 %v8021_v43, %v8021_v43  ;;  %v4004_v58 = vpack.c.bf16 %v7691_v44, %v7691_v44 }
 0x6e2   : > { %v3316_v42 = vpop.f32.mrf.mxu2  ;;  %v4278_v27 = vunpack.c.l.b16 %v4021_v63  ;;  %v4003_v17 = vpack.c.bf16 %v7686_v24, %v7686_v24  ;;  %v4002_v44 = vpack.c.bf16 %v7681_v50, %v7681_v50  ;;  %v7671_v37 = vunpack.i.l.bf16 %v10251_v14  ;;  %v12687_v50 = vld [vmem:[#allocation44_spill] sm:$0xff] }
 0x6e3   : > { %4446 = vmatpush.bf16.msra.mxu1 %v4437_v53  ;;  %4591 = vmatpush.bf16.msra.mxu2 %v4582_v9  ;;  %v4132_v28 = vunpack.c.l.b16 %v4004_v58  ;;  %v10551_v55 = vadd.f32 %v3316_v42, %v10244_v30  ;;  %v4417_v53 = vunpack.c.l.b16 %v4031_v47  ;;  %v4416_v9 = vunpack.c.l.b16 %v4030_v15 }
 0x6e4   : > { %3378 = vmax.xlane.f32.xlu2 %v10480_v22  ;;  %3422 = vmax.xlane.f32.xlu0 %v10469_v38  ;;  %v4562_v43 = vunpack.c.l.b16 %v4047_v45  ;;  %v10560_v30 = vpack.c.b16 %v4564_v16, %v4563_v21  ;;  %v8011_v47 = vunpack.i.h.bf16 %v10258_v8  ;;  %v4019_v15 = vpack.c.bf16 %v7689_v40, %v7689_v40 }
 0x6e5   : > { %12684 = vst [vmem:[#allocation65_spill] sm:$0xff] %v10551_v55  ;;  %v4144_v4 = vpack.c.b16 %v4133_v13, %v4132_v28  ;;  %3452 = vmax.xlane.f32.xlu1 %v10551_v55  ;;  %v4131_v45 = vunpack.c.l.b16 %v4003_v17  ;;  %v4130_v31 = vunpack.c.l.b16 %v4002_v44  ;;  %v4018_v58 = vpack.c.bf16 %v7684_v60, %v7684_v60  ;;  %v12688_v60 = vld [vmem:[#allocation43_spill] sm:$0xff] }
 0x6e6   : > { %v4415_v63 = vunpack.c.l.b16 %v10562_v3  ;;  %v4276_v16 = vunpack.c.l.b16 %v4019_v15  ;;  %v4001_v21 = vpack.c.bf16 %v7676_v12, %v7676_v12  ;;  %v10583_v8 = vpack.c.bf16 %v8003_v32, %v8003_v32 }
 0x6e7   : > { %4447 = vmatpush.bf16.msra.mxu1 %v10514_v20  ;;  %4592 = vmatpush.bf16.msra.mxu2 %v10503_v1  ;;  %v4561_v1 = vunpack.c.l.b16 %v4046_v6  ;;  %v4289_v20 = vpack.c.b16 %v4278_v27, %v4277_v25  ;;  %v4000_v6 = vpack.c.bf16 %v7671_v37, %v7671_v37  ;;  %v8006_v34 = vunpack.i.h.bf16 %v10239_v59 }
 0x6e8   : > { %v2984_v7 = vpop.f32.mrf.mxu0  ;;  %4159 = vmatpush.bf16.msrb.mxu3 %v4144_v4  ;;  %v4143_v42 = vpack.c.b16 %v4131_v45, %v4130_v31  ;;  %v4275_v13 = vunpack.c.l.b16 %v4018_v58  ;;  %v4129_v27 = vunpack.c.l.b16 %v4001_v21  ;;  %v7679_v25 = vunpack.i.h.bf16 %v10262_v19  ;;  %v12686_v4 = vld [vmem:[#allocation45_spill] sm:$0xff]  ;;  %v10606_v31 = vld [vmem:[%s9432_s4 + $0x68] sm:$0xff] }
 0x6e9   : > { %4304 = vmatpush.bf16.msra.mxu0 %v4289_v20  ;;  %v10576_v26 = vpack.c.b16 %v4562_v43, %v4561_v1  ;;  %v4128_v10 = vunpack.c.l.b16 %v4000_v6  ;;  %v7666_v59 = vunpack.i.l.bf16 %v12686_v4  ;;  %v10595_v1 = vpop.f32.mrf.mxu1  ;;  %v7669_v40 = vunpack.i.h.bf16 %v12686_v4 }
 0x6ea   : > { %v10578_v36 = vpop.f32.mrf.mxu2  ;;  %v4288_v43 = vpack.c.b16 %v4276_v16, %v4275_v13  ;;  %v4017_v24 = vpack.c.bf16 %v7679_v25, %v7679_v25  ;;  %v7664_v17 = vunpack.i.h.bf16 %v12687_v50  ;;  %v7656_v12 = vunpack.i.l.bf16 %v12688_v60 }
 0x6eb   : > { %4448 = vmatpush.bf16.msra.mxu1 %v10505_v52  ;;  %4593 = vmatpush.bf16.msra.mxu2 %v10507_v57  ;;  %v10569_v52 = vpop.f32.mrf.mxu3  ;;  %v10572_v57 = vpack.c.b16 %v4417_v53, %v4416_v9  ;;  %v4045_v9 = vpack.c.bf16 %v8011_v47, %v8011_v47  ;;  %v4142_v20 = vpack.c.b16 %v4129_v27, %v4128_v10  ;;  %v4414_v47 = vunpack.c.l.b16 %v10583_v8 }
 0x6ec   : > { %3428 = vmax.xlane.f32.xlu2 %v10499_v2  ;;  %3398 = vmax.xlane.f32.xlu0 %v10494_v23  ;;  %v3999_v32 = vpack.c.bf16 %v7666_v59, %v7666_v59  ;;  %v4274_v44 = vunpack.c.l.b16 %v4017_v24  ;;  %v4015_v37 = vpack.c.bf16 %v7669_v40, %v7669_v40  ;;  %v4014_v45 = vpack.c.bf16 %v7664_v17, %v7664_v17 }
 0x6ed   : > { %3430 = vmax.xlane.f32.xlu1 %v10512_v39  ;;  %4160 = vmatpush.bf16.msrb.mxu3 %v4143_v42  ;;  %v12689_v42 = vld [vmem:[#allocation42_spill] sm:$0xff]  ;;  %v4560_v27 = vunpack.c.l.b16 %v4045_v9  ;;  %v4430_v40 = vpack.c.b16 %v4415_v63, %v4414_v47  ;;  %v12693_v47 = vld [vmem:[#allocation63_spill] sm:$0xff] }
 0x6ee   : > { %4305 = vmatpush.bf16.msra.mxu0 %v4288_v43  ;;  %v4127_v15 = vunpack.c.l.b16 %v3999_v32  ;;  %v7651_v13 = vunpack.i.l.bf16 %v12689_v42  ;;  %v4272_v10 = vunpack.c.l.b16 %v4015_v37  ;;  %v4271_v25 = vunpack.c.l.b16 %v4014_v45 }
 0x6ef   : > { %4449 = vmatpush.bf16.msra.mxu1 %v10509_v5  ;;  %4594 = vmatpush.bf16.msra.mxu2 %v10516_v56  ;;  %v7674_v5 = vunpack.i.h.bf16 %v10251_v14  ;;  %v12685_v56 = vld [vmem:[#allocation54_spill] sm:$0xff]  ;;  %v7661_v14 = vunpack.i.l.bf16 %v12687_v50  ;;  %v7654_v24 = vunpack.i.h.bf16 %v12689_v42 }
 0x6f0   : > { %v10586_v28 = vpop.f32.mrf.mxu0  ;;  %v10591_v53 = vadd.f32 %v2984_v7, %v12685_v56  ;;  %v4044_v7 = vpack.c.bf16 %v8006_v34, %v8006_v34  ;;  %v3997_v34 = vpack.c.bf16 %v7656_v12, %v7656_v12  ;;  %v3996_v59 = vpack.c.bf16 %v7651_v13, %v7651_v13  ;;  %v10637_v12 = vld [vmem:[%s9432_s4 + $0x60] sm:$0xff] }
 0x6f1   : > { %v4016_v19 = vpack.c.bf16 %v7674_v5, %v7674_v5  ;;  %4161 = vmatpush.bf16.msrb.mxu3 %v4142_v20  ;;  %v7659_v20 = vunpack.i.h.bf16 %v12688_v60  ;;  %v3156_v32 = vpop.f32.mrf.mxu1 }
 0x6f2   : > { %v10608_v16 = vpop.f32.mrf.mxu2  ;;  %v4559_v8 = vunpack.c.l.b16 %v4044_v7  ;;  %v4125_v4 = vunpack.c.l.b16 %v3997_v34  ;;  %v4124_v9 = vunpack.c.l.b16 %v3996_v59  ;;  %v4012_v7 = vpack.c.bf16 %v7654_v24, %v7654_v24  ;;  %v12695_v34 = vld [vmem:[#allocation62_spill] sm:$0xff] }
 0x6f3   : > { %4450 = vmatpush.bf16.msra.mxu1 %v10538_v11  ;;  %4595 = vmatpush.bf16.msra.mxu2 %v4578_v61  ;;  %v4273_v11 = vunpack.c.l.b16 %v4016_v19  ;;  %v3998_v61 = vpack.c.bf16 %v7661_v14, %v7661_v14  ;;  %v2817_v58 = vpop.f32.mrf.mxu3  ;;  %v12690_v19 = vld [vmem:[#allocation58_spill] sm:$0xff]  ;;  %v4013_v14 = vpack.c.bf16 %v7659_v20, %v7659_v20 }
 0x6f4   : > { %3406 = vmax.xlane.f32.xlu2 %v10591_v53  ;;  %3424 = vmax.xlane.f32.xlu0 %v10477_v49  ;;  %v10620_v50 = vadd.f32 %v10487_v41, %v12690_v19  ;;  %v4575_v41 = vpack.c.b16 %v4560_v27, %v4559_v8  ;;  %v4140_v17 = vpack.c.b16 %v4125_v4, %v4124_v9  ;;  %v10667_v27 = vld [vmem:[%s9432_s4 + $0x78] sm:$0xff] }
 0x6f5   : > { %v4287_v21 = vpack.c.b16 %v4274_v44, %v4273_v11  ;;  %v4126_v6 = vunpack.c.l.b16 %v3998_v61  ;;  %v4269_v44 = vunpack.c.l.b16 %v4012_v7  ;;  %v10631_v11 = vld [vmem:[%s9432_s4 + $0x50] sm:$0xff]  ;;  %v10634_v61 = vadd.f32 %v3156_v32, %v10409_v29  ;;  %12696 = vst [vmem:[#allocation44_spill] sm:$0xff] %v10667_v27 }
 0x6f6   : > { %v12697_v4 = vld [vmem:[#allocation61_spill] sm:$0xff] }
 0x6f7   : > { %4451 = vmatpush.bf16.msra.mxu1 %v10553_v35  ;;  %4596 = vmatpush.bf16.msra.mxu2 %v10560_v30  ;;  %v4141_v43 = vpack.c.b16 %v4127_v15, %v4126_v6  ;;  %v10615_v35 = vadd.f32 %v2817_v58, %v10606_v31  ;;  %v4286_v30 = vpack.c.b16 %v4272_v10, %v4271_v25  ;;  %v12694_v6 = vld [vmem:[#allocation48_spill] sm:$0xff]  ;;  %v10669_v25 = vpop.xlane.xlu0 %3356 }
 0x6f8   : > { %v2989_v5 = vpop.f32.mrf.mxu0  ;;  %4306 = vmatpush.bf16.msra.mxu0 %v4287_v21  ;;  %12691 = vst [vmem:[#allocation54_spill] sm:$0xff] %v10634_v61  ;;  %v10644_v15 = vadd.f32 %v12693_v47, %v10631_v11  ;;  %v10660_v42 = vadd.f32 %v12695_v34, %v12694_v6  ;;  %v10676_v59 = vadd.f32 %v10534_v54, %v12697_v4 }
 0x6f9   : > { %4162 = vmatpush.bf16.msrb.mxu3 %v4141_v43  ;;  %v10656_v21 = vadd.f32 %v2989_v5, %v10472_v46  ;;  %v10662_v13 = vpop.f32.mrf.mxu1  ;;  %v10690_v54 = vadd.f32 %v10569_v52, %v10637_v12 }
 0x6fb   : > { %4452 = vmatpush.bf16.msra.mxu1 %v10572_v57  ;;  %4597 = vmatpush.bf16.msra.mxu2 %v10576_v26  ;;  %v4270_v57 = vunpack.c.l.b16 %v4013_v14  ;;  %v10628_v26 = vpop.f32.mrf.mxu2  ;;  %v10648_v37 = vpop.f32.mrf.mxu3  ;;  %12699 = vst [vmem:[#allocation42_spill] sm:$0xff] %v10690_v54 }
 0x6fc   : > { %3382 = vmax.xlane.f32.xlu2 %v10615_v35  ;;  %3400 = vmax.xlane.f32.xlu0 %v10620_v50 }
 0x6fd   : > { %4307 = vmatpush.bf16.msra.mxu0 %v4286_v30  ;;  %4163 = vmatpush.bf16.msrb.mxu3 %v4140_v17  ;;  %v4285_v60 = vpack.c.b16 %v4270_v57, %v4269_v44  ;;  %v10700_v17 = vadd.f32 %v10578_v36, %v10313_v18  ;;  %v12701_v18 = vld [vmem:[#allocation49_spill] sm:$0xff] }
 0x6ff   : > { %4453 = vmatpush.bf16.msra.mxu1 %v4430_v40  ;;  %4598 = vmatpush.bf16.msra.mxu2 %v4575_v41  ;;  %v3363_v24 = vpop.xlane.xlu0 %3362 }
 0x700   : > { %v2992_v3 = vpop.f32.mrf.mxu0  ;;  %v3487_v36 = vsub.f32 %v12701_v18, %v3363_v24 }
 0x701   : > { %v10640_v63 = vadd.f32 %v2992_v3, %v10637_v12  ;;  %4308 = vmatpush.bf16.msra.mxu0 %v4285_v60  ;;  %v3161_v20 = vpop.f32.mrf.mxu1  ;;  %v10709_v60 = vld [vmem:[%s9432_s4 + $0x70] sm:$0xff] }
 0x702   : > { %v10683_v9 = vadd.f32 %v3161_v20, %v12685_v56 }
 0x703   : > { %12692 = vst [vmem:[#allocation45_spill] sm:$0xff] %v10640_v63  ;;  %3412 = vmax.xlane.f32.xlu1 %v10640_v63  ;;  %v10651_v45 = vpop.f32.mrf.mxu2  ;;  %v2822_v8 = vpop.f32.mrf.mxu3 }
 0x704   : > { %3434 = vmax.xlane.f32.xlu2 %v10634_v61  ;;  %3376 = vmax.xlane.f32.xlu0 %v10644_v15  ;;  %v10672_v5 = vadd.f32 %v2822_v8, %v10667_v27  ;;  %v10754_v61 = vadd.f32 %v10648_v37, %v10709_v60 }
 0x706   : > { %12706 = vst [vmem:[#allocation61_spill] sm:$0xff] %v10754_v61 }
 0x708   : > { %v10653_v58 = vpop.f32.mrf.mxu0 }
 0x709   : > { %v10702_v57 = vpop.f32.mrf.mxu1 }
 0x70b   : > { %v3328_v10 = vpop.f32.mrf.mxu2 }
 0x70c   : > { %3410 = vmax.xlane.f32.xlu2 %v10656_v21  ;;  %3426 = vmax.xlane.f32.xlu0 %v10660_v42  ;;  %v10696_v41 = vadd.f32 %v3328_v10, %v10373_v48  ;;  %v10716_v48 = vadd.f32 %v10595_v1, %v12690_v19  ;;  %v3554_v10 = vmul.f32 1.442695, %v3487_v36  ;;  %v10730_v1 = vadd.f32 %v10586_v28, %v10631_v11  ;;  %v12705_v28 = vld [vmem:[#allocation53_spill] sm:$0xff] }
 0x70e   : > { %8226 = vpow2.f32 %v3554_v10 }
 0x710   : > { %v2997_v43 = vpop.f32.mrf.mxu0 }
 0x711   : > { %v10712_v3 = vadd.f32 %v2997_v43, %v10709_v60  ;;  %v3166_v47 = vpop.f32.mrf.mxu1  ;;  %v10736_v43 = vpop.xlane.xlu2 %3360 }
 0x712   : > { %v10726_v8 = vadd.f32 %v3166_v47, %v10472_v46 }
 0x713   : > { %v10680_v30 = vpop.f32.mrf.mxu2  ;;  %12700 = vst [vmem:[#allocation58_spill] sm:$0xff] %v10712_v3 }
 0x714   : > { %3386 = vmax.xlane.f32.xlu2 %v10672_v5  ;;  %3404 = vmax.xlane.f32.xlu0 %v10676_v59  ;;  %12702 = vst [vmem:[#allocation63_spill] sm:$0xff] %v10726_v8  ;;  %v10738_v24 = vpop.eup %8226 }
 0x715   : > { %12703 = vst [vmem:[#allocation48_spill] sm:$0xff] %v10738_v24 }
 0x718   : > { %v2999_v14 = vpop.f32.mrf.mxu0 }
 0x719   : > { %v10686_v7 = vadd.f32 %v2999_v14, %v10667_v27  ;;  %v8578_v14 = vld [vmem:[%s9432_s4 + $0x10] sm:$0xff] }
 0x71a   : > { %v10742_v18 = vadd.f32 %v8578_v14, %v10608_v16  ;;  %v12707_v16 = vld [vmem:[#allocation55_spill] sm:$0xff] }
 0x71b   : > { %12698 = vst [vmem:[#allocation43_spill] sm:$0xff] %v10686_v7  ;;  %3418 = vmax.xlane.f32.xlu1 %v10686_v7  ;;  %v3333_v32 = vpop.f32.mrf.mxu2 }
 0x71c   : > { %3438 = vmax.xlane.f32.xlu2 %v10683_v9  ;;  %3380 = vmax.xlane.f32.xlu0 %v10690_v54  ;;  %12704 = vst [vmem:[#allocation62_spill] sm:$0xff] %v10742_v18 }
 0x71e   : > { %v3391_v40 = vpop.xlane.xlu0 %3390 }
 0x71f   : > { %v3501_v36 = vsub.f32 %v12705_v28, %v3391_v40  ;;  %v10759_v40 = vpop.f32.mrf.mxu1 }
 0x720   : > { %v3375_v10 = vpop.xlane.xlu2 %3374 }
 0x721   : > { %v3582_v63 = vmul.f32 1.442695, %v3501_v36  ;;  %v3493_v14 = vsub.f32 %v12707_v16, %v3375_v10 }
 0x723   : > { %v10706_v52 = vpop.f32.mrf.mxu2  ;;  %8228 = vpow2.f32 %v3582_v63  ;;  %v3566_v28 = vmul.f32 1.442695, %v3493_v14  ;;  %v12710_v63 = vld [vmem:[#allocation57_spill] sm:$0xff] }
 0x724   : > { %3462 = vmax.xlane.f32.xlu2 %v10696_v41  ;;  %3454 = vmax.xlane.f32.xlu0 %v10700_v17 }
 0x725   : > { %8230 = vpow2.f32 %v3566_v28 }
 0x726   : > { %v3367_v44 = vpop.xlane.xlu0 %3366 }
 0x727   : > { %v3489_v16 = vsub.f32 %v12710_v63, %v3367_v44  ;;  %v3171_v27 = vpop.f32.mrf.mxu1  ;;  %v10788_v44 = vadd.f32 %v10662_v13, %v12697_v4  ;;  %v12715_v63 = vld [vmem:[#allocation64_spill] sm:$0xff] }
 0x729   : > { %v10767_v37 = vpop.eup %8228 }
 0x72a   : > { %12709 = vst [vmem:[#allocation53_spill] sm:$0xff] %v10767_v37 }
 0x72b   : > { %v10721_v6 = vpop.f32.mrf.mxu2 }
 0x72c   : > { %3416 = vmax.xlane.f32.xlu2 %v10712_v3  ;;  %3432 = vmax.xlane.f32.xlu0 %v10716_v48 }
 0x72e   : > { %v10723_v34 = vpop.xlane.xlu0 %3368 }
 0x733   : > { %v10734_v19 = vpop.f32.mrf.mxu2 }
 0x734   : > { %3442 = vmax.xlane.f32.xlu2 %v10726_v8  ;;  %3408 = vmax.xlane.f32.xlu0 %v10730_v1  ;;  %v10750_v8 = vadd.f32 %v3333_v32, %v10409_v29  ;;  %v8579_v32 = vld [vmem:[%s9432_s4 + $0x18] sm:$0xff] }
 0x735   : > { %v10771_v10 = vadd.f32 %v8579_v32, %v10628_v26  ;;  %v10783_v26 = vadd.f32 %v3171_v27, %v10606_v31 }
 0x736   : > { %v3395_v20 = vpop.xlane.xlu0 %3394 }
 0x737   : > { %12713 = vst [vmem:[#allocation57_spill] sm:$0xff] %v10783_v26 }
 0x73b   : > { %v10747_v47 = vpop.f32.mrf.mxu2 }
 0x73c   : > { %3682 = vadd.xlane.f32.xlu2 %v10738_v24  ;;  %3456 = vmax.xlane.f32.xlu0 %v10742_v18  ;;  %v10780_v18 = vpop.eup %8230  ;;  %v3558_v24 = vmul.f32 1.442695, %v3489_v16  ;;  %v3503_v16 = vsub.f32 %v12715_v63, %v3395_v20  ;;  %v12716_v63 = vld [vmem:[#allocation50_spill] sm:$0xff] }
 0x73d   : > { %12712 = vst [vmem:[#allocation55_spill] sm:$0xff] %v10780_v18 }
 0x73e   : > { %v3371_v3 = vpop.xlane.xlu0 %3370  ;;  %8232 = vpow2.f32 %v3558_v24  ;;  %v3359_v24 = vpop.xlane.xlu1 %3358 }
 0x73f   : > { %v3491_v20 = vsub.f32 %v10421_v0, %v3371_v3 }
 0x741   : > { %v3562_v55 = vmul.f32 1.442695, %v3491_v20 }
 0x743   : > { %v3346_v7 = vpop.f32.mrf.mxu2 }
 0x744   : > { %3466 = vmax.xlane.f32.xlu2 %v10750_v8  ;;  %3384 = vmax.xlane.f32.xlu0 %v10754_v61  ;;  %v10762_v36 = vadd.f32 %v3346_v7, %v10637_v12  ;;  %v12711_v7 = vld [vmem:[#allocation46_spill] sm:$0xff]  ;;  %v10794_v32 = vpop.eup %8232 }
 0x745   : > { %v3484_v14 = vsub.f32 %v12711_v7, %v10669_v25  ;;  %12714 = vst [vmem:[#allocation46_spill] sm:$0xff] %v10794_v32  ;;  %v3586_v7 = vmul.f32 1.442695, %v3503_v16 }
 0x746   : > { %12708 = vst [vmem:[#allocation49_spill] sm:$0xff] %v10762_v36  ;;  %v10764_v29 = vpop.xlane.xlu0 %3396  ;;  %3476 = vmax.xlane.f32.xlu1 %v10762_v36  ;;  %v3389_v16 = vpop.xlane.xlu1 %3388 }
 0x747   : > { %v3548_v61 = vmul.f32 1.442695, %v3484_v14  ;;  %v8580_v14 = vld [vmem:[%s9432_s4 + $0x20] sm:$0xff] }
 0x749   : > { %8234 = vpow2.f32 %v3548_v61  ;;  %v10807_v61 = vadd.f32 %v10721_v6, %v12685_v56 }
 0x74a   : > { %8236 = vpow2.f32 %v3586_v7 }
 0x74b   : > { %8238 = vpow2.f32 %v3562_v55 }
 0x74c   : > { %3710 = vadd.xlane.f32.xlu2 %v10767_v37  ;;  %3458 = vmax.xlane.f32.xlu0 %v10771_v10 }
 0x74e   : > { %v10778_v54 = vpop.xlane.xlu2 %3402  ;;  %v3373_v36 = vpop.xlane.xlu0 %3372  ;;  %3694 = vadd.xlane.f32.xlu1 %v10780_v18  ;;  %v10811_v18 = vadd.f32 %v8580_v14, %v10651_v45  ;;  %v10823_v45 = vadd.f32 %v10653_v58, %v10606_v31 }
 0x74f   : > { %v10796_v27 = vpop.eup %8234  ;;  %v3492_v58 = vsub.f32 %v10444_v33, %v3373_v36  ;;  %v10848_v33 = vadd.f32 %v10747_v47, %v10472_v46 }
 0x750   : > { %v10819_v6 = vpop.eup %8236  ;;  %12718 = vst [vmem:[#allocation50_spill] sm:$0xff] %v10823_v45 }
 0x751   : > { %12717 = vst [vmem:[#allocation64_spill] sm:$0xff] %v10819_v6  ;;  %v10830_v7 = vpop.eup %8238 }
 0x752   : > { %12719 = vst [vmem:[#allocation66_spill] sm:$0xff] %v10830_v7 }
 0x754   : > { %3446 = vmax.xlane.f32.xlu2 %v10783_v26  ;;  %3436 = vmax.xlane.f32.xlu0 %v10788_v44 }
 0x757   : > { %v10792_v25 = vpop.xlane.xlu2 %3378  ;;  %v3423_v28 = vpop.xlane.xlu0 %3422 }
 0x75c   : > { %3686 = vadd.xlane.f32.xlu2 %v10794_v32  ;;  %3676 = vadd.xlane.f32.xlu0 %v10796_v27  ;;  %v3485_v32 = vsub.f32 %v12716_v63, %v3359_v24  ;;  %v12720_v63 = vld [vmem:[#allocation47_spill] sm:$0xff] }
 0x75d   : > { %12721 = vst [vmem:[#allocation47_spill] sm:$0xff] %v10848_v33 }
 0x75e   : > { %v3550_v56 = vmul.f32 1.442695, %v3485_v32  ;;  %v10832_v32 = vpop.xlane.xlu1 %3364 }
 0x75f   : > { %v10801_v13 = vpop.xlane.xlu2 %3428  ;;  %v10803_v4 = vpop.xlane.xlu0 %3398 }
 0x760   : > { %8240 = vpow2.f32 %v3550_v56  ;;  %v3486_v56 = vsub.f32 %v12720_v63, %v10736_v43 }
 0x764   : > { %3470 = vmax.xlane.f32.xlu2 %v10807_v61  ;;  %3460 = vmax.xlane.f32.xlu0 %v10811_v18 }
 0x766   : > { %v10834_v20 = vpop.eup %8240  ;;  %v10858_v43 = vpop.xlane.xlu1 %3392 }
 0x767   : > { %v3407_v37 = vpop.xlane.xlu2 %3406  ;;  %v10817_v26 = vpop.xlane.xlu0 %3424 }
 0x768   : > { %v3509_v55 = vsub.f32 %v10591_v53, %v3407_v37  ;;  %v10854_v53 = vadd.f32 %v10702_v57, %v10631_v11  ;;  %v3517_v37 = vsub.f32 %v10469_v38, %v3423_v28  ;;  %v3505_v38 = vsub.f32 %v10494_v23, %v10803_v4  ;;  %v12725_v28 = vld [vmem:[#allocation51_spill] sm:$0xff] }
 0x76c   : > { %3714 = vadd.xlane.f32.xlu2 %v10819_v6  ;;  %3414 = vmax.xlane.f32.xlu0 %v10823_v45  ;;  %v3552_v45 = vmul.f32 1.442695, %v3486_v56 }
 0x76e   : > { %v10876_v63 = vpop.xlane.xlu1 %3420 }
 0x76f   : > { %v10827_v0 = vpop.xlane.xlu2 %3382  ;;  %v3401_v3 = vpop.xlane.xlu0 %3400 }
 0x770   : > { %v3506_v24 = vsub.f32 %v10620_v50, %v3401_v3  ;;  %v3564_v3 = vmul.f32 1.442695, %v3492_v58 }
 0x772   : > { %v3592_v14 = vmul.f32 1.442695, %v3506_v24  ;;  %v3598_v24 = vmul.f32 1.442695, %v3509_v55 }
 0x774   : > { %3690 = vadd.xlane.f32.xlu2 %v10830_v7  ;;  %8242 = vpow2.f32 %v3592_v14  ;;  %3678 = vadd.xlane.f32.xlu0 %v10834_v20  ;;  %v3614_v14 = vmul.f32 1.442695, %v3517_v37  ;;  %v3174_v37 = vpop.f32.mrf.mxu1 }
 0x775   : > { %8244 = vpow2.f32 %v3564_v3 }
 0x776   : > { %8246 = vpow2.f32 %v3598_v24  ;;  %v3590_v24 = vmul.f32 1.442695, %v3505_v38 }
 0x777   : > { %v10842_v50 = vpop.xlane.xlu2 %3434  ;;  %v10844_v6 = vpop.xlane.xlu0 %3376  ;;  %8248 = vpow2.f32 %v3552_v45  ;;  %v3500_v45 = vsub.f32 %v12725_v28, %v3389_v16 }
 0x778   : > { %8250 = vpow2.f32 %v3614_v14  ;;  %v10895_v16 = vpop.xlane.xlu1 %3452 }
 0x779   : > { %8252 = vpow2.f32 %v3590_v24 }
 0x77a   : > { %v10850_v36 = vpop.eup %8242 }
 0x77b   : > { %12722 = vst [vmem:[#allocation67_spill] sm:$0xff] %v10850_v36  ;;  %3720 = vadd.xlane.f32.xlu1 %v10850_v36  ;;  %v10864_v58 = vpop.eup %8244  ;;  %v3580_v36 = vmul.f32 1.442695, %v3500_v45 }
 0x77c   : > { %3474 = vmax.xlane.f32.xlu2 %v10848_v33  ;;  %3440 = vmax.xlane.f32.xlu0 %v10854_v53  ;;  %12723 = vst [vmem:[#allocation68_spill] sm:$0xff] %v10864_v58  ;;  %v10866_v57 = vpop.eup %8246  ;;  %v8581_v33 = vld [vmem:[%s9432_s4 + $0x30] sm:$0xff] }
 0x77d   : > { %12724 = vst [vmem:[#allocation69_spill] sm:$0xff] %v10866_v57  ;;  %v10868_v55 = vpop.eup %8248  ;;  %v10889_v23 = vadd.f32 %v8581_v33, %v10680_v30  ;;  %8254 = vpow2.f32 %v3580_v36  ;;  %v3495_v33 = vsub.f32 %v10480_v22, %v10792_v25 }
 0x77e   : > { %v10885_v14 = vpop.eup %8250 }
 0x77f   : > { %v10862_v46 = vpop.xlane.xlu2 %3410  ;;  %v3427_v47 = vpop.xlane.xlu0 %3426  ;;  %12726 = vst [vmem:[#allocation51_spill] sm:$0xff] %v10885_v14 }
 0x780   : > { %12727 = vst [vmem:[#allocation70_spill] sm:$0xff] %v10889_v23  ;;  %v3519_v4 = vsub.f32 %v10660_v42, %v3427_v47  ;;  %v12729_v42 = vld [vmem:[#allocation52_spill] sm:$0xff] }
 0x781   : > { %v3488_v36 = vsub.f32 %v12729_v42, %v10832_v32 }
 0x782   : > { %v3618_v45 = vmul.f32 1.442695, %v3519_v4 }
 0x783   : > { %3726 = vadd.xlane.f32.xlu1 %v10866_v57  ;;  %v10883_v57 = vadd.f32 %v3174_v37, %v10709_v60  ;;  %v10899_v37 = vpop.eup %8252  ;;  %v3556_v4 = vmul.f32 1.442695, %v3488_v36 }
 0x784   : > { %3692 = vadd.xlane.f32.xlu2 %v10864_v58  ;;  %3680 = vadd.xlane.f32.xlu0 %v10868_v55  ;;  %12728 = vst [vmem:[#allocation71_spill] sm:$0xff] %v10899_v37  ;;  %v10901_v30 = vpop.eup %8254  ;;  %8256 = vpow2.f32 %v3618_v45  ;;  %v3431_v58 = vpop.xlane.xlu1 %3430 }
 0x787   : > { %v10878_v56 = vpop.xlane.xlu2 %3386  ;;  %v10880_v3 = vpop.xlane.xlu0 %3404 }
 0x78a   : > { %v10909_v7 = vpop.eup %8256 }
 0x78b   : > { %3448 = vmax.xlane.f32.xlu1 %v10883_v57 }
 0x78c   : > { %3742 = vadd.xlane.f32.xlu2 %v10885_v14  ;;  %3464 = vmax.xlane.f32.xlu0 %v10889_v23  ;;  %v3570_v14 = vmul.f32 1.442695, %v3495_v33  ;;  %v10913_v23 = vadd.f32 %v10759_v40, %v10637_v12 }
 0x78e   : > { %8258 = vpow2.f32 %v3570_v14 }
 0x78f   : > { %v3439_v38 = vpop.xlane.xlu2 %3438  ;;  %v10897_v28 = vpop.xlane.xlu0 %3380  ;;  %8260 = vpow2.f32 %v3556_v4 }
 0x794   : > { %3718 = vadd.xlane.f32.xlu2 %v10899_v37  ;;  %3708 = vadd.xlane.f32.xlu0 %v10901_v30  ;;  %v3521_v37 = vsub.f32 %v10512_v39, %v3431_v58  ;;  %v10921_v33 = vpop.eup %8258  ;;  %v3525_v39 = vsub.f32 %v10683_v9, %v3439_v38  ;;  %v12730_v58 = vld [vmem:[#allocation56_spill] sm:$0xff]  ;;  %v8582_v38 = vld [vmem:[%s9432_s4 + $0x40] sm:$0xff] }
 0x795   : > { %v10923_v12 = vpop.eup %8260  ;;  %v3502_v14 = vsub.f32 %v12730_v58, %v10858_v43 }
 0x796   : > { %v3622_v25 = vmul.f32 1.442695, %v3521_v37  ;;  %v3630_v37 = vmul.f32 1.442695, %v3525_v39 }
 0x797   : > { %v3463_v47 = vpop.xlane.xlu2 %3462  ;;  %v3455_v24 = vpop.xlane.xlu0 %3454 }
 0x798   : > { %8262 = vpow2.f32 %v3622_v25  ;;  %v3533_v40 = vsub.f32 %v10700_v17, %v3455_v24  ;;  %v3584_v25 = vmul.f32 1.442695, %v3502_v14  ;;  %v10941_v17 = vadd.f32 %v8582_v38, %v10706_v52 }
 0x799   : > { %v3508_v24 = vsub.f32 %v10676_v59, %v10880_v3  ;;  %v3537_v43 = vsub.f32 %v10696_v41, %v3463_v47  ;;  %v3348_v41 = vpop.f32.mrf.mxu2 }
 0x79a   : > { %v3646_v4 = vmul.f32 1.442695, %v3533_v40 }
 0x79b   : > { %v3596_v52 = vmul.f32 1.442695, %v3508_v24  ;;  %v3654_v59 = vmul.f32 1.442695, %v3537_v43  ;;  %v3511_v24 = vsub.f32 %v10656_v21, %v10862_v46  ;;  %v12736_v43 = vld [vmem:[#allocation59_spill] sm:$0xff]  ;;  %v10989_v21 = vadd.f32 %v10734_v19, %v10631_v11 }
 0x79c   : > { %3746 = vadd.xlane.f32.xlu2 %v10909_v7  ;;  %3444 = vmax.xlane.f32.xlu0 %v10913_v23 }
 0x79f   : > { %v10918_v22 = vpop.xlane.xlu2 %3416  ;;  %v3433_v32 = vpop.xlane.xlu0 %3432 }
 0x7a0   : > { %v3522_v45 = vsub.f32 %v10716_v48, %v3433_v32  ;;  %v10935_v32 = vpop.eup %8262 }
 0x7a1   : > { %12731 = vst [vmem:[#allocation52_spill] sm:$0xff] %v10935_v32 }
 0x7a2   : > { %v3624_v42 = vmul.f32 1.442695, %v3522_v45  ;;  %v12733_v45 = vld [vmem:[#allocation60_spill] sm:$0xff] }
 0x7a4   : > { %3698 = vadd.xlane.f32.xlu2 %v10921_v33  ;;  %8264 = vpow2.f32 %v3624_v42  ;;  %3684 = vadd.xlane.f32.xlu0 %v10923_v12  ;;  %v3490_v42 = vsub.f32 %v12733_v45, %v10723_v34  ;;  %v3516_v45 = vsub.f32 %v12736_v43, %v10876_v63  ;;  %v3504_v63 = vsub.f32 %v10484_v51, %v10764_v29 }
 0x7a5   : > { %8266 = vpow2.f32 %v3630_v37 }
 0x7a6   : > { %8268 = vpow2.f32 %v3646_v4  ;;  %v3560_v58 = vmul.f32 1.442695, %v3490_v42  ;;  %v3588_v11 = vmul.f32 1.442695, %v3504_v63 }
 0x7a7   : > { %v10931_v48 = vpop.xlane.xlu2 %3442  ;;  %v10933_v36 = vpop.xlane.xlu0 %3408  ;;  %8270 = vpow2.f32 %v3584_v25 }
 0x7a8   : > { %8272 = vpow2.f32 %v3596_v52  ;;  %v3602_v52 = vmul.f32 1.442695, %v3511_v24 }
 0x7a9   : > { %8274 = vpow2.f32 %v3654_v59 }
 0x7aa   : > { %v10937_v9 = vpop.eup %8264  ;;  %8276 = vpow2.f32 %v3560_v58  ;;  %v3351_v58 = vpop.f32.mrf.mxu2 }
 0x7ab   : > { %12732 = vst [vmem:[#allocation56_spill] sm:$0xff] %v10937_v9  ;;  %3752 = vadd.xlane.f32.xlu1 %v10937_v9  ;;  %v10955_v3 = vpop.eup %8266  ;;  %8278 = vpow2.f32 %v3602_v52  ;;  %v3518_v52 = vsub.f32 %v10477_v49, %v10817_v26  ;;  %v3494_v49 = vsub.f32 %v10644_v15, %v10844_v6  ;;  %v3507_v15 = vsub.f32 %v10520_v62, %v10778_v54 }
 0x7ac   : > { %3750 = vadd.xlane.f32.xlu2 %v10935_v32  ;;  %3468 = vmax.xlane.f32.xlu0 %v10941_v17  ;;  %v10957_v14 = vpop.eup %8268  ;;  %v10985_v32 = vadd.f32 %v3351_v58, %v10709_v60  ;;  %v3520_v54 = vsub.f32 %v10499_v2, %v10801_v13  ;;  %v3499_v2 = vsub.f32 %v10672_v5, %v10878_v56 }
 0x7ad   : > { %12734 = vst [vmem:[#allocation60_spill] sm:$0xff] %v10957_v14  ;;  %v10959_v37 = vpop.eup %8270  ;;  %v3616_v63 = vmul.f32 1.442695, %v3518_v52  ;;  %v3568_v52 = vmul.f32 1.442695, %v3494_v49 }
 0x7ae   : > { %v10968_v4 = vpop.eup %8272  ;;  %v3578_v56 = vmul.f32 1.442695, %v3499_v2 }
 0x7af   : > { %v10951_v39 = vpop.xlane.xlu2 %3682  ;;  %v10953_v40 = vpop.xlane.xlu0 %3456 }
 0x7b0   : > { %v10970_v25 = vpop.eup %8274 }
 0x7b1   : > { %12735 = vst [vmem:[#allocation72_spill] sm:$0xff] %v10970_v25  ;;  %v10972_v38 = vpop.eup %8276 }
 0x7b2   : > { %v10998_v43 = vpop.eup %8278 }
 0x7b3   : > { %3758 = vadd.xlane.f32.xlu1 %v10955_v3 }
 0x7b4   : > { %3774 = vadd.xlane.f32.xlu2 %v10957_v14  ;;  %3712 = vadd.xlane.f32.xlu0 %v10959_v37  ;;  %v3612_v14 = vmul.f32 1.442695, %v3516_v45 }
 0x7b7   : > { %v10964_v34 = vpop.xlane.xlu2 %3466  ;;  %v10966_v47 = vpop.xlane.xlu0 %3384 }
 0x7bb   : > { %3782 = vadd.xlane.f32.xlu1 %v10970_v25 }
 0x7bc   : > { %3724 = vadd.xlane.f32.xlu2 %v10968_v4  ;;  %3688 = vadd.xlane.f32.xlu0 %v10972_v38 }
 0x7bf   : > { %v10981_v42 = vpop.xlane.xlu2 %3710  ;;  %v3459_v59 = vpop.xlane.xlu0 %3458 }
 0x7c0   : > { %v3535_v9 = vsub.f32 %v10771_v10, %v3459_v59 }
 0x7c2   : > { %v3650_v46 = vmul.f32 1.442695, %v3535_v9 }
 0x7c3   : > { %3480 = vmax.xlane.f32.xlu1 %v10985_v32 }
 0x7c4   : > { %8280 = vpow2.f32 %v3650_v46  ;;  %3472 = vmax.xlane.f32.xlu0 %v10989_v21 }
 0x7c5   : > { %8282 = vpow2.f32 %v3612_v14 }
 0x7c7   : > { %v10995_v10 = vpop.xlane.xlu2 %3446  ;;  %v3437_v24 = vpop.xlane.xlu0 %3436 }
 0x7c8   : > { %v3524_v60 = vsub.f32 %v10788_v44, %v3437_v24  ;;  %v11021_v24 = vadd.f32 %v3348_v41, %v10606_v31  ;;  %v11036_v41 = vpop.xlane.xlu1 %3412 }
 0x7ca   : > { %v11000_v19 = vpop.eup %8280  ;;  %v3628_v9 = vmul.f32 1.442695, %v3524_v60 }
 0x7cb   : > { %v11002_v45 = vpop.eup %8282  ;;  %3730 = vadd.xlane.f32.xlu1 %v10998_v43  ;;  %3778 = vadd.xlane.f32.xlu2 %v11000_v19 }
 0x7cc   : > { %8284 = vpow2.f32 %v3628_v9  ;;  %3740 = vadd.xlane.f32.xlu0 %v11002_v45 }
 0x7cd   : > { %8286 = vpow2.f32 %v3588_v11  ;;  %v3497_v11 = vsub.f32 %v10615_v35, %v10827_v0  ;;  %v3539_v35 = vsub.f32 %v10750_v8, %v10964_v34 }
 0x7cf   : > { %v11007_v51 = vpop.xlane.xlu2 %3686  ;;  %v3677_v29 = vpop.xlane.xlu0 %3676 }
 0x7d0   : > { %v11052_v8 = vpop.xlane.xlu1 %3418 }
 0x7d2   : > { %v11009_v44 = vpop.eup %8284 }
 0x7d3   : > { %v11011_v14 = vpop.eup %8286  ;;  %3756 = vadd.xlane.f32.xlu2 %v11009_v44 }
 0x7d4   : > { %3716 = vadd.xlane.f32.xlu0 %v11011_v14 }
 0x7d7   : > { %v11017_v59 = vpop.xlane.xlu2 %3470  ;;  %v3461_v58 = vpop.xlane.xlu0 %3460 }
 0x7d8   : > { %v3536_v46 = vsub.f32 %v10811_v18, %v3461_v58  ;;  %v3574_v18 = vmul.f32 1.442695, %v3497_v11  ;;  %v3510_v11 = vsub.f32 %v10730_v1, %v10933_v36  ;;  %v11070_v13 = vpop.xlane.xlu1 %3476 }
 0x7da   : > { %v3652_v60 = vmul.f32 1.442695, %v3536_v46  ;;  %v3658_v46 = vmul.f32 1.442695, %v3539_v35 }
 0x7dc   : > { %8288 = vpow2.f32 %v3652_v60  ;;  %3478 = vmax.xlane.f32.xlu0 %v11021_v24 }
 0x7dd   : > { %8290 = vpow2.f32 %v3616_v63  ;;  %v3594_v63 = vmul.f32 1.442695, %v3507_v15 }
 0x7de   : > { %8292 = vrcp.f32 %v3677_v29 }
 0x7df   : > { %v11028_v26 = vpop.xlane.xlu2 %3714  ;;  %v11030_v9 = vpop.xlane.xlu0 %3414  ;;  %8294 = vpow2.f32 %v3574_v18  ;;  %v3600_v18 = vmul.f32 1.442695, %v3510_v11  ;;  %v12738_v11 = vld [vmem:[#allocation65_spill] sm:$0xff] }
 0x7e0   : > { %8296 = vpow2.f32 %v3568_v52  ;;  %v11094_v2 = vpop.xlane.xlu1 %3694 }
 0x7e2   : > { %v11032_v58 = vpop.eup %8288 }
 0x7e3   : > { %v11034_v31 = vpop.eup %8290  ;;  %3780 = vadd.xlane.f32.xlu2 %v11032_v58 }
 0x7e4   : > { %3744 = vadd.xlane.f32.xlu0 %v11034_v31  ;;  %v8293_v29 = vpop.eup %8292 }
 0x7e5   : > { %v11046_v60 = vpop.eup %8294  ;;  %v3868_v62 = vmul.f32 %v8293_v29, %v10796_v27 }
 0x7e6   : > { %v11050_v49 = vpop.eup %8296 }
 0x7e7   : > { %v11044_v6 = vpop.xlane.xlu2 %3690  ;;  %v3679_v0 = vpop.xlane.xlu0 %3678  ;;  %v3932_v35 = vpack.c.bf16 %v3868_v62, %v3868_v62  ;;  %v3532_v62 = vsub.f32 %v12738_v11, %v10895_v16  ;;  %v12740_v16 = vld [vmem:[#allocation61_spill] sm:$0xff] }
 0x7e8   : > { %8298 = vrcp.f32 %v3679_v0  ;;  %v3620_v0 = vmul.f32 1.442695, %v3520_v54 }
 0x7e9   : > { %8300 = vpow2.f32 %v3658_v46 }
 0x7ea   : > { %8302 = vpow2.f32 %v3594_v63 }
 0x7eb   : > { %3702 = vadd.xlane.f32.xlu2 %v11046_v60  ;;  %8304 = vpow2.f32 %v3600_v18 }
 0x7ec   : > { %3696 = vadd.xlane.f32.xlu0 %v11050_v49  ;;  %8306 = vrcp.f32 %v10951_v39 }
 0x7ee   : > { %v8299_v34 = vpop.eup %8298 }
 0x7ef   : > { %v11059_v52 = vpop.xlane.xlu2 %3474  ;;  %v3441_v1 = vpop.xlane.xlu0 %3440  ;;  %v3869_v36 = vmul.f32 %v8299_v34, %v10834_v20  ;;  %v4076_v20 = vunpack.c.l.b16 %v3932_v35  ;;  %v12741_v35 = vld [vmem:[#allocation57_spill] sm:$0xff] }
 0x7f0   : > { %v3526_v15 = vsub.f32 %v10854_v53, %v3441_v1  ;;  %v11063_v27 = vpop.eup %8300  ;;  %v3541_v53 = vsub.f32 %v10807_v61, %v11017_v59  ;;  %v3644_v1 = vmul.f32 1.442695, %v3532_v62 }
 0x7f1   : > { %v3933_v25 = vpack.c.bf16 %v3869_v36, %v3869_v36  ;;  %12737 = vst [vmem:[#allocation59_spill] sm:$0xff] %v11063_v27  ;;  %v11065_v46 = vpop.eup %8302  ;;  %v3498_v36 = vsub.f32 %v12740_v16, %v10966_v47 }
 0x7f2   : > { %v3632_v29 = vmul.f32 1.442695, %v3526_v15  ;;  %v11080_v34 = vpop.eup %8304  ;;  %v3662_v18 = vmul.f32 1.442695, %v3541_v53  ;;  %v3529_v15 = vsub.f32 %v12741_v35, %v10995_v10 }
 0x7f3   : > { %3786 = vadd.xlane.f32.xlu2 %v11063_v27  ;;  %v4077_v63 = vunpack.c.l.b16 %v3933_v25  ;;  %v8307_v25 = vpop.eup %8306  ;;  %v3576_v53 = vmul.f32 1.442695, %v3498_v36  ;;  %v12745_v36 = vld [vmem:[#allocation62_spill] sm:$0xff] }
 0x7f4   : > { %8308 = vpow2.f32 %v3632_v29  ;;  %3722 = vadd.xlane.f32.xlu0 %v11065_v46  ;;  %v3638_v11 = vmul.f32 1.442695, %v3529_v15  ;;  %v3534_v35 = vsub.f32 %v12745_v36, %v10953_v40  ;;  %v12748_v40 = vld [vmem:[#allocation53_spill] sm:$0xff] }
 0x7f5   : > { %8310 = vpow2.f32 %v3620_v0  ;;  %v4092_v54 = vpack.c.b16 %v4077_v63, %v4076_v20  ;;  %v12742_v0 = vld [vmem:[#allocation48_spill] sm:$0xff] }
 0x7f6   : > { %v3871_v29 = vmul.f32 %v8307_v25, %v12742_v0  ;;  %v12744_v25 = vld [vmem:[#allocation50_spill] sm:$0xff] }
 0x7f7   : > { %v11078_v5 = vpop.xlane.xlu2 %3692  ;;  %4164 = vmatmul.bf16.vlgmr.msrb.gmra.mxu3 %v4092_v54  ;;  %v3681_v39 = vpop.xlane.xlu0 %3680 }
 0x7f8   : > { %8312 = vrcp.f32 %v3681_v39  ;;  %v3935_v54 = vpack.c.bf16 %v3871_v29, %v3871_v29  ;;  %v3176_v29 = vpop.f32.mrf.mxu1 }
 0x7f9   : > { %8314 = vpow2.f32 %v3578_v56 }
 0x7fa   : > { %v11082_v61 = vpop.eup %8308  ;;  %8316 = vpow2.f32 %v3662_v18  ;;  %v4079_v16 = vunpack.c.l.b16 %v3935_v54  ;;  %v12747_v54 = vld [vmem:[#allocation44_spill] sm:$0xff] }
 0x7fb   : > { %12739 = vst [vmem:[#allocation65_spill] sm:$0xff] %v11082_v61  ;;  %v11084_v59 = vpop.eup %8310  ;;  %3728 = vadd.xlane.f32.xlu2 %v11080_v34  ;;  %3760 = vadd.xlane.f32.xlu1 %v11082_v61  ;;  %8318 = vpow2.f32 %v3644_v1  ;;  %v3513_v1 = vsub.f32 %v12744_v25, %v11030_v9  ;;  %v3648_v9 = vmul.f32 1.442695, %v3534_v35 }
 0x7fc   : > { %3748 = vadd.xlane.f32.xlu0 %v11084_v59  ;;  %8320 = vrcp.f32 %v10981_v42  ;;  %v11115_v42 = vpop.xlane.xlu1 %3720 }
 0x7fd   : > { %8322 = vpow2.f32 %v3576_v53 }
 0x7fe   : > { %v8313_v63 = vpop.eup %8312  ;;  %8324 = vpow2.f32 %v3638_v11 }
 0x7ff   : > { %v11096_v20 = vpop.xlane.xlu2 %3742  ;;  %v11098_v47 = vpop.xlane.xlu0 %3464  ;;  %v3870_v62 = vmul.f32 %v8313_v63, %v10868_v55 }
 0x800   : > { %v11101_v56 = vpop.eup %8314 }
 0x801   : > { %v11103_v10 = vpop.eup %8316  ;;  %v3934_v39 = vpack.c.bf16 %v3870_v62, %v3870_v62  ;;  %v3606_v62 = vmul.f32 1.442695, %v3513_v1  ;;  %v12749_v1 = vld [vmem:[#allocation42_spill] sm:$0xff] }
 0x802   : > { %12743 = vst [vmem:[#allocation61_spill] sm:$0xff] %v11103_v10  ;;  %v11106_v18 = vpop.eup %8318 }
 0x803   : > { %3790 = vadd.xlane.f32.xlu2 %v11103_v10  ;;  %3706 = vadd.xlane.f32.xlu1 %v11101_v56  ;;  %v4078_v55 = vunpack.c.l.b16 %v3934_v39  ;;  %v8321_v53 = vpop.eup %8320  ;;  %v11124_v39 = vadd.f32 %v3176_v29, %v12747_v54 }
 0x804   : > { %3772 = vadd.xlane.f32.xlu0 %v11106_v18  ;;  %v11119_v11 = vpop.eup %8322  ;;  %v3885_v36 = vmul.f32 %v8321_v53, %v12748_v40 }
 0x805   : > { %v4093_v0 = vpack.c.b16 %v4079_v16, %v4078_v55  ;;  %v11121_v25 = vpop.eup %8324  ;;  %v3496_v55 = vsub.f32 %v12749_v1, %v10897_v28 }
 0x806   : > { %12746 = vst [vmem:[#allocation57_spill] sm:$0xff] %v11121_v25 }
 0x807   : > { %v11117_v15 = vpop.xlane.xlu2 %3718  ;;  %v3709_v63 = vpop.xlane.xlu0 %3708  ;;  %4169 = vmatmul.bf16.gmra.mxu3 %v4093_v0  ;;  %v3949_v0 = vpack.c.bf16 %v3885_v36, %v3885_v36  ;;  %v3572_v10 = vmul.f32 1.442695, %v3496_v55  ;;  %v12750_v36 = vld [vmem:[#allocation43_spill] sm:$0xff] }
 0x808   : > { %8326 = vrcp.f32 %v3709_v63  ;;  %v11134_v63 = vpop.xlane.xlu1 %3726  ;;  %v3515_v27 = vsub.f32 %v12750_v36, %v11052_v8 }
 0x809   : > { %8328 = vpow2.f32 %v3606_v62 }
 0x80a   : > { %8330 = vpow2.f32 %v3648_v9  ;;  %v4222_v9 = vunpack.c.l.b16 %v3949_v0 }
 0x80b   : > { %3704 = vadd.xlane.f32.xlu2 %v11119_v11  ;;  %3766 = vadd.xlane.f32.xlu1 %v11121_v25  ;;  %8332 = vrcp.f32 %v11007_v51 }
 0x80c   : > { %3450 = vmax.xlane.f32.xlu0 %v11124_v39 }
 0x80e   : > { %v8327_v16 = vpop.eup %8326 }
 0x80f   : > { %v11132_v35 = vpop.xlane.xlu2 %3746  ;;  %v3884_v29 = vmul.f32 %v8327_v16, %v10901_v30  ;;  %v3445_v53 = vpop.xlane.xlu0 %3444 }
 0x810   : > { %v3528_v40 = vsub.f32 %v10913_v23, %v3445_v53  ;;  %v11138_v62 = vpop.eup %8328  ;;  %v12751_v23 = vld [vmem:[#allocation54_spill] sm:$0xff]  ;;  %v3449_v0 = vpop.xlane.xlu1 %3448 }
 0x811   : > { %v3948_v25 = vpack.c.bf16 %v3884_v29, %v3884_v29  ;;  %v11141_v28 = vpop.eup %8330  ;;  %v3523_v30 = vsub.f32 %v12751_v23, %v10842_v50  ;;  %v3610_v29 = vmul.f32 1.442695, %v3515_v27  ;;  %v3530_v50 = vsub.f32 %v10883_v57, %v3449_v0  ;;  %v3353_v0 = vpop.f32.mrf.mxu2 }
 0x812   : > { %v3636_v61 = vmul.f32 1.442695, %v3528_v40  ;;  %v8333_v16 = vpop.eup %8332 }
 0x813   : > { %v4221_v1 = vunpack.c.l.b16 %v3948_v25  ;;  %3734 = vadd.xlane.f32.xlu2 %v11138_v62  ;;  %v3626_v25 = vmul.f32 1.442695, %v3523_v30  ;;  %v3640_v23 = vmul.f32 1.442695, %v3530_v50 }
 0x814   : > { %8334 = vpow2.f32 %v3636_v61  ;;  %3776 = vadd.xlane.f32.xlu0 %v11141_v28  ;;  %v12753_v61 = vld [vmem:[#allocation46_spill] sm:$0xff] }
 0x815   : > { %8336 = vpow2.f32 %v3572_v10  ;;  %v4237_v55 = vpack.c.b16 %v4222_v9, %v4221_v1  ;;  %v3873_v36 = vmul.f32 %v8333_v16, %v12753_v61 }
 0x817   : > { %4309 = vmatmul.bf16.vlgmr.msra.gmra.mxu0 %v4237_v55  ;;  %v3685_v51 = vpop.xlane.xlu0 %3684  ;;  %v11149_v53 = vpop.xlane.xlu2 %3698  ;;  %v3937_v1 = vpack.c.bf16 %v3873_v36, %v3873_v36 }
 0x818   : > { %8338 = vrcp.f32 %v3685_v51 }
 0x819   : > { %8340 = vpow2.f32 %v3610_v29  ;;  %v4081_v16 = vunpack.c.l.b16 %v3937_v1 }
 0x81a   : > { %v11151_v40 = vpop.eup %8334  ;;  %8342 = vpow2.f32 %v3626_v25 }
 0x81b   : > { %12752 = vst [vmem:[#allocation48_spill] sm:$0xff] %v11151_v40  ;;  %v11153_v8 = vpop.eup %8336  ;;  %3764 = vadd.xlane.f32.xlu2 %v11151_v40  ;;  %8344 = vrcp.f32 %v11028_v26  ;;  %v11174_v26 = vadd.f32 %v3353_v0, %v12747_v54 }
 0x81c   : > { %3700 = vadd.xlane.f32.xlu0 %v11153_v8  ;;  %8346 = vpow2.f32 %v3640_v23  ;;  %v12757_v23 = vld [vmem:[#allocation63_spill] sm:$0xff] }
 0x81e   : > { %v8339_v27 = vpop.eup %8338 }
 0x81f   : > { %v3469_v10 = vpop.xlane.xlu0 %3468  ;;  %v3872_v9 = vmul.f32 %v8339_v27, %v10923_v12  ;;  %v11160_v55 = vpop.eup %8340  ;;  %v12754_v12 = vld [vmem:[#allocation70_spill] sm:$0xff] }
 0x820   : > { %v11162_v51 = vpop.xlane.xlu2 %3750  ;;  %v11164_v40 = vpop.eup %8342  ;;  %v3538_v29 = vsub.f32 %v12754_v12, %v11098_v47  ;;  %v12756_v47 = vld [vmem:[#allocation64_spill] sm:$0xff] }
 0x821   : > { %v3936_v30 = vpack.c.bf16 %v3872_v9, %v3872_v9  ;;  %v8345_v36 = vpop.eup %8344 }
 0x822   : > { %v3656_v50 = vmul.f32 1.442695, %v3538_v29  ;;  %v11171_v27 = vpop.eup %8346  ;;  %v3887_v1 = vmul.f32 %v8345_v36, %v12756_v47 }
 0x823   : > { %3738 = vadd.xlane.f32.xlu2 %v11160_v55  ;;  %v4080_v57 = vunpack.c.l.b16 %v3936_v30  ;;  %12755 = vst [vmem:[#allocation50_spill] sm:$0xff] %v11171_v27  ;;  %v3527_v30 = vsub.f32 %v12757_v23, %v10931_v48 }
 0x824   : > { %3754 = vadd.xlane.f32.xlu0 %v11164_v40  ;;  %v3951_v54 = vpack.c.bf16 %v3887_v1, %v3887_v1 }
 0x825   : > { %v4094_v25 = vpack.c.b16 %v4081_v16, %v4080_v57 }
 0x826   : > { %v4224_v47 = vunpack.c.l.b16 %v3951_v54 }
 0x827   : > { %4174 = vmatmul.bf16.gmra.mxu3 %v4094_v25  ;;  %v3713_v61 = vpop.xlane.xlu0 %3712  ;;  %v3634_v25 = vmul.f32 1.442695, %v3527_v30 }
 0x828   : > { %8348 = vrcp.f32 %v3713_v61  ;;  %v11178_v9 = vpop.xlane.xlu2 %3774  ;;  %v11187_v61 = vpop.xlane.xlu1 %3752 }
 0x829   : > { %8350 = vrcp.f32 %v11044_v6 }
 0x82a   : > { %8352 = vpow2.f32 %v3656_v50  ;;  %v3540_v50 = vsub.f32 %v10941_v17, %v3469_v10  ;;  %v12759_v17 = vld [vmem:[#allocation49_spill] sm:$0xff] }
 0x82b   : > { %3768 = vadd.xlane.f32.xlu2 %v11171_v27  ;;  %v12758_v27 = vld [vmem:[#allocation66_spill] sm:$0xff]  ;;  %v3544_v10 = vsub.f32 %v12759_v17, %v11070_v13  ;;  %v12764_v17 = vld [vmem:[#allocation47_spill] sm:$0xff] }
 0x82c   : > { %3482 = vmax.xlane.f32.xlu0 %v11174_v26 }
 0x82e   : > { %v8349_v57 = vpop.eup %8348 }
 0x82f   : > { %v3689_v16 = vpop.xlane.xlu0 %3688  ;;  %v3886_v12 = vmul.f32 %v8349_v57, %v10959_v37  ;;  %v8351_v29 = vpop.eup %8350 }
 0x830   : > { %8354 = vrcp.f32 %v3689_v16  ;;  %v11185_v0 = vpop.eup %8352  ;;  %v3875_v48 = vmul.f32 %v8351_v29, %v12758_v27  ;;  %v11192_v23 = vpop.xlane.xlu2 %3724 }
 0x831   : > { %v3950_v6 = vpack.c.bf16 %v3886_v12, %v3886_v12  ;;  %8356 = vpow2.f32 %v3634_v25  ;;  %v12760_v25 = vld [vmem:[#allocation45_spill] sm:$0xff] }
 0x832   : > { %v3939_v12 = vpack.c.bf16 %v3875_v48, %v3875_v48  ;;  %8358 = vrcp.f32 %v11078_v5  ;;  %v3512_v5 = vsub.f32 %v12760_v25, %v11036_v41 }
 0x833   : > { %v4223_v36 = vunpack.c.l.b16 %v3950_v6  ;;  %v3660_v6 = vmul.f32 1.442695, %v3540_v50  ;;  %8360 = vrcp.f32 %v11094_v2 }
 0x834   : > { %3784 = vadd.xlane.f32.xlu0 %v11185_v0  ;;  %8362 = vrcp.f32 %v11096_v20  ;;  %v3668_v20 = vmul.f32 1.442695, %v3544_v10  ;;  %v3543_v10 = vsub.f32 %v12764_v17, %v11059_v52 }
 0x835   : > { %v4238_v37 = vpack.c.b16 %v4224_v47, %v4223_v36  ;;  %v3759_v36 = vpop.xlane.xlu1 %3758 }
 0x836   : > { %v8355_v1 = vpop.eup %8354 }
 0x837   : > { %v3473_v30 = vpop.xlane.xlu0 %3472  ;;  %4314 = vmatmul.bf16.gmra.mxu0 %v4238_v37  ;;  %v3874_v16 = vmul.f32 %v8355_v1, %v10972_v38  ;;  %v11198_v29 = vpop.eup %8356  ;;  %v4083_v38 = vunpack.c.l.b16 %v3939_v12  ;;  %v3604_v1 = vmul.f32 1.442695, %v3512_v5  ;;  %v12762_v12 = vld [vmem:[#allocation51_spill] sm:$0xff] }
 0x838   : > { %v3542_v57 = vsub.f32 %v10989_v21, %v3473_v30  ;;  %v8359_v48 = vpop.eup %8358 }
 0x839   : > { %v3938_v54 = vpack.c.bf16 %v3874_v16, %v3874_v16  ;;  %v8361_v37 = vpop.eup %8360 }
 0x83a   : > { %v3664_v27 = vmul.f32 1.442695, %v3542_v57  ;;  %v8363_v13 = vpop.eup %8362  ;;  %v12761_v57 = vld [vmem:[#allocation68_spill] sm:$0xff] }
 0x83b   : > { %v4082_v21 = vunpack.c.l.b16 %v3938_v54  ;;  %v3876_v41 = vmul.f32 %v8359_v48, %v12761_v57 }
 0x83c   : > { %8364 = vpow2.f32 %v3664_v27  ;;  %3762 = vadd.xlane.f32.xlu0 %v11198_v29  ;;  %v12763_v27 = vld [vmem:[#allocation55_spill] sm:$0xff] }
 0x83d   : > { %8366 = vpow2.f32 %v3660_v6  ;;  %v4095_v47 = vpack.c.b16 %v4083_v38, %v4082_v21  ;;  %v3901_v6 = vmul.f32 %v8363_v13, %v12762_v12  ;;  %v3877_v54 = vmul.f32 %v8361_v37, %v12763_v27 }
 0x83e   : > { %v11206_v2 = vpop.xlane.xlu2 %3778  ;;  %8368 = vrcp.f32 %v3759_v36 }
 0x83f   : > { %v3741_v50 = vpop.xlane.xlu0 %3740  ;;  %4179 = vmatmul.bf16.gmra.mxu3 %v4095_v47  ;;  %v3965_v47 = vpack.c.bf16 %v3901_v6, %v3901_v6 }
 0x840   : > { %8370 = vrcp.f32 %v3741_v50  ;;  %v3941_v50 = vpack.c.bf16 %v3877_v54, %v3877_v54  ;;  %v12766_v54 = vld [vmem:[#allocation58_spill] sm:$0xff] }
 0x841   : > { %8372 = vrcp.f32 %v11117_v15  ;;  %v3940_v15 = vpack.c.bf16 %v3876_v41, %v3876_v41  ;;  %v12765_v41 = vld [vmem:[#allocation71_spill] sm:$0xff]  ;;  %v4367_v27 = vunpack.c.l.b16 %v3965_v47  ;;  %v11233_v47 = vpop.xlane.xlu1 %3782 }
 0x842   : > { %v11208_v30 = vpop.eup %8364  ;;  %8374 = vpow2.f32 %v3668_v20  ;;  %v3666_v20 = vmul.f32 1.442695, %v3543_v10  ;;  %v3514_v10 = vsub.f32 %v12766_v54, %v10918_v22 }
 0x843   : > { %v11212_v16 = vpop.eup %8366  ;;  %3792 = vadd.xlane.f32.xlu1 %v11208_v30  ;;  %8376 = vpow2.f32 %v3604_v1  ;;  %v4084_v1 = vunpack.c.l.b16 %v3940_v15 }
 0x844   : > { %3788 = vadd.xlane.f32.xlu0 %v11212_v16  ;;  %v8369_v21 = vpop.eup %8368 }
 0x845   : > { %v3909_v57 = vmul.f32 %v8369_v21, %v10955_v3 }
 0x846   : > { %v3757_v38 = vpop.xlane.xlu2 %3756  ;;  %v8371_v25 = vpop.eup %8370 }
 0x847   : > { %8378 = vrcp.f32 %v3757_v38  ;;  %v3717_v5 = vpop.xlane.xlu0 %3716  ;;  %v8373_v36 = vpop.eup %8372  ;;  %v3900_v48 = vmul.f32 %v8371_v25, %v11002_v45  ;;  %v4085_v45 = vunpack.c.l.b16 %v3941_v50  ;;  %v3973_v21 = vpack.c.bf16 %v3909_v57, %v3909_v57 }
 0x848   : > { %8380 = vrcp.f32 %v3717_v5  ;;  %v11221_v13 = vpop.eup %8374  ;;  %v3889_v12 = vmul.f32 %v8373_v36, %v12765_v41 }
 0x849   : > { %v3964_v37 = vpack.c.bf16 %v3900_v48, %v3900_v48  ;;  %v11224_v52 = vpop.eup %8376  ;;  %8382 = vpow2.f32 %v3666_v20  ;;  %v4096_v25 = vpack.c.b16 %v4085_v45, %v4084_v1  ;;  %v11238_v20 = vunpack.c.l.b16 %v3973_v21 }
 0x84a   : > { %v3953_v36 = vpack.c.bf16 %v3889_v12, %v3889_v12  ;;  %8384 = vrcp.f32 %v11132_v35 }
 0x84b   : > { %3796 = vadd.xlane.f32.xlu1 %v11221_v13  ;;  %v4366_v17 = vunpack.c.l.b16 %v3964_v37  ;;  %v3608_v37 = vmul.f32 1.442695, %v3514_v10 }
 0x84c   : > { %3732 = vadd.xlane.f32.xlu0 %v11224_v52  ;;  %v4226_v57 = vunpack.c.l.b16 %v3953_v36 }
 0x84d   : > { %v8379_v6 = vpop.eup %8378  ;;  %v4382_v15 = vpack.c.b16 %v4367_v27, %v4366_v17  ;;  %8386 = vpow2.f32 %v3608_v37 }
 0x84e   : > { %v8381_v38 = vpop.eup %8380  ;;  %v3908_v3 = vmul.f32 %v8379_v6, %v11009_v44  ;;  %v3481_v6 = vpop.xlane.xlu1 %3480 }
 0x84f   : > { %v3479_v5 = vpop.xlane.xlu0 %3478  ;;  %v3888_v48 = vmul.f32 %v8381_v38, %v11011_v14  ;;  %4184 = vmatmul.bf16.gmra.mxu3 %v4096_v25  ;;  %4454 = vmatmul.bf16.vlgmr.msra.gmra.mxu1 %v4382_v15  ;;  %v11240_v1 = vpop.eup %8382  ;;  %v3546_v38 = vsub.f32 %v10985_v32, %v3481_v6 }
 0x850   : > { %v3972_v50 = vpack.c.bf16 %v3908_v3, %v3908_v3  ;;  %v3545_v12 = vsub.f32 %v11021_v24, %v3479_v5  ;;  %v8385_v35 = vpop.eup %8384 }
 0x851   : > { %v3952_v41 = vpack.c.bf16 %v3888_v48, %v3888_v48  ;;  %v3903_v10 = vmul.f32 %v8385_v35, %v10909_v7 }
 0x852   : > { %v11236_v22 = vunpack.c.l.b16 %v3972_v50  ;;  %v3670_v45 = vmul.f32 1.442695, %v3545_v12 }
 0x853   : > { %v4225_v44 = vunpack.c.l.b16 %v3952_v41  ;;  %v11247_v54 = vpop.eup %8386  ;;  %v3967_v21 = vpack.c.bf16 %v3903_v10, %v3903_v10 }
 0x854   : > { %3794 = vadd.xlane.f32.xlu0 %v11240_v1  ;;  %v4386_v14 = vpack.c.b16 %v11238_v20, %v11236_v22 }
 0x855   : > { %v4239_v27 = vpack.c.b16 %v4226_v57, %v4225_v44  ;;  %v4369_v50 = vunpack.c.l.b16 %v3967_v21 }
 0x856   : > { %v11252_v24 = vpop.xlane.xlu2 %3780 }
 0x857   : > { %4319 = vmatmul.bf16.gmra.mxu0 %v4239_v27  ;;  %v3745_v17 = vpop.xlane.xlu0 %3744 }
 0x858   : > { %8388 = vrcp.f32 %v3745_v17 }
 0x859   : > { %8390 = vrcp.f32 %v11149_v53  ;;  %v3672_v53 = vmul.f32 1.442695, %v3546_v38 }
 0x85a   : > { %8392 = vpow2.f32 %v3670_v45  ;;  %v12767_v45 = vld [vmem:[#allocation67_spill] sm:$0xff] }
 0x85c   : > { %3736 = vadd.xlane.f32.xlu0 %v11247_v54 }
 0x85e   : > { %v8389_v15 = vpop.eup %8388  ;;  %v11261_v27 = vpop.xlane.xlu2 %3702 }
 0x85f   : > { %v3697_v25 = vpop.xlane.xlu0 %3696  ;;  %v3902_v3 = vmul.f32 %v8389_v15, %v11034_v31  ;;  %v8391_v5 = vpop.eup %8390 }
 0x860   : > { %8394 = vrcp.f32 %v3697_v25  ;;  %v11256_v36 = vpop.eup %8392  ;;  %v3879_v32 = vmul.f32 %v8391_v5, %v10921_v33 }
 0x861   : > { %v3966_v48 = vpack.c.bf16 %v3902_v3, %v3902_v3  ;;  %8396 = vrcp.f32 %v11115_v42 }
 0x862   : > { %8398 = vpow2.f32 %v3672_v53  ;;  %v3943_v57 = vpack.c.bf16 %v3879_v32, %v3879_v32 }
 0x863   : > { %v4368_v7 = vunpack.c.l.b16 %v3966_v48  ;;  %v12768_v48 = vld [vmem:[#allocation52_spill] sm:$0xff] }
 0x864   : > { %3798 = vadd.xlane.f32.xlu0 %v11256_v36  ;;  %v4087_v35 = vunpack.c.l.b16 %v3943_v57  ;;  %v12769_v57 = vld [vmem:[#allocation69_spill] sm:$0xff] }
 0x865   : > { %v4383_v37 = vpack.c.b16 %v4369_v50, %v4368_v7 }
 0x866   : > { %v8395_v41 = vpop.eup %8394 }
 0x867   : > { %4459 = vmatmul.bf16.gmra.mxu1 %v4383_v37  ;;  %v3723_v31 = vpop.xlane.xlu0 %3722  ;;  %v3878_v44 = vmul.f32 %v8395_v41, %v11050_v49  ;;  %v8397_v12 = vpop.eup %8396 }
 0x868   : > { %8400 = vrcp.f32 %v3723_v31  ;;  %v11263_v17 = vpop.eup %8398  ;;  %v3890_v6 = vmul.f32 %v8397_v12, %v12767_v45 }
 0x869   : > { %v3942_v42 = vpack.c.bf16 %v3878_v44, %v3878_v44  ;;  %8402 = vrcp.f32 %v11162_v51  ;;  %v11272_v51 = vpop.xlane.xlu2 %3786 }
 0x86a   : > { %v3954_v25 = vpack.c.bf16 %v3890_v6, %v3890_v6  ;;  %8404 = vrcp.f32 %v11192_v23 }
 0x86b   : > { %v4086_v33 = vunpack.c.l.b16 %v3942_v42  ;;  %v12770_v42 = vld [vmem:[#allocation60_spill] sm:$0xff] }
 0x86c   : > { %3800 = vadd.xlane.f32.xlu0 %v11263_v17  ;;  %v4227_v5 = vunpack.c.l.b16 %v3954_v25 }
 0x86d   : > { %v4097_v10 = vpack.c.b16 %v4087_v35, %v4086_v33 }
 0x86e   : > { %v8401_v38 = vpop.eup %8400 }
 0x86f   : > { %4189 = vmatmul.bf16.gmra.mxu3 %v4097_v10  ;;  %v3749_v49 = vpop.xlane.xlu0 %3748  ;;  %v3891_v15 = vmul.f32 %v8401_v38, %v11065_v46  ;;  %v8403_v3 = vpop.eup %8402 }
 0x870   : > { %8406 = vrcp.f32 %v3749_v49  ;;  %v3905_v7 = vmul.f32 %v8403_v3, %v12768_v48  ;;  %v8405_v32 = vpop.eup %8404  ;;  %v3731_v38 = vpop.xlane.xlu1 %3730 }
 0x871   : > { %v3955_v21 = vpack.c.bf16 %v3891_v15, %v3891_v15  ;;  %8408 = vrcp.f32 %v11134_v63  ;;  %v3892_v63 = vmul.f32 %v8405_v32, %v10968_v4  ;;  %v3729_v6 = vpop.xlane.xlu2 %3728 }
 0x872   : > { %8410 = vrcp.f32 %v11178_v9  ;;  %v3969_v31 = vpack.c.bf16 %v3905_v7, %v3905_v7 }
 0x873   : > { %v4228_v53 = vunpack.c.l.b16 %v3955_v21  ;;  %v3956_v10 = vpack.c.bf16 %v3892_v63, %v3892_v63 }
 0x874   : > { %v4371_v45 = vunpack.c.l.b16 %v3969_v31 }
 0x875   : > { %v4240_v50 = vpack.c.b16 %v4228_v53, %v4227_v5  ;;  %v4229_v5 = vunpack.c.l.b16 %v3956_v10 }
 0x876   : > { %v8407_v37 = vpop.eup %8406 }
 0x877   : > { %4324 = vmatmul.bf16.gmra.mxu0 %v4240_v50  ;;  %v3773_v46 = vpop.xlane.xlu0 %3772  ;;  %v8409_v41 = vpop.eup %8408  ;;  %v3904_v23 = vmul.f32 %v8407_v37, %v11084_v59 }
 0x878   : > { %v8411_v44 = vpop.eup %8410  ;;  %8412 = vrcp.f32 %v3773_v46  ;;  %v3893_v12 = vmul.f32 %v8409_v41, %v12769_v57  ;;  %v11291_v57 = vpop.xlane.xlu1 %3760 }
 0x879   : > { %v3968_v9 = vpack.c.bf16 %v3904_v23, %v3904_v23  ;;  %v3917_v33 = vmul.f32 %v8411_v44, %v12770_v42  ;;  %8414 = vrcp.f32 %v3729_v6 }
 0x87a   : > { %v3957_v3 = vpack.c.bf16 %v3893_v12, %v3893_v12  ;;  %8416 = vrcp.f32 %v3731_v38 }
 0x87b   : > { %v4370_v35 = vunpack.c.l.b16 %v3968_v9  ;;  %v3981_v59 = vpack.c.bf16 %v3917_v33, %v3917_v33  ;;  %8418 = vrcp.f32 %v11206_v2  ;;  %v11286_v2 = vpop.xlane.xlu2 %3790 }
 0x87c   : > { %v4230_v7 = vunpack.c.l.b16 %v3957_v3 }
 0x87d   : > { %v4384_v49 = vpack.c.b16 %v4371_v45, %v4370_v35  ;;  %v4512_v50 = vunpack.c.l.b16 %v3981_v59 }
 0x87e   : > { %v8413_v15 = vpop.eup %8412  ;;  %v4241_v37 = vpack.c.b16 %v4230_v7, %v4229_v5 }
 0x87f   : > { %v3451_v25 = vpop.xlane.xlu0 %3450  ;;  %v3916_v21 = vmul.f32 %v8413_v15, %v11106_v18  ;;  %4464 = vmatmul.bf16.gmra.mxu1 %v4384_v49  ;;  %v8415_v46 = vpop.eup %8414 }
 0x880   : > { %v3531_v4 = vsub.f32 %v11124_v39, %v3451_v25  ;;  %v8417_v23 = vpop.eup %8416  ;;  %v3894_v39 = vmul.f32 %v8415_v46, %v11080_v34 }
 0x881   : > { %v3980_v53 = vpack.c.bf16 %v3916_v21, %v3916_v21  ;;  %v8419_v18 = vpop.eup %8418  ;;  %v3895_v63 = vmul.f32 %v8417_v23, %v10998_v43  ;;  %v3707_v21 = vpop.xlane.xlu1 %3706 }
 0x882   : > { %v3642_v48 = vmul.f32 1.442695, %v3531_v4  ;;  %v3919_v9 = vmul.f32 %v8419_v18, %v11000_v19  ;;  %v3958_v12 = vpack.c.bf16 %v3894_v39, %v3894_v39 }
 0x883   : > { %v4511_v32 = vunpack.c.l.b16 %v3980_v53  ;;  %v3959_v34 = vpack.c.bf16 %v3895_v63, %v3895_v63  ;;  %v3705_v15 = vpop.xlane.xlu2 %3704 }
 0x884   : > { %8420 = vpow2.f32 %v3642_v48  ;;  %v3983_v45 = vpack.c.bf16 %v3919_v9, %v3919_v9  ;;  %v4231_v6 = vunpack.c.l.b16 %v3958_v12 }
 0x885   : > { %v4527_v41 = vpack.c.b16 %v4512_v50, %v4511_v32  ;;  %v4232_v43 = vunpack.c.l.b16 %v3959_v34  ;;  %v12771_v50 = vld [vmem:[#allocation56_spill] sm:$0xff] }
 0x886   : > { %v4514_v38 = vunpack.c.l.b16 %v3983_v45 }
 0x887   : > { %4329 = vmatmul.bf16.gmra.mxu0 %v4241_v37  ;;  %v3777_v31 = vpop.xlane.xlu0 %3776  ;;  %4599 = vmatmul.bf16.vlgmr.msra.gmra.mxu2 %v4527_v41  ;;  %v4242_v25 = vpack.c.b16 %v4232_v43, %v4231_v6  ;;  %v12772_v37 = vld [vmem:[#allocation72_spill] sm:$0xff] }
 0x888   : > { %8422 = vrcp.f32 %v3777_v31 }
 0x889   : > { %8424 = vrcp.f32 %v11261_v27 }
 0x88a   : > { %v11283_v44 = vpop.eup %8420  ;;  %8426 = vrcp.f32 %v11187_v61 }
 0x88b   : > { %3770 = vadd.xlane.f32.xlu1 %v11283_v44 }
 0x88e   : > { %v8423_v42 = vpop.eup %8422 }
 0x88f   : > { %v3701_v33 = vpop.xlane.xlu0 %3700  ;;  %v3918_v35 = vmul.f32 %v8423_v42, %v11141_v28  ;;  %v8425_v27 = vpop.eup %8424 }
 0x890   : > { %8428 = vrcp.f32 %v3701_v33  ;;  %v3881_v49 = vmul.f32 %v8425_v27, %v11046_v60  ;;  %v8427_v61 = vpop.eup %8426 }
 0x891   : > { %8430 = vrcp.f32 %v11252_v24  ;;  %v3982_v10 = vpack.c.bf16 %v3918_v35, %v3918_v35  ;;  %v3906_v32 = vmul.f32 %v8427_v61, %v12771_v50  ;;  %v12773_v61 = vld [vmem:[#allocation59_spill] sm:$0xff]  ;;  %v3767_v50 = vpop.xlane.xlu1 %3766 }
 0x892   : > { %8432 = vrcp.f32 %v11233_v47  ;;  %v3945_v5 = vpack.c.bf16 %v3881_v49, %v3881_v49 }
 0x893   : > { %v4513_v19 = vunpack.c.l.b16 %v3982_v10  ;;  %8434 = vrcp.f32 %v3705_v15  ;;  %v3970_v63 = vpack.c.bf16 %v3906_v32, %v3906_v32 }
 0x894   : > { %v4089_v7 = vunpack.c.l.b16 %v3945_v5 }
 0x895   : > { %v4528_v3 = vpack.c.b16 %v4514_v38, %v4513_v19  ;;  %v4372_v45 = vunpack.c.l.b16 %v3970_v63 }
 0x896   : > { %v8429_v59 = vpop.eup %8428 }
 0x897   : > { %v8431_v28 = vpop.eup %8430  ;;  %4334 = vmatmul.bf16.gmra.mxu0 %v4242_v25  ;;  %v3755_v4 = vpop.xlane.xlu0 %3754  ;;  %v3880_v24 = vmul.f32 %v8429_v59, %v11153_v8  ;;  %4604 = vmatmul.bf16.gmra.mxu2 %v4528_v3 }
 0x898   : > { %v8433_v53 = vpop.eup %8432  ;;  %8436 = vrcp.f32 %v3755_v4  ;;  %v3920_v60 = vmul.f32 %v8431_v28, %v11032_v58 }
 0x899   : > { %v3944_v47 = vpack.c.bf16 %v3880_v24, %v3880_v24  ;;  %8438 = vrcp.f32 %v3707_v21  ;;  %v3921_v46 = vmul.f32 %v8433_v53, %v12772_v37  ;;  %v8435_v41 = vpop.eup %8434  ;;  %v3735_v24 = vpop.xlane.xlu2 %3734  ;;  %v12774_v37 = vld [vmem:[#allocation65_spill] sm:$0xff] }
 0x89a   : > { %v3984_v18 = vpack.c.bf16 %v3920_v60, %v3920_v60  ;;  %v3882_v33 = vmul.f32 %v8435_v41, %v11119_v11  ;;  %8440 = vrcp.f32 %v11272_v51  ;;  %v12775_v41 = vld [vmem:[#allocation61_spill] sm:$0xff] }
 0x89b   : > { %v4088_v48 = vunpack.c.l.b16 %v3944_v47  ;;  %v3985_v42 = vpack.c.bf16 %v3921_v46, %v3921_v46  ;;  %v4165_v47 = vpop.f32.mrf.mxu3 }
 0x89c   : > { %v4515_v35 = vunpack.c.l.b16 %v3984_v18 }
 0x89d   : > { %v4098_v23 = vpack.c.b16 %v4089_v7, %v4088_v48  ;;  %v4516_v10 = vunpack.c.l.b16 %v3985_v42 }
 0x89e   : > { %v8437_v31 = vpop.eup %8436 }
 0x89f   : > { %4194 = vmatmul.bf16.gmra.mxu3 %v4098_v23  ;;  %v3483_v8 = vpop.xlane.xlu0 %3482  ;;  %v3907_v39 = vmul.f32 %v8437_v31, %v11164_v40  ;;  %v8439_v9 = vpop.eup %8438  ;;  %v3946_v40 = vpack.c.bf16 %v3882_v33, %v3882_v33  ;;  %v4529_v19 = vpack.c.b16 %v4516_v10, %v4515_v35 }
 0x8a0   : > { %v3547_v12 = vsub.f32 %v11174_v26, %v3483_v8  ;;  %v3883_v6 = vmul.f32 %v8439_v9, %v11101_v56  ;;  %v8441_v49 = vpop.eup %8440 }
 0x8a1   : > { %v3971_v58 = vpack.c.bf16 %v3907_v39, %v3907_v39  ;;  %v4090_v11 = vunpack.c.l.b16 %v3946_v40  ;;  %v3923_v25 = vmul.f32 %v8441_v49, %v12773_v61  ;;  %v3765_v31 = vpop.xlane.xlu2 %3764 }
 0x8a2   : > { %v3674_v34 = vmul.f32 1.442695, %v3547_v12  ;;  %v3947_v26 = vpack.c.bf16 %v3883_v6, %v3883_v6 }
 0x8a3   : > { %v4373_v27 = vunpack.c.l.b16 %v3971_v58  ;;  %v3987_v21 = vpack.c.bf16 %v3923_v25, %v3923_v25  ;;  %v4167_v39 = vpop.f32.mrf.mxu3  ;;  %v12776_v25 = vld [vmem:[#allocation48_spill] sm:$0xff] }
 0x8a4   : > { %8442 = vpow2.f32 %v3674_v34  ;;  %v4091_v51 = vunpack.c.l.b16 %v3947_v26 }
 0x8a5   : > { %v4385_v43 = vpack.c.b16 %v4373_v27, %v4372_v45  ;;  %v4518_v53 = vunpack.c.l.b16 %v3987_v21 }
 0x8a6   : > { %v4099_v56 = vpack.c.b16 %v4091_v51, %v4090_v11 }
 0x8a7   : > { %4469 = vmatmul.bf16.gmra.mxu1 %v4385_v43  ;;  %v3785_v38 = vpop.xlane.xlu0 %3784  ;;  %4609 = vmatmul.bf16.gmra.mxu2 %v4529_v19 }
 0x8a8   : > { %8444 = vrcp.f32 %v3785_v38 }
 0x8a9   : > { %v3739_v19 = vpop.xlane.xlu2 %3738 }
 0x8aa   : > { %v11307_v15 = vpop.eup %8442 }
 0x8ab   : > { %3802 = vadd.xlane.f32.xlu2 %v11307_v15  ;;  %v4170_v51 = vpop.f32.mrf.mxu3 }
 0x8ae   : > { %v8445_v3 = vpop.eup %8444 }
 0x8af   : > { %4199 = vmatmul.bf16.gmra.mxu3 %v4099_v56  ;;  %v3763_v59 = vpop.xlane.xlu0 %3762  ;;  %v3922_v28 = vmul.f32 %v8445_v3, %v11185_v0  ;;  %v12777_v56 = vld [vmem:[#allocation57_spill] sm:$0xff] }
 0x8b0   : > { %8446 = vrcp.f32 %v3763_v59 }
 0x8b1   : > { %8448 = vrcp.f32 %v11291_v57  ;;  %v3986_v4 = vpack.c.bf16 %v3922_v28, %v3922_v28 }
 0x8b2   : > { %8450 = vrcp.f32 %v11286_v2  ;;  %v4310_v2 = vpop.f32.mrf.mxu0 }
 0x8b3   : > { %v4517_v5 = vunpack.c.l.b16 %v3986_v4  ;;  %v8082_v33 = vpack.i.bf16 %v4310_v2, %v4165_v47  ;;  %v4172_v2 = vpop.f32.mrf.mxu3 }
 0x8b5   : > { %v4530_v60 = vpack.c.b16 %v4518_v53, %v4517_v5 }
 0x8b6   : > { %v8447_v48 = vpop.eup %8446  ;;  %v3793_v22 = vpop.xlane.xlu1 %3792 }
 0x8b7   : > { %v8449_v7 = vpop.eup %8448  ;;  %4474 = vmatmul.bf16.gmra.mxu1 %v4386_v14  ;;  %v3789_v0 = vpop.xlane.xlu0 %3788  ;;  %4614 = vmatmul.bf16.gmra.mxu2 %v4530_v60  ;;  %v3911_v57 = vmul.f32 %v8447_v48, %v11198_v29 }
 0x8b8   : > { %v8451_v32 = vpop.eup %8450  ;;  %8452 = vrcp.f32 %v3789_v0  ;;  %v3910_v46 = vmul.f32 %v8449_v7, %v12774_v37 }
 0x8b9   : > { %8454 = vrcp.f32 %v3735_v24  ;;  %v3925_v23 = vmul.f32 %v8451_v32, %v12775_v41  ;;  %v3975_v18 = vpack.c.bf16 %v3911_v57, %v3911_v57 }
 0x8ba   : > { %v3974_v63 = vpack.c.bf16 %v3910_v46, %v3910_v46  ;;  %8456 = vrcp.f32 %v3765_v31  ;;  %v4312_v27 = vpop.f32.mrf.mxu0 }
 0x8bb   : > { %v3989_v9 = vpack.c.bf16 %v3925_v23, %v3925_v23  ;;  %v4377_v29 = vunpack.c.l.b16 %v3975_v18  ;;  %v8084_v59 = vpack.i.bf16 %v4312_v27, %v4167_v39 }
 0x8bc   : > { %v4376_v58 = vunpack.c.l.b16 %v3974_v63 }
 0x8bd   : > { %v4520_v35 = vunpack.c.l.b16 %v3989_v9  ;;  %v4175_v9 = vpop.f32.mrf.mxu3 }
 0x8be   : > { %v8453_v8 = vpop.eup %8452  ;;  %v4387_v10 = vpack.c.b16 %v4377_v29, %v4376_v58  ;;  %v3797_v60 = vpop.xlane.xlu1 %3796 }
 0x8bf   : > { %v3733_v20 = vpop.xlane.xlu0 %3732  ;;  %v3924_v14 = vmul.f32 %v8453_v8, %v11212_v16  ;;  %v8455_v12 = vpop.eup %8454 }
 0x8c0   : > { %8458 = vrcp.f32 %v3733_v20  ;;  %v3897_v45 = vmul.f32 %v8455_v12, %v11138_v62  ;;  %v8457_v6 = vpop.eup %8456 }
 0x8c1   : > { %8460 = vrcp.f32 %v3767_v50  ;;  %v3988_v42 = vpack.c.bf16 %v3924_v14, %v3924_v14  ;;  %v3912_v62 = vmul.f32 %v8457_v6, %v12776_v25 }
 0x8c2   : > { %8462 = vrcp.f32 %v3793_v22  ;;  %v3961_v49 = vpack.c.bf16 %v3897_v45, %v3897_v45  ;;  %v4315_v24 = vpop.f32.mrf.mxu0 }
 0x8c3   : > { %v4519_v34 = vunpack.c.l.b16 %v3988_v42 }
 0x8c4   : > { %v4234_v21 = vunpack.c.l.b16 %v3961_v49  ;;  %v3769_v49 = vpop.xlane.xlu2 %3768 }
 0x8c5   : > { %8083 = vxpose.xlu1.b32.start [1/16] (narrow) %v8082_v33, 32  ;;  %v4531_v43 = vpack.c.b16 %v4520_v35, %v4519_v34 }
 0x8c6   : > { %v8459_v40 = vpop.eup %8458 }
 0x8c7   : > { %v8461_v16 = vpop.eup %8460  ;;  %4479 = vmatmul.bf16.gmra.mxu1 %v4387_v10  ;;  %v3795_v38 = vpop.xlane.xlu0 %3794  ;;  %v3896_v26 = vmul.f32 %v8459_v40, %v11224_v52  ;;  %4619 = vmatmul.bf16.gmra.mxu2 %v4531_v43  ;;  %v3976_v52 = vpack.c.bf16 %v3912_v62, %v3912_v62 }
 0x8c8   : > { %v8463_v11 = vpop.eup %8462  ;;  %8464 = vrcp.f32 %v3795_v38  ;;  %v3913_v3 = vmul.f32 %v8461_v16, %v12777_v56  ;;  %v4177_v43 = vpop.f32.mrf.mxu3 }
 0x8c9   : > { %v3960_v61 = vpack.c.bf16 %v3896_v26, %v3896_v26  ;;  %8466 = vrcp.f32 %v3739_v19  ;;  %v3926_v4 = vmul.f32 %v8463_v11, %v11208_v30  ;;  %v4378_v32 = vunpack.c.l.b16 %v3976_v52 }
 0x8ca   : > { %v3977_v47 = vpack.c.bf16 %v3913_v3, %v3913_v3  ;;  %v8086_v30 = vpack.i.bf16 %v4315_v24, %v4170_v51  ;;  %v4317_v39 = vpop.f32.mrf.mxu0 }
 0x8cb   : > { %v4233_v28 = vunpack.c.l.b16 %v3960_v61  ;;  %v3990_v50 = vpack.c.bf16 %v3926_v4, %v3926_v4  ;;  %v8088_v12 = vpack.i.bf16 %v4317_v39, %v4172_v2 }
 0x8cc   : > { %v4379_v37 = vunpack.c.l.b16 %v3977_v47  ;;  %v4455_v51 = vpop.f32.mrf.mxu1 }
 0x8cd   : > { %8085 = vxpose.xlu1.b32.cont [2/16] (narrow) %v8084_v59, 32  ;;  %v4243_v5 = vpack.c.b16 %v4234_v21, %v4233_v28  ;;  %v4521_v46 = vunpack.c.l.b16 %v3990_v50  ;;  %v12778_v59 = vld [vmem:[#allocation50_spill] sm:$0xff] }
 0x8ce   : > { %v8465_v53 = vpop.eup %8464  ;;  %v4388_v31 = vpack.c.b16 %v4379_v37, %v4378_v32 }
 0x8cf   : > { %4339 = vmatmul.bf16.gmra.mxu0 %v4243_v5  ;;  %v3737_v48 = vpop.xlane.xlu0 %3736  ;;  %v3927_v7 = vmul.f32 %v8465_v53, %v11240_v1  ;;  %v8467_v0 = vpop.eup %8466 }
 0x8d0   : > { %8468 = vrcp.f32 %v3737_v48  ;;  %v3899_v23 = vmul.f32 %v8467_v0, %v11160_v55  ;;  %v4180_v38 = vpop.f32.mrf.mxu3 }
 0x8d1   : > { %v3991_v57 = vpack.c.bf16 %v3927_v7, %v3927_v7  ;;  %8470 = vrcp.f32 %v3797_v60 }
 0x8d2   : > { %v3963_v22 = vpack.c.bf16 %v3899_v23, %v3899_v23 }
 0x8d3   : > { %v4522_v41 = vunpack.c.l.b16 %v3991_v57 }
 0x8d4   : > { %v4236_v42 = vunpack.c.l.b16 %v3963_v22  ;;  %v4320_v34 = vpop.f32.mrf.mxu0  ;;  %v4457_v3 = vpop.f32.mrf.mxu1 }
 0x8d5   : > { %8087 = vxpose.xlu1.b32.cont [3/16] (narrow) %v8086_v30, 32  ;;  %v4532_v18 = vpack.c.b16 %v4522_v41, %v4521_v46  ;;  %v8090_v27 = vpack.i.bf16 %v4320_v34, %v4175_v9 }
 0x8d6   : > { %v8469_v8 = vpop.eup %8468 }
 0x8d7   : > { %4484 = vmatmul.bf16.gmra.mxu1 %v4388_v31  ;;  %v3799_v1 = vpop.xlane.xlu0 %3798  ;;  %v3898_v63 = vmul.f32 %v8469_v8, %v11247_v54  ;;  %v8471_v20 = vpop.eup %8470  ;;  %4624 = vmatmul.bf16.gmra.mxu2 %v4532_v18 }
 0x8d8   : > { %8472 = vrcp.f32 %v3799_v1  ;;  %v3928_v55 = vmul.f32 %v8471_v20, %v11221_v13  ;;  %v4182_v11 = vpop.f32.mrf.mxu3 }
 0x8d9   : > { %v3962_v14 = vpack.c.bf16 %v3898_v63, %v3898_v63  ;;  %8474 = vrcp.f32 %v3769_v49 }
 0x8da   : > { %v3992_v45 = vpack.c.bf16 %v3928_v55, %v3928_v55 }
 0x8db   : > { %v4235_v29 = vunpack.c.l.b16 %v3962_v14 }
 0x8dc   : > { %v4523_v6 = vunpack.c.l.b16 %v3992_v45  ;;  %v4322_v16 = vpop.f32.mrf.mxu0 }
 0x8dd   : > { %8089 = vxpose.xlu1.b32.cont [4/16] (narrow) %v8088_v12, 32  ;;  %v4244_v58 = vpack.c.b16 %v4236_v42, %v4235_v29  ;;  %v8092_v19 = vpack.i.bf16 %v4322_v16, %v4177_v43 }
 0x8de   : > { %v8473_v33 = vpop.eup %8472 }
 0x8df   : > { %4344 = vmatmul.bf16.gmra.mxu0 %v4244_v58  ;;  %v3929_v35 = vmul.f32 %v8473_v33, %v11256_v36  ;;  %v8475_v62 = vpop.eup %8474  ;;  %v3801_v31 = vpop.xlane.xlu0 %3800 }
 0x8e0   : > { %v4185_v56 = vpop.f32.mrf.mxu3  ;;  %v3914_v28 = vmul.f32 %v8475_v62, %v12778_v59 }
 0x8e1   : > { %v3993_v54 = vpack.c.bf16 %v3929_v35, %v3929_v35 }
 0x8e2   : > { %v3978_v52 = vpack.c.bf16 %v3914_v28, %v3914_v28 }
 0x8e3   : > { %v4524_v10 = vunpack.c.l.b16 %v3993_v54 }
 0x8e4   : > { %v4460_v47 = vpop.f32.mrf.mxu1  ;;  %v4380_v48 = vunpack.c.l.b16 %v3978_v52 }
 0x8e5   : > { %8091 = vxpose.xlu1.b32.cont [5/16] (narrow) %v8090_v27, 32  ;;  %v4533_v40 = vpack.c.b16 %v4524_v10, %v4523_v6 }
 0x8e7   : > { %4629 = vmatmul.bf16.gmra.mxu2 %v4533_v40 }
 0x8e8   : > { %v4187_v60 = vpop.f32.mrf.mxu3 }
 0x8ec   : > { %v4462_v30 = vpop.f32.mrf.mxu1 }
 0x8ed   : > { %8093 = vxpose.xlu1.b32.cont [6/16] (narrow) %v8092_v19, 32 }
 0x8f2   : > { %v4190_v37 = vpop.f32.mrf.mxu3 }
 0x8f4   : > { %v4325_v13 = vpop.f32.mrf.mxu0 }
 0x8f5   : > { %v8094_v26 = vpack.i.bf16 %v4325_v13, %v4180_v38 }
 0x8f7   : > { %8095 = vxpose.xlu1.b32.cont [7/16] (narrow) %v8094_v26, 32 }
 0x8fa   : > { %v4192_v39 = vpop.f32.mrf.mxu3 }
 0x8fc   : > { %v4327_v36 = vpop.f32.mrf.mxu0  ;;  %v4465_v18 = vpop.f32.mrf.mxu1 }
 0x8fd   : > { %v8096_v61 = vpack.i.bf16 %v4327_v36, %v4182_v11 }
 0x8fe   : > { %v3771_v25 = vpop.xlane.xlu1 %3770 }
 0x8ff   : > { %8476 = vrcp.f32 %v3771_v25  ;;  %8097 = vxpose.xlu1.b32.cont [8/16] (narrow) %v8096_v61, 32 }
 0x900   : > { %8478 = vrcp.f32 %v3801_v31 }
 0x904   : > { %v4330_v21 = vpop.f32.mrf.mxu0  ;;  %v4467_v55 = vpop.f32.mrf.mxu1 }
 0x905   : > { %v8477_v4 = vpop.eup %8476  ;;  %v8098_v24 = vpack.i.bf16 %v4330_v21, %v4185_v56 }
 0x906   : > { %v3915_v5 = vmul.f32 %v8477_v4, %v11283_v44  ;;  %v8479_v14 = vpop.eup %8478 }
 0x907   : > { %8099 = vxpose.xlu1.b32.cont [9/16] (narrow) %v8098_v24, 32  ;;  %v3930_v9 = vmul.f32 %v8479_v14, %v11263_v17 }
 0x908   : > { %v3979_v53 = vpack.c.bf16 %v3915_v5, %v3915_v5 }
 0x909   : > { %v3994_v33 = vpack.c.bf16 %v3930_v9, %v3930_v9 }
 0x90a   : > { %v4381_v7 = vunpack.c.l.b16 %v3979_v53  ;;  %v4600_v50 = vpop.f32.mrf.mxu2 }
 0x90b   : > { %v8134_v0 = vpack.i.bf16 %v4600_v50, %v4455_v51  ;;  %v4525_v35 = vunpack.c.l.b16 %v3994_v33 }
 0x90c   : > { %v4332_v32 = vpop.f32.mrf.mxu0  ;;  %v4389_v57 = vpack.c.b16 %v4381_v7, %v4380_v48 }
 0x90d   : > { %v8100_v2 = vpack.i.bf16 %v4332_v32, %v4187_v60  ;;  %8135 = vxpose.xlu0.b32.start [1/16] (narrow) %v8134_v0, 32 }
 0x90e   : > { %4489 = vmatmul.bf16.gmra.mxu1 %v4389_v57 }
 0x90f   : > { %8101 = vxpose.xlu1.b32.cont [10/16] (narrow) %v8100_v2, 32 }
 0x912   : > { %v4602_v46 = vpop.f32.mrf.mxu2 }
 0x913   : > { %v8136_v41 = vpack.i.bf16 %v4602_v46, %v4457_v3 }
 0x914   : > { %v4335_v44 = vpop.f32.mrf.mxu0 }
 0x915   : > { %v8102_v23 = vpack.i.bf16 %v4335_v44, %v4190_v37  ;;  %8137 = vxpose.xlu0.b32.cont [2/16] (narrow) %v8136_v41, 32 }
 0x917   : > { %8103 = vxpose.xlu1.b32.cont [11/16] (narrow) %v8102_v23, 32 }
 0x91a   : > { %v4605_v8 = vpop.f32.mrf.mxu2 }
 0x91b   : > { %v8138_v1 = vpack.i.bf16 %v4605_v8, %v4460_v47 }
 0x91c   : > { %v4337_v63 = vpop.f32.mrf.mxu0 }
 0x91d   : > { %v8104_v22 = vpack.i.bf16 %v4337_v63, %v4192_v39  ;;  %8139 = vxpose.xlu0.b32.cont [3/16] (narrow) %v8138_v1, 32 }
 0x91e   : > { %v3803_v20 = vpop.xlane.xlu2 %3802 }
 0x91f   : > { %8480 = vrcp.f32 %v3803_v20  ;;  %8105 = vxpose.xlu1.b32.cont [12/16] (narrow) %v8104_v22, 32 }
 0x922   : > { %v4607_v12 = vpop.f32.mrf.mxu2  ;;  %v4195_v26 = vpop.f32.mrf.mxu3 }
 0x923   : > { %v8140_v29 = vpack.i.bf16 %v4607_v12, %v4462_v30 }
 0x924   : > { %v4470_v10 = vpop.f32.mrf.mxu1 }
 0x925   : > { %v8481_v42 = vpop.eup %8480  ;;  %8141 = vxpose.xlu0.b32.cont [4/16] (narrow) %v8140_v29, 32 }
 0x926   : > { %v3931_v58 = vmul.f32 %v8481_v42, %v11307_v15 }
 0x928   : > { %v3995_v34 = vpack.c.bf16 %v3931_v58, %v3931_v58 }
 0x92a   : > { %v4526_v45 = vunpack.c.l.b16 %v3995_v34  ;;  %v4610_v54 = vpop.f32.mrf.mxu2  ;;  %v4197_v25 = vpop.f32.mrf.mxu3  ;;  %v7208_v34 = vld [vmem:[%s9396_s13 + $0x38] sm:$0xff] }
 0x92b   : > { %v8142_v27 = vpack.i.bf16 %v4610_v54, %v4465_v18  ;;  %4876 = vmatpush.bf16.msra.mxu3 %v7208_v34 }
 0x92c   : > { %v4534_v6 = vpack.c.b16 %v4526_v45, %v4525_v35  ;;  %v4472_v17 = vpop.f32.mrf.mxu1 }
 0x92d   : > { %8143 = vxpose.xlu0.b32.cont [5/16] (narrow) %v8142_v27, 32 }
 0x92e   : > { %4634 = vmatmul.bf16.gmra.mxu2 %v4534_v6  ;;  %v7207_v6 = vld [vmem:[%s9396_s13 + $0x30] sm:$0xff] }
 0x92f   : > { %4877 = vmatpush.bf16.msra.mxu3 %v7207_v6  ;;  %v8589_v6 = vld [vmem:[#allocation2 + $0x8] sm:$0xff] }
 0x932   : > { %v4612_v43 = vpop.f32.mrf.mxu2  ;;  %v4200_v21 = vpop.f32.mrf.mxu3 }
 0x933   : > { %v8144_v40 = vpack.i.bf16 %v4612_v43, %v4467_v55 }
 0x934   : > { %v4475_v38 = vpop.f32.mrf.mxu1 }
 0x935   : > { %8145 = vxpose.xlu0.b32.cont [6/16] (narrow) %v8144_v40, 32  ;;  %v7206_v40 = vld [vmem:[%s9396_s13 + $0x28] sm:$0xff] }
 0x936   : > { %4878 = vmatpush.bf16.msra.mxu3 %v7206_v40 }
 0x93a   : > { %v4615_v16 = vpop.f32.mrf.mxu2  ;;  %v4202_v60 = vpop.f32.mrf.mxu3 }
 0x93b   : > { %v8146_v19 = vpack.i.bf16 %v4615_v16, %v4470_v10 }
 0x93c   : > { %v4477_v49 = vpop.f32.mrf.mxu1 }
 0x93d   : > { %8147 = vxpose.xlu0.b32.cont [7/16] (narrow) %v8146_v19, 32  ;;  %v7204_v19 = vld [vmem:[%s9396_s13 + $0x18] sm:$0xff] }
 0x942   : > { %v4617_v13 = vpop.f32.mrf.mxu2 }
 0x943   : > { %v8148_v15 = vpack.i.bf16 %v4617_v13, %v4472_v17  ;;  %v7205_v17 = vld [vmem:[%s9396_s13 + $0x20] sm:$0xff] }
 0x944   : > { %v4480_v59 = vpop.f32.mrf.mxu1  ;;  %4879 = vmatpush.bf16.msra.mxu3 %v7205_v17  ;;  %v12780_v17 = vld [vmem:[#allocation41_spill] sm:$0xff] }
 0x945   : > { %8149 = vxpose.xlu0.b32.cont [8/16] (narrow) %v8148_v15, 32 }
 0x948   : > { %4880 = vmatpush.bf16.msra.mxu3 %v7204_v19 }
 0x94a   : > { %v4620_v11 = vpop.f32.mrf.mxu2 }
 0x94b   : > { %v8150_v51 = vpack.i.bf16 %v4620_v11, %v4475_v38  ;;  %v7203_v38 = vld [vmem:[%s9396_s13 + $0x10] sm:$0xff]  ;;  %v7201_v11 = vld [vmem:[%s9396_s13] sm:$0xff] }
 0x94c   : > { %v4340_v36 = vpop.f32.mrf.mxu0  ;;  %v4482_v53 = vpop.f32.mrf.mxu1  ;;  %4881 = vmatpush.bf16.msra.mxu3 %v7203_v38 }
 0x94d   : > { %v8106_v61 = vpack.i.bf16 %v4340_v36, %v4195_v26  ;;  %8151 = vxpose.xlu0.b32.cont [9/16] (narrow) %v8150_v51, 32 }
 0x94f   : > { %8107 = vxpose.xlu1.b32.cont [13/16] (narrow) %v8106_v61, 32 }
 0x952   : > { %v4622_v62 = vpop.f32.mrf.mxu2 }
 0x953   : > { %v8152_v56 = vpack.i.bf16 %v4622_v62, %v4477_v49  ;;  %v7202_v49 = vld [vmem:[%s9396_s13 + $0x8] sm:$0xff] }
 0x954   : > { %v4342_v3 = vpop.f32.mrf.mxu0  ;;  %v4485_v0 = vpop.f32.mrf.mxu1  ;;  %4882 = vmatpush.bf16.msra.mxu3 %v7202_v49 }
 0x955   : > { %v8108_v28 = vpack.i.bf16 %v4342_v3, %v4197_v25  ;;  %8153 = vxpose.xlu0.b32.cont [10/16] (narrow) %v8152_v56, 32 }
 0x957   : > { %8109 = vxpose.xlu1.b32.cont [14/16] (narrow) %v8108_v28, 32 }
 0x958   : > { %4883 = vmatpush.bf16.msra.mxu3 %v7201_v11 }
 0x95a   : > { %v4625_v4 = vpop.f32.mrf.mxu2 }
 0x95b   : > { %v8154_v24 = vpack.i.bf16 %v4625_v4, %v4480_v59 }
 0x95c   : > { %v4345_v5 = vpop.f32.mrf.mxu0  ;;  %v4487_v2 = vpop.f32.mrf.mxu1 }
 0x95d   : > { %v8110_v52 = vpack.i.bf16 %v4345_v5, %v4200_v21  ;;  %8155 = vxpose.xlu0.b32.cont [11/16] (narrow) %v8154_v24, 32 }
 0x95f   : > { %8111 = vxpose.xlu1.b32.cont [15/16] (narrow) %v8110_v52, 32 }
 0x962   : > { %v4627_v47 = vpop.f32.mrf.mxu2 }
 0x963   : > { %v8156_v48 = vpack.i.bf16 %v4627_v47, %v4482_v53 }
 0x964   : > { %v4347_v7 = vpop.f32.mrf.mxu0 }
 0x965   : > { %v8112_v50 = vpack.i.bf16 %v4347_v7, %v4202_v60  ;;  %8157 = vxpose.xlu0.b32.cont [12/16] (narrow) %v8156_v48, 32 }
 0x967   : > { %8113 = vxpose.xlu1.b32.end [16/16] (narrow) %v8112_v50, 32  ;;  %v11345_v50 = vld [vmem:[%s12779_s22] ss:$0 sm:$0xff] }
 0x96a   : > { %v4630_v32 = vpop.f32.mrf.mxu2 }
 0x96b   : > { %v8158_v57 = vpack.i.bf16 %v4630_v32, %v4485_v0 }
 0x96d   : > { %8159 = vxpose.xlu0.b32.cont [13/16] (narrow) %v8158_v57, 32  ;;  %v8583_v57 = vld [vmem:[#allocation2 + $0x30] sm:$0xff] }
 0x972   : > { %v4632_v37 = vpop.f32.mrf.mxu2 }
 0x973   : > { %v8160_v30 = vpack.i.bf16 %v4632_v37, %v4487_v2 }
 0x975   : > { %8161 = vxpose.xlu0.b32.cont [14/16] (narrow) %v8160_v30, 32 }
 0x98b   : > { %v4490_v1 = vpop.f32.mrf.mxu1 }
 0x993   : > { %v8114_v46 = vpop.trf.xlu1  ;;  %v4492_v14 = vpop.f32.mrf.mxu1 }
 0x994   : > { %v8115_v41 = vunpack.i.l.bf16 %v8114_v46  ;;  %v8118_v20 = vunpack.i.h.bf16 %v8114_v46 }
 0x996   : > { %4768 = vxpose.xlu2.b32.start [1/16] %v8115_v41, 128 }
 0x99b   : > { %v8119_v44 = vpop.trf.xlu1 }
 0x99c   : > { %v8120_v23 = vunpack.i.l.bf16 %v8119_v44  ;;  %v8123_v29 = vunpack.i.h.bf16 %v8119_v44  ;;  %v8584_v44 = vld [vmem:[#allocation2] sm:$0xff] }
 0x99e   : > { %4769 = vxpose.xlu2.b32.cont [2/16] %v8120_v23, 128 }
 0x9a3   : > { %v8124_v31 = vpop.trf.xlu1 }
 0x9a4   : > { %v8125_v18 = vunpack.i.l.bf16 %v8124_v31  ;;  %v8128_v42 = vunpack.i.h.bf16 %v8124_v31 }
 0x9a6   : > { %4770 = vxpose.xlu2.b32.cont [3/16] %v8125_v18, 128 }
 0x9ab   : > { %v8129_v8 = vpop.trf.xlu1 }
 0x9ac   : > { %v8130_v39 = vunpack.i.l.bf16 %v8129_v8  ;;  %v8133_v55 = vunpack.i.h.bf16 %v8129_v8 }
 0x9ae   : > { %4771 = vxpose.xlu2.b32.cont [4/16] %v8130_v39, 128  ;;  %v8585_v39 = vld [vmem:[#allocation2 + $0x58] sm:$0xff] }
 0x9b1   : > { %v4635_v63 = vpop.f32.mrf.mxu2 }
 0x9b2   : > { %v8162_v22 = vpack.i.bf16 %v4635_v63, %v4490_v1 }
 0x9b4   : > { %8163 = vxpose.xlu0.b32.cont [15/16] (narrow) %v8162_v22, 32 }
 0x9b6   : > { %4772 = vxpose.xlu2.b32.cont [5/16] %v8118_v20, 128 }
 0x9b9   : > { %v4637_v9 = vpop.f32.mrf.mxu2 }
 0x9ba   : > { %v8164_v12 = vpack.i.bf16 %v4637_v9, %v4492_v14  ;;  %v8586_v9 = vld [vmem:[#allocation2 + $0x18] sm:$0xff] }
 0x9bc   : > { %8165 = vxpose.xlu0.b32.end [16/16] (narrow) %v8164_v12, 32 }
 0x9be   : > { %4773 = vxpose.xlu2.b32.cont [6/16] %v8123_v29, 128 }
 0x9c6   : > { %4774 = vxpose.xlu2.b32.cont [7/16] %v8128_v42, 128 }
 0x9ce   : > { %4775 = vxpose.xlu2.b32.cont [8/16] %v8133_v55, 128  ;;  %v8587_v55 = vld [vmem:[#allocation2 + $0x50] sm:$0xff] }
 0x9e8   : > { %v8166_v58 = vpop.trf.xlu0 }
 0x9e9   : > { %v8167_v33 = vunpack.i.l.bf16 %v8166_v58  ;;  %v8170_v16 = vunpack.i.h.bf16 %v8166_v58 }
 0x9eb   : > { %4776 = vxpose.xlu2.b32.cont [9/16] %v8167_v33, 128 }
 0x9f0   : > { %v8171_v35 = vpop.trf.xlu0 }
 0x9f1   : > { %v8172_v45 = vunpack.i.l.bf16 %v8171_v35  ;;  %v8175_v13 = vunpack.i.h.bf16 %v8171_v35  ;;  %v8588_v35 = vld [vmem:[#allocation2 + $0x68] sm:$0xff] }
 0x9f3   : > { %4777 = vxpose.xlu2.b32.cont [10/16] %v8172_v45, 128 }
 0x9f8   : > { %v8176_v54 = vpop.trf.xlu0 }
 0x9f9   : > { %v8177_v27 = vunpack.i.l.bf16 %v8176_v54  ;;  %v8180_v15 = vunpack.i.h.bf16 %v8176_v54 }
 0x9fb   : > { %4778 = vxpose.xlu2.b32.cont [11/16] %v8177_v27, 128 }
 0xa00   : > { %v8181_v10 = vpop.trf.xlu0 }
 0xa01   : > { %v8182_v43 = vunpack.i.l.bf16 %v8181_v10  ;;  %v8185_v26 = vunpack.i.h.bf16 %v8181_v10 }
 0xa03   : > { %4779 = vxpose.xlu2.b32.cont [12/16] %v8182_v43, 128 }
 0xa0b   : > { %4780 = vxpose.xlu2.b32.cont [13/16] %v8170_v16, 128 }
 0xa13   : > { %4781 = vxpose.xlu2.b32.cont [14/16] %v8175_v13, 128 }
 0xa1b   : > { %4782 = vxpose.xlu2.b32.cont [15/16] %v8180_v15, 128 }
 0xa23   : > { %4783 = vxpose.xlu2.b32.end [16/16] %v8185_v26, 128 }
 0xa44   : > { %v4784_v51 = vpop.trf.xlu2 }
 0xa4c   : > { %v4785_v36 = vpop.trf.xlu2 }
 0xa4d   : > { %v4800_v61 = vpack.c.bf16 %v4785_v36, %v4784_v51  ;;  %v8590_v36 = vld [vmem:[#allocation2 + $0x48] sm:$0xff] }
 0xa4f   : > { %4884 = vmatmul.bf16.vlgmr.msra.gmra.mxu3 %v4800_v61 }
 0xa54   : > { %v4786_v25 = vpop.trf.xlu2 }
 0xa5c   : > { %v4787_v62 = vpop.trf.xlu2 }
 0xa5d   : > { %v4801_v56 = vpack.c.bf16 %v4787_v62, %v4786_v25 }
 0xa5f   : > { %4889 = vmatmul.bf16.gmra.mxu3 %v4801_v56 }
 0xa64   : > { %v4788_v3 = vpop.trf.xlu2 }
 0xa6c   : > { %v4789_v59 = vpop.trf.xlu2 }
 0xa6d   : > { %v4802_v28 = vpack.c.bf16 %v4789_v59, %v4788_v3 }
 0xa6f   : > { %4894 = vmatmul.bf16.gmra.mxu3 %v4802_v28 }
 0xa74   : > { %v4790_v21 = vpop.trf.xlu2 }
 0xa7c   : > { %v4791_v4 = vpop.trf.xlu2 }
 0xa7d   : > { %v4803_v24 = vpack.c.bf16 %v4791_v4, %v4790_v21  ;;  %v8591_v21 = vld [vmem:[#allocation2 + $0x40] sm:$0xff] }
 0xa7f   : > { %4899 = vmatmul.bf16.gmra.mxu3 %v4803_v24 }
 0xa84   : > { %v4792_v5 = vpop.trf.xlu2 }
 0xa8c   : > { %v4793_v52 = vpop.trf.xlu2 }
 0xa8d   : > { %v4804_v53 = vpack.c.bf16 %v4793_v52, %v4792_v5 }
 0xa8f   : > { %4904 = vmatmul.bf16.gmra.mxu3 %v4804_v53 }
 0xa94   : > { %v4794_v47 = vpop.trf.xlu2 }
 0xa9c   : > { %v4795_v60 = vpop.trf.xlu2 }
 0xa9d   : > { %v4805_v48 = vpack.c.bf16 %v4795_v60, %v4794_v47  ;;  %v8592_v60 = vld [vmem:[#allocation2 + $0x20] sm:$0xff] }
 0xa9f   : > { %4909 = vmatmul.bf16.gmra.mxu3 %v4805_v48 }
 0xaa4   : > { %v4796_v7 = vpop.trf.xlu2 }
 0xaac   : > { %v4797_v37 = vpop.trf.xlu2 }
 0xaad   : > { %v4806_v30 = vpack.c.bf16 %v4797_v37, %v4796_v7 }
 0xaaf   : > { %4914 = vmatmul.bf16.gmra.mxu3 %v4806_v30 }
 0xab4   : > { %v4798_v31 = vpop.trf.xlu2 }
 0xabc   : > { %v4799_v63 = vpop.trf.xlu2 }
 0xabd   : > { %v4807_v22 = vpack.c.bf16 %v4799_v63, %v4798_v31 }
 0xabf   : > { %4919 = vmatmul.bf16.gmra.mxu3 %v4807_v22  ;;  %v8594_v22 = vld [vmem:[#allocation2 + $0x38] sm:$0xff] }
 0xad2   : > { %v4885_v0 = vpop.f32.mrf.mxu3 }
 0xad3   : > { %v4886_v32 = vadd.f32 %v11345_v50, %v4885_v0 }
 0xad5   : > { %v11348_v2 = vadd.f32 %v8583_v57, %v4886_v32 }
 0xad7   : > { %4941 = vadd.xlane.f32.xlu0 %v11348_v2 }
 0xada   : > { %v4887_v46 = vpop.f32.mrf.mxu3 }
 0xadb   : > { %v4888_v41 = vadd.f32 %v11345_v50, %v4887_v46  ;;  %v8593_v46 = vld [vmem:[#allocation2 + $0x10] sm:$0xff] }
 0xadd   : > { %v11352_v23 = vadd.f32 %v8584_v44, %v4888_v41 }
 0xadf   : > { %4943 = vadd.xlane.f32.xlu2 %v11352_v23 }
 0xae2   : > { %v4890_v18 = vpop.f32.mrf.mxu3 }
 0xae3   : > { %v4891_v8 = vadd.f32 %v11345_v50, %v4890_v18 }
 0xae5   : > { %v11356_v1 = vadd.f32 %v8585_v39, %v4891_v8 }
 0xae7   : > { %4945 = vadd.xlane.f32.xlu1 %v11356_v1 }
 0xaea   : > { %v4892_v20 = vpop.f32.mrf.mxu3 }
 0xaeb   : > { %v4893_v14 = vadd.f32 %v11345_v50, %v4892_v20 }
 0xaed   : > { %v11360_v12 = vadd.f32 %v8586_v9, %v4893_v14 }
 0xaef   : > { %4947 = vadd.xlane.f32.xlu1 %v11360_v12 }
 0xaf2   : > { %v4895_v29 = vpop.f32.mrf.mxu3 }
 0xaf3   : > { %v4896_v42 = vadd.f32 %v11345_v50, %v4895_v29 }
 0xaf5   : > { %v11364_v58 = vadd.f32 %v8587_v55, %v4896_v42 }
 0xaf7   : > { %4949 = vadd.xlane.f32.xlu0 %v11364_v58 }
 0xafa   : > { %v4897_v33 = vpop.f32.mrf.mxu3 }
 0xafb   : > { %v4898_v34 = vadd.f32 %v11345_v50, %v4897_v33 }
 0xafd   : > { %v11368_v45 = vadd.f32 %v8588_v35, %v4898_v34  ;;  %v8595_v34 = vld [vmem:[#allocation2 + $0x60] sm:$0xff] }
 0xaff   : > { %4951 = vadd.xlane.f32.xlu2 %v11368_v45 }
 0xb02   : > { %v4900_v54 = vpop.f32.mrf.mxu3 }
 0xb03   : > { %v4901_v27 = vadd.f32 %v11345_v50, %v4900_v54 }
 0xb05   : > { %v11372_v10 = vadd.f32 %v8589_v6, %v4901_v27  ;;  %v8596_v6 = vld [vmem:[#allocation2 + $0x70] sm:$0xff] }
 0xb07   : > { %4953 = vadd.xlane.f32.xlu2 %v11372_v10 }
 0xb0a   : > { %v4902_v43 = vpop.f32.mrf.mxu3 }
 0xb0b   : > { %v4903_v49 = vadd.f32 %v11345_v50, %v4902_v43 }
 0xb0d   : > { %v11386_v61 = vadd.f32 %v8590_v36, %v4903_v49  ;;  %v7223_v49 = vld [vmem:[%s9404_s26 + $0x74] sm:$0xf]  ;;  %v7092_v36 = vld [vmem:[%s9404_s26 + $0x78] sm:$0xf0] }
 0xb12   : > { %v4905_v19 = vpop.f32.mrf.mxu3 }
 0xb13   : > { %v4906_v3 = vadd.f32 %v11345_v50, %v4905_v19  ;;  %v8597_v19 = vld [vmem:[#allocation2 + $0x78] sm:$0xff] }
 0xb15   : > { %v11396_v4 = vadd.f32 %v8591_v21, %v4906_v3  ;;  %v7221_v3 = vld [vmem:[%s9404_s26 + $0x64] sm:$0xf]  ;;  %v7084_v21 = vld [vmem:[%s9404_s26 + $0x68] sm:$0xf0] }
 0xb1a   : > { %v4907_v51 = vpop.f32.mrf.mxu3 }
 0xb1b   : > { %v4908_v53 = vadd.f32 %v11345_v50, %v4907_v51 }
 0xb1d   : > { %v11406_v48 = vadd.f32 %v8592_v60, %v4908_v53  ;;  %v7219_v53 = vld [vmem:[%s9404_s26 + $0x54] sm:$0xf] }
 0xb22   : > { %v4910_v28 = vpop.f32.mrf.mxu3 }
 0xb23   : > { %v4911_v32 = vadd.f32 %v11345_v50, %v4910_v28 }
 0xb25   : > { %v11416_v41 = vadd.f32 %v8593_v46, %v4911_v32  ;;  %v7066_v32 = vld [vmem:[%s9404_s26 + $0x40] sm:$0xf] }
 0xb2a   : > { %v4912_v0 = vpop.f32.mrf.mxu3 }
 0xb2b   : > { %v4913_v31 = vadd.f32 %v11345_v50, %v4912_v0 }
 0xb2d   : > { %v11426_v20 = vadd.f32 %v8594_v22, %v4913_v31 }
 0xb32   : > { %v4915_v8 = vpop.f32.mrf.mxu3 }
 0xb33   : > { %v4916_v9 = vadd.f32 %v11345_v50, %v4915_v8  ;;  %v7216_v8 = vld [vmem:[%s9404_s26 + $0x34] sm:$0xf0] }
 0xb35   : > { %v11436_v35 = vadd.f32 %v8595_v34, %v4916_v9 }
 0xb3a   : > { %v4917_v55 = vpop.f32.mrf.mxu3 }
 0xb3b   : > { %v4918_v27 = vadd.f32 %v11345_v50, %v4917_v55  ;;  %v7213_v55 = vld [vmem:[%s9404_s26 + $0x24] sm:$0xf] }
 0xb3d   : > { %v11442_v43 = vadd.f32 %v8596_v6, %v4918_v27  ;;  %v7042_v6 = vld [vmem:[%s9404_s26 + $0x10] sm:$0xf] }
 0xb4a   : > { %v4942_v40 = vpop.xlane.xlu0 %4941 }
 0xb4b   : > { %v4973_v16 = vmul.f32 %v4942_v40, %v12780_v17  ;;  %v4920_v40 = vpop.f32.mrf.mxu3 }
 0xb4d   : > { %v11377_v38 = vsub.f32 %v11348_v2, %v4973_v16  ;;  %v4921_v16 = vadd.f32 %v11345_v50, %v4920_v40  ;;  %v7212_v40 = vld [vmem:[%s9404_s26 + $0x14] sm:$0xf0] }
 0xb4f   : > { %v5005_v13 = vmul.f32 %v11377_v38, %v11377_v38 }
 0xb51   : > { %5021 = vadd.xlane.f32.xlu1 %v5005_v13  ;;  %v11446_v13 = vadd.f32 %v8597_v19, %v4921_v16  ;;  %v7211_v16 = vld [vmem:[%s9404_s26 + $0x14] sm:$0xf] }
 0xb52   : > { %v4944_v15 = vpop.xlane.xlu2 %4943 }
 0xb53   : > { %v4974_v26 = vmul.f32 %v4944_v15, %v12780_v17  ;;  %v7090_v15 = vld [vmem:[%s9404_s26 + $0x70] sm:$0xf] }
 0xb55   : > { %v11384_v11 = vsub.f32 %v11352_v23, %v4974_v26  ;;  %v7224_v26 = vld [vmem:[%s9404_s26 + $0x74] sm:$0xf0] }
 0xb56   : > { %v7091_v51 = vor.u32 %v7224_v26, %v7090_v15  ;;  %v7043_v15 = vor.u32 %v7212_v40, %v7042_v6  ;;  %v7044_v26 = vld [vmem:[%s9404_s26 + $0x18] sm:$0xf0] }
 0xb57   : > { %v5006_v25 = vmul.f32 %v11384_v11, %v11384_v11 }
 0xb58   : > { %5411 = vmatpush.bf16.msrb.mxu0 %v7091_v51  ;;  %v7047_v51 = vor.u32 %v7211_v16, %v7044_v26 }
 0xb59   : > { %4955 = vadd.xlane.f32.xlu1 %v11386_v61  ;;  %5023 = vadd.xlane.f32.xlu0 %v5006_v25  ;;  %v7095_v25 = vor.u32 %v7223_v49, %v7092_v36 }
 0xb5a   : > { %v4946_v62 = vpop.xlane.xlu1 %4945 }
 0xb5b   : > { %v4975_v56 = vmul.f32 %v4946_v62, %v12780_v17  ;;  %5460 = vmatpush.bf16.msrb.mxu1 %v7095_v25  ;;  %v7082_v62 = vld [vmem:[%s9404_s26 + $0x60] sm:$0xf] }
 0xb5c   : > { %v7034_v25 = vld [vmem:[%s9404_s26] sm:$0xf] }
 0xb5d   : > { %v11394_v59 = vsub.f32 %v11356_v1, %v4975_v56  ;;  %v7222_v56 = vld [vmem:[%s9404_s26 + $0x64] sm:$0xf0] }
 0xb5e   : > { %v7083_v28 = vor.u32 %v7222_v56, %v7082_v62  ;;  %v7210_v62 = vld [vmem:[%s9404_s26 + $0x4] sm:$0xf0] }
 0xb5f   : > { %v5007_v24 = vmul.f32 %v11394_v59, %v11394_v59  ;;  %v7035_v56 = vor.u32 %v7210_v62, %v7034_v25 }
 0xb60   : > { %5412 = vmatpush.bf16.msrb.mxu0 %v7083_v28  ;;  %v7036_v28 = vld [vmem:[%s9404_s26 + $0x8] sm:$0xf0] }
 0xb61   : > { %4957 = vadd.xlane.f32.xlu1 %v11396_v4  ;;  %5025 = vadd.xlane.f32.xlu0 %v5007_v24  ;;  %v7087_v24 = vor.u32 %v7221_v3, %v7084_v21  ;;  %v7209_v3 = vld [vmem:[%s9404_s26 + $0x4] sm:$0xf] }
 0xb62   : > { %v4948_v5 = vpop.xlane.xlu1 %4947  ;;  %v7039_v21 = vor.u32 %v7209_v3, %v7036_v28 }
 0xb63   : > { %v4976_v52 = vmul.f32 %v4948_v5, %v12780_v17  ;;  %5461 = vmatpush.bf16.msrb.mxu1 %v7087_v24  ;;  %v7074_v5 = vld [vmem:[%s9404_s26 + $0x50] sm:$0xf] }
 0xb65   : > { %v11404_v47 = vsub.f32 %v11360_v12, %v4976_v52  ;;  %v7220_v52 = vld [vmem:[%s9404_s26 + $0x54] sm:$0xf0] }
 0xb66   : > { %v7075_v60 = vor.u32 %v7220_v52, %v7074_v5 }
 0xb67   : > { %v5008_v7 = vmul.f32 %v11404_v47, %v11404_v47 }
 0xb68   : > { %5413 = vmatpush.bf16.msrb.mxu0 %v7075_v60 }
 0xb69   : > { %5027 = vadd.xlane.f32.xlu2 %v5008_v7  ;;  %4959 = vadd.xlane.f32.xlu0 %v11406_v48  ;;  %v7076_v7 = vld [vmem:[%s9404_s26 + $0x58] sm:$0xf0] }
 0xb6a   : > { %v4950_v57 = vpop.xlane.xlu0 %4949  ;;  %v7079_v0 = vor.u32 %v7219_v53, %v7076_v7 }
 0xb6b   : > { %v4977_v37 = vmul.f32 %v4950_v57, %v12780_v17  ;;  %v7218_v57 = vld [vmem:[%s9404_s26 + $0x44] sm:$0xf0] }
 0xb6c   : > { %5462 = vmatpush.bf16.msrb.mxu1 %v7079_v0  ;;  %v7067_v46 = vor.u32 %v7218_v57, %v7066_v32 }
 0xb6d   : > { %v11414_v30 = vsub.f32 %v11364_v58, %v4977_v37  ;;  %v7217_v37 = vld [vmem:[%s9404_s26 + $0x44] sm:$0xf] }
 0xb6e   : > { %5414 = vmatpush.bf16.msrb.mxu0 %v7067_v46 }
 0xb6f   : > { %v5009_v44 = vmul.f32 %v11414_v30, %v11414_v30 }
 0xb71   : > { %5029 = vadd.xlane.f32.xlu2 %v5009_v44  ;;  %4961 = vadd.xlane.f32.xlu0 %v11416_v41  ;;  %v7068_v44 = vld [vmem:[%s9404_s26 + $0x48] sm:$0xf0] }
 0xb72   : > { %v4952_v18 = vpop.xlane.xlu2 %4951  ;;  %v7071_v31 = vor.u32 %v7217_v37, %v7068_v44 }
 0xb73   : > { %v4978_v39 = vmul.f32 %v4952_v18, %v12780_v17  ;;  %v7058_v18 = vld [vmem:[%s9404_s26 + $0x30] sm:$0xf] }
 0xb74   : > { %5463 = vmatpush.bf16.msrb.mxu1 %v7071_v31  ;;  %v7059_v22 = vor.u32 %v7216_v8, %v7058_v18 }
 0xb75   : > { %v11424_v63 = vsub.f32 %v11368_v45, %v4978_v39  ;;  %v7215_v39 = vld [vmem:[%s9404_s26 + $0x34] sm:$0xf] }
 0xb76   : > { %5415 = vmatpush.bf16.msrb.mxu0 %v7059_v22 }
 0xb77   : > { %v5010_v14 = vmul.f32 %v11424_v63, %v11424_v63 }
 0xb79   : > { %4963 = vadd.xlane.f32.xlu2 %v11426_v20  ;;  %5031 = vadd.xlane.f32.xlu1 %v5010_v14  ;;  %v7060_v14 = vld [vmem:[%s9404_s26 + $0x38] sm:$0xf0] }
 0xb7a   : > { %v4954_v29 = vpop.xlane.xlu2 %4953  ;;  %v7063_v9 = vor.u32 %v7215_v39, %v7060_v14 }
 0xb7b   : > { %v4979_v42 = vmul.f32 %v4954_v29, %v12780_v17  ;;  %v7050_v29 = vld [vmem:[%s9404_s26 + $0x20] sm:$0xf] }
 0xb7c   : > { %5464 = vmatpush.bf16.msrb.mxu1 %v7063_v9 }
 0xb7d   : > { %v11434_v33 = vsub.f32 %v11372_v10, %v4979_v42  ;;  %v7214_v42 = vld [vmem:[%s9404_s26 + $0x24] sm:$0xf0] }
 0xb7e   : > { %v7051_v34 = vor.u32 %v7214_v42, %v7050_v29 }
 0xb7f   : > { %v5011_v54 = vmul.f32 %v11434_v33, %v11434_v33 }
 0xb80   : > { %5416 = vmatpush.bf16.msrb.mxu0 %v7051_v34 }
 0xb81   : > { %4965 = vadd.xlane.f32.xlu2 %v11436_v35  ;;  %5033 = vadd.xlane.f32.xlu1 %v5011_v54  ;;  %v7052_v54 = vld [vmem:[%s9404_s26 + $0x28] sm:$0xf0] }
 0xb82   : > { %v7055_v27 = vor.u32 %v7213_v55, %v7052_v54  ;;  %v4922_v54 = vpop.f32.mrf.mxu3 }
 0xb83   : > { %v4923_v26 = vadd.f32 %v11345_v50, %v4922_v54  ;;  %v8598_v50 = vld [vmem:[#allocation2 + $0x28] sm:$0xff] }
 0xb84   : > { %5465 = vmatpush.bf16.msrb.mxu1 %v7055_v27  ;;  %5417 = vmatpush.bf16.msrb.mxu0 %v7043_v15 }
 0xb88   : > { %5466 = vmatpush.bf16.msrb.mxu1 %v7047_v51  ;;  %5418 = vmatpush.bf16.msrb.mxu0 %v7035_v56 }
 0xb89   : > { %4967 = vadd.xlane.f32.xlu1 %v11442_v43 }
 0xb8c   : > { %5467 = vmatpush.bf16.msrb.mxu1 %v7039_v21  ;;  %v11510_v21 = vadd.f32 %v8598_v50, %v4923_v26 }
 0xb91   : > { %4969 = vadd.xlane.f32.xlu1 %v11446_v13 }
 0xbc4   : > { %v5022_v19 = vpop.xlane.xlu1 %5021 }
 0xbc5   : > { %v5053_v49 = vmul.f32 %v5022_v19, %v12780_v17 }
 0xbc7   : > { %v5069_v36 = vadd.f32 1e-05, %v5053_v49 }
 0xbc9   : > { %8482 = vrsqrt.f32 %v5069_v36  ;;  %vm5091_vm11 = vweird.f32 %v5069_v36 }
 0xbcc   : > { %v4956_v24 = vpop.xlane.xlu1 %4955  ;;  %v5024_v5 = vpop.xlane.xlu0 %5023 }
 0xbcd   : > { %v4980_v52 = vmul.f32 %v4956_v24, %v12780_v17  ;;  %v5054_v53 = vmul.f32 %v5024_v5, %v12780_v17 }
 0xbcf   : > { %v8483_v60 = vpop.eup %8482  ;;  %v11485_v7 = vsub.f32 %v11386_v61, %v4980_v52  ;;  %v5070_v0 = vadd.f32 1e-05, %v5054_v53 }
 0xbd0   : > { %v5086_v32 = vmul.f32 %v8483_v60, %v5069_v36  ;;  %vm5092_vm10 = vweird.f32 %v8483_v60  ;;  %v11504_v36 = vld [vmem:[%s1022_s8] ss:$0 sm:$0xff] }
 0xbd1   : > { %8484 = vrsqrt.f32 %v5070_v0  ;;  %v5012_v57 = vmul.f32 %v11485_v7, %v11485_v7  ;;  %vm5093_vm12 = vmor %vm5091_vm11, %vm5092_vm10  ;;  %vm5101_vm14 = vweird.f32 %v5070_v0 }
 0xbd2   : > { %v5087_v37 = vmul.f32 %v8483_v60, %v5086_v32 }
 0xbd3   : > { %5035 = vadd.xlane.f32.xlu0 %v5012_v57 }
 0xbd4   : > { %v5088_v46 = vmul.f32 0.5, %v5087_v37  ;;  %v4958_v44 = vpop.xlane.xlu1 %4957  ;;  %v5026_v31 = vpop.xlane.xlu0 %5025 }
 0xbd5   : > { %v4981_v18 = vmul.f32 %v4958_v44, %v12780_v17  ;;  %v5055_v8 = vmul.f32 %v5026_v31, %v12780_v17 }
 0xbd6   : > { %v5089_v39 = vsub.f32 1.5, %v5088_v46 }
 0xbd7   : > { %v8485_v22 = vpop.eup %8484  ;;  %v11492_v14 = vsub.f32 %v11396_v4, %v4981_v18  ;;  %v5071_v9 = vadd.f32 1e-05, %v5055_v8 }
 0xbd8   : > { %v5090_v29 = vmul.f32 %v8483_v60, %v5089_v39  ;;  %v5096_v42 = vmul.f32 %v8485_v22, %v5070_v0  ;;  %vm5102_vm13 = vweird.f32 %v8485_v22 }
 0xbd9   : > { %8486 = vrsqrt.f32 %v5071_v9  ;;  %v5013_v55 = vmul.f32 %v11492_v14, %v11492_v14  ;;  %vm5103_vm15 = vmor %vm5101_vm14, %vm5102_vm13  ;;  %vm5111_vm1 = vweird.f32 %v5071_v9 }
 0xbda   : > { %v5097_v34 = vmul.f32 %v8485_v22, %v5096_v42  ;;  %v5094_v27 = vsel %vm5093_vm12, %v8483_v60, %v5090_v29 }
 0xbdb   : > { %5037 = vadd.xlane.f32.xlu0 %v5013_v55  ;;  %v5245_v25 = vmul.f32 %v5094_v27, %v11377_v38  ;;  %v11519_v38 = vld [vmem:[%s1025_s30] ss:$0 sm:$0xff] }
 0xbdc   : > { %v5098_v6 = vmul.f32 0.5, %v5097_v34  ;;  %v4960_v40 = vpop.xlane.xlu0 %4959  ;;  %v5028_v16 = vpop.xlane.xlu2 %5027 }
 0xbdd   : > { %v4982_v19 = vmul.f32 %v4960_v40, %v12780_v17  ;;  %v5056_v15 = vmul.f32 %v5028_v16, %v12780_v17  ;;  %v5265_v53 = vmul.f32 %v11504_v36, %v5245_v25 }
 0xbde   : > { %v5099_v49 = vsub.f32 1.5, %v5098_v6 }
 0xbdf   : > { %v8487_v51 = vpop.eup %8486  ;;  %v11508_v62 = vsub.f32 %v11406_v48, %v4982_v19  ;;  %v5072_v56 = vadd.f32 1e-05, %v5056_v15  ;;  %v5285_v8 = vadd.f32 %v11519_v38, %v5265_v53 }
 0xbe0   : > { %v5100_v3 = vmul.f32 %v8485_v22, %v5099_v49  ;;  %v5106_v28 = vmul.f32 %v8487_v51, %v5071_v9  ;;  %vm5112_vm0 = vweird.f32 %v8487_v51 }
 0xbe1   : > { %8488 = vrsqrt.f32 %v5072_v56  ;;  %v5014_v24 = vmul.f32 %v11508_v62, %v11508_v62  ;;  %vm5113_vm2 = vmor %vm5111_vm1, %vm5112_vm0  ;;  %vm5121_vm4 = vweird.f32 %v5072_v56 }
 0xbe2   : > { %v5104_v5 = vsel %vm5103_vm15, %v8485_v22, %v5100_v3  ;;  %v5107_v52 = vmul.f32 %v8487_v51, %v5106_v28 }
 0xbe3   : > { %v5246_v60 = vmul.f32 %v5104_v5, %v11384_v11  ;;  %4971 = vadd.xlane.f32.xlu0 %v11510_v21  ;;  %5039 = vadd.xlane.f32.xlu2 %v5014_v24 }
 0xbe4   : > { %v5108_v0 = vmul.f32 0.5, %v5107_v52  ;;  %v4962_v32 = vpop.xlane.xlu0 %4961  ;;  %v5030_v57 = vpop.xlane.xlu2 %5029 }
 0xbe5   : > { %v5266_v37 = vmul.f32 %v11504_v36, %v5246_v60  ;;  %v4983_v46 = vmul.f32 %v4962_v32, %v12780_v17  ;;  %v5057_v44 = vmul.f32 %v5030_v57, %v12780_v17 }
 0xbe6   : > { %v5109_v31 = vsub.f32 1.5, %v5108_v0 }
 0xbe7   : > { %v8489_v18 = vpop.eup %8488  ;;  %v5286_v39 = vadd.f32 %v11519_v38, %v5266_v37  ;;  %v11530_v11 = vsub.f32 %v11416_v41, %v4983_v46  ;;  %v5073_v22 = vadd.f32 1e-05, %v5057_v44 }
 0xbe8   : > { %v5110_v29 = vmul.f32 %v8487_v51, %v5109_v31  ;;  %v5116_v42 = vmul.f32 %v8489_v18, %v5072_v56  ;;  %vm5122_vm3 = vweird.f32 %v8489_v18 }
 0xbe9   : > { %8490 = vrsqrt.f32 %v5073_v22  ;;  %v5301_v55 = vpack.c.bf16 %v5286_v39, %v5285_v8  ;;  %v5015_v34 = vmul.f32 %v11530_v11, %v11530_v11  ;;  %vm5123_vm5 = vmor %vm5121_vm4, %vm5122_vm3  ;;  %vm5131_vm7 = vweird.f32 %v5073_v22 }
 0xbea   : > { %v5117_v54 = vmul.f32 %v8489_v18, %v5116_v42  ;;  %v5114_v27 = vsel %vm5113_vm2, %v8487_v51, %v5110_v29 }
 0xbeb   : > { %5419 = vmatmul.bf16.vlgmr.msrb.gmra.mxu0 %v5301_v55  ;;  %5468 = vmatmul.bf16.vlgmr.msrb.gmra.mxu1 %v5301_v55  ;;  %v5247_v25 = vmul.f32 %v5114_v27, %v11394_v59 }
 0xbec   : > { %v5118_v6 = vmul.f32 0.5, %v5117_v54  ;;  %5041 = vadd.xlane.f32.xlu2 %v5015_v34  ;;  %v5032_v40 = vpop.xlane.xlu1 %5031  ;;  %v4964_v16 = vpop.xlane.xlu2 %4963 }
 0xbed   : > { %v5058_v19 = vmul.f32 %v5032_v40, %v12780_v17  ;;  %v4984_v15 = vmul.f32 %v4964_v16, %v12780_v17  ;;  %v5267_v53 = vmul.f32 %v11504_v36, %v5247_v25 }
 0xbee   : > { %v5119_v26 = vsub.f32 1.5, %v5118_v6 }
 0xbef   : > { %v8491_v49 = vpop.eup %8490  ;;  %v5074_v3 = vadd.f32 1e-05, %v5058_v19  ;;  %v11538_v9 = vsub.f32 %v11426_v20, %v4984_v15  ;;  %v5287_v44 = vadd.f32 %v11519_v38, %v5267_v53 }
 0xbf0   : > { %v5120_v28 = vmul.f32 %v8489_v18, %v5119_v26  ;;  %v5126_v51 = vmul.f32 %v8491_v49, %v5073_v22  ;;  %vm5132_vm6 = vweird.f32 %v8491_v49 }
 0xbf1   : > { %8492 = vrsqrt.f32 %v5074_v3  ;;  %v5016_v50 = vmul.f32 %v11538_v9, %v11538_v9  ;;  %vm5133_vm8 = vmor %vm5131_vm7, %vm5132_vm6  ;;  %vm5141_vm10 = vweird.f32 %v5074_v3 }
 0xbf2   : > { %v5124_v24 = vsel %vm5123_vm5, %v8489_v18, %v5120_v28  ;;  %v5127_v5 = vmul.f32 %v8491_v49, %v5126_v51 }
 0xbf3   : > { %v5248_v52 = vmul.f32 %v5124_v24, %v11404_v47  ;;  %5043 = vadd.xlane.f32.xlu1 %v5016_v50 }
 0xbf4   : > { %v5128_v59 = vmul.f32 0.5, %v5127_v5  ;;  %v5034_v60 = vpop.xlane.xlu1 %5033  ;;  %v4966_v0 = vpop.xlane.xlu2 %4965 }
 0xbf5   : > { %v4985_v32 = vmul.f32 %v4966_v0, %v12780_v17  ;;  %v5268_v56 = vmul.f32 %v11504_v36, %v5248_v52  ;;  %v5059_v24 = vmul.f32 %v5034_v60, %v12780_v17 }
 0xbf6   : > { %v5129_v57 = vsub.f32 1.5, %v5128_v59 }
 0xbf7   : > { %v8493_v37 = vpop.eup %8492  ;;  %v11547_v46 = vsub.f32 %v11436_v35, %v4985_v32  ;;  %v5288_v31 = vadd.f32 %v11519_v38, %v5268_v56  ;;  %v5075_v5 = vadd.f32 1e-05, %v5059_v24 }
 0xbf8   : > { %v5130_v47 = vmul.f32 %v8491_v49, %v5129_v57  ;;  %v5136_v18 = vmul.f32 %v8493_v37, %v5074_v3  ;;  %vm5142_vm9 = vweird.f32 %v8493_v37 }
 0xbf9   : > { %v5302_v8 = vpack.c.bf16 %v5288_v31, %v5287_v44  ;;  %v5017_v39 = vmul.f32 %v11547_v46, %v11547_v46  ;;  %vm5143_vm11 = vmor %vm5141_vm10, %vm5142_vm9  ;;  %8494 = vrsqrt.f32 %v5075_v5  ;;  %vm5151_vm13 = vweird.f32 %v5075_v5 }
 0xbfa   : > { %v5137_v29 = vmul.f32 %v8493_v37, %v5136_v18  ;;  %v5134_v42 = vsel %vm5133_vm8, %v8491_v49, %v5130_v47 }
 0xbfb   : > { %5424 = vmatmul.bf16.gmra.mxu0 %v5302_v8  ;;  %5473 = vmatmul.bf16.gmra.mxu1 %v5302_v8  ;;  %v5249_v6 = vmul.f32 %v5134_v42, %v11414_v30  ;;  %v7231_v8 = vld [vmem:[%s9406_s29 + $0x30] sm:$0xff] }
 0xbfc   : > { %v5138_v55 = vmul.f32 0.5, %v5137_v29  ;;  %5045 = vadd.xlane.f32.xlu0 %v5017_v39  ;;  %v4968_v34 = vpop.xlane.xlu1 %4967 }
 0xbfd   : > { %v4986_v54 = vmul.f32 %v4968_v34, %v12780_v17  ;;  %v5269_v26 = vmul.f32 %v11504_v36, %v5249_v6 }
 0xbfe   : > { %v5139_v27 = vsub.f32 1.5, %v5138_v55  ;;  %v7230_v55 = vld [vmem:[%s9406_s29 + $0x28] sm:$0xff] }
 0xbff   : > { %v11556_v40 = vsub.f32 %v11442_v43, %v4986_v54  ;;  %v5289_v3 = vadd.f32 %v11519_v38, %v5269_v26  ;;  %v8495_v52 = vpop.eup %8494 }
 0xc00   : > { %v5140_v16 = vmul.f32 %v8493_v37, %v5139_v27  ;;  %v5146_v53 = vmul.f32 %v8495_v52, %v5075_v5  ;;  %vm5152_vm12 = vweird.f32 %v8495_v52 }
 0xc01   : > { %v5018_v22 = vmul.f32 %v11556_v40, %v11556_v40  ;;  %vm5153_vm14 = vmor %vm5151_vm13, %vm5152_vm12 }
 0xc02   : > { %v5144_v19 = vsel %vm5143_vm11, %v8493_v37, %v5140_v16  ;;  %v5147_v59 = vmul.f32 %v8495_v52, %v5146_v53  ;;  %v7232_v37 = vld [vmem:[%s9406_s29 + $0x38] sm:$0xff] }
 0xc03   : > { %v5250_v15 = vmul.f32 %v5144_v19, %v11424_v63  ;;  %5047 = vadd.xlane.f32.xlu2 %v5018_v22  ;;  %5945 = vmatpush.bf16.msrb.mxu2 %v7232_v37 }
 0xc04   : > { %v4970_v49 = vpop.xlane.xlu1 %4969  ;;  %v5148_v57 = vmul.f32 0.5, %v5147_v59 }
 0xc05   : > { %v4987_v25 = vmul.f32 %v4970_v49, %v12780_v17  ;;  %v5270_v30 = vmul.f32 %v11504_v36, %v5250_v15 }
 0xc06   : > { %v5149_v44 = vsub.f32 1.5, %v5148_v57 }
 0xc07   : > { %v11565_v28 = vsub.f32 %v11446_v13, %v4987_v25  ;;  %v5290_v51 = vadd.f32 %v11519_v38, %v5270_v30  ;;  %5946 = vmatpush.bf16.msrb.mxu2 %v7231_v8 }
 0xc08   : > { %v5150_v39 = vmul.f32 %v8495_v52, %v5149_v44 }
 0xc09   : > { %v5303_v50 = vpack.c.bf16 %v5290_v51, %v5289_v3  ;;  %v5019_v63 = vmul.f32 %v11565_v28, %v11565_v28 }
 0xc0a   : > { %v5154_v34 = vsel %vm5153_vm14, %v8495_v52, %v5150_v39 }
 0xc0b   : > { %5429 = vmatmul.bf16.gmra.mxu0 %v5303_v50  ;;  %5478 = vmatmul.bf16.gmra.mxu1 %v5303_v50  ;;  %v5251_v26 = vmul.f32 %v5154_v34, %v11434_v33  ;;  %v7229_v50 = vld [vmem:[%s9406_s29 + $0x20] sm:$0xff] }
 0xc0c   : > { %5049 = vadd.xlane.f32.xlu1 %v5019_v63  ;;  %5947 = vmatpush.bf16.msrb.mxu2 %v7230_v55 }
 0xc0d   : > { %v5271_v5 = vmul.f32 %v11504_v36, %v5251_v26 }
 0xc0f   : > { %v5291_v44 = vadd.f32 %v11519_v38, %v5271_v5  ;;  %v7238_v5 = vld [vmem:[%s9406_s29 + $0x68] sm:$0xff] }
 0xc10   : > { %5948 = vmatpush.bf16.msrb.mxu2 %v7229_v50 }
 0xc46   : > { %v5036_v0 = vpop.xlane.xlu0 %5035 }
 0xc47   : > { %v5060_v32 = vmul.f32 %v5036_v0, %v12780_v17  ;;  %v7228_v0 = vld [vmem:[%s9406_s29 + $0x18] sm:$0xff] }
 0xc48   : > { %5949 = vmatpush.bf16.msrb.mxu2 %v7228_v0 }
 0xc49   : > { %v5076_v56 = vadd.f32 1e-05, %v5060_v32  ;;  %v7240_v32 = vld [vmem:[%s9406_s29 + $0x78] sm:$0xff] }
 0xc4a   : > { %7265 = vmatpush.bf16.msrb.mxu3 %v7240_v32  ;;  %5994 = vmatpush.bf16.msra.mxu0 %v7240_v32 }
 0xc4b   : > { %8496 = vrsqrt.f32 %v5076_v56  ;;  %vm5161_vm0 = vweird.f32 %v5076_v56 }
 0xc4e   : > { %v5038_v31 = vpop.xlane.xlu0 %5037 }
 0xc4f   : > { %v5061_v47 = vmul.f32 %v5038_v31, %v12780_v17 }
 0xc51   : > { %v8497_v60 = vpop.eup %8496  ;;  %v11575_v18 = vadd.f32 1e-05, %v5061_v47 }
 0xc52   : > { %v5156_v29 = vmul.f32 %v8497_v60, %v5076_v56  ;;  %vm5162_vm15 = vweird.f32 %v8497_v60 }
 0xc53   : > { %8498 = vrsqrt.f32 %v11575_v18  ;;  %vm5163_vm1 = vmor %vm5161_vm0, %vm5162_vm15  ;;  %vm5171_vm3 = vweird.f32 %v11575_v18 }
 0xc54   : > { %v5157_v42 = vmul.f32 %v8497_v60, %v5156_v29  ;;  %v7227_v29 = vld [vmem:[%s9406_s29 + $0x10] sm:$0xff] }
 0xc55   : > { %5950 = vmatpush.bf16.msrb.mxu2 %v7227_v29 }
 0xc56   : > { %v5158_v54 = vmul.f32 0.5, %v5157_v42  ;;  %v4972_v27 = vpop.xlane.xlu0 %4971  ;;  %v5040_v6 = vpop.xlane.xlu2 %5039  ;;  %v7239_v42 = vld [vmem:[%s9406_s29 + $0x70] sm:$0xff] }
 0xc57   : > { %v4988_v16 = vmul.f32 %v4972_v27, %v12780_v17  ;;  %v5062_v22 = vmul.f32 %v5040_v6, %v12780_v17  ;;  %7266 = vmatpush.bf16.msrb.mxu3 %v7239_v42  ;;  %5995 = vmatpush.bf16.msra.mxu0 %v7239_v42 }
 0xc58   : > { %v5159_v19 = vsub.f32 1.5, %v5158_v54 }
 0xc59   : > { %v8499_v15 = vpop.eup %8498  ;;  %v11584_v49 = vsub.f32 %v11510_v21, %v4988_v16  ;;  %v11586_v25 = vadd.f32 1e-05, %v5062_v22 }
 0xc5a   : > { %v5160_v30 = vmul.f32 %v8497_v60, %v5159_v19  ;;  %v5166_v3 = vmul.f32 %v8499_v15, %v11575_v18  ;;  %vm5172_vm2 = vweird.f32 %v8499_v15 }
 0xc5b   : > { %8500 = vrsqrt.f32 %v11586_v25  ;;  %v5020_v51 = vmul.f32 %v11584_v49, %v11584_v49  ;;  %vm11613_vm4 = vmor %vm5171_vm3, %vm5172_vm2  ;;  %vm5181_vm6 = vweird.f32 %v11586_v25  ;;  %7267 = vmatpush.bf16.msrb.mxu3 %v7238_v5  ;;  %5996 = vmatpush.bf16.msra.mxu0 %v7238_v5 }
 0xc5c   : > { %v5164_v63 = vsel %vm5163_vm1, %v8497_v60, %v5160_v30  ;;  %v5167_v33 = vmul.f32 %v8499_v15, %v5166_v3  ;;  %v5325_v60 = vld [vmem:[%s9456_s0] sm:$0x3] }
 0xc5d   : > { %v5252_v24 = vmul.f32 %v5164_v63, %v11485_v7  ;;  %5051 = vadd.xlane.f32.xlu0 %v5020_v51  ;;  %v11609_v34 = vperm.slane %v5325_v60, 0  ;;  %v11611_v54 = vperm.slane %v5325_v60, 1 }
 0xc5e   : > { %v5168_v52 = vmul.f32 0.5, %v5167_v33 }
 0xc5f   : > { %v5042_v53 = vpop.xlane.xlu2 %5041  ;;  %v5272_v59 = vmul.f32 %v11504_v36, %v5252_v24  ;;  %v7226_v24 = vld [vmem:[%s9406_s29 + $0x8] sm:$0xff] }
 0xc60   : > { %v5169_v56 = vsub.f32 1.5, %v5168_v52  ;;  %v5063_v57 = vmul.f32 %v5042_v53, %v12780_v17  ;;  %5951 = vmatpush.bf16.msrb.mxu2 %v7226_v24 }
 0xc61   : > { %v8501_v37 = vpop.eup %8500  ;;  %v5292_v7 = vadd.f32 %v11519_v38, %v5272_v59 }
 0xc62   : > { %v5176_v31 = vmul.f32 %v8501_v37, %v11586_v25  ;;  %v11602_v47 = vadd.f32 1e-05, %v5063_v57  ;;  %v5170_v8 = vmul.f32 %v8499_v15, %v5169_v56  ;;  %vm5182_vm5 = vweird.f32 %v8501_v37 }
 0xc63   : > { %v5304_v39 = vpack.c.bf16 %v5292_v7, %v5291_v44  ;;  %vm5183_vm7 = vmor %vm5181_vm6, %vm5182_vm5  ;;  %v7237_v44 = vld [vmem:[%s9406_s29 + $0x60] sm:$0xff] }
 0xc64   : > { %v5177_v55 = vmul.f32 %v8501_v37, %v5176_v31  ;;  %8502 = vrsqrt.f32 %v11602_v47  ;;  %v5174_v22 = vsel %vm11613_vm4, %v8499_v15, %v5170_v8  ;;  %vm5191_vm8 = vweird.f32 %v11602_v47  ;;  %7268 = vmatpush.bf16.msrb.mxu3 %v7237_v44  ;;  %5997 = vmatpush.bf16.msra.mxu0 %v7237_v44  ;;  %v7235_v44 = vld [vmem:[%s9406_s29 + $0x50] sm:$0xff] }
 0xc65   : > { %5434 = vmatmul.bf16.gmra.mxu0 %v5304_v39  ;;  %5483 = vmatmul.bf16.gmra.mxu1 %v5304_v39  ;;  %v5253_v33 = vmul.f32 %v5174_v22, %v11492_v14 }
 0xc66   : > { %v5178_v6 = vmul.f32 0.5, %v5177_v55  ;;  %v5044_v16 = vpop.xlane.xlu1 %5043 }
 0xc67   : > { %v5064_v18 = vmul.f32 %v5044_v16, %v12780_v17  ;;  %v5273_v57 = vmul.f32 %v11504_v36, %v5253_v33  ;;  %v7236_v33 = vld [vmem:[%s9406_s29 + $0x58] sm:$0xff] }
 0xc68   : > { %v5179_v19 = vsub.f32 1.5, %v5178_v6  ;;  %v5420_v26 = vpop.f32.mrf.mxu0  ;;  %v5469_v30 = vpop.f32.mrf.mxu1  ;;  %7269 = vmatpush.bf16.msrb.mxu3 %v7236_v33  ;;  %5998 = vmatpush.bf16.msra.mxu0 %v7236_v33 }
 0xc69   : > { %v11620_v3 = vadd.f32 1e-05, %v5064_v18  ;;  %v11623_v51 = vadd.f32 %v5420_v26, %v11609_v34  ;;  %v11626_v50 = vadd.f32 %v5469_v30, %v11611_v54  ;;  %v5293_v30 = vadd.f32 %v11519_v38, %v5273_v57 }
 0xc6a   : > { %v11628_v63 = vpop.eup %8502  ;;  %v5180_v15 = vmul.f32 %v8501_v37, %v5179_v19 }
 0xc6b   : > { %v5186_v52 = vmul.f32 %v11628_v63, %v11602_v47  ;;  %8504 = vrsqrt.f32 %v11620_v3  ;;  %v5509_v59 = vmul.f32 %v11623_v51, %v11623_v51  ;;  %v5510_v14 = vmul.f32 %v11626_v50, %v11626_v50 }
 0xc6c   : > { %v5184_v53 = vsel %vm5183_vm7, %v8501_v37, %v5180_v15  ;;  %v7225_v37 = vld [vmem:[%s9406_s29] sm:$0xff]  ;;  %vm5192_vm9 = vweird.f32 %v11628_v63  ;;  %7270 = vmatpush.bf16.msrb.mxu3 %v7235_v44  ;;  %5999 = vmatpush.bf16.msra.mxu0 %v7235_v44  ;;  %vm5201_vm12 = vweird.f32 %v11620_v3 }
 0xc6d   : > { %v5254_v25 = vmul.f32 %v5184_v53, %v11508_v62  ;;  %v5187_v0 = vmul.f32 %v11628_v63, %v5186_v52  ;;  %v5541_v32 = vmul.f32 %v5509_v59, %v11623_v51  ;;  %v5542_v56 = vmul.f32 %v5510_v14, %v11626_v50  ;;  %5952 = vmatpush.bf16.msrb.mxu2 %v7225_v37  ;;  %vm11678_vm10 = vmor %vm5191_vm8, %vm5192_vm9 }
 0xc6f   : > { %v5188_v7 = vmul.f32 0.5, %v5187_v0  ;;  %v5046_v31 = vpop.xlane.xlu0 %5045  ;;  %v5274_v60 = vmul.f32 %v11504_v36, %v5254_v25  ;;  %v5573_v62 = vmul.f32 0.044715, %v5541_v32  ;;  %v5574_v8 = vmul.f32 0.044715, %v5542_v56 }
 0xc70   : > { %v5065_v39 = vmul.f32 %v5046_v31, %v12780_v17  ;;  %v5422_v29 = vpop.f32.mrf.mxu0  ;;  %v5471_v42 = vpop.f32.mrf.mxu1 }
 0xc71   : > { %v11652_v55 = vpop.eup %8504  ;;  %v5189_v27 = vsub.f32 1.5, %v5188_v7  ;;  %v11655_v6 = vadd.f32 %v5422_v29, %v11609_v34  ;;  %v11658_v16 = vadd.f32 %v5471_v42, %v11611_v54  ;;  %v5294_v22 = vadd.f32 %v11519_v38, %v5274_v60 }
 0xc72   : > { %v5196_v18 = vmul.f32 %v11652_v55, %v11620_v3  ;;  %v5605_v19 = vadd.f32 %v5573_v62, %v11623_v51  ;;  %v5606_v26 = vadd.f32 %v5574_v8, %v11626_v50  ;;  %v11668_v24 = vadd.f32 1e-05, %v5065_v39 }
 0xc73   : > { %v5190_v15 = vmul.f32 %v11628_v63, %v5189_v27  ;;  %v5511_v5 = vmul.f32 %v11655_v6, %v11655_v6  ;;  %v5512_v52 = vmul.f32 %v11658_v16, %v11658_v16  ;;  %v5305_v0 = vpack.c.bf16 %v5294_v22, %v5293_v30 }
 0xc74   : > { %v5197_v59 = vmul.f32 %v11652_v55, %v5196_v18  ;;  %v5637_v14 = vmul.f32 0.7978846, %v5605_v19  ;;  %v5638_v25 = vmul.f32 0.7978846, %v5606_v26  ;;  %8506 = vrsqrt.f32 %v11668_v24  ;;  %v7234_v19 = vld [vmem:[%s9406_s29 + $0x48] sm:$0xff] }
 0xc75   : > { %v5194_v32 = vsel %vm11678_vm10, %v11628_v63, %v5190_v15  ;;  %v5543_v56 = vmul.f32 %v5511_v5, %v11655_v6  ;;  %v5544_v57 = vmul.f32 %v5512_v52, %v11658_v16  ;;  %5439 = vmatmul.bf16.gmra.mxu0 %v5305_v0  ;;  %5488 = vmatmul.bf16.gmra.mxu1 %v5305_v0  ;;  %vm5202_vm11 = vweird.f32 %v11652_v55 }
 0xc76   : > { %v5198_v47 = vmul.f32 0.5, %v5197_v59  ;;  %8508 = vtanh.f32 %v5637_v14  ;;  %v5048_v37 = vpop.xlane.xlu2 %5047  ;;  %v5255_v63 = vmul.f32 %v5194_v32, %v11530_v11  ;;  %vm11710_vm13 = vmor %vm5201_vm12, %vm5202_vm11  ;;  %7271 = vmatpush.bf16.msrb.mxu3 %v7234_v19  ;;  %6000 = vmatpush.bf16.msra.mxu0 %v7234_v19  ;;  %vm5211_vm14 = vweird.f32 %v11668_v24 }
 0xc77   : > { %8510 = vtanh.f32 %v5638_v25  ;;  %v5575_v7 = vmul.f32 0.044715, %v5543_v56  ;;  %v5066_v31 = vmul.f32 %v5048_v37, %v12780_v17  ;;  %v5576_v62 = vmul.f32 0.044715, %v5544_v57 }
 0xc78   : > { %v5199_v60 = vsub.f32 1.5, %v5198_v47  ;;  %v5425_v8 = vpop.f32.mrf.mxu0  ;;  %v5474_v39 = vpop.f32.mrf.mxu1  ;;  %v5275_v59 = vmul.f32 %v11504_v36, %v5255_v63  ;;  %v7233_v47 = vld [vmem:[%s9406_s29 + $0x40] sm:$0xff]  ;;  %s12791_s29 = scalar_lea.vmem [#allocation15], %s9379_s9  ;;  %s12792_s9 = sld [smem:[#allocation30_spill]] }
 0xc79   : > { %v5607_v29 = vadd.f32 %v5575_v7, %v11655_v6  ;;  %v11694_v42 = vadd.f32 1e-05, %v5066_v31  ;;  %v11697_v27 = vadd.f32 %v5425_v8, %v11609_v34  ;;  %v5608_v11 = vadd.f32 %v5576_v62, %v11658_v16 }
 0xc7a   : > { %v5200_v22 = vmul.f32 %v11652_v55, %v5199_v60  ;;  %v11703_v18 = vadd.f32 %v5474_v39, %v11611_v54  ;;  %v11706_v26 = vpop.eup %8506  ;;  %v5295_v62 = vadd.f32 %v11519_v38, %v5275_v59  ;;  %7272 = vmatpush.bf16.msrb.mxu3 %v7233_v47  ;;  %6001 = vmatpush.bf16.msra.mxu0 %v7233_v47 }
 0xc7b   : > { %v5639_v33 = vmul.f32 0.7978846, %v5607_v29  ;;  %8512 = vrsqrt.f32 %v11694_v42  ;;  %v5513_v3 = vmul.f32 %v11697_v27, %v11697_v27  ;;  %v5206_v52 = vmul.f32 %v11706_v26, %v11668_v24 }
 0xc7c   : > { %v8509_v15 = vpop.eup %8508  ;;  %v5204_v5 = vsel %vm11710_vm13, %v11652_v55, %v5200_v22  ;;  %v5640_v53 = vmul.f32 0.7978846, %v5608_v11  ;;  %v5514_v55 = vmul.f32 %v11703_v18, %v11703_v18  ;;  %vm5212_vm15 = vweird.f32 %v11706_v26 }
 0xc7d   : > { %v8511_v14 = vpop.eup %8510  ;;  %v5701_v25 = vadd.f32 1.0, %v8509_v15  ;;  %8514 = vtanh.f32 %v5639_v33  ;;  %v5545_v0 = vmul.f32 %v5513_v3, %v11697_v27  ;;  %v5207_v56 = vmul.f32 %v11706_v26, %v5206_v52  ;;  %vm11757_vm1 = vmor %vm5211_vm14, %vm5212_vm15 }
 0xc7e   : > { %v5702_v32 = vadd.f32 1.0, %v8511_v14  ;;  %8516 = vtanh.f32 %v5640_v53  ;;  %v5256_v57 = vmul.f32 %v5204_v5, %v11538_v9  ;;  %v5546_v31 = vmul.f32 %v5514_v55, %v11703_v18  ;;  %p7160_p8 = scmp.ne.s32.totalorder %s12792_s9, 1 }
 0xc7f   : > { %v5577_v37 = vmul.f32 0.044715, %v5545_v0  ;;  %v5733_v44 = vmul.f32 0.5, %v5701_v25  ;;  %v5208_v7 = vmul.f32 0.5, %v5207_v56  ;;  %vm5221_vm0 = vweird.f32 %v11694_v42  ;;  %s12796_s0 = sld [smem:[#allocation89_spill]] (!%p7160_p8) }
 0xc80   : > { %v5427_v63 = vpop.f32.mrf.mxu0  ;;  %v5476_v60 = vpop.f32.mrf.mxu1  ;;  %v5734_v39 = vmul.f32 0.5, %v5702_v32  ;;  %v5578_v3 = vmul.f32 0.044715, %v5546_v31  ;;  %v5276_v5 = vmul.f32 %v11504_v36, %v5256_v57 }
 0xc81   : > { %v8513_v8 = vpop.eup %8512  ;;  %v5609_v29 = vadd.f32 %v5577_v37, %v11697_v27  ;;  %v11734_v22 = vadd.f32 %v5427_v63, %v11609_v34  ;;  %v11737_v9 = vadd.f32 %v5476_v60, %v11611_v54  ;;  %v5209_v11 = vsub.f32 1.5, %v5208_v7 }
 0xc82   : > { %v5216_v19 = vmul.f32 %v8513_v8, %v11694_v42  ;;  %v5765_v0 = vmul.f32 %v5733_v44, %v11623_v51  ;;  %v11750_v32 = vmul.f32 %v5734_v39, %v11626_v50  ;;  %v5610_v55 = vadd.f32 %v5578_v3, %v11703_v18 }
 0xc83   : > { %v8515_v30 = vpop.eup %8514  ;;  %v5641_v33 = vmul.f32 0.7978846, %v5609_v29  ;;  %v5515_v15 = vmul.f32 %v11734_v22, %v11734_v22  ;;  %v5210_v53 = vmul.f32 %v11706_v26, %v5209_v11  ;;  %v5516_v25 = vmul.f32 %v11737_v9, %v11737_v9 }
 0xc84   : > { %v8517_v52 = vpop.eup %8516  ;;  %v5703_v59 = vadd.f32 1.0, %v8515_v30  ;;  %v5217_v14 = vmul.f32 %v8513_v8, %v5216_v19  ;;  %vm5222_vm2 = vweird.f32 %v8513_v8  ;;  %v5642_v44 = vmul.f32 0.7978846, %v5610_v55 }
 0xc85   : > { %v5704_v56 = vadd.f32 1.0, %v8517_v52  ;;  %8518 = vtanh.f32 %v5641_v33  ;;  %v5214_v51 = vsel %vm11757_vm1, %v11706_v26, %v5210_v53  ;;  %v5547_v7 = vmul.f32 %v5515_v15, %v11734_v22  ;;  %vm5223_vm3 = vmor %vm5221_vm0, %vm5222_vm2 }
 0xc86   : > { %v5735_v57 = vmul.f32 0.5, %v5703_v59  ;;  %v5218_v37 = vmul.f32 0.5, %v5217_v14  ;;  %v5548_v24 = vmul.f32 %v5516_v25, %v11737_v9  ;;  %v5296_v60 = vadd.f32 %v11519_v38, %v5276_v5 }
 0xc87   : > { %v5736_v50 = vmul.f32 0.5, %v5704_v56  ;;  %8520 = vtanh.f32 %v5642_v44  ;;  %v5579_v19 = vmul.f32 0.044715, %v5547_v7 }
 0xc88   : > { %v5767_v31 = vmul.f32 %v5735_v57, %v11655_v6  ;;  %v5219_v63 = vsub.f32 1.5, %v5218_v37  ;;  %v5430_v39 = vpop.f32.mrf.mxu0  ;;  %v5479_v29 = vpop.f32.mrf.mxu1  ;;  %v5580_v3 = vmul.f32 0.044715, %v5548_v24  ;;  %v5306_v15 = vpack.c.bf16 %v5296_v60, %v5295_v62 }
 0xc89   : > { %v11769_v11 = vmul.f32 %v5736_v50, %v11658_v16  ;;  %v11772_v26 = vadd.f32 %v5430_v39, %v11609_v34  ;;  %v5611_v5 = vadd.f32 %v5579_v19, %v11734_v22  ;;  %v11783_v52 = vadd.f32 %v5479_v29, %v11611_v54 }
 0xc8a   : > { %v5797_v30 = vpack.c.bf16 %v5767_v31, %v5765_v0  ;;  %v5220_v33 = vmul.f32 %v8513_v8, %v5219_v63  ;;  %v5612_v14 = vadd.f32 %v5580_v3, %v11737_v9  ;;  %5444 = vmatmul.bf16.gmra.mxu0 %v5306_v15  ;;  %5493 = vmatmul.bf16.gmra.mxu1 %v5306_v15 }
 0xc8b   : > { %v5798_v6 = vpack.c.bf16 %v11769_v11, %v11750_v32  ;;  %v5517_v16 = vmul.f32 %v11772_v26, %v11772_v26  ;;  %v8519_v53 = vpop.eup %8518  ;;  %v5257_v62 = vmul.f32 %v5214_v51, %v11547_v46  ;;  %v5643_v42 = vmul.f32 0.7978846, %v5611_v5 }
 0xc8c   : > { %v5224_v59 = vsel %vm5223_vm3, %v8513_v8, %v5220_v33  ;;  %5953 = vmatmul.bf16.vlgmr.msrb.gmra.mxu2 %v5797_v30  ;;  %v5644_v0 = vmul.f32 0.7978846, %v5612_v14  ;;  %v5518_v55 = vmul.f32 %v11783_v52, %v11783_v52  ;;  %v5705_v24 = vadd.f32 1.0, %v8519_v53 }
 0xc8d   : > { %v5258_v25 = vmul.f32 %v5224_v59, %v11556_v40  ;;  %v5549_v56 = vmul.f32 %v5517_v16, %v11772_v26  ;;  %v8521_v47 = vpop.eup %8520  ;;  %8522 = vtanh.f32 %v5643_v42  ;;  %v5277_v44 = vmul.f32 %v11504_v36, %v5257_v62 }
 0xc8e   : > { %8524 = vtanh.f32 %v5644_v0  ;;  %v5550_v57 = vmul.f32 %v5518_v55, %v11783_v52  ;;  %v5706_v7 = vadd.f32 1.0, %v8521_v47 }
 0xc8f   : > { %v5581_v8 = vmul.f32 0.044715, %v5549_v56  ;;  %v5278_v46 = vmul.f32 %v11504_v36, %v5258_v25  ;;  %v5297_v5 = vadd.f32 %v11519_v38, %v5277_v44  ;;  %v5737_v25 = vmul.f32 0.5, %v5705_v24 }
 0xc90   : > { %v5432_v37 = vpop.f32.mrf.mxu0  ;;  %v5481_v50 = vpop.f32.mrf.mxu1  ;;  %v5582_v63 = vmul.f32 0.044715, %v5550_v57  ;;  %v5738_v59 = vmul.f32 0.5, %v5706_v7 }
 0xc91   : > { %v5433_v40 = vadd.f32 %v5432_v37, %v11609_v34  ;;  %v5482_v51 = vadd.f32 %v5481_v50, %v11611_v54  ;;  %v5613_v31 = vadd.f32 %v5581_v8, %v11772_v26  ;;  %v5298_v30 = vadd.f32 %v11519_v38, %v5278_v46 }
 0xc92   : > { %v5614_v19 = vadd.f32 %v5582_v63, %v11783_v52  ;;  %v5769_v37 = vmul.f32 %v5737_v25, %v11697_v27  ;;  %v5770_v46 = vmul.f32 %v5738_v59, %v11703_v18 }
 0xc93   : > { %v5519_v60 = vmul.f32 %v5433_v40, %v5433_v40  ;;  %v5520_v39 = vmul.f32 %v5482_v51, %v5482_v51  ;;  %v5645_v29 = vmul.f32 0.7978846, %v5613_v31  ;;  %v8523_v33 = vpop.eup %8522  ;;  %v5307_v56 = vpack.c.bf16 %v5298_v30, %v5297_v5 }
 0xc94   : > { %v8525_v16 = vpop.eup %8524  ;;  %v5646_v14 = vmul.f32 0.7978846, %v5614_v19  ;;  %v5707_v62 = vadd.f32 1.0, %v8523_v33 }
 0xc95   : > { %v5551_v3 = vmul.f32 %v5519_v60, %v5433_v40  ;;  %v5552_v15 = vmul.f32 %v5520_v39, %v5482_v51  ;;  %v5708_v42 = vadd.f32 1.0, %v8525_v16  ;;  %8526 = vtanh.f32 %v5645_v29 }
 0xc96   : > { %8528 = vtanh.f32 %v5646_v14  ;;  %v5739_v55 = vmul.f32 0.5, %v5707_v62 }
 0xc97   : > { %v5583_v53 = vmul.f32 0.044715, %v5551_v3  ;;  %v5584_v0 = vmul.f32 0.044715, %v5552_v15  ;;  %v5740_v47 = vmul.f32 0.5, %v5708_v42  ;;  %v5050_v42 = vpop.xlane.xlu1 %5049 }
 0xc98   : > { %v5771_v50 = vmul.f32 %v5739_v55, %v11734_v22 }
 0xc99   : > { %v5615_v8 = vadd.f32 %v5583_v53, %v5433_v40  ;;  %v5616_v57 = vadd.f32 %v5584_v0, %v5482_v51  ;;  %v5772_v44 = vmul.f32 %v5740_v47, %v11737_v9  ;;  %v5067_v53 = vmul.f32 %v5050_v42, %v12780_v17 }
 0xc9a   : > { %5449 = vmatmul.bf16.gmra.mxu0 %v5307_v56  ;;  %5498 = vmatmul.bf16.gmra.mxu1 %v5307_v56  ;;  %v5799_v63 = vpack.c.bf16 %v5771_v50, %v5769_v37 }
 0xc9b   : > { %v5647_v7 = vmul.f32 0.7978846, %v5615_v8  ;;  %v5648_v31 = vmul.f32 0.7978846, %v5616_v57  ;;  %v8527_v24 = vpop.eup %8526  ;;  %v5800_v60 = vpack.c.bf16 %v5772_v44, %v5770_v46  ;;  %v5083_v0 = vadd.f32 1e-05, %v5067_v53 }
 0xc9c   : > { %v8529_v39 = vpop.eup %8528  ;;  %5958 = vmatmul.bf16.gmra.mxu2 %v5799_v63  ;;  %v5709_v29 = vadd.f32 1.0, %v8527_v24 }
 0xc9d   : > { %8530 = vtanh.f32 %v5647_v7  ;;  %6007 = vmatmul.bf16.vlgmr.msrb.gmra.mxu3 %v5800_v60  ;;  %v5710_v27 = vadd.f32 1.0, %v8529_v39  ;;  %vm5231_vm5 = vweird.f32 %v5083_v0 }
 0xc9e   : > { %8532 = vtanh.f32 %v5648_v31  ;;  %v5741_v18 = vmul.f32 0.5, %v5709_v29 }
 0xc9f   : > { %v5742_v9 = vmul.f32 0.5, %v5710_v27  ;;  %8534 = vrsqrt.f32 %v5083_v0 }
 0xca0   : > { %v5773_v5 = vmul.f32 %v5741_v18, %v11772_v26 }
 0xca1   : > { %v5774_v59 = vmul.f32 %v5742_v9, %v11783_v52 }
 0xca3   : > { %v8531_v19 = vpop.eup %8530 }
 0xca4   : > { %v8533_v22 = vpop.eup %8532  ;;  %v5711_v30 = vadd.f32 1.0, %v8531_v19 }
 0xca5   : > { %v5712_v33 = vadd.f32 1.0, %v8533_v22  ;;  %v8535_v56 = vpop.eup %8534 }
 0xca6   : > { %v5743_v3 = vmul.f32 0.5, %v5711_v30  ;;  %v5226_v55 = vmul.f32 %v8535_v56, %v5083_v0  ;;  %vm5232_vm4 = vweird.f32 %v8535_v56 }
 0xca7   : > { %v5744_v15 = vmul.f32 0.5, %v5712_v33  ;;  %vm5233_vm6 = vmor %vm5231_vm5, %vm5232_vm4 }
 0xca8   : > { %v5775_v16 = vmul.f32 %v5743_v3, %v5433_v40  ;;  %v5227_v8 = vmul.f32 %v8535_v56, %v5226_v55 }
 0xca9   : > { %v5776_v14 = vmul.f32 %v5744_v15, %v5482_v51 }
 0xcaa   : > { %v5801_v62 = vpack.c.bf16 %v5775_v16, %v5773_v5  ;;  %v5228_v40 = vmul.f32 0.5, %v5227_v8 }
 0xcab   : > { %v5802_v25 = vpack.c.bf16 %v5776_v14, %v5774_v59 }
 0xcac   : > { %5963 = vmatmul.bf16.gmra.mxu2 %v5801_v62  ;;  %v5229_v52 = vsub.f32 1.5, %v5228_v40 }
 0xcad   : > { %6012 = vmatmul.bf16.gmra.mxu3 %v5802_v25 }
 0xcae   : > { %v5230_v50 = vmul.f32 %v8535_v56, %v5229_v52 }
 0xcb0   : > { %v5234_v7 = vsel %vm5233_vm6, %v8535_v56, %v5230_v50 }
 0xcb1   : > { %v5259_v39 = vmul.f32 %v5234_v7, %v11565_v28 }
 0xcb3   : > { %v5279_v9 = vmul.f32 %v11504_v36, %v5259_v39 }
 0xcb5   : > { %v5299_v25 = vadd.f32 %v11519_v38, %v5279_v9 }
 0xcd0   : > { %v5052_v47 = vpop.xlane.xlu0 %5051 }
 0xcd1   : > { %v5068_v57 = vmul.f32 %v5052_v47, %v12780_v17 }
 0xcd3   : > { %v5084_v26 = vadd.f32 1e-05, %v5068_v57 }
 0xcd5   : > { %8536 = vrsqrt.f32 %v5084_v26  ;;  %vm5241_vm8 = vweird.f32 %v5084_v26 }
 0xcdb   : > { %v8537_v51 = vpop.eup %8536 }
 0xcdc   : > { %v5236_v37 = vmul.f32 %v8537_v51, %v5084_v26  ;;  %vm5242_vm7 = vweird.f32 %v8537_v51 }
 0xcdd   : > { %vm5243_vm9 = vmor %vm5241_vm8, %vm5242_vm7 }
 0xcde   : > { %v5237_v46 = vmul.f32 %v8537_v51, %v5236_v37 }
 0xce0   : > { %v5238_v44 = vmul.f32 0.5, %v5237_v46 }
 0xce2   : > { %v5239_v31 = vsub.f32 1.5, %v5238_v44  ;;  %v5435_v63 = vpop.f32.mrf.mxu0  ;;  %v5484_v24 = vpop.f32.mrf.mxu1 }
 0xce3   : > { %v11809_v60 = vadd.f32 %v5435_v63, %v11609_v34  ;;  %v11812_v17 = vadd.f32 %v5484_v24, %v11611_v54 }
 0xce4   : > { %v5240_v29 = vmul.f32 %v8537_v51, %v5239_v31 }
 0xce5   : > { %v5521_v27 = vmul.f32 %v11809_v60, %v11809_v60  ;;  %v5522_v19 = vmul.f32 %v11812_v17, %v11812_v17 }
 0xce6   : > { %v5244_v22 = vsel %vm5243_vm9, %v8537_v51, %v5240_v29 }
 0xce7   : > { %v5260_v30 = vmul.f32 %v5244_v22, %v11584_v49  ;;  %v5553_v18 = vmul.f32 %v5521_v27, %v11809_v60  ;;  %v5554_v33 = vmul.f32 %v5522_v19, %v11812_v17 }
 0xce9   : > { %v5585_v3 = vmul.f32 0.044715, %v5553_v18  ;;  %v5586_v28 = vmul.f32 0.044715, %v5554_v33  ;;  %v5280_v15 = vmul.f32 %v11504_v36, %v5260_v30 }
 0xcea   : > { %v5437_v5 = vpop.f32.mrf.mxu0  ;;  %v5486_v16 = vpop.f32.mrf.mxu1 }
 0xceb   : > { %v5617_v59 = vadd.f32 %v5585_v3, %v11809_v60  ;;  %v5618_v14 = vadd.f32 %v5586_v28, %v11812_v17  ;;  %v5438_v62 = vadd.f32 %v5437_v5, %v11609_v34  ;;  %v11828_v49 = vadd.f32 %v5486_v16, %v11611_v54 }
 0xcec   : > { %v5300_v42 = vadd.f32 %v11519_v38, %v5280_v15 }
 0xced   : > { %v5649_v53 = vmul.f32 0.7978846, %v5617_v59  ;;  %v5523_v0 = vmul.f32 %v5438_v62, %v5438_v62  ;;  %v5524_v36 = vmul.f32 %v11828_v49, %v11828_v49  ;;  %v5650_v56 = vmul.f32 0.7978846, %v5618_v14 }
 0xcee   : > { %v5308_v55 = vpack.c.bf16 %v5300_v42, %v5299_v25 }
 0xcef   : > { %v5555_v47 = vmul.f32 %v5523_v0, %v5438_v62  ;;  %v5556_v8 = vmul.f32 %v5524_v36, %v11828_v49  ;;  %8538 = vtanh.f32 %v5649_v53 }
 0xcf0   : > { %5454 = vmatmul.bf16.gmra.mxu0 %v5308_v55  ;;  %5503 = vmatmul.bf16.gmra.mxu1 %v5308_v55  ;;  %8540 = vtanh.f32 %v5650_v56 }
 0xcf1   : > { %v5587_v57 = vmul.f32 0.044715, %v5555_v47  ;;  %v5588_v26 = vmul.f32 0.044715, %v5556_v8 }
 0xcf2   : > { %v5440_v38 = vpop.f32.mrf.mxu0  ;;  %v5489_v51 = vpop.f32.mrf.mxu1 }
 0xcf3   : > { %v5619_v40 = vadd.f32 %v5587_v57, %v5438_v62  ;;  %v5620_v52 = vadd.f32 %v5588_v26, %v11828_v49  ;;  %v11837_v37 = vadd.f32 %v5440_v38, %v11609_v34  ;;  %v11840_v50 = vadd.f32 %v5489_v51, %v11611_v54 }
 0xcf5   : > { %v5651_v46 = vmul.f32 0.7978846, %v5619_v40  ;;  %v5652_v44 = vmul.f32 0.7978846, %v5620_v52  ;;  %v5525_v7 = vmul.f32 %v11837_v37, %v11837_v37  ;;  %v5526_v31 = vmul.f32 %v11840_v50, %v11840_v50  ;;  %v8539_v63 = vpop.eup %8538 }
 0xcf6   : > { %v8541_v24 = vpop.eup %8540  ;;  %v5713_v18 = vadd.f32 1.0, %v8539_v63 }
 0xcf7   : > { %8542 = vtanh.f32 %v5651_v46  ;;  %v5557_v39 = vmul.f32 %v5525_v7, %v11837_v37  ;;  %v5558_v29 = vmul.f32 %v5526_v31, %v11840_v50  ;;  %v5714_v33 = vadd.f32 1.0, %v8541_v24 }
 0xcf8   : > { %8544 = vtanh.f32 %v5652_v44  ;;  %v5745_v53 = vmul.f32 0.5, %v5713_v18 }
 0xcf9   : > { %v5589_v27 = vmul.f32 0.044715, %v5557_v39  ;;  %v5590_v19 = vmul.f32 0.044715, %v5558_v29  ;;  %v5746_v36 = vmul.f32 0.5, %v5714_v33 }
 0xcfa   : > { %v5442_v22 = vpop.f32.mrf.mxu0  ;;  %v5491_v30 = vpop.f32.mrf.mxu1  ;;  %v5777_v52 = vmul.f32 %v5745_v53, %v11809_v60 }
 0xcfb   : > { %v5621_v9 = vadd.f32 %v5589_v27, %v11837_v37  ;;  %v5622_v3 = vadd.f32 %v5590_v19, %v11840_v50  ;;  %v11851_v28 = vadd.f32 %v5442_v22, %v11609_v34  ;;  %v11854_v15 = vadd.f32 %v5491_v30, %v11611_v54 }
 0xcfc   : > { %v5778_v51 = vmul.f32 %v5746_v36, %v11812_v17 }
 0xcfd   : > { %v8543_v5 = vpop.eup %8542  ;;  %v5653_v59 = vmul.f32 0.7978846, %v5621_v9  ;;  %v5527_v14 = vmul.f32 %v11851_v28, %v11851_v28  ;;  %v5528_v25 = vmul.f32 %v11854_v15, %v11854_v15  ;;  %v5654_v56 = vmul.f32 0.7978846, %v5622_v3 }
 0xcfe   : > { %v8545_v16 = vpop.eup %8544  ;;  %v5715_v42 = vadd.f32 1.0, %v8543_v5 }
 0xcff   : > { %v5716_v0 = vadd.f32 1.0, %v8545_v16  ;;  %v5559_v55 = vmul.f32 %v5527_v14, %v11851_v28  ;;  %v5560_v47 = vmul.f32 %v5528_v25, %v11854_v15  ;;  %8546 = vtanh.f32 %v5653_v59 }
 0xd00   : > { %6002 = vmatmul.bf16.vlgmr.msra.gmra.mxu0 %v5798_v6  ;;  %v5747_v8 = vmul.f32 0.5, %v5715_v42  ;;  %8548 = vtanh.f32 %v5654_v56 }
 0xd01   : > { %v5748_v57 = vmul.f32 0.5, %v5716_v0  ;;  %v5591_v26 = vmul.f32 0.044715, %v5559_v55  ;;  %v5592_v40 = vmul.f32 0.044715, %v5560_v47 }
 0xd02   : > { %v5779_v38 = vmul.f32 %v5747_v8, %v5438_v62 }
 0xd03   : > { %v5780_v46 = vmul.f32 %v5748_v57, %v11828_v49  ;;  %v5623_v44 = vadd.f32 %v5591_v26, %v11851_v28  ;;  %v5624_v7 = vadd.f32 %v5592_v40, %v11854_v15 }
 0xd04   : > { %v5803_v31 = vpack.c.bf16 %v5779_v38, %v5777_v52 }
 0xd05   : > { %v5804_v32 = vpack.c.bf16 %v5780_v46, %v5778_v51  ;;  %v5655_v11 = vmul.f32 0.7978846, %v5623_v44  ;;  %v5656_v6 = vmul.f32 0.7978846, %v5624_v7  ;;  %v8547_v63 = vpop.eup %8546 }
 0xd06   : > { %5968 = vmatmul.bf16.gmra.mxu2 %v5803_v31  ;;  %v8549_v24 = vpop.eup %8548  ;;  %v5717_v39 = vadd.f32 1.0, %v8547_v63 }
 0xd07   : > { %6017 = vmatmul.bf16.gmra.mxu3 %v5804_v32  ;;  %8550 = vtanh.f32 %v5655_v11  ;;  %v5445_v60 = vpop.f32.mrf.mxu0  ;;  %v5494_v62 = vpop.f32.mrf.mxu1  ;;  %v5718_v19 = vadd.f32 1.0, %v8549_v24 }
 0xd08   : > { %8552 = vtanh.f32 %v5656_v6  ;;  %v11871_v17 = vadd.f32 %v5445_v60, %v11609_v34  ;;  %v11874_v49 = vadd.f32 %v5494_v62, %v11611_v54  ;;  %v5749_v3 = vmul.f32 0.5, %v5717_v39 }
 0xd09   : > { %v5750_v0 = vmul.f32 0.5, %v5718_v19 }
 0xd0a   : > { %v5529_v29 = vmul.f32 %v11871_v17, %v11871_v17  ;;  %v5530_v27 = vmul.f32 %v11874_v49, %v11874_v49  ;;  %v5781_v8 = vmul.f32 %v5749_v3, %v11837_v37 }
 0xd0b   : > { %v5782_v44 = vmul.f32 %v5750_v0, %v11840_v50 }
 0xd0c   : > { %v5561_v30 = vmul.f32 %v5529_v29, %v11871_v17  ;;  %v5562_v18 = vmul.f32 %v5530_v27, %v11874_v49 }
 0xd0d   : > { %v8551_v22 = vpop.eup %8550 }
 0xd0e   : > { %v8553_v33 = vpop.eup %8552  ;;  %v5719_v9 = vadd.f32 1.0, %v8551_v22  ;;  %v5593_v5 = vmul.f32 0.044715, %v5561_v30  ;;  %v5594_v16 = vmul.f32 0.044715, %v5562_v18 }
 0xd0f   : > { %v11882_v59 = vpop.f32.mrf.mxu2  ;;  %v5720_v14 = vadd.f32 1.0, %v8553_v33  ;;  %v5447_v25 = vpop.f32.mrf.mxu0 }
 0xd10   : > { %v5496_v42 = vpop.f32.mrf.mxu1  ;;  %v5751_v53 = vmul.f32 0.5, %v5719_v9  ;;  %v5625_v36 = vadd.f32 %v5593_v5, %v11871_v17  ;;  %v5626_v56 = vadd.f32 %v5594_v16, %v11874_v49  ;;  %v11887_v55 = vadd.f32 %v5447_v25, %v11609_v34  ;;  %v11920_v5 = vld [vmem:[%s12791_s29] ss:$0 sm:$0xff] }
 0xd11   : > { %v11890_v47 = vadd.f32 %v5496_v42, %v11611_v54  ;;  %v5752_v26 = vmul.f32 0.5, %v5720_v14 }
 0xd12   : > { %v5783_v57 = vmul.f32 %v5751_v53, %v11851_v28  ;;  %v5657_v40 = vmul.f32 0.7978846, %v5625_v36  ;;  %v5658_v52 = vmul.f32 0.7978846, %v5626_v56  ;;  %v5531_v38 = vmul.f32 %v11887_v55, %v11887_v55 }
 0xd13   : > { %v5532_v51 = vmul.f32 %v11890_v47, %v11890_v47  ;;  %v5784_v7 = vmul.f32 %v5752_v26, %v11854_v15 }
 0xd14   : > { %v5805_v46 = vpack.c.bf16 %v5783_v57, %v5781_v8  ;;  %v5563_v31 = vmul.f32 %v5531_v38, %v11887_v55  ;;  %8554 = vtanh.f32 %v5657_v40 }
 0xd15   : > { %v5564_v37 = vmul.f32 %v5532_v51, %v11890_v47  ;;  %v5806_v28 = vpack.c.bf16 %v5784_v7, %v5782_v44  ;;  %8556 = vtanh.f32 %v5658_v52 }
 0xd16   : > { %5973 = vmatmul.bf16.gmra.mxu2 %v5805_v46  ;;  %v5595_v32 = vmul.f32 0.044715, %v5563_v31 }
 0xd17   : > { %v5596_v11 = vmul.f32 0.044715, %v5564_v37  ;;  %v11902_v6 = vpop.f32.mrf.mxu2  ;;  %v5450_v63 = vpop.f32.mrf.mxu0  ;;  %6022 = vmatmul.bf16.gmra.mxu3 %v5806_v28 }
 0xd18   : > { %v5499_v60 = vpop.f32.mrf.mxu1  ;;  %v5627_v62 = vadd.f32 %v5595_v32, %v11887_v55  ;;  %v11907_v15 = vadd.f32 %v5450_v63, %v11609_v34 }
 0xd19   : > { %v5628_v50 = vadd.f32 %v5596_v11, %v11890_v47  ;;  %v11910_v24 = vadd.f32 %v5499_v60, %v11611_v54 }
 0xd1a   : > { %v5659_v39 = vmul.f32 0.7978846, %v5627_v62  ;;  %v5533_v27 = vmul.f32 %v11907_v15, %v11907_v15  ;;  %v8555_v22 = vpop.eup %8554 }
 0xd1b   : > { %v5660_v29 = vmul.f32 0.7978846, %v5628_v50  ;;  %v5534_v19 = vmul.f32 %v11910_v24, %v11910_v24  ;;  %v8557_v30 = vpop.eup %8556  ;;  %v5721_v25 = vadd.f32 1.0, %v8555_v22 }
 0xd1c   : > { %8558 = vtanh.f32 %v5659_v39  ;;  %v5565_v18 = vmul.f32 %v5533_v27, %v11907_v15  ;;  %v5722_v42 = vadd.f32 1.0, %v8557_v30 }
 0xd1d   : > { %v5566_v33 = vmul.f32 %v5534_v19, %v11910_v24  ;;  %8560 = vtanh.f32 %v5660_v29  ;;  %v5753_v37 = vmul.f32 0.5, %v5721_v25 }
 0xd1e   : > { %v5597_v9 = vmul.f32 0.044715, %v5565_v18  ;;  %v5754_v63 = vmul.f32 0.5, %v5722_v42 }
 0xd1f   : > { %v5598_v3 = vmul.f32 0.044715, %v5566_v33  ;;  %v5452_v16 = vpop.f32.mrf.mxu0  ;;  %v5959_v8 = vpop.f32.mrf.mxu2  ;;  %v5785_v27 = vmul.f32 %v5753_v37, %v11871_v17 }
 0xd20   : > { %v5501_v14 = vpop.f32.mrf.mxu1  ;;  %v5629_v53 = vadd.f32 %v5597_v9, %v11907_v15  ;;  %v11925_v36 = vadd.f32 %v5452_v16, %v11609_v34  ;;  %v6008_v57 = vpop.f32.mrf.mxu3  ;;  %v5960_v26 = vadd.f32 %v11920_v5, %v5959_v8  ;;  %v5786_v18 = vmul.f32 %v5754_v63, %v11874_v49 }
 0xd21   : > { %v5630_v0 = vadd.f32 %v5598_v3, %v11910_v24  ;;  %v11928_v56 = vadd.f32 %v5501_v14, %v11611_v54 }
 0xd22   : > { %v8559_v40 = vpop.eup %8558  ;;  %v5661_v52 = vmul.f32 0.7978846, %v5629_v53  ;;  %v5535_v38 = vmul.f32 %v11925_v36, %v11925_v36  ;;  %v6009_v7 = vadd.f32 %v6008_v57, %v5960_v26 }
 0xd23   : > { %v5536_v51 = vmul.f32 %v11928_v56, %v11928_v56  ;;  %v8561_v46 = vpop.eup %8560  ;;  %v5662_v44 = vmul.f32 0.7978846, %v5630_v0  ;;  %v5723_v31 = vadd.f32 1.0, %v8559_v40 }
 0xd24   : > { %v5567_v28 = vmul.f32 %v5535_v38, %v11925_v36  ;;  %v5724_v11 = vadd.f32 1.0, %v8561_v46  ;;  %v11938_v60 = vadd.f32 %v6009_v7, %v11356_v1  ;;  %8562 = vtanh.f32 %v5661_v52 }
 0xd25   : > { %v5568_v32 = vmul.f32 %v5536_v51, %v11928_v56  ;;  %v5755_v62 = vmul.f32 0.5, %v5723_v31  ;;  %8564 = vtanh.f32 %v5662_v44 }
 0xd26   : > { %v5599_v50 = vmul.f32 0.044715, %v5567_v28  ;;  %v5756_v29 = vmul.f32 0.5, %v5724_v11  ;;  %6061 = vst [vmem:[#allocation2 + $0x58] sm:$0xff] %v11938_v60 }
 0xd27   : > { %v5600_v39 = vmul.f32 0.044715, %v5568_v32  ;;  %v5787_v19 = vmul.f32 %v5755_v62, %v11887_v55  ;;  %v5961_v33 = vpop.f32.mrf.mxu2 }
 0xd28   : > { %v5631_v22 = vadd.f32 %v5599_v50, %v11925_v36  ;;  %v5788_v1 = vmul.f32 %v5756_v29, %v11890_v47  ;;  %v6010_v9 = vpop.f32.mrf.mxu3  ;;  %v5962_v16 = vadd.f32 %v11920_v5, %v5961_v33 }
 0xd29   : > { %v5632_v30 = vadd.f32 %v5600_v39, %v11928_v56  ;;  %v5807_v3 = vpack.c.bf16 %v5787_v19, %v5785_v27 }
 0xd2a   : > { %v5663_v14 = vmul.f32 0.7978846, %v5631_v22  ;;  %v5808_v42 = vpack.c.bf16 %v5788_v1, %v5786_v18  ;;  %v6011_v17 = vadd.f32 %v6010_v9, %v5962_v16  ;;  %v8563_v53 = vpop.eup %8562 }
 0xd2b   : > { %v5664_v25 = vmul.f32 0.7978846, %v5632_v30  ;;  %5978 = vmatmul.bf16.gmra.mxu2 %v5807_v3  ;;  %v8565_v55 = vpop.eup %8564  ;;  %v5725_v49 = vadd.f32 1.0, %v8563_v53 }
 0xd2c   : > { %8566 = vtanh.f32 %v5663_v14  ;;  %6027 = vmatmul.bf16.gmra.mxu3 %v5808_v42  ;;  %v11949_v0 = vadd.f32 %v6011_v17, %v11360_v12  ;;  %v5726_v57 = vadd.f32 1.0, %v8565_v55 }
 0xd2d   : > { %8568 = vtanh.f32 %v5664_v25  ;;  %v5757_v46 = vmul.f32 0.5, %v5725_v49 }
 0xd2e   : > { %6062 = vst [vmem:[#allocation2 + $0x18] sm:$0xff] %v11949_v0  ;;  %v5758_v7 = vmul.f32 0.5, %v5726_v57  ;;  %v5955_v57 = vadd.f32 %v11920_v5, %v11882_v59  ;;  %v5957_v59 = vadd.f32 %v11920_v5, %v11902_v6 }
 0xd2f   : > { %v5964_v47 = vpop.f32.mrf.mxu2  ;;  %v5789_v28 = vmul.f32 %v5757_v46, %v11907_v15 }
 0xd30   : > { %v6013_v8 = vpop.f32.mrf.mxu3  ;;  %v5965_v26 = vadd.f32 %v11920_v5, %v5964_v47  ;;  %v5790_v11 = vmul.f32 %v5758_v7, %v11910_v24 }
 0xd32   : > { %v8567_v40 = vpop.eup %8566  ;;  %v6014_v38 = vadd.f32 %v6013_v8, %v5965_v26 }
 0xd33   : > { %v8569_v52 = vpop.eup %8568  ;;  %v5727_v51 = vadd.f32 1.0, %v8567_v40 }
 0xd34   : > { %v5728_v44 = vadd.f32 1.0, %v8569_v52  ;;  %v11954_v31 = vadd.f32 %v6014_v38, %v11364_v58 }
 0xd35   : > { %v5759_v12 = vmul.f32 0.5, %v5727_v51 }
 0xd36   : > { %v5760_v37 = vmul.f32 0.5, %v5728_v44  ;;  %6063 = vst [vmem:[#allocation2 + $0x50] sm:$0xff] %v11954_v31 }
 0xd37   : > { %v5791_v32 = vmul.f32 %v5759_v12, %v11925_v36  ;;  %v5966_v62 = vpop.f32.mrf.mxu2 }
 0xd38   : > { %v5792_v63 = vmul.f32 %v5760_v37, %v11928_v56  ;;  %v5967_v39 = vadd.f32 %v11920_v5, %v5966_v62  ;;  %v6015_v27 = vpop.f32.mrf.mxu3 }
 0xd39   : > { %v5809_v50 = vpack.c.bf16 %v5791_v32, %v5789_v28 }
 0xd3a   : > { %v5810_v29 = vpack.c.bf16 %v5792_v63, %v5790_v11  ;;  %v6016_v58 = vadd.f32 %v6015_v27, %v5967_v39 }
 0xd3b   : > { %5983 = vmatmul.bf16.gmra.mxu2 %v5809_v50 }
 0xd3c   : > { %6032 = vmatmul.bf16.gmra.mxu3 %v5810_v29  ;;  %v11963_v19 = vadd.f32 %v6016_v58, %v11368_v45 }
 0xd3e   : > { %6064 = vst [vmem:[#allocation2 + $0x68] sm:$0xff] %v11963_v19 }
 0xd6d   : > { %v5455_v15 = vpop.f32.mrf.mxu0  ;;  %v5504_v36 = vpop.f32.mrf.mxu1 }
 0xd6e   : > { %v5456_v24 = vadd.f32 %v5455_v15, %v11609_v34  ;;  %v5505_v56 = vadd.f32 %v5504_v36, %v11611_v54 }
 0xd70   : > { %v5537_v22 = vmul.f32 %v5456_v24, %v5456_v24  ;;  %v5538_v30 = vmul.f32 %v5505_v56, %v5505_v56 }
 0xd72   : > { %v5569_v18 = vmul.f32 %v5537_v22, %v5456_v24  ;;  %v5570_v1 = vmul.f32 %v5538_v30, %v5505_v56 }
 0xd74   : > { %v5601_v33 = vmul.f32 0.044715, %v5569_v18  ;;  %v5602_v9 = vmul.f32 0.044715, %v5570_v1 }
 0xd75   : > { %v5457_v3 = vpop.f32.mrf.mxu0  ;;  %v5506_v16 = vpop.f32.mrf.mxu1 }
 0xd76   : > { %v5633_v14 = vadd.f32 %v5601_v33, %v5456_v24  ;;  %v5634_v25 = vadd.f32 %v5602_v9, %v5505_v56  ;;  %v5458_v45 = vadd.f32 %v5457_v3, %v11609_v34  ;;  %v5507_v42 = vadd.f32 %v5506_v16, %v11611_v54 }
 0xd78   : > { %v5665_v17 = vmul.f32 0.7978846, %v5633_v14  ;;  %v5539_v53 = vmul.f32 %v5458_v45, %v5458_v45  ;;  %v5540_v55 = vmul.f32 %v5507_v42, %v5507_v42  ;;  %v5666_v49 = vmul.f32 0.7978846, %v5634_v25 }
 0xd7a   : > { %v5571_v47 = vmul.f32 %v5539_v53, %v5458_v45  ;;  %v5572_v8 = vmul.f32 %v5540_v55, %v5507_v42  ;;  %8570 = vtanh.f32 %v5665_v17 }
 0xd7b   : > { %8572 = vtanh.f32 %v5666_v49 }
 0xd7c   : > { %v5603_v26 = vmul.f32 0.044715, %v5571_v47  ;;  %v5604_v40 = vmul.f32 0.044715, %v5572_v8 }
 0xd7d   : > { %v6003_v52 = vpop.f32.mrf.mxu0 }
 0xd7e   : > { %v5635_v38 = vadd.f32 %v5603_v26, %v5458_v45  ;;  %v5636_v51 = vadd.f32 %v5604_v40, %v5507_v42  ;;  %v6004_v46 = vadd.f32 %v6003_v52, %v5955_v57 }
 0xd80   : > { %v5667_v34 = vmul.f32 0.7978846, %v5635_v38  ;;  %v5668_v44 = vmul.f32 0.7978846, %v5636_v51  ;;  %v11973_v54 = vadd.f32 %v6004_v46, %v11348_v2  ;;  %v8571_v7 = vpop.eup %8570 }
 0xd81   : > { %v8573_v12 = vpop.eup %8572  ;;  %v5729_v28 = vadd.f32 1.0, %v8571_v7 }
 0xd82   : > { %8574 = vtanh.f32 %v5667_v34  ;;  %6059 = vst [vmem:[#allocation2 + $0x30] sm:$0xff] %v11973_v54  ;;  %v5730_v11 = vadd.f32 1.0, %v8573_v12 }
 0xd83   : > { %8576 = vtanh.f32 %v5668_v44  ;;  %v5761_v39 = vmul.f32 0.5, %v5729_v28 }
 0xd84   : > { %v5762_v15 = vmul.f32 0.5, %v5730_v11 }
 0xd85   : > { %v6005_v37 = vpop.f32.mrf.mxu0  ;;  %v5793_v18 = vmul.f32 %v5761_v39, %v5456_v24 }
 0xd86   : > { %v6006_v32 = vadd.f32 %v6005_v37, %v5957_v59  ;;  %v5794_v33 = vmul.f32 %v5762_v15, %v5505_v56 }
 0xd88   : > { %v8575_v63 = vpop.eup %8574  ;;  %v11979_v62 = vadd.f32 %v6006_v32, %v11352_v23 }
 0xd89   : > { %v8577_v50 = vpop.eup %8576  ;;  %v5731_v2 = vadd.f32 1.0, %v8575_v63  ;;  %v5969_v29 = vpop.f32.mrf.mxu2 }
 0xd8a   : > { %6060 = vst [vmem:[#allocation2] sm:$0xff] %v11979_v62  ;;  %v6018_v27 = vpop.f32.mrf.mxu3  ;;  %v5732_v58 = vadd.f32 1.0, %v8577_v50  ;;  %v5970_v36 = vadd.f32 %v11920_v5, %v5969_v29 }
 0xd8b   : > { %v5763_v6 = vmul.f32 0.5, %v5731_v2 }
 0xd8c   : > { %v5764_v22 = vmul.f32 0.5, %v5732_v58  ;;  %v6019_v30 = vadd.f32 %v6018_v27, %v5970_v36 }
 0xd8d   : > { %v5795_v1 = vmul.f32 %v5763_v6, %v5458_v45 }
 0xd8e   : > { %v5796_v9 = vmul.f32 %v5764_v22, %v5507_v42  ;;  %v11984_v23 = vadd.f32 %v6019_v30, %v11372_v10 }
 0xd8f   : > { %v5811_v3 = vpack.c.bf16 %v5795_v1, %v5793_v18 }
 0xd90   : > { %v5812_v16 = vpack.c.bf16 %v5796_v9, %v5794_v33  ;;  %6065 = vst [vmem:[#allocation2 + $0x8] sm:$0xff] %v11984_v23 }
 0xd91   : > { %5988 = vmatmul.bf16.gmra.mxu2 %v5811_v3  ;;  %v5971_v14 = vpop.f32.mrf.mxu2 }
 0xd92   : > { %6037 = vmatmul.bf16.gmra.mxu3 %v5812_v16  ;;  %v6020_v25 = vpop.f32.mrf.mxu3  ;;  %v5972_v17 = vadd.f32 %v11920_v5, %v5971_v14 }
 0xd94   : > { %v6021_v53 = vadd.f32 %v6020_v25, %v5972_v17 }
 0xd96   : > { %v11989_v55 = vadd.f32 %v6021_v53, %v11386_v61 }
 0xd98   : > { %6066 = vst [vmem:[#allocation2 + $0x48] sm:$0xff] %v11989_v55 }
 0xd99   : > { %v5974_v24 = vpop.f32.mrf.mxu2 }
 0xd9a   : > { %v5975_v10 = vadd.f32 %v11920_v5, %v5974_v24  ;;  %v6023_v56 = vpop.f32.mrf.mxu3 }
 0xd9c   : > { %v6024_v45 = vadd.f32 %v6023_v56, %v5975_v10 }
 0xd9e   : > { %v11994_v42 = vadd.f32 %v6024_v45, %v11396_v4 }
 0xda0   : > { %6067 = vst [vmem:[#allocation2 + $0x40] sm:$0xff] %v11994_v42 }
 0xda1   : > { %v5976_v49 = vpop.f32.mrf.mxu2 }
 0xda2   : > { %v5977_v47 = vadd.f32 %v11920_v5, %v5976_v49  ;;  %v6025_v8 = vpop.f32.mrf.mxu3 }
 0xda4   : > { %v6026_v57 = vadd.f32 %v6025_v8, %v5977_v47 }
 0xda6   : > { %v11999_v61 = vadd.f32 %v6026_v57, %v11406_v48 }
 0xda8   : > { %6068 = vst [vmem:[#allocation2 + $0x20] sm:$0xff] %v11999_v61 }
 0xdae   : > { %v5979_v26 = vpop.f32.mrf.mxu2 }
 0xdaf   : > { %v5980_v40 = vadd.f32 %v11920_v5, %v5979_v26  ;;  %v6028_v52 = vpop.f32.mrf.mxu3 }
 0xdb1   : > { %v6029_v38 = vadd.f32 %v6028_v52, %v5980_v40 }
 0xdb3   : > { %v12004_v4 = vadd.f32 %v6029_v38, %v11416_v41 }
 0xdb5   : > { %6069 = vst [vmem:[#allocation2 + $0x10] sm:$0xff] %v12004_v4 }
 0xdb6   : > { %v5981_v51 = vpop.f32.mrf.mxu2 }
 0xdb7   : > { %v5982_v46 = vadd.f32 %v11920_v5, %v5981_v51  ;;  %v6030_v34 = vpop.f32.mrf.mxu3 }
 0xdb9   : > { %v6031_v44 = vadd.f32 %v6030_v34, %v5982_v46 }
 0xdbb   : > { %v12009_v48 = vadd.f32 %v6031_v44, %v11426_v20 }
 0xdbd   : > { %6070 = vst [vmem:[#allocation2 + $0x38] sm:$0xff] %v12009_v48 }
 0xdbe   : > { %v5984_v7 = vpop.f32.mrf.mxu2 }
 0xdbf   : > { %v5985_v12 = vadd.f32 %v11920_v5, %v5984_v7  ;;  %v6033_v59 = vpop.f32.mrf.mxu3 }
 0xdc1   : > { %v6034_v37 = vadd.f32 %v6033_v59, %v5985_v12 }
 0xdc3   : > { %v12014_v41 = vadd.f32 %v6034_v37, %v11436_v35 }
 0xdc5   : > { %6071 = vst [vmem:[#allocation2 + $0x60] sm:$0xff] %v12014_v41 }
 0xdc6   : > { %v5986_v28 = vpop.f32.mrf.mxu2 }
 0xdc7   : > { %v5987_v32 = vadd.f32 %v11920_v5, %v5986_v28  ;;  %v6035_v11 = vpop.f32.mrf.mxu3 }
 0xdc9   : > { %v6036_v63 = vadd.f32 %v6035_v11, %v5987_v32 }
 0xdcb   : > { %v12019_v20 = vadd.f32 %v6036_v63, %v11442_v43 }
 0xdcd   : > { %6072 = vst [vmem:[#allocation2 + $0x70] sm:$0xff] %v12019_v20 }
 0xe14   : > { %v5989_v50 = vpop.f32.mrf.mxu2 }
 0xe15   : > { %v5990_v2 = vadd.f32 %v11920_v5, %v5989_v50  ;;  %v6038_v39 = vpop.f32.mrf.mxu3 }
 0xe17   : > { %v6039_v29 = vadd.f32 %v6038_v39, %v5990_v2 }
 0xe19   : > { %v12024_v35 = vadd.f32 %v6039_v29, %v11446_v13 }
 0xe1b   : > { %6073 = vst [vmem:[#allocation2 + $0x78] sm:$0xff] %v12024_v35 }
 0xe1c   : > { %v5991_v27 = vpop.f32.mrf.mxu2 }
 0xe1d   : > { %v5992_v58 = vadd.f32 %v11920_v5, %v5991_v27  ;;  %v6040_v15 = vpop.f32.mrf.mxu3 }
 0xe1f   : > { %v6041_v36 = vadd.f32 %v6040_v15, %v5992_v58  ;;  %6078 = sbr.rel (%p7160_p8) target bundleno = 4220 (0x107c), region = 144 }
 0xe21   : > { %v12029_v43 = vadd.f32 %v6041_v36, %v11510_v21 }
 0xe23   : > { %6074 = vst [vmem:[#allocation2 + $0x28] sm:$0xff] %v12029_v43 }
 0xe24   : > { %6087 = vadd.xlane.f32.xlu2 %v11954_v31  ;;  %6083 = vadd.xlane.f32.xlu1 %v11938_v60  ;;  %v12793_v5 = vld [vmem:[#allocation41_spill] sm:$0xff] }
 0xe25   : > { %6079 = vadd.xlane.f32.xlu0 %v11973_v54 }
 0xe2c   : > { %6089 = vadd.xlane.f32.xlu2 %v11963_v19  ;;  %6085 = vadd.xlane.f32.xlu1 %v11949_v0 }
 0xe2d   : > { %6081 = vadd.xlane.f32.xlu0 %v11979_v62 }
 0xe34   : > { %6095 = vadd.xlane.f32.xlu2 %v11994_v42  ;;  %6093 = vadd.xlane.f32.xlu1 %v11989_v55 }
 0xe35   : > { %6091 = vadd.xlane.f32.xlu0 %v11984_v23 }
 0xe3c   : > { %6101 = vadd.xlane.f32.xlu2 %v12009_v48  ;;  %6099 = vadd.xlane.f32.xlu1 %v12004_v4 }
 0xe3d   : > { %6097 = vadd.xlane.f32.xlu0 %v11999_v61 }
 0xe44   : > { %6107 = vadd.xlane.f32.xlu2 %v12024_v35  ;;  %6105 = vadd.xlane.f32.xlu1 %v12019_v20 }
 0xe45   : > { %6103 = vadd.xlane.f32.xlu0 %v12014_v41 }
 0xe4d   : > { %6109 = vadd.xlane.f32.xlu0 %v12029_v43 }
 0xe97   : > { %v6088_v13 = vpop.xlane.xlu2 %6087  ;;  %v6084_v21 = vpop.xlane.xlu1 %6083 }
 0xe98   : > { %v6113_v6 = vmul.f32 %v6084_v21, %v12793_v5  ;;  %v6080_v22 = vpop.xlane.xlu0 %6079  ;;  %v6115_v45 = vmul.f32 %v6088_v13, %v12793_v5 }
 0xe99   : > { %v6111_v30 = vmul.f32 %v6080_v22, %v12793_v5 }
 0xe9a   : > { %v12052_v18 = vsub.f32 %v11938_v60, %v6113_v6  ;;  %v12082_v8 = vsub.f32 %v11954_v31, %v6115_v45 }
 0xe9b   : > { %v12055_v1 = vsub.f32 %v11973_v54, %v6111_v30 }
 0xe9c   : > { %v6145_v33 = vmul.f32 %v12052_v18, %v12052_v18  ;;  %v6147_v51 = vmul.f32 %v12082_v8, %v12082_v8 }
 0xe9d   : > { %v6143_v9 = vmul.f32 %v12055_v1, %v12055_v1 }
 0xe9e   : > { %6163 = vadd.xlane.f32.xlu0 %v6145_v33 }
 0xe9f   : > { %6159 = vadd.xlane.f32.xlu1 %v6143_v9  ;;  %v6090_v3 = vpop.xlane.xlu2 %6089  ;;  %v6086_v16 = vpop.xlane.xlu1 %6085 }
 0xea0   : > { %v6116_v14 = vmul.f32 %v6090_v3, %v12793_v5  ;;  %v6114_v25 = vmul.f32 %v6086_v16, %v12793_v5  ;;  %v6082_v17 = vpop.xlane.xlu0 %6081 }
 0xea1   : > { %v6112_v60 = vmul.f32 %v6082_v17, %v12793_v5 }
 0xea2   : > { %v12065_v54 = vsub.f32 %v11963_v19, %v6116_v14  ;;  %v12068_v53 = vsub.f32 %v11949_v0, %v6114_v25 }
 0xea3   : > { %v12071_v24 = vsub.f32 %v11979_v62, %v6112_v60 }
 0xea4   : > { %v6148_v10 = vmul.f32 %v12065_v54, %v12065_v54  ;;  %v6146_v56 = vmul.f32 %v12068_v53, %v12068_v53 }
 0xea5   : > { %v6144_v49 = vmul.f32 %v12071_v24, %v12071_v24 }
 0xea6   : > { %6169 = vadd.xlane.f32.xlu0 %v6148_v10 }
 0xea7   : > { %6165 = vadd.xlane.f32.xlu1 %v6146_v56  ;;  %6161 = vadd.xlane.f32.xlu2 %v6144_v49  ;;  %v6096_v19 = vpop.xlane.xlu2 %6095  ;;  %v6094_v0 = vpop.xlane.xlu1 %6093 }
 0xea8   : > { %v6119_v47 = vmul.f32 %v6096_v19, %v12793_v5  ;;  %v6092_v62 = vpop.xlane.xlu0 %6091  ;;  %v6118_v52 = vmul.f32 %v6094_v0, %v12793_v5 }
 0xea9   : > { %v6117_v57 = vmul.f32 %v6092_v62, %v12793_v5 }
 0xeaa   : > { %v12086_v26 = vsub.f32 %v11994_v42, %v6119_v47  ;;  %v12099_v42 = vsub.f32 %v11989_v55, %v6118_v52 }
 0xeab   : > { %v12089_v40 = vsub.f32 %v11984_v23, %v6117_v57 }
 0xeac   : > { %v6151_v38 = vmul.f32 %v12086_v26, %v12086_v26  ;;  %v6150_v37 = vmul.f32 %v12099_v42, %v12099_v42 }
 0xead   : > { %v6149_v31 = vmul.f32 %v12089_v40, %v12089_v40 }
 0xeae   : > { %6175 = vadd.xlane.f32.xlu0 %v6151_v38 }
 0xeaf   : > { %6167 = vadd.xlane.f32.xlu2 %v6147_v51  ;;  %6171 = vadd.xlane.f32.xlu1 %v6149_v31  ;;  %v6102_v46 = vpop.xlane.xlu2 %6101  ;;  %v6100_v23 = vpop.xlane.xlu1 %6099 }
 0xeb0   : > { %v6122_v34 = vmul.f32 %v6102_v46, %v12793_v5  ;;  %v6098_v44 = vpop.xlane.xlu0 %6097  ;;  %v6121_v28 = vmul.f32 %v6100_v23, %v12793_v5 }
 0xeb1   : > { %v6120_v7 = vmul.f32 %v6098_v44, %v12793_v5 }
 0xeb2   : > { %v12104_v12 = vsub.f32 %v12009_v48, %v6122_v34  ;;  %v12117_v48 = vsub.f32 %v12004_v4, %v6121_v28 }
 0xeb3   : > { %v12107_v59 = vsub.f32 %v11999_v61, %v6120_v7 }
 0xeb4   : > { %v6154_v55 = vmul.f32 %v12104_v12, %v12104_v12  ;;  %v6153_v27 = vmul.f32 %v12117_v48, %v12117_v48 }
 0xeb5   : > { %v6152_v32 = vmul.f32 %v12107_v59, %v12107_v59 }
 0xeb6   : > { %6181 = vadd.xlane.f32.xlu0 %v6154_v55 }
 0xeb7   : > { %6173 = vadd.xlane.f32.xlu2 %v6150_v37  ;;  %6177 = vadd.xlane.f32.xlu1 %v6152_v32  ;;  %v6108_v11 = vpop.xlane.xlu2 %6107  ;;  %v6106_v50 = vpop.xlane.xlu1 %6105 }
 0xeb8   : > { %v6125_v61 = vmul.f32 %v6108_v11, %v12793_v5  ;;  %v6104_v63 = vpop.xlane.xlu0 %6103  ;;  %v6124_v58 = vmul.f32 %v6106_v50, %v12793_v5 }
 0xeb9   : > { %v6123_v2 = vmul.f32 %v6104_v63, %v12793_v5 }
 0xeba   : > { %v12122_v39 = vsub.f32 %v12024_v35, %v6125_v61  ;;  %v12135_v35 = vsub.f32 %v12019_v20, %v6124_v58 }
 0xebb   : > { %v12125_v29 = vsub.f32 %v12014_v41, %v6123_v2 }
 0xebc   : > { %v6157_v4 = vmul.f32 %v12122_v39, %v12122_v39  ;;  %v6156_v21 = vmul.f32 %v12135_v35, %v12135_v35 }
 0xebd   : > { %v6155_v15 = vmul.f32 %v12125_v29, %v12125_v29 }
 0xebe   : > { %6187 = vadd.xlane.f32.xlu0 %v6157_v4 }
 0xebf   : > { %6179 = vadd.xlane.f32.xlu2 %v6153_v27  ;;  %6183 = vadd.xlane.f32.xlu1 %v6155_v15 }
 0xec0   : > { %v6110_v36 = vpop.xlane.xlu0 %6109 }
 0xec1   : > { %v6126_v41 = vmul.f32 %v6110_v36, %v12793_v5 }
 0xec3   : > { %v12139_v13 = vsub.f32 %v12029_v43, %v6126_v41 }
 0xec5   : > { %v6158_v6 = vmul.f32 %v12139_v13, %v12139_v13 }
 0xec7   : > { %6185 = vadd.xlane.f32.xlu2 %v6156_v21  ;;  %6189 = vadd.xlane.f32.xlu1 %v6158_v6 }
 0xf11   : > { %v6164_v22 = vpop.xlane.xlu0 %6163 }
 0xf12   : > { %v6160_v30 = vpop.xlane.xlu1 %6159  ;;  %v6193_v33 = vmul.f32 %v6164_v22, %v12793_v5 }
 0xf13   : > { %v6191_v20 = vmul.f32 %v6160_v30, %v12793_v5 }
 0xf14   : > { %v6209_v9 = vadd.f32 1e-05, %v6193_v33 }
 0xf15   : > { %v6207_v3 = vadd.f32 1e-05, %v6191_v20 }
 0xf16   : > { %8602 = vrsqrt.f32 %v6209_v9  ;;  %vm6249_vm14 = vweird.f32 %v6209_v9 }
 0xf17   : > { %8604 = vrsqrt.f32 %v6207_v3  ;;  %vm6229_vm10 = vweird.f32 %v6207_v3 }
 0xf19   : > { %v6170_v43 = vpop.xlane.xlu0 %6169 }
 0xf1a   : > { %v6166_v16 = vpop.xlane.xlu1 %6165  ;;  %v6162_v14 = vpop.xlane.xlu2 %6161  ;;  %v6196_v25 = vmul.f32 %v6170_v43, %v12793_v5 }
 0xf1b   : > { %v6194_v17 = vmul.f32 %v6166_v16, %v12793_v5  ;;  %v6192_v60 = vmul.f32 %v6162_v14, %v12793_v5 }
 0xf1c   : > { %v8603_v10 = vpop.eup %8602  ;;  %v12150_v56 = vadd.f32 1e-05, %v6196_v25 }
 0xf1d   : > { %v8605_v45 = vpop.eup %8604  ;;  %v6244_v49 = vmul.f32 %v8603_v10, %v6209_v9  ;;  %v12152_v19 = vadd.f32 1e-05, %v6194_v17  ;;  %v12154_v0 = vadd.f32 1e-05, %v6192_v60  ;;  %vm6250_vm12 = vweird.f32 %v8603_v10  ;;  %v12192_v9 = vld [vmem:[%s12796_s0] ss:$0 sm:$0xff] }
 0xf1e   : > { %v6224_v47 = vmul.f32 %v8605_v45, %v6207_v3  ;;  %8606 = vrsqrt.f32 %v12150_v56  ;;  %vm6230_vm11 = vweird.f32 %v8605_v45  ;;  %vm12180_vm15 = vmor %vm6249_vm14, %vm6250_vm12  ;;  %vm6279_vm2 = vweird.f32 %v12150_v56 }
 0xf1f   : > { %v6245_v62 = vmul.f32 %v8603_v10, %v6244_v49  ;;  %8608 = vrsqrt.f32 %v12152_v19  ;;  %vm6231_vm13 = vmor %vm6229_vm10, %vm6230_vm11  ;;  %vm6259_vm0 = vweird.f32 %v12152_v19  ;;  %vm6239_vm4 = vweird.f32 %v12154_v0 }
 0xf20   : > { %v6225_v57 = vmul.f32 %v8605_v45, %v6224_v47  ;;  %8610 = vrsqrt.f32 %v12154_v0 }
 0xf21   : > { %v6246_v52 = vmul.f32 0.5, %v6245_v62  ;;  %v6176_v38 = vpop.xlane.xlu0 %6175 }
 0xf22   : > { %v6226_v51 = vmul.f32 0.5, %v6225_v57  ;;  %v6168_v31 = vpop.xlane.xlu2 %6167  ;;  %v6172_v46 = vpop.xlane.xlu1 %6171  ;;  %v6199_v7 = vmul.f32 %v6176_v38, %v12793_v5 }
 0xf23   : > { %v6247_v23 = vsub.f32 1.5, %v6246_v52  ;;  %v6195_v34 = vmul.f32 %v6168_v31, %v12793_v5  ;;  %v6197_v44 = vmul.f32 %v6172_v46, %v12793_v5 }
 0xf24   : > { %v12162_v37 = vpop.eup %8606  ;;  %v6227_v28 = vsub.f32 1.5, %v6226_v51  ;;  %v12176_v15 = vadd.f32 1e-05, %v6199_v7  ;;  %v12210_v51 = vld [vmem:[#allocation16] ss:$0 sm:$0xff] }
 0xf25   : > { %v12164_v55 = vpop.eup %8608  ;;  %v6274_v32 = vmul.f32 %v12162_v37, %v12150_v56  ;;  %v12168_v11 = vadd.f32 1e-05, %v6195_v34  ;;  %v12172_v2 = vadd.f32 1e-05, %v6197_v44  ;;  %v6248_v27 = vmul.f32 %v8603_v10, %v6247_v23 }
 0xf26   : > { %v8611_v61 = vpop.eup %8610  ;;  %v6228_v63 = vmul.f32 %v8605_v45, %v6227_v28  ;;  %v6254_v50 = vmul.f32 %v12164_v55, %v12152_v19  ;;  %vm6260_vm3 = vweird.f32 %v12164_v55  ;;  %vm6280_vm6 = vweird.f32 %v12162_v37 }
 0xf27   : > { %v6234_v58 = vmul.f32 %v8611_v61, %v12154_v0  ;;  %v6275_v4 = vmul.f32 %v12162_v37, %v6274_v32  ;;  %8612 = vrsqrt.f32 %v12168_v11  ;;  %v6252_v33 = vsel %vm12180_vm15, %v8603_v10, %v6248_v27  ;;  %vm12227_vm7 = vmor %vm6259_vm0, %vm6260_vm3 }
 0xf28   : > { %v6255_v36 = vmul.f32 %v12164_v55, %v6254_v50  ;;  %v6232_v41 = vsel %vm6231_vm13, %v8605_v45, %v6228_v63  ;;  %8614 = vrsqrt.f32 %v12172_v2  ;;  %vm6240_vm1 = vweird.f32 %v8611_v61  ;;  %vm12257_vm11 = vmor %vm6279_vm2, %vm6280_vm6 }
 0xf29   : > { %v6235_v21 = vmul.f32 %v8611_v61, %v6234_v58  ;;  %v6276_v3 = vmul.f32 0.5, %v6275_v4  ;;  %8616 = vrsqrt.f32 %v12176_v15  ;;  %v6383_v43 = vmul.f32 %v6232_v41, %v12055_v1  ;;  %v6182_v45 = vpop.xlane.xlu0 %6181  ;;  %vm6241_vm5 = vmor %vm6239_vm4, %vm6240_vm1 }
 0xf2a   : > { %v6256_v22 = vmul.f32 0.5, %v6255_v36  ;;  %v6174_v30 = vpop.xlane.xlu2 %6173  ;;  %v6178_v17 = vpop.xlane.xlu1 %6177  ;;  %v6385_v10 = vmul.f32 %v6252_v33, %v12052_v18  ;;  %v6202_v34 = vmul.f32 %v6182_v45, %v12793_v5  ;;  %vm6269_vm8 = vweird.f32 %v12168_v11 }
 0xf2b   : > { %v6236_v20 = vmul.f32 0.5, %v6235_v21  ;;  %v6198_v14 = vmul.f32 %v6174_v30, %v12793_v5  ;;  %v6277_v62 = vsub.f32 1.5, %v6276_v3  ;;  %v6403_v38 = vmul.f32 %v12192_v9, %v6383_v43 }
 0xf2c   : > { %v6257_v16 = vsub.f32 1.5, %v6256_v22  ;;  %v6200_v18 = vmul.f32 %v6178_v17, %v12793_v5  ;;  %v6405_v44 = vmul.f32 %v12192_v9, %v6385_v10  ;;  %vm6289_vm9 = vweird.f32 %v12172_v2 }
 0xf2d   : > { %v6237_v25 = vsub.f32 1.5, %v6236_v20  ;;  %v12197_v60 = vpop.eup %8612  ;;  %v12202_v1 = vadd.f32 1e-05, %v6198_v14  ;;  %v6278_v63 = vmul.f32 %v12162_v37, %v6277_v62  ;;  %v6423_v27 = vadd.f32 %v12210_v51, %v6403_v38 }
 0xf2e   : > { %v6258_v49 = vmul.f32 %v12164_v55, %v6257_v16  ;;  %v6264_v57 = vmul.f32 %v12197_v60, %v12168_v11  ;;  %v12207_v52 = vpop.eup %8614  ;;  %v12244_v4 = vadd.f32 1e-05, %v6200_v18  ;;  %vm6270_vm10 = vweird.f32 %v12197_v60 }
 0xf2f   : > { %v6238_v47 = vmul.f32 %v8611_v61, %v6237_v25  ;;  %8618 = vrsqrt.f32 %v12202_v1  ;;  %v12216_v0 = vpop.eup %8616  ;;  %v6284_v23 = vmul.f32 %v12207_v52, %v12172_v2  ;;  %v6282_v3 = vsel %vm12257_vm11, %v12162_v37, %v6278_v63  ;;  %vm6271_vm12 = vmor %vm6269_vm8, %vm6270_vm10 }
 0xf30   : > { %v6265_v46 = vmul.f32 %v12197_v60, %v6264_v57  ;;  %v6304_v32 = vmul.f32 %v12216_v0, %v12176_v15  ;;  %8620 = vrsqrt.f32 %v12244_v4  ;;  %vm6290_vm13 = vweird.f32 %v12207_v52 }
 0xf31   : > { %v6242_v31 = vsel %vm6241_vm5, %v8611_v61, %v6238_v47  ;;  %v6262_v61 = vsel %vm12227_vm7, %v12164_v55, %v6258_v49  ;;  %v6285_v19 = vmul.f32 %v12207_v52, %v6284_v23  ;;  %v12247_v55 = vadd.f32 1e-05, %v6202_v34  ;;  %vm12293_vm0 = vmor %vm6289_vm9, %vm6290_vm13 }
 0xf32   : > { %v6384_v28 = vmul.f32 %v6242_v31, %v12071_v24  ;;  %v6266_v50 = vmul.f32 0.5, %v6265_v46  ;;  %v6305_v58 = vmul.f32 %v12216_v0, %v6304_v32  ;;  %v6386_v6 = vmul.f32 %v6262_v61, %v12068_v53  ;;  %v6180_v20 = vpop.xlane.xlu2 %6179  ;;  %v6184_v14 = vpop.xlane.xlu1 %6183 }
 0xf33   : > { %v6286_v41 = vmul.f32 0.5, %v6285_v19  ;;  %8622 = vrsqrt.f32 %v12247_v55  ;;  %v6201_v45 = vmul.f32 %v6180_v20, %v12793_v5  ;;  %v6425_v49 = vadd.f32 %v12210_v51, %v6405_v44  ;;  %v6188_v46 = vpop.xlane.xlu0 %6187 }
 0xf34   : > { %v6404_v24 = vmul.f32 %v12192_v9, %v6384_v28  ;;  %v6267_v36 = vsub.f32 1.5, %v6266_v50  ;;  %v6306_v33 = vmul.f32 0.5, %v6305_v58  ;;  %v6406_v47 = vmul.f32 %v12192_v9, %v6386_v6 }
 0xf35   : > { %v12249_v21 = vpop.eup %8618  ;;  %v6287_v43 = vsub.f32 1.5, %v6286_v41  ;;  %vm6309_vm14 = vweird.f32 %v12176_v15  ;;  %v6388_v62 = vmul.f32 %v6282_v3, %v12065_v54  ;;  %vm6310_vm15 = vweird.f32 %v12216_v0 }
 0xf36   : > { %v6424_v22 = vadd.f32 %v12210_v51, %v6404_v24  ;;  %v6268_v53 = vmul.f32 %v12197_v60, %v6267_v36  ;;  %v6294_v16 = vmul.f32 %v12249_v21, %v12202_v1  ;;  %v6307_v25 = vsub.f32 1.5, %v6306_v33  ;;  %v12286_v38 = vpop.eup %8620  ;;  %vm12315_vm3 = vmor %vm6309_vm14, %vm6310_vm15 }
 0xf37   : > { %v6288_v17 = vmul.f32 %v12207_v52, %v6287_v43  ;;  %vm6300_vm1 = vweird.f32 %v12249_v21  ;;  %v6203_v54 = vmul.f32 %v6184_v14, %v12793_v5  ;;  %v6314_v7 = vmul.f32 %v12286_v38, %v12244_v4 }
 0xf38   : > { %v6439_v56 = vadd.f32 %v6424_v22, %v6423_v27  ;;  %v6272_v37 = vsel %vm6271_vm12, %v12197_v60, %v6268_v53  ;;  %v6295_v10 = vmul.f32 %v12249_v21, %v6294_v16  ;;  %v12284_v60 = vadd.f32 1e-05, %v6201_v45 }
 0xf39   : > { %v6387_v11 = vmul.f32 %v6272_v37, %v12082_v8  ;;  %v6292_v23 = vsel %vm12293_vm0, %v12207_v52, %v6288_v17  ;;  %v6308_v34 = vmul.f32 %v12216_v0, %v6307_v25  ;;  %v12305_v2 = vpop.eup %8622  ;;  %v6426_v28 = vadd.f32 %v12210_v51, %v6406_v47 }
 0xf3a   : > { %v6296_v57 = vmul.f32 0.5, %v6295_v10  ;;  %v6440_v18 = vadd.f32 %v6439_v56, %v6425_v49  ;;  %vm6299_vm2 = vweird.f32 %v12202_v1  ;;  %8624 = vrsqrt.f32 %v12284_v60  ;;  %v6186_v58 = vpop.xlane.xlu2 %6185  ;;  %v6190_v30 = vpop.xlane.xlu1 %6189 }
 0xf3b   : > { %v6407_v31 = vmul.f32 %v12192_v9, %v6387_v11  ;;  %v6315_v63 = vmul.f32 %v12286_v38, %v6314_v7  ;;  %v6334_v50 = vmul.f32 %v12305_v2, %v12247_v55  ;;  %v6205_v19 = vmul.f32 %v6188_v46, %v12793_v5  ;;  %vm6301_vm4 = vmor %vm6299_vm2, %vm6300_vm1 }
 0xf3c   : > { %v6297_v44 = vsub.f32 1.5, %v6296_v57  ;;  %v6408_v1 = vmul.f32 %v12192_v9, %v6388_v62  ;;  %v6441_v27 = vadd.f32 %v6440_v18, %v6426_v28  ;;  %v6389_v24 = vmul.f32 %v6292_v23, %v12089_v40 }
 0xf3d   : > { %v6427_v32 = vadd.f32 %v12210_v51, %v6407_v31  ;;  %v12328_v15 = vadd.f32 1e-05, %v6203_v54  ;;  %v6312_v36 = vsel %vm12315_vm3, %v12216_v0, %v6308_v34  ;;  %v6316_v6 = vmul.f32 0.5, %v6315_v63 }
 0xf3e   : > { %v6298_v61 = vmul.f32 %v12249_v21, %v6297_v44  ;;  %v6335_v22 = vmul.f32 %v12305_v2, %v6334_v50  ;;  %vm6320_vm5 = vweird.f32 %v12286_v38  ;;  %v12338_v53 = vadd.f32 1e-05, %v6205_v19 }
 0xf3f   : > { %v6442_v33 = vadd.f32 %v6441_v27, %v6427_v32  ;;  %8626 = vrsqrt.f32 %v12328_v15  ;;  %v6317_v40 = vsub.f32 1.5, %v6316_v6  ;;  %v6204_v43 = vmul.f32 %v6186_v58, %v12793_v5 }
 0xf40   : > { %v6302_v41 = vsel %vm6301_vm4, %v12249_v21, %v6298_v61  ;;  %v6336_v3 = vmul.f32 0.5, %v6335_v22  ;;  %v8625_v0 = vpop.eup %8624  ;;  %v6428_v21 = vadd.f32 %v12210_v51, %v6408_v1  ;;  %v6409_v16 = vmul.f32 %v12192_v9, %v6389_v24 }
 0xf41   : > { %v6390_v20 = vmul.f32 %v6302_v41, %v12099_v42  ;;  %v6206_v56 = vmul.f32 %v6190_v30, %v12793_v5  ;;  %v6318_v42 = vmul.f32 %v12286_v38, %v6317_v40  ;;  %vm6319_vm6 = vweird.f32 %v12244_v4 }
 0xf42   : > { %v6337_v25 = vsub.f32 1.5, %v6336_v3  ;;  %v6324_v37 = vmul.f32 %v8625_v0, %v12284_v60  ;;  %v6443_v17 = vadd.f32 %v6442_v33, %v6428_v21  ;;  %v6391_v10 = vmul.f32 %v6312_v36, %v12086_v26  ;;  %vm12351_vm7 = vmor %vm6319_vm6, %vm6320_vm5 }
 0xf43   : > { %v6410_v14 = vmul.f32 %v12192_v9, %v6390_v20  ;;  %8628 = vrsqrt.f32 %v12338_v53  ;;  %v12356_v49 = vadd.f32 1e-05, %v6204_v43  ;;  %v6322_v4 = vsel %vm12351_vm7, %v12286_v38, %v6318_v42 }
 0xf44   : > { %v6325_v47 = vmul.f32 %v8625_v0, %v6324_v37  ;;  %v12361_v11 = vadd.f32 1e-05, %v6206_v56  ;;  %v6429_v26 = vadd.f32 %v12210_v51, %v6409_v16  ;;  %vm6339_vm8 = vweird.f32 %v12247_v55 }
 0xf45   : > { %v8627_v62 = vpop.eup %8626  ;;  %v6430_v57 = vadd.f32 %v12210_v51, %v6410_v14  ;;  %8630 = vrsqrt.f32 %v12356_v49  ;;  %v6338_v18 = vmul.f32 %v12305_v2, %v6337_v25  ;;  %vm6340_vm9 = vweird.f32 %v12305_v2 }
 0xf46   : > { %v6326_v31 = vmul.f32 0.5, %v6325_v47  ;;  %v6344_v8 = vmul.f32 %v8627_v62, %v12328_v15  ;;  %v6444_v38 = vadd.f32 %v6443_v17, %v6429_v26  ;;  %v6411_v54 = vmul.f32 %v12192_v9, %v6391_v10  ;;  %vm12375_vm11 = vmor %vm6339_vm8, %vm6340_vm9 }
 0xf47   : > { %v6392_v46 = vmul.f32 %v6322_v4, %v12107_v59  ;;  %8632 = vrsqrt.f32 %v12361_v11  ;;  %vm6330_vm10 = vweird.f32 %v8625_v0  ;;  %vm6329_vm12 = vweird.f32 %v12284_v60 }
 0xf48   : > { %v6327_v23 = vsub.f32 1.5, %v6326_v31  ;;  %v6345_v34 = vmul.f32 %v8627_v62, %v6344_v8  ;;  %v6445_v7 = vadd.f32 %v6444_v38, %v6430_v57  ;;  %v6342_v32 = vsel %vm12375_vm11, %v12305_v2, %v6338_v18  ;;  %vm6331_vm13 = vmor %vm6329_vm12, %vm6330_vm10 }
 0xf49   : > { %v8629_v44 = vpop.eup %8628  ;;  %v6431_v50 = vadd.f32 %v12210_v51, %v6411_v54  ;;  %v6412_v19 = vmul.f32 %v12192_v9, %v6392_v46  ;;  %vm6350_vm14 = vweird.f32 %v8627_v62  ;;  %v6394_v2 = vmul.f32 %v6342_v32, %v12104_v12 }
 0xf4a   : > { %v6328_v59 = vmul.f32 %v8625_v0, %v6327_v23  ;;  %v6346_v52 = vmul.f32 0.5, %v6345_v34  ;;  %v6364_v61 = vmul.f32 %v8629_v44, %v12338_v53  ;;  %vm6349_vm15 = vweird.f32 %v12328_v15 }
 0xf4b   : > { %v8631_v63 = vpop.eup %8630  ;;  %v6446_v58 = vadd.f32 %v6445_v7, %v6431_v50  ;;  %v6432_v33 = vadd.f32 %v12210_v51, %v6412_v19  ;;  %vm6351_vm0 = vmor %vm6349_vm15, %vm6350_vm14  ;;  %vm6369_vm1 = vweird.f32 %v12338_v53  ;;  %vm6370_vm2 = vweird.f32 %v8629_v44  ;;  %v6467_v50 = vld [vmem:[#allocation3] sm:$0x1] }
 0xf4c   : > { %v6332_v55 = vsel %vm6331_vm13, %v8625_v0, %v6328_v59  ;;  %v6347_v1 = vsub.f32 1.5, %v6346_v52  ;;  %v6365_v27 = vmul.f32 %v8629_v44, %v6364_v61  ;;  %v6354_v60 = vmul.f32 %v8631_v63, %v12356_v49  ;;  %vm6371_vm4 = vmor %vm6369_vm1, %vm6370_vm2  ;;  %v6461_v52 = vld [vmem:[#allocation18] sm:$0x1] }
 0xf4d   : > { %v8633_v24 = vpop.eup %8632  ;;  %v6393_v36 = vmul.f32 %v6332_v55, %v12117_v48  ;;  %v6447_v43 = vadd.f32 %v6446_v58, %v6432_v33  ;;  %v6414_v15 = vmul.f32 %v12192_v9, %v6394_v2  ;;  %vm6360_vm3 = vweird.f32 %v8631_v63 }
 0xf4e   : > { %v6348_v41 = vmul.f32 %v8627_v62, %v6347_v1  ;;  %v6366_v6 = vmul.f32 0.5, %v6365_v27  ;;  %v6355_v22 = vmul.f32 %v8631_v63, %v6354_v60  ;;  %v6374_v30 = vmul.f32 %v8633_v24, %v12361_v11 }
 0xf4f   : > { %v6413_v20 = vmul.f32 %v12192_v9, %v6393_v36  ;;  %vm6359_vm5 = vweird.f32 %v12356_v49  ;;  %vm6380_vm6 = vweird.f32 %v8633_v24  ;;  %v6434_v10 = vadd.f32 %v12210_v51, %v6414_v15 }
 0xf50   : > { %v6352_v40 = vsel %vm6351_vm0, %v8627_v62, %v6348_v41  ;;  %v6367_v12 = vsub.f32 1.5, %v6366_v6  ;;  %v6356_v3 = vmul.f32 0.5, %v6355_v22  ;;  %v6375_v48 = vmul.f32 %v8633_v24, %v6374_v30  ;;  %vm6361_vm7 = vmor %vm6359_vm5, %vm6360_vm3 }
 0xf51   : > { %v6433_v0 = vadd.f32 %v12210_v51, %v6413_v20  ;;  %v6395_v21 = vmul.f32 %v6352_v40, %v12125_v29  ;;  %vm6379_vm8 = vweird.f32 %v12361_v11  ;;  %vm6463_vm10 = vcmask 1040384  }
 0xf52   : > { %v6368_v16 = vmul.f32 %v8629_v44, %v6367_v12  ;;  %v6357_v14 = vsub.f32 1.5, %v6356_v3  ;;  %v6376_v56 = vmul.f32 0.5, %v6375_v48  ;;  %vm6381_vm9 = vmor %vm6379_vm8, %vm6380_vm6 }
 0xf53   : > { %v6448_v42 = vadd.f32 %v6447_v43, %v6433_v0  ;;  %v6415_v45 = vmul.f32 %v12192_v9, %v6395_v21 }
 0xf54   : > { %v6372_v25 = vsel %vm6371_vm4, %v8629_v44, %v6368_v16  ;;  %v6358_v37 = vmul.f32 %v8631_v63, %v6357_v14  ;;  %v6377_v17 = vsub.f32 1.5, %v6376_v56 }
 0xf55   : > { %v6397_v29 = vmul.f32 %v6372_v25, %v12122_v39  ;;  %v6449_v62 = vadd.f32 %v6448_v42, %v6434_v10  ;;  %v6435_v26 = vadd.f32 %v12210_v51, %v6415_v45 }
 0xf56   : > { %v6362_v4 = vsel %vm6361_vm7, %v8631_v63, %v6358_v37  ;;  %v6378_v47 = vmul.f32 %v8633_v24, %v6377_v17 }
 0xf57   : > { %v6396_v53 = vmul.f32 %v6362_v4, %v12135_v35  ;;  %v6417_v57 = vmul.f32 %v12192_v9, %v6397_v29  ;;  %v6450_v8 = vadd.f32 %v6449_v62, %v6435_v26 }
 0xf58   : > { %v6382_v49 = vsel %vm6381_vm9, %v8633_v24, %v6378_v47 }
 0xf59   : > { %v6416_v18 = vmul.f32 %v12192_v9, %v6396_v53  ;;  %v6398_v31 = vmul.f32 %v6382_v49, %v12139_v13  ;;  %v6437_v11 = vadd.f32 %v12210_v51, %v6417_v57 }
 0xf5b   : > { %v6436_v39 = vadd.f32 %v12210_v51, %v6416_v18  ;;  %v6418_v38 = vmul.f32 %v12192_v9, %v6398_v31  ;;  %v9057_v9 = vmov 0  }
 0xf5c   : > { %8599 = vset.pattern.permute.xlu0 %v9057_v9 }
 0xf5d   : > { %v6451_v54 = vadd.f32 %v6450_v8, %v6436_v39  ;;  %v6438_v35 = vadd.f32 %v12210_v51, %v6418_v38 }
 0xf5f   : > { %v6452_v46 = vadd.f32 %v6451_v54, %v6437_v11 }
 0xf61   : > { %v6453_v23 = vadd.f32 %v6452_v46, %v6438_v35 }
 0xf63   : > { %v6454_v34 = vrot.slane %v6453_v23, 4 }
 0xf65   : > { %v6455_v44 = vadd.f32 %v6454_v34, %v6453_v23 }
 0xf67   : > { %v6456_v7 = vrot.slane %v6455_v44, 2 }
 0xf69   : > { %v6457_v28 = vadd.f32 %v6456_v7, %v6455_v44 }
 0xf6b   : > { %v6458_v32 = vrot.slane %v6457_v28, 1 }
 0xf6d   : > { %v6459_v59 = vadd.f32 %v6458_v32, %v6457_v28 }
 0xf6f   : > { %v6460_v13 = vmul.f32 %v6459_v59, %v12793_v5 }
 0xf71   : > { %v6462_v61 = vmul.f32 %v6461_v52, %v6460_v13 }
 0xf73   : > { %v6464_v63 = vsel %vm6463_vm10, %v6462_v61, 0.0 }
 0xf74   : > { %6465 = vadd.xlane.f32.xlu2 %v6464_v63 }
 0xfe7   : > { %v6466_v19 = vpop.xlane.xlu2 %6465 }
 0xfe8   : > { %v6468_v51 = vadd.f32 %v6467_v50, %v6466_v19 }
 0xfea   : > { %v7161_v55 = vmul.f32 -1.442695, %v6468_v51 }
 0xfec   : > { %8634 = vpow2.f32 %v7161_v55 }
 0xff2   : > { %v8635_v1 = vpop.eup %8634 }
 0xff3   : > { %v6472_v27 = vadd.f32 1.0, %v8635_v1 }
 0xff5   : > { %8636 = vrcp.f32 %v6472_v27  ;;  %v6484_v2 = vand.u32 2147483648, %v6472_v27  ;;  %v6482_v36 = vand.u32 2147483647, %v6472_v27  ;;  %vm6478_vm12 = vweird.f32 %v6472_v27 }
 0xff7   : > { %v6485_v6 = vor.u32 1.1754944e-38, %v6484_v2  ;;  %vm6483_vm14 = vcmp.eq.f32.partialorder %v6482_v36, 8.507059e+37 }
 0xffb   : > { %v8637_v60 = vpop.eup %8636 }
 0xffc   : > { %v6474_v24 = vmul.f32 %v8637_v60, %v6472_v27  ;;  %vm6479_vm11 = vweird.f32 %v8637_v60 }
 0xffd   : > { %vm6480_vm13 = vmor %vm6478_vm12, %vm6479_vm11 }
 0xffe   : > { %v6475_v58 = vsub.f32 1.0, %v6474_v24 }
0x1000   : > { %v6476_v5 = vmul.f32 %v8637_v60, %v6475_v58 }
0x1002   : > { %v6477_v41 = vadd.f32 %v8637_v60, %v6476_v5 }
0x1004   : > { %v6481_v22 = vsel %vm6480_vm13, %v8637_v60, %v6477_v41 }
0x1005   : > { %v6486_v30 = vsel %vm6483_vm14, %v6485_v6, %v6481_v22 }
0x1006   : > { %6490 = vperm.xlu0 %8599, %v6486_v30  }
0x1078   : > { %v6491_v33 = vpop.permute.xlu0 %6490 }
0x1079   : > { %v6493_v20 = vmul.f32 %v6491_v33, %v6460_v13 }
0x107b   : > { %6494 = vst [vmem:[%s9460_s23] sm:$0x1] %v6493_v20 }
0x107c PF: > { %s12809_s17 = sld [smem:[#allocation31_spill]]  ;;  %s6506_s11 = sshll.u32 %s9460_s23, 4  ;;  %s6507_s11 = int_to_ptr.vmem [resolvable:$true] %s6506_s11 }
0x107d   : > { %s12810_s5 = sld [smem:[#allocation92_spill]]  ;;  %s12812_s18 = sand.u32 1, %s9010_s24  }
0x107e   : > { %s6496_s28 = scalar_lea.sflag [#allocation6], %s12812_s18 }
0x1083   : > { %s6504_s1 = scalar_lea.hbm %s12810_s5, %s12809_s17  ;;  %s8928_s27 = scalar_lea.hbm %s12810_s5, 2 }
0x1084   : > { %s6508_s15 = sshll.u32 %s6504_s1, 4  ;;  %s6509_s15 = int_to_ptr.hbm [resolvable:$true] %s6508_s15 }
0x1085   : > { %s8922_s25 = sshra.s32 %s6509_s15, 4  ;;  %s8923_s25 = int_to_ptr.hbm [resolvable:$true] %s8922_s25 }
0x1086   : > { %s8924_s19 = scalar_lea.hbm %s8923_s25, 1  ;;  %p8929_p5 = scmp.lt.s32.totalorder %s8923_s25, %s12810_s5 }
0x1087   : > { %p8925_p0 = scmp.ne.s32.totalorder %s8923_s25, %s8924_s19  ;;  %p8930_p6 = scmp.lt.s32.totalorder %s8928_s27, %s8924_s19 }
0x1089   : > { %p8926_p1 = pnand %p8925_p0, %p9260_p12  ;;  %p8931_p9 = por %p8930_p6, %p8929_p5 }
0x108b   : > { %p8927_p2 = pneg %p8926_p1 }
0x108d   : > { %p8932_p10 = pnand %p8931_p9, %p8927_p2 }
0x108f   : > { %8935 = shalt.err (!%p8932_p10)
}
0x1090   : > { %7299 = dma.vmem_to_hbm [thread:$0]  (%p9260_p12), %s6507_s11, 16, %s6509_s15, %s6496_s28  }
0x1091 PF: > { %s12813_s23 = sld [smem:[#allocation34_spill]] }
0x1092   : > { %s12814_s26 = sld [smem:[#allocation26_spill]] }
0x1097   : > { %p7339_p11 = scmp.ge.s32.totalorder %s12813_s23, 2 }
0x1098   : > { %s6520_s8 = sand.u32 1, %s12814_s26  }
0x1099   : > { %p7331_p3 = pnand %p7339_p11, %p9268_p4  ;;  %s6521_s6 = scalar_lea.sflag [#allocation6], %s6520_s8 }
0x109b   : > { %p7332_p13 = pneg %p7331_p3 }
0x109d   : > { %9001 = dma.done.wait (%p7332_p13), %s6521_s6, 16  }
0x109e   : > { %9003 = vsyncadd (%p7332_p13), %s6521_s6, 4294967280  ;;  %s48_s29 = sadd.s32 1, %s12813_s23   ;;  %s12816_s10 = sld [smem:[#allocation27_spill]] }
0x109f   : > { %p45_p7 = scmp.ge.s32.totalorder %s48_s29, 6   ;;  %s12817_s2 = sld [smem:[#allocation38_spill]] }
0x10a0   : > { %s12818_s25 = sld [smem:[#allocation28_spill]]  ;;  %s12825_s23 = smov %s9010_s24 }
0x10a1   : > { %s12819_s19 = sld [smem:[#allocation29_spill]] }
0x10a2   : > { %s12820_s3 = sld [smem:[#allocation37_spill]]  ;;  %47 = sbr.rel (!%p45_p7) target bundleno = 37 (0x25), region = 254 }
0x10a3   : > { %s12821_s26 = sld [smem:[#allocation32_spill]] }
0x10a4   : > { %s12822_s27 = sld [smem:[#allocation33_spill]]  ;;  %s12826_s24 = smov %s12816_s10 }
0x10a5   : > { %s12823_s28 = sld [smem:[#allocation35_spill]] }
0x10a6   : > { %s12824_s4 = sld [smem:[#allocation36_spill]] }
0x10a7   :  { %6526 = vsyncpa [#allocation5], 1 }
0x10a8   :  { %6528 = vsyncpa [#allocation5 + $0x1], 1 }
0x10a9   :  { %6529 = vsyncpa [#allocation8], 1 }
0x10aa   :  { %6531 = vsyncpa [#allocation8 + $0x1], 1 }
0x10ab   :  { %6532 = vsyncpa [#allocation11], 1 }
0x10ac   :  { %6534 = vsyncpa [#allocation11 + $0x1], 1 }
0x10ad   :  { %6535 = vsyncpa [#allocation14], 1 }
0x10ae   :  { %6537 = vsyncpa [#allocation14 + $0x1], 1 }
0x10af   :  { %6538 = vsyncpa [#allocation17], 1 }
0x10b0   :  { %6539 = vsyncpa [#allocation6], 1 }
0x10b1   :  { %6541 = vsyncpa [#allocation6 + $0x1], 1 }

</bundles_post_ra>
